<compile_context>
chip_gen: v5e
topology: v5e:2x2
jax: 0.10.0
libtpu: 0.0.40
codegen_flags: <defaults>
</compile_context>

<pallas_src>
import functools

import jax
import jax.numpy as jnp
from jax import lax
from jax.experimental import pallas as pl
from jax.experimental.pallas import tpu as pltpu


def _convbn_kernel(x_ref, w_ref, scale_ref, bias_ref, o_ref, l_ref, *,
                   rows, kh_taps, kw_taps, cq, wo):
    """One (image n, Cout-tile co, row-tile h) grid step.

    x_ref:     (Hq, Cq, Wq)   whole space-to-depth image, bf16 (resident per n)
    w_ref:     (CT, K)        packed conv weights, bf16 (unscaled)
    scale_ref: (CT, 1)        BN scale, f32
    bias_ref:  (CT, 1)        BN bias,  f32
    o_ref:     (CT, TR, Wo)   NCHW output tile
    l_ref:     (K, Wo)        VMEM scratch: packed-K (im2col) LHS for one row
    """
    h0 = pl.program_id(2) * rows                    # absolute first output row
    scale = scale_ref[...]                          # (CT, 1) f32
    bias = bias_ref[...]

    # Static unroll: TR <= 8 rows, each tap temporary dies at its l_ref store,
    # and there is no accumulator, so vreg pressure stays tiny.
    for r in range(rows):
        # Stage the packed-K LHS for output row (h0 + r): contiguous slices only.
        for kh in range(kh_taps):
            rowv = x_ref[h0 + r + kh]               # (Cq, Wq) -- leading-dim dyn idx
            for kw in range(kw_taps):
                k0 = (kh * kw_taps + kw) * cq       # static, 8-aligned
                l_ref[k0:k0 + cq, :] = rowv[:, kw:kw + wo]
        # Single full-K MXU dot: (CT, K) @ (K, Wo) -> (CT, Wo) in f32.
        acc = jnp.dot(w_ref[...], l_ref[...],
                      preferred_element_type=jnp.float32)
        y = acc * scale + bias                      # BN affine in f32 (v5e-safe)
        o_ref[:, r, :] = jnp.maximum(y, 0.0).astype(o_ref.dtype)


def conv_bn_relu(x_nchw, weight, gamma, beta, running_mean, running_var,
                 *, stride, eps=1e-5, mxu_dtype=jnp.bfloat16, out_dtype=None):
    """Fused Conv2d(k=7, pad=3, bias=False) + BatchNorm2d(eval) + ReLU, NCHW in/out."""
    N, Cin, H, W = x_nchw.shape
    Cout, Cin_w, KH, KW = weight.shape
    assert Cin == Cin_w and KH == 7 and KW == 7
    s = int(stride)
    pad = 3
    out_dtype = x_nchw.dtype if out_dtype is None else out_dtype

    Ho = (H + 2 * pad - KH) // s + 1
    Wo = (W + 2 * pad - KW) // s + 1
    KHp = -(-KH // s)                     # taps after stride folding (ceil)
    KWp = -(-KW // s)

    # Row tile: 8 output rows per grid step (sublane-aligned); pad Ho if needed.
    TR = 8 if Ho >= 8 else Ho
    Ho_pad = ((Ho + TR - 1) // TR) * TR
    Hq = Ho_pad + KHp - 1                 # space-to-depth rows needed (incl. halo)
    Wq = Wo + KWp - 1

    s2 = s * s
    Cq = ((s2 * Cin + 7) // 8) * 8        # packed channels, sublane-aligned
    Kp = KHp * KWp * Cq                   # packed contraction length (e.g. 256/392)

    # Cout sits on the matmul M (sublane) axis -> only pad to a multiple of 8.
    Cpad = ((Cout + 7) // 8) * 8
    if Cpad > 128:
        Cpad = ((Cout + 127) // 128) * 128
        CT = 128
    else:
        CT = Cpad

    # ---- input prep: pad + space-to-depth (one small-tensor XLA pass) --------
    # Layout (N, Hq, Cq, Wq): W on lanes (lane-dense), channels on sublanes.
    Hp, Wp = s * Hq, s * Wq
    pad_b, pad_r = Hp - pad - H, Wp - pad - W
    assert pad_b >= 0 and pad_r >= 0
    xp = jnp.pad(x_nchw, ((0, 0), (0, 0), (pad, pad_b), (pad, pad_r)))
    xr = xp.reshape(N, Cin, Hq, s, Wq, s)
    xt = jnp.transpose(xr, (0, 2, 3, 5, 1, 4))            # (N, Hq, ph, pw, Cin, Wq)
    xt = xt.reshape(N, Hq, s2 * Cin, Wq)
    xg = jnp.pad(xt, ((0, 0), (0, 0), (0, Cq - s2 * Cin), (0, 0))).astype(mxu_dtype)

    # ---- weight prep: packed (Cout, K) matrix matching the kernel's LHS ------
    wsp = jnp.pad(weight, ((0, 0), (0, 0), (0, KHp * s - KH), (0, KWp * s - KW)))
    wr = wsp.reshape(Cout, Cin, KHp, s, KWp, s)
    wt = jnp.transpose(wr, (0, 2, 4, 3, 5, 1))            # (Cout, KH', KW', ph, pw, Cin)
    wt = wt.reshape(Cout, KHp, KWp, s2 * Cin)
    wt = jnp.pad(wt, ((0, Cpad - Cout), (0, 0), (0, 0), (0, Cq - s2 * Cin)))
    w_mat = wt.reshape(Cpad, Kp).astype(mxu_dtype)        # bf16, UNscaled

    # ---- BN (eval mode) affine, applied in the f32 epilogue ------------------
    inv_std = lax.rsqrt(running_var.astype(jnp.float32) + eps)
    scale = gamma.astype(jnp.float32) * inv_std
    bias = beta.astype(jnp.float32) - running_mean.astype(jnp.float32) * scale
    scale_p = jnp.pad(scale, (0, Cpad - Cout)).reshape(Cpad, 1)
    bias_p = jnp.pad(bias, (0, Cpad - Cout)).reshape(Cpad, 1)

    kernel = functools.partial(_convbn_kernel, rows=TR, kh_taps=KHp,
                               kw_taps=KWp, cq=Cq, wo=Wo)

    out = pl.pallas_call(
        kernel,
        out_shape=jax.ShapeDtypeStruct((N, Cpad, Ho_pad, Wo), out_dtype),
        grid_spec=pltpu.PrefetchScalarGridSpec(
            num_scalar_prefetch=0,
            grid=(N, Cpad // CT, Ho_pad // TR),
            in_specs=[
                # Whole (small) image stays resident across co/h steps.
                pl.BlockSpec((None, Hq, Cq, Wq), lambda n, co, h: (n, 0, 0, 0)),
                pl.BlockSpec((CT, Kp), lambda n, co, h: (co, 0)),
                pl.BlockSpec((CT, 1), lambda n, co, h: (co, 0)),
                pl.BlockSpec((CT, 1), lambda n, co, h: (co, 0)),
            ],
            # Output is produced directly in NCHW.
            out_specs=pl.BlockSpec((None, CT, TR, Wo),
                                   lambda n, co, h: (n, co, h, 0)),
            scratch_shapes=[pltpu.VMEM((Kp, Wo), mxu_dtype)],
        ),
        # No reduction grid axis (K is packed in-kernel) -> everything parallel.
        compiler_params=pltpu.CompilerParams(
            dimension_semantics=("parallel", "parallel", "parallel")),
        # NOTE: per-step VMEM is <1 MiB here, so no vmem_limit_bytes override is
        # needed on any generation; allow_input_fusion could further fuse the
        # (small) space-to-depth prep into the call if it ever shows up.
    )(xg, w_mat, scale_p, bias_p)

    # Identity slice when Cout/Ho need no padding (XLA elides it); never a transpose.
    return out[:, :Cout, :Ho, :]


def _reference(x, weight, gamma, beta, mean, var, stride, eps=1e-5):
    y = lax.conv_general_dilated(
        x, weight, window_strides=(stride, stride),
        padding=((3, 3), (3, 3)),
        dimension_numbers=("NCHW", "OIHW", "NCHW"))
    inv_std = 1.0 / jnp.sqrt(var + eps)
    s = (gamma * inv_std).reshape(1, -1, 1, 1)
    b = (beta - mean * gamma * inv_std).reshape(1, -1, 1, 1)
    return jnp.maximum(y * s + b, 0.0)


if __name__ == "__main__":
    key = jax.random.PRNGKey(0)
    k_x, k_w, k_g, k_b, k_m, k_v = jax.random.split(key, 6)

    N, Cin, H, W = 2, 4, 16, 16
    Cout = 8

    x = jax.random.normal(k_x, (N, Cin, H, W), dtype=jnp.float32)
    weight = 0.1 * jax.random.normal(k_w, (Cout, Cin, 7, 7), dtype=jnp.float32)
    gamma = jax.random.uniform(k_g, (Cout,), minval=0.5, maxval=1.5,
                               dtype=jnp.float32)
    beta = 0.1 * jax.random.normal(k_b, (Cout,), dtype=jnp.float32)
    running_mean = 0.1 * jax.random.normal(k_m, (Cout,), dtype=jnp.float32)
    running_var = jax.random.uniform(k_v, (Cout,), minval=0.5, maxval=1.5,
                                     dtype=jnp.float32)

    for stride in (1, 2):
        out = conv_bn_relu(x, weight, gamma, beta, running_mean, running_var,
                           stride=stride)
        out = jax.block_until_ready(out)
        ref = _reference(x, weight, gamma, beta, running_mean, running_var,
                         stride)
        assert out.shape == ref.shape, (out.shape, ref.shape)
        err = float(jnp.max(jnp.abs(out - ref)))
        # bf16 MXU operands (f32 accumulation, f32 BN/ReLU epilogue) vs pure-f32
        # reference; BN scale is applied in f32 so weights are not scale-quantized.
        assert jnp.allclose(out, ref, rtol=3e-2, atol=3e-2), (
            f"mismatch at stride={stride}: max err {err}")

    print("KERNEL_OK")
</pallas_src>

<mosaic_0001>
module attributes {stable_mosaic.version = 11 : i64} {
  func.func @_convbn_kernel(%arg0: i32, %arg1: i32, %arg2: i32, %arg3: memref<1x22x8x22xbf16, #tpu.memory_space<vmem>>, %arg4: memref<8x392xbf16, #tpu.memory_space<vmem>>, %arg5: memref<8x1xf32, #tpu.memory_space<vmem>>, %arg6: memref<8x1xf32, #tpu.memory_space<vmem>>, %arg7: memref<1x8x8x16xf32, #tpu.memory_space<vmem>>, %arg8: memref<392x16xbf16, #tpu.memory_space<vmem>>) attributes {dimension_semantics = [#tpu.dimension_semantics<parallel>, #tpu.dimension_semantics<parallel>, #tpu.dimension_semantics<parallel>], iteration_bounds = array<i64: 2, 1, 2>, scalar_prefetch = 0 : i64, scratch_operands = 1 : i64, tpu.core_type = #tpu.core_type<tc>, window_params = [{transform_indices = @transform_0, window_bounds = array<i64: 1, 22, 8, 22>}, {transform_indices = @transform_1, window_bounds = array<i64: 8, 392>}, {transform_indices = @transform_2, window_bounds = array<i64: 8, 1>}, {transform_indices = @transform_3, window_bounds = array<i64: 8, 1>}, {transform_indices = @transform_4, window_bounds = array<i64: 1, 8, 8, 16>}]} {
    %c8_i32 = arith.constant 8 : i32
    %0 = arith.muli %arg2, %c8_i32 : i32
    %c0 = arith.constant 0 : index
    %c0_0 = arith.constant 0 : index
    %1 = vector.load %arg5[%c0, %c0_0] : memref<8x1xf32, #tpu.memory_space<vmem>>, vector<8x1xf32>
    %c0_1 = arith.constant 0 : index
    %c0_2 = arith.constant 0 : index
    %2 = vector.load %arg6[%c0_1, %c0_2] : memref<8x1xf32, #tpu.memory_space<vmem>>, vector<8x1xf32>
    %c0_i32 = arith.constant 0 : i32
    %3 = arith.addi %0, %c0_i32 : i32
    %c0_i32_3 = arith.constant 0 : i32
    %4 = arith.addi %3, %c0_i32_3 : i32
    %c0_4 = arith.constant 0 : index
    %5 = arith.index_cast %4 : i32 to index
    %c0_5 = arith.constant 0 : index
    %c0_6 = arith.constant 0 : index
    %6 = vector.load %arg3[%c0_4, %5, %c0_5, %c0_6] : memref<1x22x8x22xbf16, #tpu.memory_space<vmem>>, vector<1x1x8x22xbf16>
    %7 = vector.shape_cast %6 : vector<1x1x8x22xbf16> to vector<8x22xbf16>
    %8 = vector.extract_strided_slice %7 {offsets = [0, 0], sizes = [8, 16], strides = [1, 1]} : vector<8x22xbf16> to vector<8x16xbf16>
    %c0_7 = arith.constant 0 : index
    %c0_8 = arith.constant 0 : index
    %9 = vector.load %arg8[%c0_7, %c0_8] : memref<392x16xbf16, #tpu.memory_space<vmem>>, vector<8x16xbf16>
    tpu.vector_store %arg8[%c0_7, %c0_8], %8 {strides = array<i32>} : memref<392x16xbf16, #tpu.memory_space<vmem>>, vector<8x16xbf16>,
    %10 = vector.extract_strided_slice %7 {offsets = [0, 1], sizes = [8, 16], strides = [1, 1]} : vector<8x22xbf16> to vector<8x16xbf16>
    %c8 = arith.constant 8 : index
    %c0_9 = arith.constant 0 : index
    %11 = vector.load %arg8[%c8, %c0_9] : memref<392x16xbf16, #tpu.memory_space<vmem>>, vector<8x16xbf16>
    tpu.vector_store %arg8[%c8, %c0_9], %10 {strides = array<i32>} : memref<392x16xbf16, #tpu.memory_space<vmem>>, vector<8x16xbf16>,
    %12 = vector.extract_strided_slice %7 {offsets = [0, 2], sizes = [8, 16], strides = [1, 1]} : vector<8x22xbf16> to vector<8x16xbf16>
    %c16 = arith.constant 16 : index
    %c0_10 = arith.constant 0 : index
    %13 = vector.load %arg8[%c16, %c0_10] : memref<392x16xbf16, #tpu.memory_space<vmem>>, vector<8x16xbf16>
    tpu.vector_store %arg8[%c16, %c0_10], %12 {strides = array<i32>} : memref<392x16xbf16, #tpu.memory_space<vmem>>, vector<8x16xbf16>,
    %14 = vector.extract_strided_slice %7 {offsets = [0, 3], sizes = [8, 16], strides = [1, 1]} : vector<8x22xbf16> to vector<8x16xbf16>
    %c24 = arith.constant 24 : index
    %c0_11 = arith.constant 0 : index
    %15 = vector.load %arg8[%c24, %c0_11] : memref<392x16xbf16, #tpu.memory_space<vmem>>, vector<8x16xbf16>
    tpu.vector_store %arg8[%c24, %c0_11], %14 {strides = array<i32>} : memref<392x16xbf16, #tpu.memory_space<vmem>>, vector<8x16xbf16>,
    %16 = vector.extract_strided_slice %7 {offsets = [0, 4], sizes = [8, 16], strides = [1, 1]} : vector<8x22xbf16> to vector<8x16xbf16>
    %c32 = arith.constant 32 : index
    %c0_12 = arith.constant 0 : index
    %17 = vector.load %arg8[%c32, %c0_12] : memref<392x16xbf16, #tpu.memory_space<vmem>>, vector<8x16xbf16>
    tpu.vector_store %arg8[%c32, %c0_12], %16 {strides = array<i32>} : memref<392x16xbf16, #tpu.memory_space<vmem>>, vector<8x16xbf16>,
    %18 = vector.extract_strided_slice %7 {offsets = [0, 5], sizes = [8, 16], strides = [1, 1]} : vector<8x22xbf16> to vector<8x16xbf16>
    %c40 = arith.constant 40 : index
    %c0_13 = arith.constant 0 : index
    %19 = vector.load %arg8[%c40, %c0_13] : memref<392x16xbf16, #tpu.memory_space<vmem>>, vector<8x16xbf16>
    tpu.vector_store %arg8[%c40, %c0_13], %18 {strides = array<i32>} : memref<392x16xbf16, #tpu.memory_space<vmem>>, vector<8x16xbf16>,
    %20 = vector.extract_strided_slice %7 {offsets = [0, 6], sizes = [8, 16], strides = [1, 1]} : vector<8x22xbf16> to vector<8x16xbf16>
    %c48 = arith.constant 48 : index
    %c0_14 = arith.constant 0 : index
    %21 = vector.load %arg8[%c48, %c0_14] : memref<392x16xbf16, #tpu.memory_space<vmem>>, vector<8x16xbf16>
    tpu.vector_store %arg8[%c48, %c0_14], %20 {strides = array<i32>} : memref<392x16xbf16, #tpu.memory_space<vmem>>, vector<8x16xbf16>,
    %c0_i32_15 = arith.constant 0 : i32
    %22 = arith.addi %0, %c0_i32_15 : i32
    %c1_i32 = arith.constant 1 : i32
    %23 = arith.addi %22, %c1_i32 : i32
    %c0_16 = arith.constant 0 : index
    %24 = arith.index_cast %23 : i32 to index
    %c0_17 = arith.constant 0 : index
    %c0_18 = arith.constant 0 : index
    %25 = vector.load %arg3[%c0_16, %24, %c0_17, %c0_18] : memref<1x22x8x22xbf16, #tpu.memory_space<vmem>>, vector<1x1x8x22xbf16>
    %26 = vector.shape_cast %25 : vector<1x1x8x22xbf16> to vector<8x22xbf16>
    %27 = vector.extract_strided_slice %26 {offsets = [0, 0], sizes = [8, 16], strides = [1, 1]} : vector<8x22xbf16> to vector<8x16xbf16>
    %c56 = arith.constant 56 : index
    %c0_19 = arith.constant 0 : index
    %28 = vector.load %arg8[%c56, %c0_19] : memref<392x16xbf16, #tpu.memory_space<vmem>>, vector<8x16xbf16>
    tpu.vector_store %arg8[%c56, %c0_19], %27 {strides = array<i32>} : memref<392x16xbf16, #tpu.memory_space<vmem>>, vector<8x16xbf16>,
    %29 = vector.extract_strided_slice %26 {offsets = [0, 1], sizes = [8, 16], strides = [1, 1]} : vector<8x22xbf16> to vector<8x16xbf16>
    %c64 = arith.constant 64 : index
    %c0_20 = arith.constant 0 : index
    %30 = vector.load %arg8[%c64, %c0_20] : memref<392x16xbf16, #tpu.memory_space<vmem>>, vector<8x16xbf16>
    tpu.vector_store %arg8[%c64, %c0_20], %29 {strides = array<i32>} : memref<392x16xbf16, #tpu.memory_space<vmem>>, vector<8x16xbf16>,
    %31 = vector.extract_strided_slice %26 {offsets = [0, 2], sizes = [8, 16], strides = [1, 1]} : vector<8x22xbf16> to vector<8x16xbf16>
    %c72 = arith.constant 72 : index
    %c0_21 = arith.constant 0 : index
    %32 = vector.load %arg8[%c72, %c0_21] : memref<392x16xbf16, #tpu.memory_space<vmem>>, vector<8x16xbf16>
    tpu.vector_store %arg8[%c72, %c0_21], %31 {strides = array<i32>} : memref<392x16xbf16, #tpu.memory_space<vmem>>, vector<8x16xbf16>,
    %33 = vector.extract_strided_slice %26 {offsets = [0, 3], sizes = [8, 16], strides = [1, 1]} : vector<8x22xbf16> to vector<8x16xbf16>
    %c80 = arith.constant 80 : index
    %c0_22 = arith.constant 0 : index
    %34 = vector.load %arg8[%c80, %c0_22] : memref<392x16xbf16, #tpu.memory_space<vmem>>, vector<8x16xbf16>
    tpu.vector_store %arg8[%c80, %c0_22], %33 {strides = array<i32>} : memref<392x16xbf16, #tpu.memory_space<vmem>>, vector<8x16xbf16>,
    %35 = vector.extract_strided_slice %26 {offsets = [0, 4], sizes = [8, 16], strides = [1, 1]} : vector<8x22xbf16> to vector<8x16xbf16>
    %c88 = arith.constant 88 : index
    %c0_23 = arith.constant 0 : index
    %36 = vector.load %arg8[%c88, %c0_23] : memref<392x16xbf16, #tpu.memory_space<vmem>>, vector<8x16xbf16>
    tpu.vector_store %arg8[%c88, %c0_23], %35 {strides = array<i32>} : memref<392x16xbf16, #tpu.memory_space<vmem>>, vector<8x16xbf16>,
    %37 = vector.extract_strided_slice %26 {offsets = [0, 5], sizes = [8, 16], strides = [1, 1]} : vector<8x22xbf16> to vector<8x16xbf16>
    %c96 = arith.constant 96 : index
    %c0_24 = arith.constant 0 : index
    %38 = vector.load %arg8[%c96, %c0_24] : memref<392x16xbf16, #tpu.memory_space<vmem>>, vector<8x16xbf16>
    tpu.vector_store %arg8[%c96, %c0_24], %37 {strides = array<i32>} : memref<392x16xbf16, #tpu.memory_space<vmem>>, vector<8x16xbf16>,
    %39 = vector.extract_strided_slice %26 {offsets = [0, 6], sizes = [8, 16], strides = [1, 1]} : vector<8x22xbf16> to vector<8x16xbf16>
    %c104 = arith.constant 104 : index
    %c0_25 = arith.constant 0 : index
    %40 = vector.load %arg8[%c104, %c0_25] : memref<392x16xbf16, #tpu.memory_space<vmem>>, vector<8x16xbf16>
    tpu.vector_store %arg8[%c104, %c0_25], %39 {strides = array<i32>} : memref<392x16xbf16, #tpu.memory_space<vmem>>, vector<8x16xbf16>,
    %c0_i32_26 = arith.constant 0 : i32
    %41 = arith.addi %0, %c0_i32_26 : i32
    %c2_i32 = arith.constant 2 : i32
    %42 = arith.addi %41, %c2_i32 : i32
    %c0_27 = arith.constant 0 : index
    %43 = arith.index_cast %42 : i32 to index
    %c0_28 = arith.constant 0 : index
    %c0_29 = arith.constant 0 : index
    %44 = vector.load %arg3[%c0_27, %43, %c0_28, %c0_29] : memref<1x22x8x22xbf16, #tpu.memory_space<vmem>>, vector<1x1x8x22xbf16>
    %45 = vector.shape_cast %44 : vector<1x1x8x22xbf16> to vector<8x22xbf16>
    %46 = vector.extract_strided_slice %45 {offsets = [0, 0], sizes = [8, 16], strides = [1, 1]} : vector<8x22xbf16> to vector<8x16xbf16>
    %c112 = arith.constant 112 : index
    %c0_30 = arith.constant 0 : index
    %47 = vector.load %arg8[%c112, %c0_30] : memref<392x16xbf16, #tpu.memory_space<vmem>>, vector<8x16xbf16>
    tpu.vector_store %arg8[%c112, %c0_30], %46 {strides = array<i32>} : memref<392x16xbf16, #tpu.memory_space<vmem>>, vector<8x16xbf16>,
    %48 = vector.extract_strided_slice %45 {offsets = [0, 1], sizes = [8, 16], strides = [1, 1]} : vector<8x22xbf16> to vector<8x16xbf16>
    %c120 = arith.constant 120 : index
    %c0_31 = arith.constant 0 : index
    %49 = vector.load %arg8[%c120, %c0_31] : memref<392x16xbf16, #tpu.memory_space<vmem>>, vector<8x16xbf16>
    tpu.vector_store %arg8[%c120, %c0_31], %48 {strides = array<i32>} : memref<392x16xbf16, #tpu.memory_space<vmem>>, vector<8x16xbf16>,
    %50 = vector.extract_strided_slice %45 {offsets = [0, 2], sizes = [8, 16], strides = [1, 1]} : vector<8x22xbf16> to vector<8x16xbf16>
    %c128 = arith.constant 128 : index
    %c0_32 = arith.constant 0 : index
    %51 = vector.load %arg8[%c128, %c0_32] : memref<392x16xbf16, #tpu.memory_space<vmem>>, vector<8x16xbf16>
    tpu.vector_store %arg8[%c128, %c0_32], %50 {strides = array<i32>} : memref<392x16xbf16, #tpu.memory_space<vmem>>, vector<8x16xbf16>,
    %52 = vector.extract_strided_slice %45 {offsets = [0, 3], sizes = [8, 16], strides = [1, 1]} : vector<8x22xbf16> to vector<8x16xbf16>
    %c136 = arith.constant 136 : index
    %c0_33 = arith.constant 0 : index
    %53 = vector.load %arg8[%c136, %c0_33] : memref<392x16xbf16, #tpu.memory_space<vmem>>, vector<8x16xbf16>
    tpu.vector_store %arg8[%c136, %c0_33], %52 {strides = array<i32>} : memref<392x16xbf16, #tpu.memory_space<vmem>>, vector<8x16xbf16>,
    %54 = vector.extract_strided_slice %45 {offsets = [0, 4], sizes = [8, 16], strides = [1, 1]} : vector<8x22xbf16> to vector<8x16xbf16>
    %c144 = arith.constant 144 : index
    %c0_34 = arith.constant 0 : index
    %55 = vector.load %arg8[%c144, %c0_34] : memref<392x16xbf16, #tpu.memory_space<vmem>>, vector<8x16xbf16>
    tpu.vector_store %arg8[%c144, %c0_34], %54 {strides = array<i32>} : memref<392x16xbf16, #tpu.memory_space<vmem>>, vector<8x16xbf16>,
    %56 = vector.extract_strided_slice %45 {offsets = [0, 5], sizes = [8, 16], strides = [1, 1]} : vector<8x22xbf16> to vector<8x16xbf16>
    %c152 = arith.constant 152 : index
    %c0_35 = arith.constant 0 : index
    %57 = vector.load %arg8[%c152, %c0_35] : memref<392x16xbf16, #tpu.memory_space<vmem>>, vector<8x16xbf16>
    tpu.vector_store %arg8[%c152, %c0_35], %56 {strides = array<i32>} : memref<392x16xbf16, #tpu.memory_space<vmem>>, vector<8x16xbf16>,
    %58 = vector.extract_strided_slice %45 {offsets = [0, 6], sizes = [8, 16], strides = [1, 1]} : vector<8x22xbf16> to vector<8x16xbf16>
    %c160 = arith.constant 160 : index
    %c0_36 = arith.constant 0 : index
    %59 = vector.load %arg8[%c160, %c0_36] : memref<392x16xbf16, #tpu.memory_space<vmem>>, vector<8x16xbf16>
    tpu.vector_store %arg8[%c160, %c0_36], %58 {strides = array<i32>} : memref<392x16xbf16, #tpu.memory_space<vmem>>, vector<8x16xbf16>,
    %c0_i32_37 = arith.constant 0 : i32
    %60 = arith.addi %0, %c0_i32_37 : i32
    %c3_i32 = arith.constant 3 : i32
    %61 = arith.addi %60, %c3_i32 : i32
    %c0_38 = arith.constant 0 : index
    %62 = arith.index_cast %61 : i32 to index
    %c0_39 = arith.constant 0 : index
    %c0_40 = arith.constant 0 : index
    %63 = vector.load %arg3[%c0_38, %62, %c0_39, %c0_40] : memref<1x22x8x22xbf16, #tpu.memory_space<vmem>>, vector<1x1x8x22xbf16>
    %64 = vector.shape_cast %63 : vector<1x1x8x22xbf16> to vector<8x22xbf16>
    %65 = vector.extract_strided_slice %64 {offsets = [0, 0], sizes = [8, 16], strides = [1, 1]} : vector<8x22xbf16> to vector<8x16xbf16>
    %c168 = arith.constant 168 : index
    %c0_41 = arith.constant 0 : index
    %66 = vector.load %arg8[%c168, %c0_41] : memref<392x16xbf16, #tpu.memory_space<vmem>>, vector<8x16xbf16>
    tpu.vector_store %arg8[%c168, %c0_41], %65 {strides = array<i32>} : memref<392x16xbf16, #tpu.memory_space<vmem>>, vector<8x16xbf16>,
    %67 = vector.extract_strided_slice %64 {offsets = [0, 1], sizes = [8, 16], strides = [1, 1]} : vector<8x22xbf16> to vector<8x16xbf16>
    %c176 = arith.constant 176 : index
    %c0_42 = arith.constant 0 : index
    %68 = vector.load %arg8[%c176, %c0_42] : memref<392x16xbf16, #tpu.memory_space<vmem>>, vector<8x16xbf16>
    tpu.vector_store %arg8[%c176, %c0_42], %67 {strides = array<i32>} : memref<392x16xbf16, #tpu.memory_space<vmem>>, vector<8x16xbf16>,
    %69 = vector.extract_strided_slice %64 {offsets = [0, 2], sizes = [8, 16], strides = [1, 1]} : vector<8x22xbf16> to vector<8x16xbf16>
    %c184 = arith.constant 184 : index
    %c0_43 = arith.constant 0 : index
    %70 = vector.load %arg8[%c184, %c0_43] : memref<392x16xbf16, #tpu.memory_space<vmem>>, vector<8x16xbf16>
    tpu.vector_store %arg8[%c184, %c0_43], %69 {strides = array<i32>} : memref<392x16xbf16, #tpu.memory_space<vmem>>, vector<8x16xbf16>,
    %71 = vector.extract_strided_slice %64 {offsets = [0, 3], sizes = [8, 16], strides = [1, 1]} : vector<8x22xbf16> to vector<8x16xbf16>
    %c192 = arith.constant 192 : index
    %c0_44 = arith.constant 0 : index
    %72 = vector.load %arg8[%c192, %c0_44] : memref<392x16xbf16, #tpu.memory_space<vmem>>, vector<8x16xbf16>
    tpu.vector_store %arg8[%c192, %c0_44], %71 {strides = array<i32>} : memref<392x16xbf16, #tpu.memory_space<vmem>>, vector<8x16xbf16>,
    %73 = vector.extract_strided_slice %64 {offsets = [0, 4], sizes = [8, 16], strides = [1, 1]} : vector<8x22xbf16> to vector<8x16xbf16>
    %c200 = arith.constant 200 : index
    %c0_45 = arith.constant 0 : index
    %74 = vector.load %arg8[%c200, %c0_45] : memref<392x16xbf16, #tpu.memory_space<vmem>>, vector<8x16xbf16>
    tpu.vector_store %arg8[%c200, %c0_45], %73 {strides = array<i32>} : memref<392x16xbf16, #tpu.memory_space<vmem>>, vector<8x16xbf16>,
    %75 = vector.extract_strided_slice %64 {offsets = [0, 5], sizes = [8, 16], strides = [1, 1]} : vector<8x22xbf16> to vector<8x16xbf16>
    %c208 = arith.constant 208 : index
    %c0_46 = arith.constant 0 : index
    %76 = vector.load %arg8[%c208, %c0_46] : memref<392x16xbf16, #tpu.memory_space<vmem>>, vector<8x16xbf16>
    tpu.vector_store %arg8[%c208, %c0_46], %75 {strides = array<i32>} : memref<392x16xbf16, #tpu.memory_space<vmem>>, vector<8x16xbf16>,
    %77 = vector.extract_strided_slice %64 {offsets = [0, 6], sizes = [8, 16], strides = [1, 1]} : vector<8x22xbf16> to vector<8x16xbf16>
    %c216 = arith.constant 216 : index
    %c0_47 = arith.constant 0 : index
    %78 = vector.load %arg8[%c216, %c0_47] : memref<392x16xbf16, #tpu.memory_space<vmem>>, vector<8x16xbf16>
    tpu.vector_store %arg8[%c216, %c0_47], %77 {strides = array<i32>} : memref<392x16xbf16, #tpu.memory_space<vmem>>, vector<8x16xbf16>,
    %c0_i32_48 = arith.constant 0 : i32
    %79 = arith.addi %0, %c0_i32_48 : i32
    %c4_i32 = arith.constant 4 : i32
    %80 = arith.addi %79, %c4_i32 : i32
    %c0_49 = arith.constant 0 : index
    %81 = arith.index_cast %80 : i32 to index
    %c0_50 = arith.constant 0 : index
    %c0_51 = arith.constant 0 : index
    %82 = vector.load %arg3[%c0_49, %81, %c0_50, %c0_51] : memref<1x22x8x22xbf16, #tpu.memory_space<vmem>>, vector<1x1x8x22xbf16>
    %83 = vector.shape_cast %82 : vector<1x1x8x22xbf16> to vector<8x22xbf16>
    %84 = vector.extract_strided_slice %83 {offsets = [0, 0], sizes = [8, 16], strides = [1, 1]} : vector<8x22xbf16> to vector<8x16xbf16>
    %c224 = arith.constant 224 : index
    %c0_52 = arith.constant 0 : index
    %85 = vector.load %arg8[%c224, %c0_52] : memref<392x16xbf16, #tpu.memory_space<vmem>>, vector<8x16xbf16>
    tpu.vector_store %arg8[%c224, %c0_52], %84 {strides = array<i32>} : memref<392x16xbf16, #tpu.memory_space<vmem>>, vector<8x16xbf16>,
    %86 = vector.extract_strided_slice %83 {offsets = [0, 1], sizes = [8, 16], strides = [1, 1]} : vector<8x22xbf16> to vector<8x16xbf16>
    %c232 = arith.constant 232 : index
    %c0_53 = arith.constant 0 : index
    %87 = vector.load %arg8[%c232, %c0_53] : memref<392x16xbf16, #tpu.memory_space<vmem>>, vector<8x16xbf16>
    tpu.vector_store %arg8[%c232, %c0_53], %86 {strides = array<i32>} : memref<392x16xbf16, #tpu.memory_space<vmem>>, vector<8x16xbf16>,
    %88 = vector.extract_strided_slice %83 {offsets = [0, 2], sizes = [8, 16], strides = [1, 1]} : vector<8x22xbf16> to vector<8x16xbf16>
    %c240 = arith.constant 240 : index
    %c0_54 = arith.constant 0 : index
    %89 = vector.load %arg8[%c240, %c0_54] : memref<392x16xbf16, #tpu.memory_space<vmem>>, vector<8x16xbf16>
    tpu.vector_store %arg8[%c240, %c0_54], %88 {strides = array<i32>} : memref<392x16xbf16, #tpu.memory_space<vmem>>, vector<8x16xbf16>,
    %90 = vector.extract_strided_slice %83 {offsets = [0, 3], sizes = [8, 16], strides = [1, 1]} : vector<8x22xbf16> to vector<8x16xbf16>
    %c248 = arith.constant 248 : index
    %c0_55 = arith.constant 0 : index
    %91 = vector.load %arg8[%c248, %c0_55] : memref<392x16xbf16, #tpu.memory_space<vmem>>, vector<8x16xbf16>
    tpu.vector_store %arg8[%c248, %c0_55], %90 {strides = array<i32>} : memref<392x16xbf16, #tpu.memory_space<vmem>>, vector<8x16xbf16>,
    %92 = vector.extract_strided_slice %83 {offsets = [0, 4], sizes = [8, 16], strides = [1, 1]} : vector<8x22xbf16> to vector<8x16xbf16>
    %c256 = arith.constant 256 : index
    %c0_56 = arith.constant 0 : index
    %93 = vector.load %arg8[%c256, %c0_56] : memref<392x16xbf16, #tpu.memory_space<vmem>>, vector<8x16xbf16>
    tpu.vector_store %arg8[%c256, %c0_56], %92 {strides = array<i32>} : memref<392x16xbf16, #tpu.memory_space<vmem>>, vector<8x16xbf16>,
    %94 = vector.extract_strided_slice %83 {offsets = [0, 5], sizes = [8, 16], strides = [1, 1]} : vector<8x22xbf16> to vector<8x16xbf16>
    %c264 = arith.constant 264 : index
    %c0_57 = arith.constant 0 : index
    %95 = vector.load %arg8[%c264, %c0_57] : memref<392x16xbf16, #tpu.memory_space<vmem>>, vector<8x16xbf16>
    tpu.vector_store %arg8[%c264, %c0_57], %94 {strides = array<i32>} : memref<392x16xbf16, #tpu.memory_space<vmem>>, vector<8x16xbf16>,
    %96 = vector.extract_strided_slice %83 {offsets = [0, 6], sizes = [8, 16], strides = [1, 1]} : vector<8x22xbf16> to vector<8x16xbf16>
    %c272 = arith.constant 272 : index
    %c0_58 = arith.constant 0 : index
    %97 = vector.load %arg8[%c272, %c0_58] : memref<392x16xbf16, #tpu.memory_space<vmem>>, vector<8x16xbf16>
    tpu.vector_store %arg8[%c272, %c0_58], %96 {strides = array<i32>} : memref<392x16xbf16, #tpu.memory_space<vmem>>, vector<8x16xbf16>,
    %c0_i32_59 = arith.constant 0 : i32
    %98 = arith.addi %0, %c0_i32_59 : i32
    %c5_i32 = arith.constant 5 : i32
    %99 = arith.addi %98, %c5_i32 : i32
    %c0_60 = arith.constant 0 : index
    %100 = arith.index_cast %99 : i32 to index
    %c0_61 = arith.constant 0 : index
    %c0_62 = arith.constant 0 : index
    %101 = vector.load %arg3[%c0_60, %100, %c0_61, %c0_62] : memref<1x22x8x22xbf16, #tpu.memory_space<vmem>>, vector<1x1x8x22xbf16>
    %102 = vector.shape_cast %101 : vector<1x1x8x22xbf16> to vector<8x22xbf16>
    %103 = vector.extract_strided_slice %102 {offsets = [0, 0], sizes = [8, 16], strides = [1, 1]} : vector<8x22xbf16> to vector<8x16xbf16>
    %c280 = arith.constant 280 : index
    %c0_63 = arith.constant 0 : index
    %104 = vector.load %arg8[%c280, %c0_63] : memref<392x16xbf16, #tpu.memory_space<vmem>>, vector<8x16xbf16>
    tpu.vector_store %arg8[%c280, %c0_63], %103 {strides = array<i32>} : memref<392x16xbf16, #tpu.memory_space<vmem>>, vector<8x16xbf16>,
    %105 = vector.extract_strided_slice %102 {offsets = [0, 1], sizes = [8, 16], strides = [1, 1]} : vector<8x22xbf16> to vector<8x16xbf16>
    %c288 = arith.constant 288 : index
    %c0_64 = arith.constant 0 : index
    %106 = vector.load %arg8[%c288, %c0_64] : memref<392x16xbf16, #tpu.memory_space<vmem>>, vector<8x16xbf16>
    tpu.vector_store %arg8[%c288, %c0_64], %105 {strides = array<i32>} : memref<392x16xbf16, #tpu.memory_space<vmem>>, vector<8x16xbf16>,
    %107 = vector.extract_strided_slice %102 {offsets = [0, 2], sizes = [8, 16], strides = [1, 1]} : vector<8x22xbf16> to vector<8x16xbf16>
    %c296 = arith.constant 296 : index
    %c0_65 = arith.constant 0 : index
    %108 = vector.load %arg8[%c296, %c0_65] : memref<392x16xbf16, #tpu.memory_space<vmem>>, vector<8x16xbf16>
    tpu.vector_store %arg8[%c296, %c0_65], %107 {strides = array<i32>} : memref<392x16xbf16, #tpu.memory_space<vmem>>, vector<8x16xbf16>,
    %109 = vector.extract_strided_slice %102 {offsets = [0, 3], sizes = [8, 16], strides = [1, 1]} : vector<8x22xbf16> to vector<8x16xbf16>
    %c304 = arith.constant 304 : index
    %c0_66 = arith.constant 0 : index
    %110 = vector.load %arg8[%c304, %c0_66] : memref<392x16xbf16, #tpu.memory_space<vmem>>, vector<8x16xbf16>
    tpu.vector_store %arg8[%c304, %c0_66], %109 {strides = array<i32>} : memref<392x16xbf16, #tpu.memory_space<vmem>>, vector<8x16xbf16>,
    %111 = vector.extract_strided_slice %102 {offsets = [0, 4], sizes = [8, 16], strides = [1, 1]} : vector<8x22xbf16> to vector<8x16xbf16>
    %c312 = arith.constant 312 : index
    %c0_67 = arith.constant 0 : index
    %112 = vector.load %arg8[%c312, %c0_67] : memref<392x16xbf16, #tpu.memory_space<vmem>>, vector<8x16xbf16>
    tpu.vector_store %arg8[%c312, %c0_67], %111 {strides = array<i32>} : memref<392x16xbf16, #tpu.memory_space<vmem>>, vector<8x16xbf16>,
    %113 = vector.extract_strided_slice %102 {offsets = [0, 5], sizes = [8, 16], strides = [1, 1]} : vector<8x22xbf16> to vector<8x16xbf16>
    %c320 = arith.constant 320 : index
    %c0_68 = arith.constant 0 : index
    %114 = vector.load %arg8[%c320, %c0_68] : memref<392x16xbf16, #tpu.memory_space<vmem>>, vector<8x16xbf16>
    tpu.vector_store %arg8[%c320, %c0_68], %113 {strides = array<i32>} : memref<392x16xbf16, #tpu.memory_space<vmem>>, vector<8x16xbf16>,
    %115 = vector.extract_strided_slice %102 {offsets = [0, 6], sizes = [8, 16], strides = [1, 1]} : vector<8x22xbf16> to vector<8x16xbf16>
    %c328 = arith.constant 328 : index
    %c0_69 = arith.constant 0 : index
    %116 = vector.load %arg8[%c328, %c0_69] : memref<392x16xbf16, #tpu.memory_space<vmem>>, vector<8x16xbf16>
    tpu.vector_store %arg8[%c328, %c0_69], %115 {strides = array<i32>} : memref<392x16xbf16, #tpu.memory_space<vmem>>, vector<8x16xbf16>,
    %c0_i32_70 = arith.constant 0 : i32
    %117 = arith.addi %0, %c0_i32_70 : i32
    %c6_i32 = arith.constant 6 : i32
    %118 = arith.addi %117, %c6_i32 : i32
    %c0_71 = arith.constant 0 : index
    %119 = arith.index_cast %118 : i32 to index
    %c0_72 = arith.constant 0 : index
    %c0_73 = arith.constant 0 : index
    %120 = vector.load %arg3[%c0_71, %119, %c0_72, %c0_73] : memref<1x22x8x22xbf16, #tpu.memory_space<vmem>>, vector<1x1x8x22xbf16>
    %121 = vector.shape_cast %120 : vector<1x1x8x22xbf16> to vector<8x22xbf16>
    %122 = vector.extract_strided_slice %121 {offsets = [0, 0], sizes = [8, 16], strides = [1, 1]} : vector<8x22xbf16> to vector<8x16xbf16>
    %c336 = arith.constant 336 : index
    %c0_74 = arith.constant 0 : index
    %123 = vector.load %arg8[%c336, %c0_74] : memref<392x16xbf16, #tpu.memory_space<vmem>>, vector<8x16xbf16>
    tpu.vector_store %arg8[%c336, %c0_74], %122 {strides = array<i32>} : memref<392x16xbf16, #tpu.memory_space<vmem>>, vector<8x16xbf16>,
    %124 = vector.extract_strided_slice %121 {offsets = [0, 1], sizes = [8, 16], strides = [1, 1]} : vector<8x22xbf16> to vector<8x16xbf16>
    %c344 = arith.constant 344 : index
    %c0_75 = arith.constant 0 : index
    %125 = vector.load %arg8[%c344, %c0_75] : memref<392x16xbf16, #tpu.memory_space<vmem>>, vector<8x16xbf16>
    tpu.vector_store %arg8[%c344, %c0_75], %124 {strides = array<i32>} : memref<392x16xbf16, #tpu.memory_space<vmem>>, vector<8x16xbf16>,
    %126 = vector.extract_strided_slice %121 {offsets = [0, 2], sizes = [8, 16], strides = [1, 1]} : vector<8x22xbf16> to vector<8x16xbf16>
    %c352 = arith.constant 352 : index
    %c0_76 = arith.constant 0 : index
    %127 = vector.load %arg8[%c352, %c0_76] : memref<392x16xbf16, #tpu.memory_space<vmem>>, vector<8x16xbf16>
    tpu.vector_store %arg8[%c352, %c0_76], %126 {strides = array<i32>} : memref<392x16xbf16, #tpu.memory_space<vmem>>, vector<8x16xbf16>,
    %128 = vector.extract_strided_slice %121 {offsets = [0, 3], sizes = [8, 16], strides = [1, 1]} : vector<8x22xbf16> to vector<8x16xbf16>
    %c360 = arith.constant 360 : index
    %c0_77 = arith.constant 0 : index
    %129 = vector.load %arg8[%c360, %c0_77] : memref<392x16xbf16, #tpu.memory_space<vmem>>, vector<8x16xbf16>
    tpu.vector_store %arg8[%c360, %c0_77], %128 {strides = array<i32>} : memref<392x16xbf16, #tpu.memory_space<vmem>>, vector<8x16xbf16>,
    %130 = vector.extract_strided_slice %121 {offsets = [0, 4], sizes = [8, 16], strides = [1, 1]} : vector<8x22xbf16> to vector<8x16xbf16>
    %c368 = arith.constant 368 : index
    %c0_78 = arith.constant 0 : index
    %131 = vector.load %arg8[%c368, %c0_78] : memref<392x16xbf16, #tpu.memory_space<vmem>>, vector<8x16xbf16>
    tpu.vector_store %arg8[%c368, %c0_78], %130 {strides = array<i32>} : memref<392x16xbf16, #tpu.memory_space<vmem>>, vector<8x16xbf16>,
    %132 = vector.extract_strided_slice %121 {offsets = [0, 5], sizes = [8, 16], strides = [1, 1]} : vector<8x22xbf16> to vector<8x16xbf16>
    %c376 = arith.constant 376 : index
    %c0_79 = arith.constant 0 : index
    %133 = vector.load %arg8[%c376, %c0_79] : memref<392x16xbf16, #tpu.memory_space<vmem>>, vector<8x16xbf16>
    tpu.vector_store %arg8[%c376, %c0_79], %132 {strides = array<i32>} : memref<392x16xbf16, #tpu.memory_space<vmem>>, vector<8x16xbf16>,
    %134 = vector.extract_strided_slice %121 {offsets = [0, 6], sizes = [8, 16], strides = [1, 1]} : vector<8x22xbf16> to vector<8x16xbf16>
    %c384 = arith.constant 384 : index
    %c0_80 = arith.constant 0 : index
    %135 = vector.load %arg8[%c384, %c0_80] : memref<392x16xbf16, #tpu.memory_space<vmem>>, vector<8x16xbf16>
    tpu.vector_store %arg8[%c384, %c0_80], %134 {strides = array<i32>} : memref<392x16xbf16, #tpu.memory_space<vmem>>, vector<8x16xbf16>,
    %c0_81 = arith.constant 0 : index
    %c0_82 = arith.constant 0 : index
    %136 = vector.load %arg4[%c0_81, %c0_82] : memref<8x392xbf16, #tpu.memory_space<vmem>>, vector<8x392xbf16>
    %c0_83 = arith.constant 0 : index
    %c0_84 = arith.constant 0 : index
    %137 = vector.load %arg8[%c0_83, %c0_84] : memref<392x16xbf16, #tpu.memory_space<vmem>>, vector<392x16xbf16>
    %cst = arith.constant dense<0.000000e+00> : vector<8x16xf32>
    %138 = tpu.matmul %136, %137, %cst {dimension_numbers = #tpu.dot_dimension_numbers<[1], [0], [0], [1], [0, 0, 1, 1], [], []>} : vector<8x392xbf16>, vector<392x16xbf16>, vector<8x16xf32> -> vector<8x16xf32>
    %139 = vector.broadcast %1 : vector<8x1xf32> to vector<8x16xf32>
    %140 = arith.mulf %138, %139 : vector<8x16xf32>
    %141 = vector.broadcast %2 : vector<8x1xf32> to vector<8x16xf32>
    %142 = arith.addf %140, %141 : vector<8x16xf32>
    %cst_85 = arith.constant 0.000000e+00 : f32
    %143 = vector.broadcast %cst_85 : f32 to vector<8x16xf32>
    %144 = arith.maximumf %142, %143 : vector<8x16xf32>
    %c0_86 = arith.constant 0 : index
    %c0_87 = arith.constant 0 : index
    %c0_88 = arith.constant 0 : index
    %c0_89 = arith.constant 0 : index
    %145 = vector.load %arg7[%c0_86, %c0_87, %c0_88, %c0_89] : memref<1x8x8x16xf32, #tpu.memory_space<vmem>>, vector<1x8x1x16xf32>
    %146 = vector.shape_cast %145 : vector<1x8x1x16xf32> to vector<8x16xf32>
    %147 = vector.shape_cast %144 : vector<8x16xf32> to vector<1x8x1x16xf32>
    tpu.vector_store %arg7[%c0_86, %c0_87, %c0_88, %c0_89], %147 {strides = array<i32>} : memref<1x8x8x16xf32, #tpu.memory_space<vmem>>, vector<1x8x1x16xf32>,
    %c1_i32_90 = arith.constant 1 : i32
    %148 = arith.addi %0, %c1_i32_90 : i32
    %c0_i32_91 = arith.constant 0 : i32
    %149 = arith.addi %148, %c0_i32_91 : i32
    %c0_92 = arith.constant 0 : index
    %150 = arith.index_cast %149 : i32 to index
    %c0_93 = arith.constant 0 : index
    %c0_94 = arith.constant 0 : index
    %151 = vector.load %arg3[%c0_92, %150, %c0_93, %c0_94] : memref<1x22x8x22xbf16, #tpu.memory_space<vmem>>, vector<1x1x8x22xbf16>
    %152 = vector.shape_cast %151 : vector<1x1x8x22xbf16> to vector<8x22xbf16>
    %153 = vector.extract_strided_slice %152 {offsets = [0, 0], sizes = [8, 16], strides = [1, 1]} : vector<8x22xbf16> to vector<8x16xbf16>
    %c0_95 = arith.constant 0 : index
    %c0_96 = arith.constant 0 : index
    %154 = vector.load %arg8[%c0_95, %c0_96] : memref<392x16xbf16, #tpu.memory_space<vmem>>, vector<8x16xbf16>
    tpu.vector_store %arg8[%c0_95, %c0_96], %153 {strides = array<i32>} : memref<392x16xbf16, #tpu.memory_space<vmem>>, vector<8x16xbf16>,
    %155 = vector.extract_strided_slice %152 {offsets = [0, 1], sizes = [8, 16], strides = [1, 1]} : vector<8x22xbf16> to vector<8x16xbf16>
    %c8_97 = arith.constant 8 : index
    %c0_98 = arith.constant 0 : index
    %156 = vector.load %arg8[%c8_97, %c0_98] : memref<392x16xbf16, #tpu.memory_space<vmem>>, vector<8x16xbf16>
    tpu.vector_store %arg8[%c8_97, %c0_98], %155 {strides = array<i32>} : memref<392x16xbf16, #tpu.memory_space<vmem>>, vector<8x16xbf16>,
    %157 = vector.extract_strided_slice %152 {offsets = [0, 2], sizes = [8, 16], strides = [1, 1]} : vector<8x22xbf16> to vector<8x16xbf16>
    %c16_99 = arith.constant 16 : index
    %c0_100 = arith.constant 0 : index
    %158 = vector.load %arg8[%c16_99, %c0_100] : memref<392x16xbf16, #tpu.memory_space<vmem>>, vector<8x16xbf16>
    tpu.vector_store %arg8[%c16_99, %c0_100], %157 {strides = array<i32>} : memref<392x16xbf16, #tpu.memory_space<vmem>>, vector<8x16xbf16>,
    %159 = vector.extract_strided_slice %152 {offsets = [0, 3], sizes = [8, 16], strides = [1, 1]} : vector<8x22xbf16> to vector<8x16xbf16>
    %c24_101 = arith.constant 24 : index
    %c0_102 = arith.constant 0 : index
    %160 = vector.load %arg8[%c24_101, %c0_102] : memref<392x16xbf16, #tpu.memory_space<vmem>>, vector<8x16xbf16>
    tpu.vector_store %arg8[%c24_101, %c0_102], %159 {strides = array<i32>} : memref<392x16xbf16, #tpu.memory_space<vmem>>, vector<8x16xbf16>,
    %161 = vector.extract_strided_slice %152 {offsets = [0, 4], sizes = [8, 16], strides = [1, 1]} : vector<8x22xbf16> to vector<8x16xbf16>
    %c32_103 = arith.constant 32 : index
    %c0_104 = arith.constant 0 : index
    %162 = vector.load %arg8[%c32_103, %c0_104] : memref<392x16xbf16, #tpu.memory_space<vmem>>, vector<8x16xbf16>
    tpu.vector_store %arg8[%c32_103, %c0_104], %161 {strides = array<i32>} : memref<392x16xbf16, #tpu.memory_space<vmem>>, vector<8x16xbf16>,
    %163 = vector.extract_strided_slice %152 {offsets = [0, 5], sizes = [8, 16], strides = [1, 1]} : vector<8x22xbf16> to vector<8x16xbf16>
    %c40_105 = arith.constant 40 : index
    %c0_106 = arith.constant 0 : index
    %164 = vector.load %arg8[%c40_105, %c0_106] : memref<392x16xbf16, #tpu.memory_space<vmem>>, vector<8x16xbf16>
    tpu.vector_store %arg8[%c40_105, %c0_106], %163 {strides = array<i32>} : memref<392x16xbf16, #tpu.memory_space<vmem>>, vector<8x16xbf16>,
    %165 = vector.extract_strided_slice %152 {offsets = [0, 6], sizes = [8, 16], strides = [1, 1]} : vector<8x22xbf16> to vector<8x16xbf16>
    %c48_107 = arith.constant 48 : index
    %c0_108 = arith.constant 0 : index
    %166 = vector.load %arg8[%c48_107, %c0_108] : memref<392x16xbf16, #tpu.memory_space<vmem>>, vector<8x16xbf16>
    tpu.vector_store %arg8[%c48_107, %c0_108], %165 {strides = array<i32>} : memref<392x16xbf16, #tpu.memory_space<vmem>>, vector<8x16xbf16>,
    %c1_i32_109 = arith.constant 1 : i32
    %167 = arith.addi %0, %c1_i32_109 : i32
    %c1_i32_110 = arith.constant 1 : i32
    %168 = arith.addi %167, %c1_i32_110 : i32
    %c0_111 = arith.constant 0 : index
    %169 = arith.index_cast %168 : i32 to index
    %c0_112 = arith.constant 0 : index
    %c0_113 = arith.constant 0 : index
    %170 = vector.load %arg3[%c0_111, %169, %c0_112, %c0_113] : memref<1x22x8x22xbf16, #tpu.memory_space<vmem>>, vector<1x1x8x22xbf16>
    %171 = vector.shape_cast %170 : vector<1x1x8x22xbf16> to vector<8x22xbf16>
    %172 = vector.extract_strided_slice %171 {offsets = [0, 0], sizes = [8, 16], strides = [1, 1]} : vector<8x22xbf16> to vector<8x16xbf16>
    %c56_114 = arith.constant 56 : index
    %c0_115 = arith.constant 0 : index
    %173 = vector.load %arg8[%c56_114, %c0_115] : memref<392x16xbf16, #tpu.memory_space<vmem>>, vector<8x16xbf16>
    tpu.vector_store %arg8[%c56_114, %c0_115], %172 {strides = array<i32>} : memref<392x16xbf16, #tpu.memory_space<vmem>>, vector<8x16xbf16>,
    %174 = vector.extract_strided_slice %171 {offsets = [0, 1], sizes = [8, 16], strides = [1, 1]} : vector<8x22xbf16> to vector<8x16xbf16>
    %c64_116 = arith.constant 64 : index
    %c0_117 = arith.constant 0 : index
    %175 = vector.load %arg8[%c64_116, %c0_117] : memref<392x16xbf16, #tpu.memory_space<vmem>>, vector<8x16xbf16>
    tpu.vector_store %arg8[%c64_116, %c0_117], %174 {strides = array<i32>} : memref<392x16xbf16, #tpu.memory_space<vmem>>, vector<8x16xbf16>,
    %176 = vector.extract_strided_slice %171 {offsets = [0, 2], sizes = [8, 16], strides = [1, 1]} : vector<8x22xbf16> to vector<8x16xbf16>
    %c72_118 = arith.constant 72 : index
    %c0_119 = arith.constant 0 : index
    %177 = vector.load %arg8[%c72_118, %c0_119] : memref<392x16xbf16, #tpu.memory_space<vmem>>, vector<8x16xbf16>
    tpu.vector_store %arg8[%c72_118, %c0_119], %176 {strides = array<i32>} : memref<392x16xbf16, #tpu.memory_space<vmem>>, vector<8x16xbf16>,
    %178 = vector.extract_strided_slice %171 {offsets = [0, 3], sizes = [8, 16], strides = [1, 1]} : vector<8x22xbf16> to vector<8x16xbf16>
    %c80_120 = arith.constant 80 : index
    %c0_121 = arith.constant 0 : index
    %179 = vector.load %arg8[%c80_120, %c0_121] : memref<392x16xbf16, #tpu.memory_space<vmem>>, vector<8x16xbf16>
    tpu.vector_store %arg8[%c80_120, %c0_121], %178 {strides = array<i32>} : memref<392x16xbf16, #tpu.memory_space<vmem>>, vector<8x16xbf16>,
    %180 = vector.extract_strided_slice %171 {offsets = [0, 4], sizes = [8, 16], strides = [1, 1]} : vector<8x22xbf16> to vector<8x16xbf16>
    %c88_122 = arith.constant 88 : index
    %c0_123 = arith.constant 0 : index
    %181 = vector.load %arg8[%c88_122, %c0_123] : memref<392x16xbf16, #tpu.memory_space<vmem>>, vector<8x16xbf16>
    tpu.vector_store %arg8[%c88_122, %c0_123], %180 {strides = array<i32>} : memref<392x16xbf16, #tpu.memory_space<vmem>>, vector<8x16xbf16>,
    %182 = vector.extract_strided_slice %171 {offsets = [0, 5], sizes = [8, 16], strides = [1, 1]} : vector<8x22xbf16> to vector<8x16xbf16>
    %c96_124 = arith.constant 96 : index
    %c0_125 = arith.constant 0 : index
    %183 = vector.load %arg8[%c96_124, %c0_125] : memref<392x16xbf16, #tpu.memory_space<vmem>>, vector<8x16xbf16>
    tpu.vector_store %arg8[%c96_124, %c0_125], %182 {strides = array<i32>} : memref<392x16xbf16, #tpu.memory_space<vmem>>, vector<8x16xbf16>,
    %184 = vector.extract_strided_slice %171 {offsets = [0, 6], sizes = [8, 16], strides = [1, 1]} : vector<8x22xbf16> to vector<8x16xbf16>
    %c104_126 = arith.constant 104 : index
    %c0_127 = arith.constant 0 : index
    %185 = vector.load %arg8[%c104_126, %c0_127] : memref<392x16xbf16, #tpu.memory_space<vmem>>, vector<8x16xbf16>
    tpu.vector_store %arg8[%c104_126, %c0_127], %184 {strides = array<i32>} : memref<392x16xbf16, #tpu.memory_space<vmem>>, vector<8x16xbf16>,
    %c1_i32_128 = arith.constant 1 : i32
    %186 = arith.addi %0, %c1_i32_128 : i32
    %c2_i32_129 = arith.constant 2 : i32
    %187 = arith.addi %186, %c2_i32_129 : i32
    %c0_130 = arith.constant 0 : index
    %188 = arith.index_cast %187 : i32 to index
    %c0_131 = arith.constant 0 : index
    %c0_132 = arith.constant 0 : index
    %189 = vector.load %arg3[%c0_130, %188, %c0_131, %c0_132] : memref<1x22x8x22xbf16, #tpu.memory_space<vmem>>, vector<1x1x8x22xbf16>
    %190 = vector.shape_cast %189 : vector<1x1x8x22xbf16> to vector<8x22xbf16>
    %191 = vector.extract_strided_slice %190 {offsets = [0, 0], sizes = [8, 16], strides = [1, 1]} : vector<8x22xbf16> to vector<8x16xbf16>
    %c112_133 = arith.constant 112 : index
    %c0_134 = arith.constant 0 : index
    %192 = vector.load %arg8[%c112_133, %c0_134] : memref<392x16xbf16, #tpu.memory_space<vmem>>, vector<8x16xbf16>
    tpu.vector_store %arg8[%c112_133, %c0_134], %191 {strides = array<i32>} : memref<392x16xbf16, #tpu.memory_space<vmem>>, vector<8x16xbf16>,
    %193 = vector.extract_strided_slice %190 {offsets = [0, 1], sizes = [8, 16], strides = [1, 1]} : vector<8x22xbf16> to vector<8x16xbf16>
    %c120_135 = arith.constant 120 : index
    %c0_136 = arith.constant 0 : index
    %194 = vector.load %arg8[%c120_135, %c0_136] : memref<392x16xbf16, #tpu.memory_space<vmem>>, vector<8x16xbf16>
    tpu.vector_store %arg8[%c120_135, %c0_136], %193 {strides = array<i32>} : memref<392x16xbf16, #tpu.memory_space<vmem>>, vector<8x16xbf16>,
    %195 = vector.extract_strided_slice %190 {offsets = [0, 2], sizes = [8, 16], strides = [1, 1]} : vector<8x22xbf16> to vector<8x16xbf16>
    %c128_137 = arith.constant 128 : index
    %c0_138 = arith.constant 0 : index
    %196 = vector.load %arg8[%c128_137, %c0_138] : memref<392x16xbf16, #tpu.memory_space<vmem>>, vector<8x16xbf16>
    tpu.vector_store %arg8[%c128_137, %c0_138], %195 {strides = array<i32>} : memref<392x16xbf16, #tpu.memory_space<vmem>>, vector<8x16xbf16>,
    %197 = vector.extract_strided_slice %190 {offsets = [0, 3], sizes = [8, 16], strides = [1, 1]} : vector<8x22xbf16> to vector<8x16xbf16>
    %c136_139 = arith.constant 136 : index
    %c0_140 = arith.constant 0 : index
    %198 = vector.load %arg8[%c136_139, %c0_140] : memref<392x16xbf16, #tpu.memory_space<vmem>>, vector<8x16xbf16>
    tpu.vector_store %arg8[%c136_139, %c0_140], %197 {strides = array<i32>} : memref<392x16xbf16, #tpu.memory_space<vmem>>, vector<8x16xbf16>,
    %199 = vector.extract_strided_slice %190 {offsets = [0, 4], sizes = [8, 16], strides = [1, 1]} : vector<8x22xbf16> to vector<8x16xbf16>
    %c144_141 = arith.constant 144 : index
    %c0_142 = arith.constant 0 : index
    %200 = vector.load %arg8[%c144_141, %c0_142] : memref<392x16xbf16, #tpu.memory_space<vmem>>, vector<8x16xbf16>
    tpu.vector_store %arg8[%c144_141, %c0_142], %199 {strides = array<i32>} : memref<392x16xbf16, #tpu.memory_space<vmem>>, vector<8x16xbf16>,
    %201 = vector.extract_strided_slice %190 {offsets = [0, 5], sizes = [8, 16], strides = [1, 1]} : vector<8x22xbf16> to vector<8x16xbf16>
    %c152_143 = arith.constant 152 : index
    %c0_144 = arith.constant 0 : index
    %202 = vector.load %arg8[%c152_143, %c0_144] : memref<392x16xbf16, #tpu.memory_space<vmem>>, vector<8x16xbf16>
    tpu.vector_store %arg8[%c152_143, %c0_144], %201 {strides = array<i32>} : memref<392x16xbf16, #tpu.memory_space<vmem>>, vector<8x16xbf16>,
    %203 = vector.extract_strided_slice %190 {offsets = [0, 6], sizes = [8, 16], strides = [1, 1]} : vector<8x22xbf16> to vector<8x16xbf16>
    %c160_145 = arith.constant 160 : index
    %c0_146 = arith.constant 0 : index
    %204 = vector.load %arg8[%c160_145, %c0_146] : memref<392x16xbf16, #tpu.memory_space<vmem>>, vector<8x16xbf16>
    tpu.vector_store %arg8[%c160_145, %c0_146], %203 {strides = array<i32>} : memref<392x16xbf16, #tpu.memory_space<vmem>>, vector<8x16xbf16>,
    %c1_i32_147 = arith.constant 1 : i32
    %205 = arith.addi %0, %c1_i32_147 : i32
    %c3_i32_148 = arith.constant 3 : i32
    %206 = arith.addi %205, %c3_i32_148 : i32
    %c0_149 = arith.constant 0 : index
    %207 = arith.index_cast %206 : i32 to index
    %c0_150 = arith.constant 0 : index
    %c0_151 = arith.constant 0 : index
    %208 = vector.load %arg3[%c0_149, %207, %c0_150, %c0_151] : memref<1x22x8x22xbf16, #tpu.memory_space<vmem>>, vector<1x1x8x22xbf16>
    %209 = vector.shape_cast %208 : vector<1x1x8x22xbf16> to vector<8x22xbf16>
    %210 = vector.extract_strided_slice %209 {offsets = [0, 0], sizes = [8, 16], strides = [1, 1]} : vector<8x22xbf16> to vector<8x16xbf16>
    %c168_152 = arith.constant 168 : index
    %c0_153 = arith.constant 0 : index
    %211 = vector.load %arg8[%c168_152, %c0_153] : memref<392x16xbf16, #tpu.memory_space<vmem>>, vector<8x16xbf16>
    tpu.vector_store %arg8[%c168_152, %c0_153], %210 {strides = array<i32>} : memref<392x16xbf16, #tpu.memory_space<vmem>>, vector<8x16xbf16>,
    %212 = vector.extract_strided_slice %209 {offsets = [0, 1], sizes = [8, 16], strides = [1, 1]} : vector<8x22xbf16> to vector<8x16xbf16>
    %c176_154 = arith.constant 176 : index
    %c0_155 = arith.constant 0 : index
    %213 = vector.load %arg8[%c176_154, %c0_155] : memref<392x16xbf16, #tpu.memory_space<vmem>>, vector<8x16xbf16>
    tpu.vector_store %arg8[%c176_154, %c0_155], %212 {strides = array<i32>} : memref<392x16xbf16, #tpu.memory_space<vmem>>, vector<8x16xbf16>,
    %214 = vector.extract_strided_slice %209 {offsets = [0, 2], sizes = [8, 16], strides = [1, 1]} : vector<8x22xbf16> to vector<8x16xbf16>
    %c184_156 = arith.constant 184 : index
    %c0_157 = arith.constant 0 : index
    %215 = vector.load %arg8[%c184_156, %c0_157] : memref<392x16xbf16, #tpu.memory_space<vmem>>, vector<8x16xbf16>
    tpu.vector_store %arg8[%c184_156, %c0_157], %214 {strides = array<i32>} : memref<392x16xbf16, #tpu.memory_space<vmem>>, vector<8x16xbf16>,
    %216 = vector.extract_strided_slice %209 {offsets = [0, 3], sizes = [8, 16], strides = [1, 1]} : vector<8x22xbf16> to vector<8x16xbf16>
    %c192_158 = arith.constant 192 : index
    %c0_159 = arith.constant 0 : index
    %217 = vector.load %arg8[%c192_158, %c0_159] : memref<392x16xbf16, #tpu.memory_space<vmem>>, vector<8x16xbf16>
    tpu.vector_store %arg8[%c192_158, %c0_159], %216 {strides = array<i32>} : memref<392x16xbf16, #tpu.memory_space<vmem>>, vector<8x16xbf16>,
    %218 = vector.extract_strided_slice %209 {offsets = [0, 4], sizes = [8, 16], strides = [1, 1]} : vector<8x22xbf16> to vector<8x16xbf16>
    %c200_160 = arith.constant 200 : index
    %c0_161 = arith.constant 0 : index
    %219 = vector.load %arg8[%c200_160, %c0_161] : memref<392x16xbf16, #tpu.memory_space<vmem>>, vector<8x16xbf16>
    tpu.vector_store %arg8[%c200_160, %c0_161], %218 {strides = array<i32>} : memref<392x16xbf16, #tpu.memory_space<vmem>>, vector<8x16xbf16>,
    %220 = vector.extract_strided_slice %209 {offsets = [0, 5], sizes = [8, 16], strides = [1, 1]} : vector<8x22xbf16> to vector<8x16xbf16>
    %c208_162 = arith.constant 208 : index
    %c0_163 = arith.constant 0 : index
    %221 = vector.load %arg8[%c208_162, %c0_163] : memref<392x16xbf16, #tpu.memory_space<vmem>>, vector<8x16xbf16>
    tpu.vector_store %arg8[%c208_162, %c0_163], %220 {strides = array<i32>} : memref<392x16xbf16, #tpu.memory_space<vmem>>, vector<8x16xbf16>,
    %222 = vector.extract_strided_slice %209 {offsets = [0, 6], sizes = [8, 16], strides = [1, 1]} : vector<8x22xbf16> to vector<8x16xbf16>
    %c216_164 = arith.constant 216 : index
    %c0_165 = arith.constant 0 : index
    %223 = vector.load %arg8[%c216_164, %c0_165] : memref<392x16xbf16, #tpu.memory_space<vmem>>, vector<8x16xbf16>
    tpu.vector_store %arg8[%c216_164, %c0_165], %222 {strides = array<i32>} : memref<392x16xbf16, #tpu.memory_space<vmem>>, vector<8x16xbf16>,
    %c1_i32_166 = arith.constant 1 : i32
    %224 = arith.addi %0, %c1_i32_166 : i32
    %c4_i32_167 = arith.constant 4 : i32
    %225 = arith.addi %224, %c4_i32_167 : i32
    %c0_168 = arith.constant 0 : index
    %226 = arith.index_cast %225 : i32 to index
    %c0_169 = arith.constant 0 : index
    %c0_170 = arith.constant 0 : index
    %227 = vector.load %arg3[%c0_168, %226, %c0_169, %c0_170] : memref<1x22x8x22xbf16, #tpu.memory_space<vmem>>, vector<1x1x8x22xbf16>
    %228 = vector.shape_cast %227 : vector<1x1x8x22xbf16> to vector<8x22xbf16>
    %229 = vector.extract_strided_slice %228 {offsets = [0, 0], sizes = [8, 16], strides = [1, 1]} : vector<8x22xbf16> to vector<8x16xbf16>
    %c224_171 = arith.constant 224 : index
    %c0_172 = arith.constant 0 : index
    %230 = vector.load %arg8[%c224_171, %c0_172] : memref<392x16xbf16, #tpu.memory_space<vmem>>, vector<8x16xbf16>
    tpu.vector_store %arg8[%c224_171, %c0_172], %229 {strides = array<i32>} : memref<392x16xbf16, #tpu.memory_space<vmem>>, vector<8x16xbf16>,
    %231 = vector.extract_strided_slice %228 {offsets = [0, 1], sizes = [8, 16], strides = [1, 1]} : vector<8x22xbf16> to vector<8x16xbf16>
    %c232_173 = arith.constant 232 : index
    %c0_174 = arith.constant 0 : index
    %232 = vector.load %arg8[%c232_173, %c0_174] : memref<392x16xbf16, #tpu.memory_space<vmem>>, vector<8x16xbf16>
    tpu.vector_store %arg8[%c232_173, %c0_174], %231 {strides = array<i32>} : memref<392x16xbf16, #tpu.memory_space<vmem>>, vector<8x16xbf16>,
    %233 = vector.extract_strided_slice %228 {offsets = [0, 2], sizes = [8, 16], strides = [1, 1]} : vector<8x22xbf16> to vector<8x16xbf16>
    %c240_175 = arith.constant 240 : index
    %c0_176 = arith.constant 0 : index
    %234 = vector.load %arg8[%c240_175, %c0_176] : memref<392x16xbf16, #tpu.memory_space<vmem>>, vector<8x16xbf16>
    tpu.vector_store %arg8[%c240_175, %c0_176], %233 {strides = array<i32>} : memref<392x16xbf16, #tpu.memory_space<vmem>>, vector<8x16xbf16>,
    %235 = vector.extract_strided_slice %228 {offsets = [0, 3], sizes = [8, 16], strides = [1, 1]} : vector<8x22xbf16> to vector<8x16xbf16>
    %c248_177 = arith.constant 248 : index
    %c0_178 = arith.constant 0 : index
    %236 = vector.load %arg8[%c248_177, %c0_178] : memref<392x16xbf16, #tpu.memory_space<vmem>>, vector<8x16xbf16>
    tpu.vector_store %arg8[%c248_177, %c0_178], %235 {strides = array<i32>} : memref<392x16xbf16, #tpu.memory_space<vmem>>, vector<8x16xbf16>,
    %237 = vector.extract_strided_slice %228 {offsets = [0, 4], sizes = [8, 16], strides = [1, 1]} : vector<8x22xbf16> to vector<8x16xbf16>
    %c256_179 = arith.constant 256 : index
    %c0_180 = arith.constant 0 : index
    %238 = vector.load %arg8[%c256_179, %c0_180] : memref<392x16xbf16, #tpu.memory_space<vmem>>, vector<8x16xbf16>
    tpu.vector_store %arg8[%c256_179, %c0_180], %237 {strides = array<i32>} : memref<392x16xbf16, #tpu.memory_space<vmem>>, vector<8x16xbf16>,
    %239 = vector.extract_strided_slice %228 {offsets = [0, 5], sizes = [8, 16], strides = [1, 1]} : vector<8x22xbf16> to vector<8x16xbf16>
    %c264_181 = arith.constant 264 : index
    %c0_182 = arith.constant 0 : index
    %240 = vector.load %arg8[%c264_181, %c0_182] : memref<392x16xbf16, #tpu.memory_space<vmem>>, vector<8x16xbf16>
    tpu.vector_store %arg8[%c264_181, %c0_182], %239 {strides = array<i32>} : memref<392x16xbf16, #tpu.memory_space<vmem>>, vector<8x16xbf16>,
    %241 = vector.extract_strided_slice %228 {offsets = [0, 6], sizes = [8, 16], strides = [1, 1]} : vector<8x22xbf16> to vector<8x16xbf16>
    %c272_183 = arith.constant 272 : index
    %c0_184 = arith.constant 0 : index
    %242 = vector.load %arg8[%c272_183, %c0_184] : memref<392x16xbf16, #tpu.memory_space<vmem>>, vector<8x16xbf16>
    tpu.vector_store %arg8[%c272_183, %c0_184], %241 {strides = array<i32>} : memref<392x16xbf16, #tpu.memory_space<vmem>>, vector<8x16xbf16>,
    %c1_i32_185 = arith.constant 1 : i32
    %243 = arith.addi %0, %c1_i32_185 : i32
    %c5_i32_186 = arith.constant 5 : i32
    %244 = arith.addi %243, %c5_i32_186 : i32
    %c0_187 = arith.constant 0 : index
    %245 = arith.index_cast %244 : i32 to index
    %c0_188 = arith.constant 0 : index
    %c0_189 = arith.constant 0 : index
    %246 = vector.load %arg3[%c0_187, %245, %c0_188, %c0_189] : memref<1x22x8x22xbf16, #tpu.memory_space<vmem>>, vector<1x1x8x22xbf16>
    %247 = vector.shape_cast %246 : vector<1x1x8x22xbf16> to vector<8x22xbf16>
    %248 = vector.extract_strided_slice %247 {offsets = [0, 0], sizes = [8, 16], strides = [1, 1]} : vector<8x22xbf16> to vector<8x16xbf16>
    %c280_190 = arith.constant 280 : index
    %c0_191 = arith.constant 0 : index
    %249 = vector.load %arg8[%c280_190, %c0_191] : memref<392x16xbf16, #tpu.memory_space<vmem>>, vector<8x16xbf16>
    tpu.vector_store %arg8[%c280_190, %c0_191], %248 {strides = array<i32>} : memref<392x16xbf16, #tpu.memory_space<vmem>>, vector<8x16xbf16>,
    %250 = vector.extract_strided_slice %247 {offsets = [0, 1], sizes = [8, 16], strides = [1, 1]} : vector<8x22xbf16> to vector<8x16xbf16>
    %c288_192 = arith.constant 288 : index
    %c0_193 = arith.constant 0 : index
    %251 = vector.load %arg8[%c288_192, %c0_193] : memref<392x16xbf16, #tpu.memory_space<vmem>>, vector<8x16xbf16>
    tpu.vector_store %arg8[%c288_192, %c0_193], %250 {strides = array<i32>} : memref<392x16xbf16, #tpu.memory_space<vmem>>, vector<8x16xbf16>,
    %252 = vector.extract_strided_slice %247 {offsets = [0, 2], sizes = [8, 16], strides = [1, 1]} : vector<8x22xbf16> to vector<8x16xbf16>
    %c296_194 = arith.constant 296 : index
    %c0_195 = arith.constant 0 : index
    %253 = vector.load %arg8[%c296_194, %c0_195] : memref<392x16xbf16, #tpu.memory_space<vmem>>, vector<8x16xbf16>
    tpu.vector_store %arg8[%c296_194, %c0_195], %252 {strides = array<i32>} : memref<392x16xbf16, #tpu.memory_space<vmem>>, vector<8x16xbf16>,
    %254 = vector.extract_strided_slice %247 {offsets = [0, 3], sizes = [8, 16], strides = [1, 1]} : vector<8x22xbf16> to vector<8x16xbf16>
    %c304_196 = arith.constant 304 : index
    %c0_197 = arith.constant 0 : index
    %255 = vector.load %arg8[%c304_196, %c0_197] : memref<392x16xbf16, #tpu.memory_space<vmem>>, vector<8x16xbf16>
    tpu.vector_store %arg8[%c304_196, %c0_197], %254 {strides = array<i32>} : memref<392x16xbf16, #tpu.memory_space<vmem>>, vector<8x16xbf16>,
    %256 = vector.extract_strided_slice %247 {offsets = [0, 4], sizes = [8, 16], strides = [1, 1]} : vector<8x22xbf16> to vector<8x16xbf16>
    %c312_198 = arith.constant 312 : index
    %c0_199 = arith.constant 0 : index
    %257 = vector.load %arg8[%c312_198, %c0_199] : memref<392x16xbf16, #tpu.memory_space<vmem>>, vector<8x16xbf16>
    tpu.vector_store %arg8[%c312_198, %c0_199], %256 {strides = array<i32>} : memref<392x16xbf16, #tpu.memory_space<vmem>>, vector<8x16xbf16>,
    %258 = vector.extract_strided_slice %247 {offsets = [0, 5], sizes = [8, 16], strides = [1, 1]} : vector<8x22xbf16> to vector<8x16xbf16>
    %c320_200 = arith.constant 320 : index
    %c0_201 = arith.constant 0 : index
    %259 = vector.load %arg8[%c320_200, %c0_201] : memref<392x16xbf16, #tpu.memory_space<vmem>>, vector<8x16xbf16>
    tpu.vector_store %arg8[%c320_200, %c0_201], %258 {strides = array<i32>} : memref<392x16xbf16, #tpu.memory_space<vmem>>, vector<8x16xbf16>,
    %260 = vector.extract_strided_slice %247 {offsets = [0, 6], sizes = [8, 16], strides = [1, 1]} : vector<8x22xbf16> to vector<8x16xbf16>
    %c328_202 = arith.constant 328 : index
    %c0_203 = arith.constant 0 : index
    %261 = vector.load %arg8[%c328_202, %c0_203] : memref<392x16xbf16, #tpu.memory_space<vmem>>, vector<8x16xbf16>
    tpu.vector_store %arg8[%c328_202, %c0_203], %260 {strides = array<i32>} : memref<392x16xbf16, #tpu.memory_space<vmem>>, vector<8x16xbf16>,
    %c1_i32_204 = arith.constant 1 : i32
    %262 = arith.addi %0, %c1_i32_204 : i32
    %c6_i32_205 = arith.constant 6 : i32
    %263 = arith.addi %262, %c6_i32_205 : i32
    %c0_206 = arith.constant 0 : index
    %264 = arith.index_cast %263 : i32 to index
    %c0_207 = arith.constant 0 : index
    %c0_208 = arith.constant 0 : index
    %265 = vector.load %arg3[%c0_206, %264, %c0_207, %c0_208] : memref<1x22x8x22xbf16, #tpu.memory_space<vmem>>, vector<1x1x8x22xbf16>
    %266 = vector.shape_cast %265 : vector<1x1x8x22xbf16> to vector<8x22xbf16>
    %267 = vector.extract_strided_slice %266 {offsets = [0, 0], sizes = [8, 16], strides = [1, 1]} : vector<8x22xbf16> to vector<8x16xbf16>
    %c336_209 = arith.constant 336 : index
    %c0_210 = arith.constant 0 : index
    %268 = vector.load %arg8[%c336_209, %c0_210] : memref<392x16xbf16, #tpu.memory_space<vmem>>, vector<8x16xbf16>
    tpu.vector_store %arg8[%c336_209, %c0_210], %267 {strides = array<i32>} : memref<392x16xbf16, #tpu.memory_space<vmem>>, vector<8x16xbf16>,
    %269 = vector.extract_strided_slice %266 {offsets = [0, 1], sizes = [8, 16], strides = [1, 1]} : vector<8x22xbf16> to vector<8x16xbf16>
    %c344_211 = arith.constant 344 : index
    %c0_212 = arith.constant 0 : index
    %270 = vector.load %arg8[%c344_211, %c0_212] : memref<392x16xbf16, #tpu.memory_space<vmem>>, vector<8x16xbf16>
    tpu.vector_store %arg8[%c344_211, %c0_212], %269 {strides = array<i32>} : memref<392x16xbf16, #tpu.memory_space<vmem>>, vector<8x16xbf16>,
    %271 = vector.extract_strided_slice %266 {offsets = [0, 2], sizes = [8, 16], strides = [1, 1]} : vector<8x22xbf16> to vector<8x16xbf16>
    %c352_213 = arith.constant 352 : index
    %c0_214 = arith.constant 0 : index
    %272 = vector.load %arg8[%c352_213, %c0_214] : memref<392x16xbf16, #tpu.memory_space<vmem>>, vector<8x16xbf16>
    tpu.vector_store %arg8[%c352_213, %c0_214], %271 {strides = array<i32>} : memref<392x16xbf16, #tpu.memory_space<vmem>>, vector<8x16xbf16>,
    %273 = vector.extract_strided_slice %266 {offsets = [0, 3], sizes = [8, 16], strides = [1, 1]} : vector<8x22xbf16> to vector<8x16xbf16>
    %c360_215 = arith.constant 360 : index
    %c0_216 = arith.constant 0 : index
    %274 = vector.load %arg8[%c360_215, %c0_216] : memref<392x16xbf16, #tpu.memory_space<vmem>>, vector<8x16xbf16>
    tpu.vector_store %arg8[%c360_215, %c0_216], %273 {strides = array<i32>} : memref<392x16xbf16, #tpu.memory_space<vmem>>, vector<8x16xbf16>,
    %275 = vector.extract_strided_slice %266 {offsets = [0, 4], sizes = [8, 16], strides = [1, 1]} : vector<8x22xbf16> to vector<8x16xbf16>
    %c368_217 = arith.constant 368 : index
    %c0_218 = arith.constant 0 : index
    %276 = vector.load %arg8[%c368_217, %c0_218] : memref<392x16xbf16, #tpu.memory_space<vmem>>, vector<8x16xbf16>
    tpu.vector_store %arg8[%c368_217, %c0_218], %275 {strides = array<i32>} : memref<392x16xbf16, #tpu.memory_space<vmem>>, vector<8x16xbf16>,
    %277 = vector.extract_strided_slice %266 {offsets = [0, 5], sizes = [8, 16], strides = [1, 1]} : vector<8x22xbf16> to vector<8x16xbf16>
    %c376_219 = arith.constant 376 : index
    %c0_220 = arith.constant 0 : index
    %278 = vector.load %arg8[%c376_219, %c0_220] : memref<392x16xbf16, #tpu.memory_space<vmem>>, vector<8x16xbf16>
    tpu.vector_store %arg8[%c376_219, %c0_220], %277 {strides = array<i32>} : memref<392x16xbf16, #tpu.memory_space<vmem>>, vector<8x16xbf16>,
    %279 = vector.extract_strided_slice %266 {offsets = [0, 6], sizes = [8, 16], strides = [1, 1]} : vector<8x22xbf16> to vector<8x16xbf16>
    %c384_221 = arith.constant 384 : index
    %c0_222 = arith.constant 0 : index
    %280 = vector.load %arg8[%c384_221, %c0_222] : memref<392x16xbf16, #tpu.memory_space<vmem>>, vector<8x16xbf16>
    tpu.vector_store %arg8[%c384_221, %c0_222], %279 {strides = array<i32>} : memref<392x16xbf16, #tpu.memory_space<vmem>>, vector<8x16xbf16>,
    %c0_223 = arith.constant 0 : index
    %c0_224 = arith.constant 0 : index
    %281 = vector.load %arg4[%c0_223, %c0_224] : memref<8x392xbf16, #tpu.memory_space<vmem>>, vector<8x392xbf16>
    %c0_225 = arith.constant 0 : index
    %c0_226 = arith.constant 0 : index
    %282 = vector.load %arg8[%c0_225, %c0_226] : memref<392x16xbf16, #tpu.memory_space<vmem>>, vector<392x16xbf16>
    %cst_227 = arith.constant dense<0.000000e+00> : vector<8x16xf32>
    %283 = tpu.matmul %281, %282, %cst_227 {dimension_numbers = #tpu.dot_dimension_numbers<[1], [0], [0], [1], [0, 0, 1, 1], [], []>} : vector<8x392xbf16>, vector<392x16xbf16>, vector<8x16xf32> -> vector<8x16xf32>
    %284 = vector.broadcast %1 : vector<8x1xf32> to vector<8x16xf32>
    %285 = arith.mulf %283, %284 : vector<8x16xf32>
    %286 = vector.broadcast %2 : vector<8x1xf32> to vector<8x16xf32>
    %287 = arith.addf %285, %286 : vector<8x16xf32>
    %cst_228 = arith.constant 0.000000e+00 : f32
    %288 = vector.broadcast %cst_228 : f32 to vector<8x16xf32>
    %289 = arith.maximumf %287, %288 : vector<8x16xf32>
    %c0_229 = arith.constant 0 : index
    %c0_230 = arith.constant 0 : index
    %c1 = arith.constant 1 : index
    %c0_231 = arith.constant 0 : index
    %290 = vector.load %arg7[%c0_229, %c0_230, %c1, %c0_231] : memref<1x8x8x16xf32, #tpu.memory_space<vmem>>, vector<1x8x1x16xf32>
    %291 = vector.shape_cast %290 : vector<1x8x1x16xf32> to vector<8x16xf32>
    %292 = vector.shape_cast %289 : vector<8x16xf32> to vector<1x8x1x16xf32>
    tpu.vector_store %arg7[%c0_229, %c0_230, %c1, %c0_231], %292 {strides = array<i32>} : memref<1x8x8x16xf32, #tpu.memory_space<vmem>>, vector<1x8x1x16xf32>,
    %c2_i32_232 = arith.constant 2 : i32
    %293 = arith.addi %0, %c2_i32_232 : i32
    %c0_i32_233 = arith.constant 0 : i32
    %294 = arith.addi %293, %c0_i32_233 : i32
    %c0_234 = arith.constant 0 : index
    %295 = arith.index_cast %294 : i32 to index
    %c0_235 = arith.constant 0 : index
    %c0_236 = arith.constant 0 : index
    %296 = vector.load %arg3[%c0_234, %295, %c0_235, %c0_236] : memref<1x22x8x22xbf16, #tpu.memory_space<vmem>>, vector<1x1x8x22xbf16>
    %297 = vector.shape_cast %296 : vector<1x1x8x22xbf16> to vector<8x22xbf16>
    %298 = vector.extract_strided_slice %297 {offsets = [0, 0], sizes = [8, 16], strides = [1, 1]} : vector<8x22xbf16> to vector<8x16xbf16>
    %c0_237 = arith.constant 0 : index
    %c0_238 = arith.constant 0 : index
    %299 = vector.load %arg8[%c0_237, %c0_238] : memref<392x16xbf16, #tpu.memory_space<vmem>>, vector<8x16xbf16>
    tpu.vector_store %arg8[%c0_237, %c0_238], %298 {strides = array<i32>} : memref<392x16xbf16, #tpu.memory_space<vmem>>, vector<8x16xbf16>,
    %300 = vector.extract_strided_slice %297 {offsets = [0, 1], sizes = [8, 16], strides = [1, 1]} : vector<8x22xbf16> to vector<8x16xbf16>
    %c8_239 = arith.constant 8 : index
    %c0_240 = arith.constant 0 : index
    %301 = vector.load %arg8[%c8_239, %c0_240] : memref<392x16xbf16, #tpu.memory_space<vmem>>, vector<8x16xbf16>
    tpu.vector_store %arg8[%c8_239, %c0_240], %300 {strides = array<i32>} : memref<392x16xbf16, #tpu.memory_space<vmem>>, vector<8x16xbf16>,
    %302 = vector.extract_strided_slice %297 {offsets = [0, 2], sizes = [8, 16], strides = [1, 1]} : vector<8x22xbf16> to vector<8x16xbf16>
    %c16_241 = arith.constant 16 : index
    %c0_242 = arith.constant 0 : index
    %303 = vector.load %arg8[%c16_241, %c0_242] : memref<392x16xbf16, #tpu.memory_space<vmem>>, vector<8x16xbf16>
    tpu.vector_store %arg8[%c16_241, %c0_242], %302 {strides = array<i32>} : memref<392x16xbf16, #tpu.memory_space<vmem>>, vector<8x16xbf16>,
    %304 = vector.extract_strided_slice %297 {offsets = [0, 3], sizes = [8, 16], strides = [1, 1]} : vector<8x22xbf16> to vector<8x16xbf16>
    %c24_243 = arith.constant 24 : index
    %c0_244 = arith.constant 0 : index
    %305 = vector.load %arg8[%c24_243, %c0_244] : memref<392x16xbf16, #tpu.memory_space<vmem>>, vector<8x16xbf16>
    tpu.vector_store %arg8[%c24_243, %c0_244], %304 {strides = array<i32>} : memref<392x16xbf16, #tpu.memory_space<vmem>>, vector<8x16xbf16>,
    %306 = vector.extract_strided_slice %297 {offsets = [0, 4], sizes = [8, 16], strides = [1, 1]} : vector<8x22xbf16> to vector<8x16xbf16>
    %c32_245 = arith.constant 32 : index
    %c0_246 = arith.constant 0 : index
    %307 = vector.load %arg8[%c32_245, %c0_246] : memref<392x16xbf16, #tpu.memory_space<vmem>>, vector<8x16xbf16>
    tpu.vector_store %arg8[%c32_245, %c0_246], %306 {strides = array<i32>} : memref<392x16xbf16, #tpu.memory_space<vmem>>, vector<8x16xbf16>,
    %308 = vector.extract_strided_slice %297 {offsets = [0, 5], sizes = [8, 16], strides = [1, 1]} : vector<8x22xbf16> to vector<8x16xbf16>
    %c40_247 = arith.constant 40 : index
    %c0_248 = arith.constant 0 : index
    %309 = vector.load %arg8[%c40_247, %c0_248] : memref<392x16xbf16, #tpu.memory_space<vmem>>, vector<8x16xbf16>
    tpu.vector_store %arg8[%c40_247, %c0_248], %308 {strides = array<i32>} : memref<392x16xbf16, #tpu.memory_space<vmem>>, vector<8x16xbf16>,
    %310 = vector.extract_strided_slice %297 {offsets = [0, 6], sizes = [8, 16], strides = [1, 1]} : vector<8x22xbf16> to vector<8x16xbf16>
    %c48_249 = arith.constant 48 : index
    %c0_250 = arith.constant 0 : index
    %311 = vector.load %arg8[%c48_249, %c0_250] : memref<392x16xbf16, #tpu.memory_space<vmem>>, vector<8x16xbf16>
    tpu.vector_store %arg8[%c48_249, %c0_250], %310 {strides = array<i32>} : memref<392x16xbf16, #tpu.memory_space<vmem>>, vector<8x16xbf16>,
    %c2_i32_251 = arith.constant 2 : i32
    %312 = arith.addi %0, %c2_i32_251 : i32
    %c1_i32_252 = arith.constant 1 : i32
    %313 = arith.addi %312, %c1_i32_252 : i32
    %c0_253 = arith.constant 0 : index
    %314 = arith.index_cast %313 : i32 to index
    %c0_254 = arith.constant 0 : index
    %c0_255 = arith.constant 0 : index
    %315 = vector.load %arg3[%c0_253, %314, %c0_254, %c0_255] : memref<1x22x8x22xbf16, #tpu.memory_space<vmem>>, vector<1x1x8x22xbf16>
    %316 = vector.shape_cast %315 : vector<1x1x8x22xbf16> to vector<8x22xbf16>
    %317 = vector.extract_strided_slice %316 {offsets = [0, 0], sizes = [8, 16], strides = [1, 1]} : vector<8x22xbf16> to vector<8x16xbf16>
    %c56_256 = arith.constant 56 : index
    %c0_257 = arith.constant 0 : index
    %318 = vector.load %arg8[%c56_256, %c0_257] : memref<392x16xbf16, #tpu.memory_space<vmem>>, vector<8x16xbf16>
    tpu.vector_store %arg8[%c56_256, %c0_257], %317 {strides = array<i32>} : memref<392x16xbf16, #tpu.memory_space<vmem>>, vector<8x16xbf16>,
    %319 = vector.extract_strided_slice %316 {offsets = [0, 1], sizes = [8, 16], strides = [1, 1]} : vector<8x22xbf16> to vector<8x16xbf16>
    %c64_258 = arith.constant 64 : index
    %c0_259 = arith.constant 0 : index
    %320 = vector.load %arg8[%c64_258, %c0_259] : memref<392x16xbf16, #tpu.memory_space<vmem>>, vector<8x16xbf16>
    tpu.vector_store %arg8[%c64_258, %c0_259], %319 {strides = array<i32>} : memref<392x16xbf16, #tpu.memory_space<vmem>>, vector<8x16xbf16>,
    %321 = vector.extract_strided_slice %316 {offsets = [0, 2], sizes = [8, 16], strides = [1, 1]} : vector<8x22xbf16> to vector<8x16xbf16>
    %c72_260 = arith.constant 72 : index
    %c0_261 = arith.constant 0 : index
    %322 = vector.load %arg8[%c72_260, %c0_261] : memref<392x16xbf16, #tpu.memory_space<vmem>>, vector<8x16xbf16>
    tpu.vector_store %arg8[%c72_260, %c0_261], %321 {strides = array<i32>} : memref<392x16xbf16, #tpu.memory_space<vmem>>, vector<8x16xbf16>,
    %323 = vector.extract_strided_slice %316 {offsets = [0, 3], sizes = [8, 16], strides = [1, 1]} : vector<8x22xbf16> to vector<8x16xbf16>
    %c80_262 = arith.constant 80 : index
    %c0_263 = arith.constant 0 : index
    %324 = vector.load %arg8[%c80_262, %c0_263] : memref<392x16xbf16, #tpu.memory_space<vmem>>, vector<8x16xbf16>
    tpu.vector_store %arg8[%c80_262, %c0_263], %323 {strides = array<i32>} : memref<392x16xbf16, #tpu.memory_space<vmem>>, vector<8x16xbf16>,
    %325 = vector.extract_strided_slice %316 {offsets = [0, 4], sizes = [8, 16], strides = [1, 1]} : vector<8x22xbf16> to vector<8x16xbf16>
    %c88_264 = arith.constant 88 : index
    %c0_265 = arith.constant 0 : index
    %326 = vector.load %arg8[%c88_264, %c0_265] : memref<392x16xbf16, #tpu.memory_space<vmem>>, vector<8x16xbf16>
    tpu.vector_store %arg8[%c88_264, %c0_265], %325 {strides = array<i32>} : memref<392x16xbf16, #tpu.memory_space<vmem>>, vector<8x16xbf16>,
    %327 = vector.extract_strided_slice %316 {offsets = [0, 5], sizes = [8, 16], strides = [1, 1]} : vector<8x22xbf16> to vector<8x16xbf16>
    %c96_266 = arith.constant 96 : index
    %c0_267 = arith.constant 0 : index
    %328 = vector.load %arg8[%c96_266, %c0_267] : memref<392x16xbf16, #tpu.memory_space<vmem>>, vector<8x16xbf16>
    tpu.vector_store %arg8[%c96_266, %c0_267], %327 {strides = array<i32>} : memref<392x16xbf16, #tpu.memory_space<vmem>>, vector<8x16xbf16>,
    %329 = vector.extract_strided_slice %316 {offsets = [0, 6], sizes = [8, 16], strides = [1, 1]} : vector<8x22xbf16> to vector<8x16xbf16>
    %c104_268 = arith.constant 104 : index
    %c0_269 = arith.constant 0 : index
    %330 = vector.load %arg8[%c104_268, %c0_269] : memref<392x16xbf16, #tpu.memory_space<vmem>>, vector<8x16xbf16>
    tpu.vector_store %arg8[%c104_268, %c0_269], %329 {strides = array<i32>} : memref<392x16xbf16, #tpu.memory_space<vmem>>, vector<8x16xbf16>,
    %c2_i32_270 = arith.constant 2 : i32
    %331 = arith.addi %0, %c2_i32_270 : i32
    %c2_i32_271 = arith.constant 2 : i32
    %332 = arith.addi %331, %c2_i32_271 : i32
    %c0_272 = arith.constant 0 : index
    %333 = arith.index_cast %332 : i32 to index
    %c0_273 = arith.constant 0 : index
    %c0_274 = arith.constant 0 : index
    %334 = vector.load %arg3[%c0_272, %333, %c0_273, %c0_274] : memref<1x22x8x22xbf16, #tpu.memory_space<vmem>>, vector<1x1x8x22xbf16>
    %335 = vector.shape_cast %334 : vector<1x1x8x22xbf16> to vector<8x22xbf16>
    %336 = vector.extract_strided_slice %335 {offsets = [0, 0], sizes = [8, 16], strides = [1, 1]} : vector<8x22xbf16> to vector<8x16xbf16>
    %c112_275 = arith.constant 112 : index
    %c0_276 = arith.constant 0 : index
    %337 = vector.load %arg8[%c112_275, %c0_276] : memref<392x16xbf16, #tpu.memory_space<vmem>>, vector<8x16xbf16>
    tpu.vector_store %arg8[%c112_275, %c0_276], %336 {strides = array<i32>} : memref<392x16xbf16, #tpu.memory_space<vmem>>, vector<8x16xbf16>,
    %338 = vector.extract_strided_slice %335 {offsets = [0, 1], sizes = [8, 16], strides = [1, 1]} : vector<8x22xbf16> to vector<8x16xbf16>
    %c120_277 = arith.constant 120 : index
    %c0_278 = arith.constant 0 : index
    %339 = vector.load %arg8[%c120_277, %c0_278] : memref<392x16xbf16, #tpu.memory_space<vmem>>, vector<8x16xbf16>
    tpu.vector_store %arg8[%c120_277, %c0_278], %338 {strides = array<i32>} : memref<392x16xbf16, #tpu.memory_space<vmem>>, vector<8x16xbf16>,
    %340 = vector.extract_strided_slice %335 {offsets = [0, 2], sizes = [8, 16], strides = [1, 1]} : vector<8x22xbf16> to vector<8x16xbf16>
    %c128_279 = arith.constant 128 : index
    %c0_280 = arith.constant 0 : index
    %341 = vector.load %arg8[%c128_279, %c0_280] : memref<392x16xbf16, #tpu.memory_space<vmem>>, vector<8x16xbf16>
    tpu.vector_store %arg8[%c128_279, %c0_280], %340 {strides = array<i32>} : memref<392x16xbf16, #tpu.memory_space<vmem>>, vector<8x16xbf16>,
    %342 = vector.extract_strided_slice %335 {offsets = [0, 3], sizes = [8, 16], strides = [1, 1]} : vector<8x22xbf16> to vector<8x16xbf16>
    %c136_281 = arith.constant 136 : index
    %c0_282 = arith.constant 0 : index
    %343 = vector.load %arg8[%c136_281, %c0_282] : memref<392x16xbf16, #tpu.memory_space<vmem>>, vector<8x16xbf16>
    tpu.vector_store %arg8[%c136_281, %c0_282], %342 {strides = array<i32>} : memref<392x16xbf16, #tpu.memory_space<vmem>>, vector<8x16xbf16>,
    %344 = vector.extract_strided_slice %335 {offsets = [0, 4], sizes = [8, 16], strides = [1, 1]} : vector<8x22xbf16> to vector<8x16xbf16>
    %c144_283 = arith.constant 144 : index
    %c0_284 = arith.constant 0 : index
    %345 = vector.load %arg8[%c144_283, %c0_284] : memref<392x16xbf16, #tpu.memory_space<vmem>>, vector<8x16xbf16>
    tpu.vector_store %arg8[%c144_283, %c0_284], %344 {strides = array<i32>} : memref<392x16xbf16, #tpu.memory_space<vmem>>, vector<8x16xbf16>,
    %346 = vector.extract_strided_slice %335 {offsets = [0, 5], sizes = [8, 16], strides = [1, 1]} : vector<8x22xbf16> to vector<8x16xbf16>
    %c152_285 = arith.constant 152 : index
    %c0_286 = arith.constant 0 : index
    %347 = vector.load %arg8[%c152_285, %c0_286] : memref<392x16xbf16, #tpu.memory_space<vmem>>, vector<8x16xbf16>
    tpu.vector_store %arg8[%c152_285, %c0_286], %346 {strides = array<i32>} : memref<392x16xbf16, #tpu.memory_space<vmem>>, vector<8x16xbf16>,
    %348 = vector.extract_strided_slice %335 {offsets = [0, 6], sizes = [8, 16], strides = [1, 1]} : vector<8x22xbf16> to vector<8x16xbf16>
    %c160_287 = arith.constant 160 : index
    %c0_288 = arith.constant 0 : index
    %349 = vector.load %arg8[%c160_287, %c0_288] : memref<392x16xbf16, #tpu.memory_space<vmem>>, vector<8x16xbf16>
    tpu.vector_store %arg8[%c160_287, %c0_288], %348 {strides = array<i32>} : memref<392x16xbf16, #tpu.memory_space<vmem>>, vector<8x16xbf16>,
    %c2_i32_289 = arith.constant 2 : i32
    %350 = arith.addi %0, %c2_i32_289 : i32
    %c3_i32_290 = arith.constant 3 : i32
    %351 = arith.addi %350, %c3_i32_290 : i32
    %c0_291 = arith.constant 0 : index
    %352 = arith.index_cast %351 : i32 to index
    %c0_292 = arith.constant 0 : index
    %c0_293 = arith.constant 0 : index
    %353 = vector.load %arg3[%c0_291, %352, %c0_292, %c0_293] : memref<1x22x8x22xbf16, #tpu.memory_space<vmem>>, vector<1x1x8x22xbf16>
    %354 = vector.shape_cast %353 : vector<1x1x8x22xbf16> to vector<8x22xbf16>
    %355 = vector.extract_strided_slice %354 {offsets = [0, 0], sizes = [8, 16], strides = [1, 1]} : vector<8x22xbf16> to vector<8x16xbf16>
    %c168_294 = arith.constant 168 : index
    %c0_295 = arith.constant 0 : index
    %356 = vector.load %arg8[%c168_294, %c0_295] : memref<392x16xbf16, #tpu.memory_space<vmem>>, vector<8x16xbf16>
    tpu.vector_store %arg8[%c168_294, %c0_295], %355 {strides = array<i32>} : memref<392x16xbf16, #tpu.memory_space<vmem>>, vector<8x16xbf16>,
    %357 = vector.extract_strided_slice %354 {offsets = [0, 1], sizes = [8, 16], strides = [1, 1]} : vector<8x22xbf16> to vector<8x16xbf16>
    %c176_296 = arith.constant 176 : index
    %c0_297 = arith.constant 0 : index
    %358 = vector.load %arg8[%c176_296, %c0_297] : memref<392x16xbf16, #tpu.memory_space<vmem>>, vector<8x16xbf16>
    tpu.vector_store %arg8[%c176_296, %c0_297], %357 {strides = array<i32>} : memref<392x16xbf16, #tpu.memory_space<vmem>>, vector<8x16xbf16>,
    %359 = vector.extract_strided_slice %354 {offsets = [0, 2], sizes = [8, 16], strides = [1, 1]} : vector<8x22xbf16> to vector<8x16xbf16>
    %c184_298 = arith.constant 184 : index
    %c0_299 = arith.constant 0 : index
    %360 = vector.load %arg8[%c184_298, %c0_299] : memref<392x16xbf16, #tpu.memory_space<vmem>>, vector<8x16xbf16>
    tpu.vector_store %arg8[%c184_298, %c0_299], %359 {strides = array<i32>} : memref<392x16xbf16, #tpu.memory_space<vmem>>, vector<8x16xbf16>,
    %361 = vector.extract_strided_slice %354 {offsets = [0, 3], sizes = [8, 16], strides = [1, 1]} : vector<8x22xbf16> to vector<8x16xbf16>
    %c192_300 = arith.constant 192 : index
    %c0_301 = arith.constant 0 : index
    %362 = vector.load %arg8[%c192_300, %c0_301] : memref<392x16xbf16, #tpu.memory_space<vmem>>, vector<8x16xbf16>
    tpu.vector_store %arg8[%c192_300, %c0_301], %361 {strides = array<i32>} : memref<392x16xbf16, #tpu.memory_space<vmem>>, vector<8x16xbf16>,
    %363 = vector.extract_strided_slice %354 {offsets = [0, 4], sizes = [8, 16], strides = [1, 1]} : vector<8x22xbf16> to vector<8x16xbf16>
    %c200_302 = arith.constant 200 : index
    %c0_303 = arith.constant 0 : index
    %364 = vector.load %arg8[%c200_302, %c0_303] : memref<392x16xbf16, #tpu.memory_space<vmem>>, vector<8x16xbf16>
    tpu.vector_store %arg8[%c200_302, %c0_303], %363 {strides = array<i32>} : memref<392x16xbf16, #tpu.memory_space<vmem>>, vector<8x16xbf16>,
    %365 = vector.extract_strided_slice %354 {offsets = [0, 5], sizes = [8, 16], strides = [1, 1]} : vector<8x22xbf16> to vector<8x16xbf16>
    %c208_304 = arith.constant 208 : index
    %c0_305 = arith.constant 0 : index
    %366 = vector.load %arg8[%c208_304, %c0_305] : memref<392x16xbf16, #tpu.memory_space<vmem>>, vector<8x16xbf16>
    tpu.vector_store %arg8[%c208_304, %c0_305], %365 {strides = array<i32>} : memref<392x16xbf16, #tpu.memory_space<vmem>>, vector<8x16xbf16>,
    %367 = vector.extract_strided_slice %354 {offsets = [0, 6], sizes = [8, 16], strides = [1, 1]} : vector<8x22xbf16> to vector<8x16xbf16>
    %c216_306 = arith.constant 216 : index
    %c0_307 = arith.constant 0 : index
    %368 = vector.load %arg8[%c216_306, %c0_307] : memref<392x16xbf16, #tpu.memory_space<vmem>>, vector<8x16xbf16>
    tpu.vector_store %arg8[%c216_306, %c0_307], %367 {strides = array<i32>} : memref<392x16xbf16, #tpu.memory_space<vmem>>, vector<8x16xbf16>,
    %c2_i32_308 = arith.constant 2 : i32
    %369 = arith.addi %0, %c2_i32_308 : i32
    %c4_i32_309 = arith.constant 4 : i32
    %370 = arith.addi %369, %c4_i32_309 : i32
    %c0_310 = arith.constant 0 : index
    %371 = arith.index_cast %370 : i32 to index
    %c0_311 = arith.constant 0 : index
    %c0_312 = arith.constant 0 : index
    %372 = vector.load %arg3[%c0_310, %371, %c0_311, %c0_312] : memref<1x22x8x22xbf16, #tpu.memory_space<vmem>>, vector<1x1x8x22xbf16>
    %373 = vector.shape_cast %372 : vector<1x1x8x22xbf16> to vector<8x22xbf16>
    %374 = vector.extract_strided_slice %373 {offsets = [0, 0], sizes = [8, 16], strides = [1, 1]} : vector<8x22xbf16> to vector<8x16xbf16>
    %c224_313 = arith.constant 224 : index
    %c0_314 = arith.constant 0 : index
    %375 = vector.load %arg8[%c224_313, %c0_314] : memref<392x16xbf16, #tpu.memory_space<vmem>>, vector<8x16xbf16>
    tpu.vector_store %arg8[%c224_313, %c0_314], %374 {strides = array<i32>} : memref<392x16xbf16, #tpu.memory_space<vmem>>, vector<8x16xbf16>,
    %376 = vector.extract_strided_slice %373 {offsets = [0, 1], sizes = [8, 16], strides = [1, 1]} : vector<8x22xbf16> to vector<8x16xbf16>
    %c232_315 = arith.constant 232 : index
    %c0_316 = arith.constant 0 : index
    %377 = vector.load %arg8[%c232_315, %c0_316] : memref<392x16xbf16, #tpu.memory_space<vmem>>, vector<8x16xbf16>
    tpu.vector_store %arg8[%c232_315, %c0_316], %376 {strides = array<i32>} : memref<392x16xbf16, #tpu.memory_space<vmem>>, vector<8x16xbf16>,
    %378 = vector.extract_strided_slice %373 {offsets = [0, 2], sizes = [8, 16], strides = [1, 1]} : vector<8x22xbf16> to vector<8x16xbf16>
    %c240_317 = arith.constant 240 : index
    %c0_318 = arith.constant 0 : index
    %379 = vector.load %arg8[%c240_317, %c0_318] : memref<392x16xbf16, #tpu.memory_space<vmem>>, vector<8x16xbf16>
    tpu.vector_store %arg8[%c240_317, %c0_318], %378 {strides = array<i32>} : memref<392x16xbf16, #tpu.memory_space<vmem>>, vector<8x16xbf16>,
    %380 = vector.extract_strided_slice %373 {offsets = [0, 3], sizes = [8, 16], strides = [1, 1]} : vector<8x22xbf16> to vector<8x16xbf16>
    %c248_319 = arith.constant 248 : index
    %c0_320 = arith.constant 0 : index
    %381 = vector.load %arg8[%c248_319, %c0_320] : memref<392x16xbf16, #tpu.memory_space<vmem>>, vector<8x16xbf16>
    tpu.vector_store %arg8[%c248_319, %c0_320], %380 {strides = array<i32>} : memref<392x16xbf16, #tpu.memory_space<vmem>>, vector<8x16xbf16>,
    %382 = vector.extract_strided_slice %373 {offsets = [0, 4], sizes = [8, 16], strides = [1, 1]} : vector<8x22xbf16> to vector<8x16xbf16>
    %c256_321 = arith.constant 256 : index
    %c0_322 = arith.constant 0 : index
    %383 = vector.load %arg8[%c256_321, %c0_322] : memref<392x16xbf16, #tpu.memory_space<vmem>>, vector<8x16xbf16>
    tpu.vector_store %arg8[%c256_321, %c0_322], %382 {strides = array<i32>} : memref<392x16xbf16, #tpu.memory_space<vmem>>, vector<8x16xbf16>,
    %384 = vector.extract_strided_slice %373 {offsets = [0, 5], sizes = [8, 16], strides = [1, 1]} : vector<8x22xbf16> to vector<8x16xbf16>
    %c264_323 = arith.constant 264 : index
    %c0_324 = arith.constant 0 : index
    %385 = vector.load %arg8[%c264_323, %c0_324] : memref<392x16xbf16, #tpu.memory_space<vmem>>, vector<8x16xbf16>
    tpu.vector_store %arg8[%c264_323, %c0_324], %384 {strides = array<i32>} : memref<392x16xbf16, #tpu.memory_space<vmem>>, vector<8x16xbf16>,
    %386 = vector.extract_strided_slice %373 {offsets = [0, 6], sizes = [8, 16], strides = [1, 1]} : vector<8x22xbf16> to vector<8x16xbf16>
    %c272_325 = arith.constant 272 : index
    %c0_326 = arith.constant 0 : index
    %387 = vector.load %arg8[%c272_325, %c0_326] : memref<392x16xbf16, #tpu.memory_space<vmem>>, vector<8x16xbf16>
    tpu.vector_store %arg8[%c272_325, %c0_326], %386 {strides = array<i32>} : memref<392x16xbf16, #tpu.memory_space<vmem>>, vector<8x16xbf16>,
    %c2_i32_327 = arith.constant 2 : i32
    %388 = arith.addi %0, %c2_i32_327 : i32
    %c5_i32_328 = arith.constant 5 : i32
    %389 = arith.addi %388, %c5_i32_328 : i32
    %c0_329 = arith.constant 0 : index
    %390 = arith.index_cast %389 : i32 to index
    %c0_330 = arith.constant 0 : index
    %c0_331 = arith.constant 0 : index
    %391 = vector.load %arg3[%c0_329, %390, %c0_330, %c0_331] : memref<1x22x8x22xbf16, #tpu.memory_space<vmem>>, vector<1x1x8x22xbf16>
    %392 = vector.shape_cast %391 : vector<1x1x8x22xbf16> to vector<8x22xbf16>
    %393 = vector.extract_strided_slice %392 {offsets = [0, 0], sizes = [8, 16], strides = [1, 1]} : vector<8x22xbf16> to vector<8x16xbf16>
    %c280_332 = arith.constant 280 : index
    %c0_333 = arith.constant 0 : index
    %394 = vector.load %arg8[%c280_332, %c0_333] : memref<392x16xbf16, #tpu.memory_space<vmem>>, vector<8x16xbf16>
    tpu.vector_store %arg8[%c280_332, %c0_333], %393 {strides = array<i32>} : memref<392x16xbf16, #tpu.memory_space<vmem>>, vector<8x16xbf16>,
    %395 = vector.extract_strided_slice %392 {offsets = [0, 1], sizes = [8, 16], strides = [1, 1]} : vector<8x22xbf16> to vector<8x16xbf16>
    %c288_334 = arith.constant 288 : index
    %c0_335 = arith.constant 0 : index
    %396 = vector.load %arg8[%c288_334, %c0_335] : memref<392x16xbf16, #tpu.memory_space<vmem>>, vector<8x16xbf16>
    tpu.vector_store %arg8[%c288_334, %c0_335], %395 {strides = array<i32>} : memref<392x16xbf16, #tpu.memory_space<vmem>>, vector<8x16xbf16>,
    %397 = vector.extract_strided_slice %392 {offsets = [0, 2], sizes = [8, 16], strides = [1, 1]} : vector<8x22xbf16> to vector<8x16xbf16>
    %c296_336 = arith.constant 296 : index
    %c0_337 = arith.constant 0 : index
    %398 = vector.load %arg8[%c296_336, %c0_337] : memref<392x16xbf16, #tpu.memory_space<vmem>>, vector<8x16xbf16>
    tpu.vector_store %arg8[%c296_336, %c0_337], %397 {strides = array<i32>} : memref<392x16xbf16, #tpu.memory_space<vmem>>, vector<8x16xbf16>,
    %399 = vector.extract_strided_slice %392 {offsets = [0, 3], sizes = [8, 16], strides = [1, 1]} : vector<8x22xbf16> to vector<8x16xbf16>
    %c304_338 = arith.constant 304 : index
    %c0_339 = arith.constant 0 : index
    %400 = vector.load %arg8[%c304_338, %c0_339] : memref<392x16xbf16, #tpu.memory_space<vmem>>, vector<8x16xbf16>
    tpu.vector_store %arg8[%c304_338, %c0_339], %399 {strides = array<i32>} : memref<392x16xbf16, #tpu.memory_space<vmem>>, vector<8x16xbf16>,
    %401 = vector.extract_strided_slice %392 {offsets = [0, 4], sizes = [8, 16], strides = [1, 1]} : vector<8x22xbf16> to vector<8x16xbf16>
    %c312_340 = arith.constant 312 : index
    %c0_341 = arith.constant 0 : index
    %402 = vector.load %arg8[%c312_340, %c0_341] : memref<392x16xbf16, #tpu.memory_space<vmem>>, vector<8x16xbf16>
    tpu.vector_store %arg8[%c312_340, %c0_341], %401 {strides = array<i32>} : memref<392x16xbf16, #tpu.memory_space<vmem>>, vector<8x16xbf16>,
    %403 = vector.extract_strided_slice %392 {offsets = [0, 5], sizes = [8, 16], strides = [1, 1]} : vector<8x22xbf16> to vector<8x16xbf16>
    %c320_342 = arith.constant 320 : index
    %c0_343 = arith.constant 0 : index
    %404 = vector.load %arg8[%c320_342, %c0_343] : memref<392x16xbf16, #tpu.memory_space<vmem>>, vector<8x16xbf16>
    tpu.vector_store %arg8[%c320_342, %c0_343], %403 {strides = array<i32>} : memref<392x16xbf16, #tpu.memory_space<vmem>>, vector<8x16xbf16>,
    %405 = vector.extract_strided_slice %392 {offsets = [0, 6], sizes = [8, 16], strides = [1, 1]} : vector<8x22xbf16> to vector<8x16xbf16>
    %c328_344 = arith.constant 328 : index
    %c0_345 = arith.constant 0 : index
    %406 = vector.load %arg8[%c328_344, %c0_345] : memref<392x16xbf16, #tpu.memory_space<vmem>>, vector<8x16xbf16>
    tpu.vector_store %arg8[%c328_344, %c0_345], %405 {strides = array<i32>} : memref<392x16xbf16, #tpu.memory_space<vmem>>, vector<8x16xbf16>,
    %c2_i32_346 = arith.constant 2 : i32
    %407 = arith.addi %0, %c2_i32_346 : i32
    %c6_i32_347 = arith.constant 6 : i32
    %408 = arith.addi %407, %c6_i32_347 : i32
    %c0_348 = arith.constant 0 : index
    %409 = arith.index_cast %408 : i32 to index
    %c0_349 = arith.constant 0 : index
    %c0_350 = arith.constant 0 : index
    %410 = vector.load %arg3[%c0_348, %409, %c0_349, %c0_350] : memref<1x22x8x22xbf16, #tpu.memory_space<vmem>>, vector<1x1x8x22xbf16>
    %411 = vector.shape_cast %410 : vector<1x1x8x22xbf16> to vector<8x22xbf16>
    %412 = vector.extract_strided_slice %411 {offsets = [0, 0], sizes = [8, 16], strides = [1, 1]} : vector<8x22xbf16> to vector<8x16xbf16>
    %c336_351 = arith.constant 336 : index
    %c0_352 = arith.constant 0 : index
    %413 = vector.load %arg8[%c336_351, %c0_352] : memref<392x16xbf16, #tpu.memory_space<vmem>>, vector<8x16xbf16>
    tpu.vector_store %arg8[%c336_351, %c0_352], %412 {strides = array<i32>} : memref<392x16xbf16, #tpu.memory_space<vmem>>, vector<8x16xbf16>,
    %414 = vector.extract_strided_slice %411 {offsets = [0, 1], sizes = [8, 16], strides = [1, 1]} : vector<8x22xbf16> to vector<8x16xbf16>
    %c344_353 = arith.constant 344 : index
    %c0_354 = arith.constant 0 : index
    %415 = vector.load %arg8[%c344_353, %c0_354] : memref<392x16xbf16, #tpu.memory_space<vmem>>, vector<8x16xbf16>
    tpu.vector_store %arg8[%c344_353, %c0_354], %414 {strides = array<i32>} : memref<392x16xbf16, #tpu.memory_space<vmem>>, vector<8x16xbf16>,
    %416 = vector.extract_strided_slice %411 {offsets = [0, 2], sizes = [8, 16], strides = [1, 1]} : vector<8x22xbf16> to vector<8x16xbf16>
    %c352_355 = arith.constant 352 : index
    %c0_356 = arith.constant 0 : index
    %417 = vector.load %arg8[%c352_355, %c0_356] : memref<392x16xbf16, #tpu.memory_space<vmem>>, vector<8x16xbf16>
    tpu.vector_store %arg8[%c352_355, %c0_356], %416 {strides = array<i32>} : memref<392x16xbf16, #tpu.memory_space<vmem>>, vector<8x16xbf16>,
    %418 = vector.extract_strided_slice %411 {offsets = [0, 3], sizes = [8, 16], strides = [1, 1]} : vector<8x22xbf16> to vector<8x16xbf16>
    %c360_357 = arith.constant 360 : index
    %c0_358 = arith.constant 0 : index
    %419 = vector.load %arg8[%c360_357, %c0_358] : memref<392x16xbf16, #tpu.memory_space<vmem>>, vector<8x16xbf16>
    tpu.vector_store %arg8[%c360_357, %c0_358], %418 {strides = array<i32>} : memref<392x16xbf16, #tpu.memory_space<vmem>>, vector<8x16xbf16>,
    %420 = vector.extract_strided_slice %411 {offsets = [0, 4], sizes = [8, 16], strides = [1, 1]} : vector<8x22xbf16> to vector<8x16xbf16>
    %c368_359 = arith.constant 368 : index
    %c0_360 = arith.constant 0 : index
    %421 = vector.load %arg8[%c368_359, %c0_360] : memref<392x16xbf16, #tpu.memory_space<vmem>>, vector<8x16xbf16>
    tpu.vector_store %arg8[%c368_359, %c0_360], %420 {strides = array<i32>} : memref<392x16xbf16, #tpu.memory_space<vmem>>, vector<8x16xbf16>,
    %422 = vector.extract_strided_slice %411 {offsets = [0, 5], sizes = [8, 16], strides = [1, 1]} : vector<8x22xbf16> to vector<8x16xbf16>
    %c376_361 = arith.constant 376 : index
    %c0_362 = arith.constant 0 : index
    %423 = vector.load %arg8[%c376_361, %c0_362] : memref<392x16xbf16, #tpu.memory_space<vmem>>, vector<8x16xbf16>
    tpu.vector_store %arg8[%c376_361, %c0_362], %422 {strides = array<i32>} : memref<392x16xbf16, #tpu.memory_space<vmem>>, vector<8x16xbf16>,
    %424 = vector.extract_strided_slice %411 {offsets = [0, 6], sizes = [8, 16], strides = [1, 1]} : vector<8x22xbf16> to vector<8x16xbf16>
    %c384_363 = arith.constant 384 : index
    %c0_364 = arith.constant 0 : index
    %425 = vector.load %arg8[%c384_363, %c0_364] : memref<392x16xbf16, #tpu.memory_space<vmem>>, vector<8x16xbf16>
    tpu.vector_store %arg8[%c384_363, %c0_364], %424 {strides = array<i32>} : memref<392x16xbf16, #tpu.memory_space<vmem>>, vector<8x16xbf16>,
    %c0_365 = arith.constant 0 : index
    %c0_366 = arith.constant 0 : index
    %426 = vector.load %arg4[%c0_365, %c0_366] : memref<8x392xbf16, #tpu.memory_space<vmem>>, vector<8x392xbf16>
    %c0_367 = arith.constant 0 : index
    %c0_368 = arith.constant 0 : index
    %427 = vector.load %arg8[%c0_367, %c0_368] : memref<392x16xbf16, #tpu.memory_space<vmem>>, vector<392x16xbf16>
    %cst_369 = arith.constant dense<0.000000e+00> : vector<8x16xf32>
    %428 = tpu.matmul %426, %427, %cst_369 {dimension_numbers = #tpu.dot_dimension_numbers<[1], [0], [0], [1], [0, 0, 1, 1], [], []>} : vector<8x392xbf16>, vector<392x16xbf16>, vector<8x16xf32> -> vector<8x16xf32>
    %429 = vector.broadcast %1 : vector<8x1xf32> to vector<8x16xf32>
    %430 = arith.mulf %428, %429 : vector<8x16xf32>
    %431 = vector.broadcast %2 : vector<8x1xf32> to vector<8x16xf32>
    %432 = arith.addf %430, %431 : vector<8x16xf32>
    %cst_370 = arith.constant 0.000000e+00 : f32
    %433 = vector.broadcast %cst_370 : f32 to vector<8x16xf32>
    %434 = arith.maximumf %432, %433 : vector<8x16xf32>
    %c0_371 = arith.constant 0 : index
    %c0_372 = arith.constant 0 : index
    %c2 = arith.constant 2 : index
    %c0_373 = arith.constant 0 : index
    %435 = vector.load %arg7[%c0_371, %c0_372, %c2, %c0_373] : memref<1x8x8x16xf32, #tpu.memory_space<vmem>>, vector<1x8x1x16xf32>
    %436 = vector.shape_cast %435 : vector<1x8x1x16xf32> to vector<8x16xf32>
    %437 = vector.shape_cast %434 : vector<8x16xf32> to vector<1x8x1x16xf32>
    tpu.vector_store %arg7[%c0_371, %c0_372, %c2, %c0_373], %437 {strides = array<i32>} : memref<1x8x8x16xf32, #tpu.memory_space<vmem>>, vector<1x8x1x16xf32>,
    %c3_i32_374 = arith.constant 3 : i32
    %438 = arith.addi %0, %c3_i32_374 : i32
    %c0_i32_375 = arith.constant 0 : i32
    %439 = arith.addi %438, %c0_i32_375 : i32
    %c0_376 = arith.constant 0 : index
    %440 = arith.index_cast %439 : i32 to index
    %c0_377 = arith.constant 0 : index
    %c0_378 = arith.constant 0 : index
    %441 = vector.load %arg3[%c0_376, %440, %c0_377, %c0_378] : memref<1x22x8x22xbf16, #tpu.memory_space<vmem>>, vector<1x1x8x22xbf16>
    %442 = vector.shape_cast %441 : vector<1x1x8x22xbf16> to vector<8x22xbf16>
    %443 = vector.extract_strided_slice %442 {offsets = [0, 0], sizes = [8, 16], strides = [1, 1]} : vector<8x22xbf16> to vector<8x16xbf16>
    %c0_379 = arith.constant 0 : index
    %c0_380 = arith.constant 0 : index
    %444 = vector.load %arg8[%c0_379, %c0_380] : memref<392x16xbf16, #tpu.memory_space<vmem>>, vector<8x16xbf16>
    tpu.vector_store %arg8[%c0_379, %c0_380], %443 {strides = array<i32>} : memref<392x16xbf16, #tpu.memory_space<vmem>>, vector<8x16xbf16>,
    %445 = vector.extract_strided_slice %442 {offsets = [0, 1], sizes = [8, 16], strides = [1, 1]} : vector<8x22xbf16> to vector<8x16xbf16>
    %c8_381 = arith.constant 8 : index
    %c0_382 = arith.constant 0 : index
    %446 = vector.load %arg8[%c8_381, %c0_382] : memref<392x16xbf16, #tpu.memory_space<vmem>>, vector<8x16xbf16>
    tpu.vector_store %arg8[%c8_381, %c0_382], %445 {strides = array<i32>} : memref<392x16xbf16, #tpu.memory_space<vmem>>, vector<8x16xbf16>,
    %447 = vector.extract_strided_slice %442 {offsets = [0, 2], sizes = [8, 16], strides = [1, 1]} : vector<8x22xbf16> to vector<8x16xbf16>
    %c16_383 = arith.constant 16 : index
    %c0_384 = arith.constant 0 : index
    %448 = vector.load %arg8[%c16_383, %c0_384] : memref<392x16xbf16, #tpu.memory_space<vmem>>, vector<8x16xbf16>
    tpu.vector_store %arg8[%c16_383, %c0_384], %447 {strides = array<i32>} : memref<392x16xbf16, #tpu.memory_space<vmem>>, vector<8x16xbf16>,
    %449 = vector.extract_strided_slice %442 {offsets = [0, 3], sizes = [8, 16], strides = [1, 1]} : vector<8x22xbf16> to vector<8x16xbf16>
    %c24_385 = arith.constant 24 : index
    %c0_386 = arith.constant 0 : index
    %450 = vector.load %arg8[%c24_385, %c0_386] : memref<392x16xbf16, #tpu.memory_space<vmem>>, vector<8x16xbf16>
    tpu.vector_store %arg8[%c24_385, %c0_386], %449 {strides = array<i32>} : memref<392x16xbf16, #tpu.memory_space<vmem>>, vector<8x16xbf16>,
    %451 = vector.extract_strided_slice %442 {offsets = [0, 4], sizes = [8, 16], strides = [1, 1]} : vector<8x22xbf16> to vector<8x16xbf16>
    %c32_387 = arith.constant 32 : index
    %c0_388 = arith.constant 0 : index
    %452 = vector.load %arg8[%c32_387, %c0_388] : memref<392x16xbf16, #tpu.memory_space<vmem>>, vector<8x16xbf16>
    tpu.vector_store %arg8[%c32_387, %c0_388], %451 {strides = array<i32>} : memref<392x16xbf16, #tpu.memory_space<vmem>>, vector<8x16xbf16>,
    %453 = vector.extract_strided_slice %442 {offsets = [0, 5], sizes = [8, 16], strides = [1, 1]} : vector<8x22xbf16> to vector<8x16xbf16>
    %c40_389 = arith.constant 40 : index
    %c0_390 = arith.constant 0 : index
    %454 = vector.load %arg8[%c40_389, %c0_390] : memref<392x16xbf16, #tpu.memory_space<vmem>>, vector<8x16xbf16>
    tpu.vector_store %arg8[%c40_389, %c0_390], %453 {strides = array<i32>} : memref<392x16xbf16, #tpu.memory_space<vmem>>, vector<8x16xbf16>,
    %455 = vector.extract_strided_slice %442 {offsets = [0, 6], sizes = [8, 16], strides = [1, 1]} : vector<8x22xbf16> to vector<8x16xbf16>
    %c48_391 = arith.constant 48 : index
    %c0_392 = arith.constant 0 : index
    %456 = vector.load %arg8[%c48_391, %c0_392] : memref<392x16xbf16, #tpu.memory_space<vmem>>, vector<8x16xbf16>
    tpu.vector_store %arg8[%c48_391, %c0_392], %455 {strides = array<i32>} : memref<392x16xbf16, #tpu.memory_space<vmem>>, vector<8x16xbf16>,
    %c3_i32_393 = arith.constant 3 : i32
    %457 = arith.addi %0, %c3_i32_393 : i32
    %c1_i32_394 = arith.constant 1 : i32
    %458 = arith.addi %457, %c1_i32_394 : i32
    %c0_395 = arith.constant 0 : index
    %459 = arith.index_cast %458 : i32 to index
    %c0_396 = arith.constant 0 : index
    %c0_397 = arith.constant 0 : index
    %460 = vector.load %arg3[%c0_395, %459, %c0_396, %c0_397] : memref<1x22x8x22xbf16, #tpu.memory_space<vmem>>, vector<1x1x8x22xbf16>
    %461 = vector.shape_cast %460 : vector<1x1x8x22xbf16> to vector<8x22xbf16>
    %462 = vector.extract_strided_slice %461 {offsets = [0, 0], sizes = [8, 16], strides = [1, 1]} : vector<8x22xbf16> to vector<8x16xbf16>
    %c56_398 = arith.constant 56 : index
    %c0_399 = arith.constant 0 : index
    %463 = vector.load %arg8[%c56_398, %c0_399] : memref<392x16xbf16, #tpu.memory_space<vmem>>, vector<8x16xbf16>
    tpu.vector_store %arg8[%c56_398, %c0_399], %462 {strides = array<i32>} : memref<392x16xbf16, #tpu.memory_space<vmem>>, vector<8x16xbf16>,
    %464 = vector.extract_strided_slice %461 {offsets = [0, 1], sizes = [8, 16], strides = [1, 1]} : vector<8x22xbf16> to vector<8x16xbf16>
    %c64_400 = arith.constant 64 : index
    %c0_401 = arith.constant 0 : index
    %465 = vector.load %arg8[%c64_400, %c0_401] : memref<392x16xbf16, #tpu.memory_space<vmem>>, vector<8x16xbf16>
    tpu.vector_store %arg8[%c64_400, %c0_401], %464 {strides = array<i32>} : memref<392x16xbf16, #tpu.memory_space<vmem>>, vector<8x16xbf16>,
    %466 = vector.extract_strided_slice %461 {offsets = [0, 2], sizes = [8, 16], strides = [1, 1]} : vector<8x22xbf16> to vector<8x16xbf16>
    %c72_402 = arith.constant 72 : index
    %c0_403 = arith.constant 0 : index
    %467 = vector.load %arg8[%c72_402, %c0_403] : memref<392x16xbf16, #tpu.memory_space<vmem>>, vector<8x16xbf16>
    tpu.vector_store %arg8[%c72_402, %c0_403], %466 {strides = array<i32>} : memref<392x16xbf16, #tpu.memory_space<vmem>>, vector<8x16xbf16>,
    %468 = vector.extract_strided_slice %461 {offsets = [0, 3], sizes = [8, 16], strides = [1, 1]} : vector<8x22xbf16> to vector<8x16xbf16>
    %c80_404 = arith.constant 80 : index
    %c0_405 = arith.constant 0 : index
    %469 = vector.load %arg8[%c80_404, %c0_405] : memref<392x16xbf16, #tpu.memory_space<vmem>>, vector<8x16xbf16>
    tpu.vector_store %arg8[%c80_404, %c0_405], %468 {strides = array<i32>} : memref<392x16xbf16, #tpu.memory_space<vmem>>, vector<8x16xbf16>,
    %470 = vector.extract_strided_slice %461 {offsets = [0, 4], sizes = [8, 16], strides = [1, 1]} : vector<8x22xbf16> to vector<8x16xbf16>
    %c88_406 = arith.constant 88 : index
    %c0_407 = arith.constant 0 : index
    %471 = vector.load %arg8[%c88_406, %c0_407] : memref<392x16xbf16, #tpu.memory_space<vmem>>, vector<8x16xbf16>
    tpu.vector_store %arg8[%c88_406, %c0_407], %470 {strides = array<i32>} : memref<392x16xbf16, #tpu.memory_space<vmem>>, vector<8x16xbf16>,
    %472 = vector.extract_strided_slice %461 {offsets = [0, 5], sizes = [8, 16], strides = [1, 1]} : vector<8x22xbf16> to vector<8x16xbf16>
    %c96_408 = arith.constant 96 : index
    %c0_409 = arith.constant 0 : index
    %473 = vector.load %arg8[%c96_408, %c0_409] : memref<392x16xbf16, #tpu.memory_space<vmem>>, vector<8x16xbf16>
    tpu.vector_store %arg8[%c96_408, %c0_409], %472 {strides = array<i32>} : memref<392x16xbf16, #tpu.memory_space<vmem>>, vector<8x16xbf16>,
    %474 = vector.extract_strided_slice %461 {offsets = [0, 6], sizes = [8, 16], strides = [1, 1]} : vector<8x22xbf16> to vector<8x16xbf16>
    %c104_410 = arith.constant 104 : index
    %c0_411 = arith.constant 0 : index
    %475 = vector.load %arg8[%c104_410, %c0_411] : memref<392x16xbf16, #tpu.memory_space<vmem>>, vector<8x16xbf16>
    tpu.vector_store %arg8[%c104_410, %c0_411], %474 {strides = array<i32>} : memref<392x16xbf16, #tpu.memory_space<vmem>>, vector<8x16xbf16>,
    %c3_i32_412 = arith.constant 3 : i32
    %476 = arith.addi %0, %c3_i32_412 : i32
    %c2_i32_413 = arith.constant 2 : i32
    %477 = arith.addi %476, %c2_i32_413 : i32
    %c0_414 = arith.constant 0 : index
    %478 = arith.index_cast %477 : i32 to index
    %c0_415 = arith.constant 0 : index
    %c0_416 = arith.constant 0 : index
    %479 = vector.load %arg3[%c0_414, %478, %c0_415, %c0_416] : memref<1x22x8x22xbf16, #tpu.memory_space<vmem>>, vector<1x1x8x22xbf16>
    %480 = vector.shape_cast %479 : vector<1x1x8x22xbf16> to vector<8x22xbf16>
    %481 = vector.extract_strided_slice %480 {offsets = [0, 0], sizes = [8, 16], strides = [1, 1]} : vector<8x22xbf16> to vector<8x16xbf16>
    %c112_417 = arith.constant 112 : index
    %c0_418 = arith.constant 0 : index
    %482 = vector.load %arg8[%c112_417, %c0_418] : memref<392x16xbf16, #tpu.memory_space<vmem>>, vector<8x16xbf16>
    tpu.vector_store %arg8[%c112_417, %c0_418], %481 {strides = array<i32>} : memref<392x16xbf16, #tpu.memory_space<vmem>>, vector<8x16xbf16>,
    %483 = vector.extract_strided_slice %480 {offsets = [0, 1], sizes = [8, 16], strides = [1, 1]} : vector<8x22xbf16> to vector<8x16xbf16>
    %c120_419 = arith.constant 120 : index
    %c0_420 = arith.constant 0 : index
    %484 = vector.load %arg8[%c120_419, %c0_420] : memref<392x16xbf16, #tpu.memory_space<vmem>>, vector<8x16xbf16>
    tpu.vector_store %arg8[%c120_419, %c0_420], %483 {strides = array<i32>} : memref<392x16xbf16, #tpu.memory_space<vmem>>, vector<8x16xbf16>,
    %485 = vector.extract_strided_slice %480 {offsets = [0, 2], sizes = [8, 16], strides = [1, 1]} : vector<8x22xbf16> to vector<8x16xbf16>
    %c128_421 = arith.constant 128 : index
    %c0_422 = arith.constant 0 : index
    %486 = vector.load %arg8[%c128_421, %c0_422] : memref<392x16xbf16, #tpu.memory_space<vmem>>, vector<8x16xbf16>
    tpu.vector_store %arg8[%c128_421, %c0_422], %485 {strides = array<i32>} : memref<392x16xbf16, #tpu.memory_space<vmem>>, vector<8x16xbf16>,
    %487 = vector.extract_strided_slice %480 {offsets = [0, 3], sizes = [8, 16], strides = [1, 1]} : vector<8x22xbf16> to vector<8x16xbf16>
    %c136_423 = arith.constant 136 : index
    %c0_424 = arith.constant 0 : index
    %488 = vector.load %arg8[%c136_423, %c0_424] : memref<392x16xbf16, #tpu.memory_space<vmem>>, vector<8x16xbf16>
    tpu.vector_store %arg8[%c136_423, %c0_424], %487 {strides = array<i32>} : memref<392x16xbf16, #tpu.memory_space<vmem>>, vector<8x16xbf16>,
    %489 = vector.extract_strided_slice %480 {offsets = [0, 4], sizes = [8, 16], strides = [1, 1]} : vector<8x22xbf16> to vector<8x16xbf16>
    %c144_425 = arith.constant 144 : index
    %c0_426 = arith.constant 0 : index
    %490 = vector.load %arg8[%c144_425, %c0_426] : memref<392x16xbf16, #tpu.memory_space<vmem>>, vector<8x16xbf16>
    tpu.vector_store %arg8[%c144_425, %c0_426], %489 {strides = array<i32>} : memref<392x16xbf16, #tpu.memory_space<vmem>>, vector<8x16xbf16>,
    %491 = vector.extract_strided_slice %480 {offsets = [0, 5], sizes = [8, 16], strides = [1, 1]} : vector<8x22xbf16> to vector<8x16xbf16>
    %c152_427 = arith.constant 152 : index
    %c0_428 = arith.constant 0 : index
    %492 = vector.load %arg8[%c152_427, %c0_428] : memref<392x16xbf16, #tpu.memory_space<vmem>>, vector<8x16xbf16>
    tpu.vector_store %arg8[%c152_427, %c0_428], %491 {strides = array<i32>} : memref<392x16xbf16, #tpu.memory_space<vmem>>, vector<8x16xbf16>,
    %493 = vector.extract_strided_slice %480 {offsets = [0, 6], sizes = [8, 16], strides = [1, 1]} : vector<8x22xbf16> to vector<8x16xbf16>
    %c160_429 = arith.constant 160 : index
    %c0_430 = arith.constant 0 : index
    %494 = vector.load %arg8[%c160_429, %c0_430] : memref<392x16xbf16, #tpu.memory_space<vmem>>, vector<8x16xbf16>
    tpu.vector_store %arg8[%c160_429, %c0_430], %493 {strides = array<i32>} : memref<392x16xbf16, #tpu.memory_space<vmem>>, vector<8x16xbf16>,
    %c3_i32_431 = arith.constant 3 : i32
    %495 = arith.addi %0, %c3_i32_431 : i32
    %c3_i32_432 = arith.constant 3 : i32
    %496 = arith.addi %495, %c3_i32_432 : i32
    %c0_433 = arith.constant 0 : index
    %497 = arith.index_cast %496 : i32 to index
    %c0_434 = arith.constant 0 : index
    %c0_435 = arith.constant 0 : index
    %498 = vector.load %arg3[%c0_433, %497, %c0_434, %c0_435] : memref<1x22x8x22xbf16, #tpu.memory_space<vmem>>, vector<1x1x8x22xbf16>
    %499 = vector.shape_cast %498 : vector<1x1x8x22xbf16> to vector<8x22xbf16>
    %500 = vector.extract_strided_slice %499 {offsets = [0, 0], sizes = [8, 16], strides = [1, 1]} : vector<8x22xbf16> to vector<8x16xbf16>
    %c168_436 = arith.constant 168 : index
    %c0_437 = arith.constant 0 : index
    %501 = vector.load %arg8[%c168_436, %c0_437] : memref<392x16xbf16, #tpu.memory_space<vmem>>, vector<8x16xbf16>
    tpu.vector_store %arg8[%c168_436, %c0_437], %500 {strides = array<i32>} : memref<392x16xbf16, #tpu.memory_space<vmem>>, vector<8x16xbf16>,
    %502 = vector.extract_strided_slice %499 {offsets = [0, 1], sizes = [8, 16], strides = [1, 1]} : vector<8x22xbf16> to vector<8x16xbf16>
    %c176_438 = arith.constant 176 : index
    %c0_439 = arith.constant 0 : index
    %503 = vector.load %arg8[%c176_438, %c0_439] : memref<392x16xbf16, #tpu.memory_space<vmem>>, vector<8x16xbf16>
    tpu.vector_store %arg8[%c176_438, %c0_439], %502 {strides = array<i32>} : memref<392x16xbf16, #tpu.memory_space<vmem>>, vector<8x16xbf16>,
    %504 = vector.extract_strided_slice %499 {offsets = [0, 2], sizes = [8, 16], strides = [1, 1]} : vector<8x22xbf16> to vector<8x16xbf16>
    %c184_440 = arith.constant 184 : index
    %c0_441 = arith.constant 0 : index
    %505 = vector.load %arg8[%c184_440, %c0_441] : memref<392x16xbf16, #tpu.memory_space<vmem>>, vector<8x16xbf16>
    tpu.vector_store %arg8[%c184_440, %c0_441], %504 {strides = array<i32>} : memref<392x16xbf16, #tpu.memory_space<vmem>>, vector<8x16xbf16>,
    %506 = vector.extract_strided_slice %499 {offsets = [0, 3], sizes = [8, 16], strides = [1, 1]} : vector<8x22xbf16> to vector<8x16xbf16>
    %c192_442 = arith.constant 192 : index
    %c0_443 = arith.constant 0 : index
    %507 = vector.load %arg8[%c192_442, %c0_443] : memref<392x16xbf16, #tpu.memory_space<vmem>>, vector<8x16xbf16>
    tpu.vector_store %arg8[%c192_442, %c0_443], %506 {strides = array<i32>} : memref<392x16xbf16, #tpu.memory_space<vmem>>, vector<8x16xbf16>,
    %508 = vector.extract_strided_slice %499 {offsets = [0, 4], sizes = [8, 16], strides = [1, 1]} : vector<8x22xbf16> to vector<8x16xbf16>
    %c200_444 = arith.constant 200 : index
    %c0_445 = arith.constant 0 : index
    %509 = vector.load %arg8[%c200_444, %c0_445] : memref<392x16xbf16, #tpu.memory_space<vmem>>, vector<8x16xbf16>
    tpu.vector_store %arg8[%c200_444, %c0_445], %508 {strides = array<i32>} : memref<392x16xbf16, #tpu.memory_space<vmem>>, vector<8x16xbf16>,
    %510 = vector.extract_strided_slice %499 {offsets = [0, 5], sizes = [8, 16], strides = [1, 1]} : vector<8x22xbf16> to vector<8x16xbf16>
    %c208_446 = arith.constant 208 : index
    %c0_447 = arith.constant 0 : index
    %511 = vector.load %arg8[%c208_446, %c0_447] : memref<392x16xbf16, #tpu.memory_space<vmem>>, vector<8x16xbf16>
    tpu.vector_store %arg8[%c208_446, %c0_447], %510 {strides = array<i32>} : memref<392x16xbf16, #tpu.memory_space<vmem>>, vector<8x16xbf16>,
    %512 = vector.extract_strided_slice %499 {offsets = [0, 6], sizes = [8, 16], strides = [1, 1]} : vector<8x22xbf16> to vector<8x16xbf16>
    %c216_448 = arith.constant 216 : index
    %c0_449 = arith.constant 0 : index
    %513 = vector.load %arg8[%c216_448, %c0_449] : memref<392x16xbf16, #tpu.memory_space<vmem>>, vector<8x16xbf16>
    tpu.vector_store %arg8[%c216_448, %c0_449], %512 {strides = array<i32>} : memref<392x16xbf16, #tpu.memory_space<vmem>>, vector<8x16xbf16>,
    %c3_i32_450 = arith.constant 3 : i32
    %514 = arith.addi %0, %c3_i32_450 : i32
    %c4_i32_451 = arith.constant 4 : i32
    %515 = arith.addi %514, %c4_i32_451 : i32
    %c0_452 = arith.constant 0 : index
    %516 = arith.index_cast %515 : i32 to index
    %c0_453 = arith.constant 0 : index
    %c0_454 = arith.constant 0 : index
    %517 = vector.load %arg3[%c0_452, %516, %c0_453, %c0_454] : memref<1x22x8x22xbf16, #tpu.memory_space<vmem>>, vector<1x1x8x22xbf16>
    %518 = vector.shape_cast %517 : vector<1x1x8x22xbf16> to vector<8x22xbf16>
    %519 = vector.extract_strided_slice %518 {offsets = [0, 0], sizes = [8, 16], strides = [1, 1]} : vector<8x22xbf16> to vector<8x16xbf16>
    %c224_455 = arith.constant 224 : index
    %c0_456 = arith.constant 0 : index
    %520 = vector.load %arg8[%c224_455, %c0_456] : memref<392x16xbf16, #tpu.memory_space<vmem>>, vector<8x16xbf16>
    tpu.vector_store %arg8[%c224_455, %c0_456], %519 {strides = array<i32>} : memref<392x16xbf16, #tpu.memory_space<vmem>>, vector<8x16xbf16>,
    %521 = vector.extract_strided_slice %518 {offsets = [0, 1], sizes = [8, 16], strides = [1, 1]} : vector<8x22xbf16> to vector<8x16xbf16>
    %c232_457 = arith.constant 232 : index
    %c0_458 = arith.constant 0 : index
    %522 = vector.load %arg8[%c232_457, %c0_458] : memref<392x16xbf16, #tpu.memory_space<vmem>>, vector<8x16xbf16>
    tpu.vector_store %arg8[%c232_457, %c0_458], %521 {strides = array<i32>} : memref<392x16xbf16, #tpu.memory_space<vmem>>, vector<8x16xbf16>,
    %523 = vector.extract_strided_slice %518 {offsets = [0, 2], sizes = [8, 16], strides = [1, 1]} : vector<8x22xbf16> to vector<8x16xbf16>
    %c240_459 = arith.constant 240 : index
    %c0_460 = arith.constant 0 : index
    %524 = vector.load %arg8[%c240_459, %c0_460] : memref<392x16xbf16, #tpu.memory_space<vmem>>, vector<8x16xbf16>
    tpu.vector_store %arg8[%c240_459, %c0_460], %523 {strides = array<i32>} : memref<392x16xbf16, #tpu.memory_space<vmem>>, vector<8x16xbf16>,
    %525 = vector.extract_strided_slice %518 {offsets = [0, 3], sizes = [8, 16], strides = [1, 1]} : vector<8x22xbf16> to vector<8x16xbf16>
    %c248_461 = arith.constant 248 : index
    %c0_462 = arith.constant 0 : index
    %526 = vector.load %arg8[%c248_461, %c0_462] : memref<392x16xbf16, #tpu.memory_space<vmem>>, vector<8x16xbf16>
    tpu.vector_store %arg8[%c248_461, %c0_462], %525 {strides = array<i32>} : memref<392x16xbf16, #tpu.memory_space<vmem>>, vector<8x16xbf16>,
    %527 = vector.extract_strided_slice %518 {offsets = [0, 4], sizes = [8, 16], strides = [1, 1]} : vector<8x22xbf16> to vector<8x16xbf16>
    %c256_463 = arith.constant 256 : index
    %c0_464 = arith.constant 0 : index
    %528 = vector.load %arg8[%c256_463, %c0_464] : memref<392x16xbf16, #tpu.memory_space<vmem>>, vector<8x16xbf16>
    tpu.vector_store %arg8[%c256_463, %c0_464], %527 {strides = array<i32>} : memref<392x16xbf16, #tpu.memory_space<vmem>>, vector<8x16xbf16>,
    %529 = vector.extract_strided_slice %518 {offsets = [0, 5], sizes = [8, 16], strides = [1, 1]} : vector<8x22xbf16> to vector<8x16xbf16>
    %c264_465 = arith.constant 264 : index
    %c0_466 = arith.constant 0 : index
    %530 = vector.load %arg8[%c264_465, %c0_466] : memref<392x16xbf16, #tpu.memory_space<vmem>>, vector<8x16xbf16>
    tpu.vector_store %arg8[%c264_465, %c0_466], %529 {strides = array<i32>} : memref<392x16xbf16, #tpu.memory_space<vmem>>, vector<8x16xbf16>,
    %531 = vector.extract_strided_slice %518 {offsets = [0, 6], sizes = [8, 16], strides = [1, 1]} : vector<8x22xbf16> to vector<8x16xbf16>
    %c272_467 = arith.constant 272 : index
    %c0_468 = arith.constant 0 : index
    %532 = vector.load %arg8[%c272_467, %c0_468] : memref<392x16xbf16, #tpu.memory_space<vmem>>, vector<8x16xbf16>
    tpu.vector_store %arg8[%c272_467, %c0_468], %531 {strides = array<i32>} : memref<392x16xbf16, #tpu.memory_space<vmem>>, vector<8x16xbf16>,
    %c3_i32_469 = arith.constant 3 : i32
    %533 = arith.addi %0, %c3_i32_469 : i32
    %c5_i32_470 = arith.constant 5 : i32
    %534 = arith.addi %533, %c5_i32_470 : i32
    %c0_471 = arith.constant 0 : index
    %535 = arith.index_cast %534 : i32 to index
    %c0_472 = arith.constant 0 : index
    %c0_473 = arith.constant 0 : index
    %536 = vector.load %arg3[%c0_471, %535, %c0_472, %c0_473] : memref<1x22x8x22xbf16, #tpu.memory_space<vmem>>, vector<1x1x8x22xbf16>
    %537 = vector.shape_cast %536 : vector<1x1x8x22xbf16> to vector<8x22xbf16>
    %538 = vector.extract_strided_slice %537 {offsets = [0, 0], sizes = [8, 16], strides = [1, 1]} : vector<8x22xbf16> to vector<8x16xbf16>
    %c280_474 = arith.constant 280 : index
    %c0_475 = arith.constant 0 : index
    %539 = vector.load %arg8[%c280_474, %c0_475] : memref<392x16xbf16, #tpu.memory_space<vmem>>, vector<8x16xbf16>
    tpu.vector_store %arg8[%c280_474, %c0_475], %538 {strides = array<i32>} : memref<392x16xbf16, #tpu.memory_space<vmem>>, vector<8x16xbf16>,
    %540 = vector.extract_strided_slice %537 {offsets = [0, 1], sizes = [8, 16], strides = [1, 1]} : vector<8x22xbf16> to vector<8x16xbf16>
    %c288_476 = arith.constant 288 : index
    %c0_477 = arith.constant 0 : index
    %541 = vector.load %arg8[%c288_476, %c0_477] : memref<392x16xbf16, #tpu.memory_space<vmem>>, vector<8x16xbf16>
    tpu.vector_store %arg8[%c288_476, %c0_477], %540 {strides = array<i32>} : memref<392x16xbf16, #tpu.memory_space<vmem>>, vector<8x16xbf16>,
    %542 = vector.extract_strided_slice %537 {offsets = [0, 2], sizes = [8, 16], strides = [1, 1]} : vector<8x22xbf16> to vector<8x16xbf16>
    %c296_478 = arith.constant 296 : index
    %c0_479 = arith.constant 0 : index
    %543 = vector.load %arg8[%c296_478, %c0_479] : memref<392x16xbf16, #tpu.memory_space<vmem>>, vector<8x16xbf16>
    tpu.vector_store %arg8[%c296_478, %c0_479], %542 {strides = array<i32>} : memref<392x16xbf16, #tpu.memory_space<vmem>>, vector<8x16xbf16>,
    %544 = vector.extract_strided_slice %537 {offsets = [0, 3], sizes = [8, 16], strides = [1, 1]} : vector<8x22xbf16> to vector<8x16xbf16>
    %c304_480 = arith.constant 304 : index
    %c0_481 = arith.constant 0 : index
    %545 = vector.load %arg8[%c304_480, %c0_481] : memref<392x16xbf16, #tpu.memory_space<vmem>>, vector<8x16xbf16>
    tpu.vector_store %arg8[%c304_480, %c0_481], %544 {strides = array<i32>} : memref<392x16xbf16, #tpu.memory_space<vmem>>, vector<8x16xbf16>,
    %546 = vector.extract_strided_slice %537 {offsets = [0, 4], sizes = [8, 16], strides = [1, 1]} : vector<8x22xbf16> to vector<8x16xbf16>
    %c312_482 = arith.constant 312 : index
    %c0_483 = arith.constant 0 : index
    %547 = vector.load %arg8[%c312_482, %c0_483] : memref<392x16xbf16, #tpu.memory_space<vmem>>, vector<8x16xbf16>
    tpu.vector_store %arg8[%c312_482, %c0_483], %546 {strides = array<i32>} : memref<392x16xbf16, #tpu.memory_space<vmem>>, vector<8x16xbf16>,
    %548 = vector.extract_strided_slice %537 {offsets = [0, 5], sizes = [8, 16], strides = [1, 1]} : vector<8x22xbf16> to vector<8x16xbf16>
    %c320_484 = arith.constant 320 : index
    %c0_485 = arith.constant 0 : index
    %549 = vector.load %arg8[%c320_484, %c0_485] : memref<392x16xbf16, #tpu.memory_space<vmem>>, vector<8x16xbf16>
    tpu.vector_store %arg8[%c320_484, %c0_485], %548 {strides = array<i32>} : memref<392x16xbf16, #tpu.memory_space<vmem>>, vector<8x16xbf16>,
    %550 = vector.extract_strided_slice %537 {offsets = [0, 6], sizes = [8, 16], strides = [1, 1]} : vector<8x22xbf16> to vector<8x16xbf16>
    %c328_486 = arith.constant 328 : index
    %c0_487 = arith.constant 0 : index
    %551 = vector.load %arg8[%c328_486, %c0_487] : memref<392x16xbf16, #tpu.memory_space<vmem>>, vector<8x16xbf16>
    tpu.vector_store %arg8[%c328_486, %c0_487], %550 {strides = array<i32>} : memref<392x16xbf16, #tpu.memory_space<vmem>>, vector<8x16xbf16>,
    %c3_i32_488 = arith.constant 3 : i32
    %552 = arith.addi %0, %c3_i32_488 : i32
    %c6_i32_489 = arith.constant 6 : i32
    %553 = arith.addi %552, %c6_i32_489 : i32
    %c0_490 = arith.constant 0 : index
    %554 = arith.index_cast %553 : i32 to index
    %c0_491 = arith.constant 0 : index
    %c0_492 = arith.constant 0 : index
    %555 = vector.load %arg3[%c0_490, %554, %c0_491, %c0_492] : memref<1x22x8x22xbf16, #tpu.memory_space<vmem>>, vector<1x1x8x22xbf16>
    %556 = vector.shape_cast %555 : vector<1x1x8x22xbf16> to vector<8x22xbf16>
    %557 = vector.extract_strided_slice %556 {offsets = [0, 0], sizes = [8, 16], strides = [1, 1]} : vector<8x22xbf16> to vector<8x16xbf16>
    %c336_493 = arith.constant 336 : index
    %c0_494 = arith.constant 0 : index
    %558 = vector.load %arg8[%c336_493, %c0_494] : memref<392x16xbf16, #tpu.memory_space<vmem>>, vector<8x16xbf16>
    tpu.vector_store %arg8[%c336_493, %c0_494], %557 {strides = array<i32>} : memref<392x16xbf16, #tpu.memory_space<vmem>>, vector<8x16xbf16>,
    %559 = vector.extract_strided_slice %556 {offsets = [0, 1], sizes = [8, 16], strides = [1, 1]} : vector<8x22xbf16> to vector<8x16xbf16>
    %c344_495 = arith.constant 344 : index
    %c0_496 = arith.constant 0 : index
    %560 = vector.load %arg8[%c344_495, %c0_496] : memref<392x16xbf16, #tpu.memory_space<vmem>>, vector<8x16xbf16>
    tpu.vector_store %arg8[%c344_495, %c0_496], %559 {strides = array<i32>} : memref<392x16xbf16, #tpu.memory_space<vmem>>, vector<8x16xbf16>,
    %561 = vector.extract_strided_slice %556 {offsets = [0, 2], sizes = [8, 16], strides = [1, 1]} : vector<8x22xbf16> to vector<8x16xbf16>
    %c352_497 = arith.constant 352 : index
    %c0_498 = arith.constant 0 : index
    %562 = vector.load %arg8[%c352_497, %c0_498] : memref<392x16xbf16, #tpu.memory_space<vmem>>, vector<8x16xbf16>
    tpu.vector_store %arg8[%c352_497, %c0_498], %561 {strides = array<i32>} : memref<392x16xbf16, #tpu.memory_space<vmem>>, vector<8x16xbf16>,
    %563 = vector.extract_strided_slice %556 {offsets = [0, 3], sizes = [8, 16], strides = [1, 1]} : vector<8x22xbf16> to vector<8x16xbf16>
    %c360_499 = arith.constant 360 : index
    %c0_500 = arith.constant 0 : index
    %564 = vector.load %arg8[%c360_499, %c0_500] : memref<392x16xbf16, #tpu.memory_space<vmem>>, vector<8x16xbf16>
    tpu.vector_store %arg8[%c360_499, %c0_500], %563 {strides = array<i32>} : memref<392x16xbf16, #tpu.memory_space<vmem>>, vector<8x16xbf16>,
    %565 = vector.extract_strided_slice %556 {offsets = [0, 4], sizes = [8, 16], strides = [1, 1]} : vector<8x22xbf16> to vector<8x16xbf16>
    %c368_501 = arith.constant 368 : index
    %c0_502 = arith.constant 0 : index
    %566 = vector.load %arg8[%c368_501, %c0_502] : memref<392x16xbf16, #tpu.memory_space<vmem>>, vector<8x16xbf16>
    tpu.vector_store %arg8[%c368_501, %c0_502], %565 {strides = array<i32>} : memref<392x16xbf16, #tpu.memory_space<vmem>>, vector<8x16xbf16>,
    %567 = vector.extract_strided_slice %556 {offsets = [0, 5], sizes = [8, 16], strides = [1, 1]} : vector<8x22xbf16> to vector<8x16xbf16>
    %c376_503 = arith.constant 376 : index
    %c0_504 = arith.constant 0 : index
    %568 = vector.load %arg8[%c376_503, %c0_504] : memref<392x16xbf16, #tpu.memory_space<vmem>>, vector<8x16xbf16>
    tpu.vector_store %arg8[%c376_503, %c0_504], %567 {strides = array<i32>} : memref<392x16xbf16, #tpu.memory_space<vmem>>, vector<8x16xbf16>,
    %569 = vector.extract_strided_slice %556 {offsets = [0, 6], sizes = [8, 16], strides = [1, 1]} : vector<8x22xbf16> to vector<8x16xbf16>
    %c384_505 = arith.constant 384 : index
    %c0_506 = arith.constant 0 : index
    %570 = vector.load %arg8[%c384_505, %c0_506] : memref<392x16xbf16, #tpu.memory_space<vmem>>, vector<8x16xbf16>
    tpu.vector_store %arg8[%c384_505, %c0_506], %569 {strides = array<i32>} : memref<392x16xbf16, #tpu.memory_space<vmem>>, vector<8x16xbf16>,
    %c0_507 = arith.constant 0 : index
    %c0_508 = arith.constant 0 : index
    %571 = vector.load %arg4[%c0_507, %c0_508] : memref<8x392xbf16, #tpu.memory_space<vmem>>, vector<8x392xbf16>
    %c0_509 = arith.constant 0 : index
    %c0_510 = arith.constant 0 : index
    %572 = vector.load %arg8[%c0_509, %c0_510] : memref<392x16xbf16, #tpu.memory_space<vmem>>, vector<392x16xbf16>
    %cst_511 = arith.constant dense<0.000000e+00> : vector<8x16xf32>
    %573 = tpu.matmul %571, %572, %cst_511 {dimension_numbers = #tpu.dot_dimension_numbers<[1], [0], [0], [1], [0, 0, 1, 1], [], []>} : vector<8x392xbf16>, vector<392x16xbf16>, vector<8x16xf32> -> vector<8x16xf32>
    %574 = vector.broadcast %1 : vector<8x1xf32> to vector<8x16xf32>
    %575 = arith.mulf %573, %574 : vector<8x16xf32>
    %576 = vector.broadcast %2 : vector<8x1xf32> to vector<8x16xf32>
    %577 = arith.addf %575, %576 : vector<8x16xf32>
    %cst_512 = arith.constant 0.000000e+00 : f32
    %578 = vector.broadcast %cst_512 : f32 to vector<8x16xf32>
    %579 = arith.maximumf %577, %578 : vector<8x16xf32>
    %c0_513 = arith.constant 0 : index
    %c0_514 = arith.constant 0 : index
    %c3 = arith.constant 3 : index
    %c0_515 = arith.constant 0 : index
    %580 = vector.load %arg7[%c0_513, %c0_514, %c3, %c0_515] : memref<1x8x8x16xf32, #tpu.memory_space<vmem>>, vector<1x8x1x16xf32>
    %581 = vector.shape_cast %580 : vector<1x8x1x16xf32> to vector<8x16xf32>
    %582 = vector.shape_cast %579 : vector<8x16xf32> to vector<1x8x1x16xf32>
    tpu.vector_store %arg7[%c0_513, %c0_514, %c3, %c0_515], %582 {strides = array<i32>} : memref<1x8x8x16xf32, #tpu.memory_space<vmem>>, vector<1x8x1x16xf32>,
    %c4_i32_516 = arith.constant 4 : i32
    %583 = arith.addi %0, %c4_i32_516 : i32
    %c0_i32_517 = arith.constant 0 : i32
    %584 = arith.addi %583, %c0_i32_517 : i32
    %c0_518 = arith.constant 0 : index
    %585 = arith.index_cast %584 : i32 to index
    %c0_519 = arith.constant 0 : index
    %c0_520 = arith.constant 0 : index
    %586 = vector.load %arg3[%c0_518, %585, %c0_519, %c0_520] : memref<1x22x8x22xbf16, #tpu.memory_space<vmem>>, vector<1x1x8x22xbf16>
    %587 = vector.shape_cast %586 : vector<1x1x8x22xbf16> to vector<8x22xbf16>
    %588 = vector.extract_strided_slice %587 {offsets = [0, 0], sizes = [8, 16], strides = [1, 1]} : vector<8x22xbf16> to vector<8x16xbf16>
    %c0_521 = arith.constant 0 : index
    %c0_522 = arith.constant 0 : index
    %589 = vector.load %arg8[%c0_521, %c0_522] : memref<392x16xbf16, #tpu.memory_space<vmem>>, vector<8x16xbf16>
    tpu.vector_store %arg8[%c0_521, %c0_522], %588 {strides = array<i32>} : memref<392x16xbf16, #tpu.memory_space<vmem>>, vector<8x16xbf16>,
    %590 = vector.extract_strided_slice %587 {offsets = [0, 1], sizes = [8, 16], strides = [1, 1]} : vector<8x22xbf16> to vector<8x16xbf16>
    %c8_523 = arith.constant 8 : index
    %c0_524 = arith.constant 0 : index
    %591 = vector.load %arg8[%c8_523, %c0_524] : memref<392x16xbf16, #tpu.memory_space<vmem>>, vector<8x16xbf16>
    tpu.vector_store %arg8[%c8_523, %c0_524], %590 {strides = array<i32>} : memref<392x16xbf16, #tpu.memory_space<vmem>>, vector<8x16xbf16>,
    %592 = vector.extract_strided_slice %587 {offsets = [0, 2], sizes = [8, 16], strides = [1, 1]} : vector<8x22xbf16> to vector<8x16xbf16>
    %c16_525 = arith.constant 16 : index
    %c0_526 = arith.constant 0 : index
    %593 = vector.load %arg8[%c16_525, %c0_526] : memref<392x16xbf16, #tpu.memory_space<vmem>>, vector<8x16xbf16>
    tpu.vector_store %arg8[%c16_525, %c0_526], %592 {strides = array<i32>} : memref<392x16xbf16, #tpu.memory_space<vmem>>, vector<8x16xbf16>,
    %594 = vector.extract_strided_slice %587 {offsets = [0, 3], sizes = [8, 16], strides = [1, 1]} : vector<8x22xbf16> to vector<8x16xbf16>
    %c24_527 = arith.constant 24 : index
    %c0_528 = arith.constant 0 : index
    %595 = vector.load %arg8[%c24_527, %c0_528] : memref<392x16xbf16, #tpu.memory_space<vmem>>, vector<8x16xbf16>
    tpu.vector_store %arg8[%c24_527, %c0_528], %594 {strides = array<i32>} : memref<392x16xbf16, #tpu.memory_space<vmem>>, vector<8x16xbf16>,
    %596 = vector.extract_strided_slice %587 {offsets = [0, 4], sizes = [8, 16], strides = [1, 1]} : vector<8x22xbf16> to vector<8x16xbf16>
    %c32_529 = arith.constant 32 : index
    %c0_530 = arith.constant 0 : index
    %597 = vector.load %arg8[%c32_529, %c0_530] : memref<392x16xbf16, #tpu.memory_space<vmem>>, vector<8x16xbf16>
    tpu.vector_store %arg8[%c32_529, %c0_530], %596 {strides = array<i32>} : memref<392x16xbf16, #tpu.memory_space<vmem>>, vector<8x16xbf16>,
    %598 = vector.extract_strided_slice %587 {offsets = [0, 5], sizes = [8, 16], strides = [1, 1]} : vector<8x22xbf16> to vector<8x16xbf16>
    %c40_531 = arith.constant 40 : index
    %c0_532 = arith.constant 0 : index
    %599 = vector.load %arg8[%c40_531, %c0_532] : memref<392x16xbf16, #tpu.memory_space<vmem>>, vector<8x16xbf16>
    tpu.vector_store %arg8[%c40_531, %c0_532], %598 {strides = array<i32>} : memref<392x16xbf16, #tpu.memory_space<vmem>>, vector<8x16xbf16>,
    %600 = vector.extract_strided_slice %587 {offsets = [0, 6], sizes = [8, 16], strides = [1, 1]} : vector<8x22xbf16> to vector<8x16xbf16>
    %c48_533 = arith.constant 48 : index
    %c0_534 = arith.constant 0 : index
    %601 = vector.load %arg8[%c48_533, %c0_534] : memref<392x16xbf16, #tpu.memory_space<vmem>>, vector<8x16xbf16>
    tpu.vector_store %arg8[%c48_533, %c0_534], %600 {strides = array<i32>} : memref<392x16xbf16, #tpu.memory_space<vmem>>, vector<8x16xbf16>,
    %c4_i32_535 = arith.constant 4 : i32
    %602 = arith.addi %0, %c4_i32_535 : i32
    %c1_i32_536 = arith.constant 1 : i32
    %603 = arith.addi %602, %c1_i32_536 : i32
    %c0_537 = arith.constant 0 : index
    %604 = arith.index_cast %603 : i32 to index
    %c0_538 = arith.constant 0 : index
    %c0_539 = arith.constant 0 : index
    %605 = vector.load %arg3[%c0_537, %604, %c0_538, %c0_539] : memref<1x22x8x22xbf16, #tpu.memory_space<vmem>>, vector<1x1x8x22xbf16>
    %606 = vector.shape_cast %605 : vector<1x1x8x22xbf16> to vector<8x22xbf16>
    %607 = vector.extract_strided_slice %606 {offsets = [0, 0], sizes = [8, 16], strides = [1, 1]} : vector<8x22xbf16> to vector<8x16xbf16>
    %c56_540 = arith.constant 56 : index
    %c0_541 = arith.constant 0 : index
    %608 = vector.load %arg8[%c56_540, %c0_541] : memref<392x16xbf16, #tpu.memory_space<vmem>>, vector<8x16xbf16>
    tpu.vector_store %arg8[%c56_540, %c0_541], %607 {strides = array<i32>} : memref<392x16xbf16, #tpu.memory_space<vmem>>, vector<8x16xbf16>,
    %609 = vector.extract_strided_slice %606 {offsets = [0, 1], sizes = [8, 16], strides = [1, 1]} : vector<8x22xbf16> to vector<8x16xbf16>
    %c64_542 = arith.constant 64 : index
    %c0_543 = arith.constant 0 : index
    %610 = vector.load %arg8[%c64_542, %c0_543] : memref<392x16xbf16, #tpu.memory_space<vmem>>, vector<8x16xbf16>
    tpu.vector_store %arg8[%c64_542, %c0_543], %609 {strides = array<i32>} : memref<392x16xbf16, #tpu.memory_space<vmem>>, vector<8x16xbf16>,
    %611 = vector.extract_strided_slice %606 {offsets = [0, 2], sizes = [8, 16], strides = [1, 1]} : vector<8x22xbf16> to vector<8x16xbf16>
    %c72_544 = arith.constant 72 : index
    %c0_545 = arith.constant 0 : index
    %612 = vector.load %arg8[%c72_544, %c0_545] : memref<392x16xbf16, #tpu.memory_space<vmem>>, vector<8x16xbf16>
    tpu.vector_store %arg8[%c72_544, %c0_545], %611 {strides = array<i32>} : memref<392x16xbf16, #tpu.memory_space<vmem>>, vector<8x16xbf16>,
    %613 = vector.extract_strided_slice %606 {offsets = [0, 3], sizes = [8, 16], strides = [1, 1]} : vector<8x22xbf16> to vector<8x16xbf16>
    %c80_546 = arith.constant 80 : index
    %c0_547 = arith.constant 0 : index
    %614 = vector.load %arg8[%c80_546, %c0_547] : memref<392x16xbf16, #tpu.memory_space<vmem>>, vector<8x16xbf16>
    tpu.vector_store %arg8[%c80_546, %c0_547], %613 {strides = array<i32>} : memref<392x16xbf16, #tpu.memory_space<vmem>>, vector<8x16xbf16>,
    %615 = vector.extract_strided_slice %606 {offsets = [0, 4], sizes = [8, 16], strides = [1, 1]} : vector<8x22xbf16> to vector<8x16xbf16>
    %c88_548 = arith.constant 88 : index
    %c0_549 = arith.constant 0 : index
    %616 = vector.load %arg8[%c88_548, %c0_549] : memref<392x16xbf16, #tpu.memory_space<vmem>>, vector<8x16xbf16>
    tpu.vector_store %arg8[%c88_548, %c0_549], %615 {strides = array<i32>} : memref<392x16xbf16, #tpu.memory_space<vmem>>, vector<8x16xbf16>,
    %617 = vector.extract_strided_slice %606 {offsets = [0, 5], sizes = [8, 16], strides = [1, 1]} : vector<8x22xbf16> to vector<8x16xbf16>
    %c96_550 = arith.constant 96 : index
    %c0_551 = arith.constant 0 : index
    %618 = vector.load %arg8[%c96_550, %c0_551] : memref<392x16xbf16, #tpu.memory_space<vmem>>, vector<8x16xbf16>
    tpu.vector_store %arg8[%c96_550, %c0_551], %617 {strides = array<i32>} : memref<392x16xbf16, #tpu.memory_space<vmem>>, vector<8x16xbf16>,
    %619 = vector.extract_strided_slice %606 {offsets = [0, 6], sizes = [8, 16], strides = [1, 1]} : vector<8x22xbf16> to vector<8x16xbf16>
    %c104_552 = arith.constant 104 : index
    %c0_553 = arith.constant 0 : index
    %620 = vector.load %arg8[%c104_552, %c0_553] : memref<392x16xbf16, #tpu.memory_space<vmem>>, vector<8x16xbf16>
    tpu.vector_store %arg8[%c104_552, %c0_553], %619 {strides = array<i32>} : memref<392x16xbf16, #tpu.memory_space<vmem>>, vector<8x16xbf16>,
    %c4_i32_554 = arith.constant 4 : i32
    %621 = arith.addi %0, %c4_i32_554 : i32
    %c2_i32_555 = arith.constant 2 : i32
    %622 = arith.addi %621, %c2_i32_555 : i32
    %c0_556 = arith.constant 0 : index
    %623 = arith.index_cast %622 : i32 to index
    %c0_557 = arith.constant 0 : index
    %c0_558 = arith.constant 0 : index
    %624 = vector.load %arg3[%c0_556, %623, %c0_557, %c0_558] : memref<1x22x8x22xbf16, #tpu.memory_space<vmem>>, vector<1x1x8x22xbf16>
    %625 = vector.shape_cast %624 : vector<1x1x8x22xbf16> to vector<8x22xbf16>
    %626 = vector.extract_strided_slice %625 {offsets = [0, 0], sizes = [8, 16], strides = [1, 1]} : vector<8x22xbf16> to vector<8x16xbf16>
    %c112_559 = arith.constant 112 : index
    %c0_560 = arith.constant 0 : index
    %627 = vector.load %arg8[%c112_559, %c0_560] : memref<392x16xbf16, #tpu.memory_space<vmem>>, vector<8x16xbf16>
    tpu.vector_store %arg8[%c112_559, %c0_560], %626 {strides = array<i32>} : memref<392x16xbf16, #tpu.memory_space<vmem>>, vector<8x16xbf16>,
    %628 = vector.extract_strided_slice %625 {offsets = [0, 1], sizes = [8, 16], strides = [1, 1]} : vector<8x22xbf16> to vector<8x16xbf16>
    %c120_561 = arith.constant 120 : index
    %c0_562 = arith.constant 0 : index
    %629 = vector.load %arg8[%c120_561, %c0_562] : memref<392x16xbf16, #tpu.memory_space<vmem>>, vector<8x16xbf16>
    tpu.vector_store %arg8[%c120_561, %c0_562], %628 {strides = array<i32>} : memref<392x16xbf16, #tpu.memory_space<vmem>>, vector<8x16xbf16>,
    %630 = vector.extract_strided_slice %625 {offsets = [0, 2], sizes = [8, 16], strides = [1, 1]} : vector<8x22xbf16> to vector<8x16xbf16>
    %c128_563 = arith.constant 128 : index
    %c0_564 = arith.constant 0 : index
    %631 = vector.load %arg8[%c128_563, %c0_564] : memref<392x16xbf16, #tpu.memory_space<vmem>>, vector<8x16xbf16>
    tpu.vector_store %arg8[%c128_563, %c0_564], %630 {strides = array<i32>} : memref<392x16xbf16, #tpu.memory_space<vmem>>, vector<8x16xbf16>,
    %632 = vector.extract_strided_slice %625 {offsets = [0, 3], sizes = [8, 16], strides = [1, 1]} : vector<8x22xbf16> to vector<8x16xbf16>
    %c136_565 = arith.constant 136 : index
    %c0_566 = arith.constant 0 : index
    %633 = vector.load %arg8[%c136_565, %c0_566] : memref<392x16xbf16, #tpu.memory_space<vmem>>, vector<8x16xbf16>
    tpu.vector_store %arg8[%c136_565, %c0_566], %632 {strides = array<i32>} : memref<392x16xbf16, #tpu.memory_space<vmem>>, vector<8x16xbf16>,
    %634 = vector.extract_strided_slice %625 {offsets = [0, 4], sizes = [8, 16], strides = [1, 1]} : vector<8x22xbf16> to vector<8x16xbf16>
    %c144_567 = arith.constant 144 : index
    %c0_568 = arith.constant 0 : index
    %635 = vector.load %arg8[%c144_567, %c0_568] : memref<392x16xbf16, #tpu.memory_space<vmem>>, vector<8x16xbf16>
    tpu.vector_store %arg8[%c144_567, %c0_568], %634 {strides = array<i32>} : memref<392x16xbf16, #tpu.memory_space<vmem>>, vector<8x16xbf16>,
    %636 = vector.extract_strided_slice %625 {offsets = [0, 5], sizes = [8, 16], strides = [1, 1]} : vector<8x22xbf16> to vector<8x16xbf16>
    %c152_569 = arith.constant 152 : index
    %c0_570 = arith.constant 0 : index
    %637 = vector.load %arg8[%c152_569, %c0_570] : memref<392x16xbf16, #tpu.memory_space<vmem>>, vector<8x16xbf16>
    tpu.vector_store %arg8[%c152_569, %c0_570], %636 {strides = array<i32>} : memref<392x16xbf16, #tpu.memory_space<vmem>>, vector<8x16xbf16>,
    %638 = vector.extract_strided_slice %625 {offsets = [0, 6], sizes = [8, 16], strides = [1, 1]} : vector<8x22xbf16> to vector<8x16xbf16>
    %c160_571 = arith.constant 160 : index
    %c0_572 = arith.constant 0 : index
    %639 = vector.load %arg8[%c160_571, %c0_572] : memref<392x16xbf16, #tpu.memory_space<vmem>>, vector<8x16xbf16>
    tpu.vector_store %arg8[%c160_571, %c0_572], %638 {strides = array<i32>} : memref<392x16xbf16, #tpu.memory_space<vmem>>, vector<8x16xbf16>,
    %c4_i32_573 = arith.constant 4 : i32
    %640 = arith.addi %0, %c4_i32_573 : i32
    %c3_i32_574 = arith.constant 3 : i32
    %641 = arith.addi %640, %c3_i32_574 : i32
    %c0_575 = arith.constant 0 : index
    %642 = arith.index_cast %641 : i32 to index
    %c0_576 = arith.constant 0 : index
    %c0_577 = arith.constant 0 : index
    %643 = vector.load %arg3[%c0_575, %642, %c0_576, %c0_577] : memref<1x22x8x22xbf16, #tpu.memory_space<vmem>>, vector<1x1x8x22xbf16>
    %644 = vector.shape_cast %643 : vector<1x1x8x22xbf16> to vector<8x22xbf16>
    %645 = vector.extract_strided_slice %644 {offsets = [0, 0], sizes = [8, 16], strides = [1, 1]} : vector<8x22xbf16> to vector<8x16xbf16>
    %c168_578 = arith.constant 168 : index
    %c0_579 = arith.constant 0 : index
    %646 = vector.load %arg8[%c168_578, %c0_579] : memref<392x16xbf16, #tpu.memory_space<vmem>>, vector<8x16xbf16>
    tpu.vector_store %arg8[%c168_578, %c0_579], %645 {strides = array<i32>} : memref<392x16xbf16, #tpu.memory_space<vmem>>, vector<8x16xbf16>,
    %647 = vector.extract_strided_slice %644 {offsets = [0, 1], sizes = [8, 16], strides = [1, 1]} : vector<8x22xbf16> to vector<8x16xbf16>
    %c176_580 = arith.constant 176 : index
    %c0_581 = arith.constant 0 : index
    %648 = vector.load %arg8[%c176_580, %c0_581] : memref<392x16xbf16, #tpu.memory_space<vmem>>, vector<8x16xbf16>
    tpu.vector_store %arg8[%c176_580, %c0_581], %647 {strides = array<i32>} : memref<392x16xbf16, #tpu.memory_space<vmem>>, vector<8x16xbf16>,
    %649 = vector.extract_strided_slice %644 {offsets = [0, 2], sizes = [8, 16], strides = [1, 1]} : vector<8x22xbf16> to vector<8x16xbf16>
    %c184_582 = arith.constant 184 : index
    %c0_583 = arith.constant 0 : index
    %650 = vector.load %arg8[%c184_582, %c0_583] : memref<392x16xbf16, #tpu.memory_space<vmem>>, vector<8x16xbf16>
    tpu.vector_store %arg8[%c184_582, %c0_583], %649 {strides = array<i32>} : memref<392x16xbf16, #tpu.memory_space<vmem>>, vector<8x16xbf16>,
    %651 = vector.extract_strided_slice %644 {offsets = [0, 3], sizes = [8, 16], strides = [1, 1]} : vector<8x22xbf16> to vector<8x16xbf16>
    %c192_584 = arith.constant 192 : index
    %c0_585 = arith.constant 0 : index
    %652 = vector.load %arg8[%c192_584, %c0_585] : memref<392x16xbf16, #tpu.memory_space<vmem>>, vector<8x16xbf16>
    tpu.vector_store %arg8[%c192_584, %c0_585], %651 {strides = array<i32>} : memref<392x16xbf16, #tpu.memory_space<vmem>>, vector<8x16xbf16>,
    %653 = vector.extract_strided_slice %644 {offsets = [0, 4], sizes = [8, 16], strides = [1, 1]} : vector<8x22xbf16> to vector<8x16xbf16>
    %c200_586 = arith.constant 200 : index
    %c0_587 = arith.constant 0 : index
    %654 = vector.load %arg8[%c200_586, %c0_587] : memref<392x16xbf16, #tpu.memory_space<vmem>>, vector<8x16xbf16>
    tpu.vector_store %arg8[%c200_586, %c0_587], %653 {strides = array<i32>} : memref<392x16xbf16, #tpu.memory_space<vmem>>, vector<8x16xbf16>,
    %655 = vector.extract_strided_slice %644 {offsets = [0, 5], sizes = [8, 16], strides = [1, 1]} : vector<8x22xbf16> to vector<8x16xbf16>
    %c208_588 = arith.constant 208 : index
    %c0_589 = arith.constant 0 : index
    %656 = vector.load %arg8[%c208_588, %c0_589] : memref<392x16xbf16, #tpu.memory_space<vmem>>, vector<8x16xbf16>
    tpu.vector_store %arg8[%c208_588, %c0_589], %655 {strides = array<i32>} : memref<392x16xbf16, #tpu.memory_space<vmem>>, vector<8x16xbf16>,
    %657 = vector.extract_strided_slice %644 {offsets = [0, 6], sizes = [8, 16], strides = [1, 1]} : vector<8x22xbf16> to vector<8x16xbf16>
    %c216_590 = arith.constant 216 : index
    %c0_591 = arith.constant 0 : index
    %658 = vector.load %arg8[%c216_590, %c0_591] : memref<392x16xbf16, #tpu.memory_space<vmem>>, vector<8x16xbf16>
    tpu.vector_store %arg8[%c216_590, %c0_591], %657 {strides = array<i32>} : memref<392x16xbf16, #tpu.memory_space<vmem>>, vector<8x16xbf16>,
    %c4_i32_592 = arith.constant 4 : i32
    %659 = arith.addi %0, %c4_i32_592 : i32
    %c4_i32_593 = arith.constant 4 : i32
    %660 = arith.addi %659, %c4_i32_593 : i32
    %c0_594 = arith.constant 0 : index
    %661 = arith.index_cast %660 : i32 to index
    %c0_595 = arith.constant 0 : index
    %c0_596 = arith.constant 0 : index
    %662 = vector.load %arg3[%c0_594, %661, %c0_595, %c0_596] : memref<1x22x8x22xbf16, #tpu.memory_space<vmem>>, vector<1x1x8x22xbf16>
    %663 = vector.shape_cast %662 : vector<1x1x8x22xbf16> to vector<8x22xbf16>
    %664 = vector.extract_strided_slice %663 {offsets = [0, 0], sizes = [8, 16], strides = [1, 1]} : vector<8x22xbf16> to vector<8x16xbf16>
    %c224_597 = arith.constant 224 : index
    %c0_598 = arith.constant 0 : index
    %665 = vector.load %arg8[%c224_597, %c0_598] : memref<392x16xbf16, #tpu.memory_space<vmem>>, vector<8x16xbf16>
    tpu.vector_store %arg8[%c224_597, %c0_598], %664 {strides = array<i32>} : memref<392x16xbf16, #tpu.memory_space<vmem>>, vector<8x16xbf16>,
    %666 = vector.extract_strided_slice %663 {offsets = [0, 1], sizes = [8, 16], strides = [1, 1]} : vector<8x22xbf16> to vector<8x16xbf16>
    %c232_599 = arith.constant 232 : index
    %c0_600 = arith.constant 0 : index
    %667 = vector.load %arg8[%c232_599, %c0_600] : memref<392x16xbf16, #tpu.memory_space<vmem>>, vector<8x16xbf16>
    tpu.vector_store %arg8[%c232_599, %c0_600], %666 {strides = array<i32>} : memref<392x16xbf16, #tpu.memory_space<vmem>>, vector<8x16xbf16>,
    %668 = vector.extract_strided_slice %663 {offsets = [0, 2], sizes = [8, 16], strides = [1, 1]} : vector<8x22xbf16> to vector<8x16xbf16>
    %c240_601 = arith.constant 240 : index
    %c0_602 = arith.constant 0 : index
    %669 = vector.load %arg8[%c240_601, %c0_602] : memref<392x16xbf16, #tpu.memory_space<vmem>>, vector<8x16xbf16>
    tpu.vector_store %arg8[%c240_601, %c0_602], %668 {strides = array<i32>} : memref<392x16xbf16, #tpu.memory_space<vmem>>, vector<8x16xbf16>,
    %670 = vector.extract_strided_slice %663 {offsets = [0, 3], sizes = [8, 16], strides = [1, 1]} : vector<8x22xbf16> to vector<8x16xbf16>
    %c248_603 = arith.constant 248 : index
    %c0_604 = arith.constant 0 : index
    %671 = vector.load %arg8[%c248_603, %c0_604] : memref<392x16xbf16, #tpu.memory_space<vmem>>, vector<8x16xbf16>
    tpu.vector_store %arg8[%c248_603, %c0_604], %670 {strides = array<i32>} : memref<392x16xbf16, #tpu.memory_space<vmem>>, vector<8x16xbf16>,
    %672 = vector.extract_strided_slice %663 {offsets = [0, 4], sizes = [8, 16], strides = [1, 1]} : vector<8x22xbf16> to vector<8x16xbf16>
    %c256_605 = arith.constant 256 : index
    %c0_606 = arith.constant 0 : index
    %673 = vector.load %arg8[%c256_605, %c0_606] : memref<392x16xbf16, #tpu.memory_space<vmem>>, vector<8x16xbf16>
    tpu.vector_store %arg8[%c256_605, %c0_606], %672 {strides = array<i32>} : memref<392x16xbf16, #tpu.memory_space<vmem>>, vector<8x16xbf16>,
    %674 = vector.extract_strided_slice %663 {offsets = [0, 5], sizes = [8, 16], strides = [1, 1]} : vector<8x22xbf16> to vector<8x16xbf16>
    %c264_607 = arith.constant 264 : index
    %c0_608 = arith.constant 0 : index
    %675 = vector.load %arg8[%c264_607, %c0_608] : memref<392x16xbf16, #tpu.memory_space<vmem>>, vector<8x16xbf16>
    tpu.vector_store %arg8[%c264_607, %c0_608], %674 {strides = array<i32>} : memref<392x16xbf16, #tpu.memory_space<vmem>>, vector<8x16xbf16>,
    %676 = vector.extract_strided_slice %663 {offsets = [0, 6], sizes = [8, 16], strides = [1, 1]} : vector<8x22xbf16> to vector<8x16xbf16>
    %c272_609 = arith.constant 272 : index
    %c0_610 = arith.constant 0 : index
    %677 = vector.load %arg8[%c272_609, %c0_610] : memref<392x16xbf16, #tpu.memory_space<vmem>>, vector<8x16xbf16>
    tpu.vector_store %arg8[%c272_609, %c0_610], %676 {strides = array<i32>} : memref<392x16xbf16, #tpu.memory_space<vmem>>, vector<8x16xbf16>,
    %c4_i32_611 = arith.constant 4 : i32
    %678 = arith.addi %0, %c4_i32_611 : i32
    %c5_i32_612 = arith.constant 5 : i32
    %679 = arith.addi %678, %c5_i32_612 : i32
    %c0_613 = arith.constant 0 : index
    %680 = arith.index_cast %679 : i32 to index
    %c0_614 = arith.constant 0 : index
    %c0_615 = arith.constant 0 : index
    %681 = vector.load %arg3[%c0_613, %680, %c0_614, %c0_615] : memref<1x22x8x22xbf16, #tpu.memory_space<vmem>>, vector<1x1x8x22xbf16>
    %682 = vector.shape_cast %681 : vector<1x1x8x22xbf16> to vector<8x22xbf16>
    %683 = vector.extract_strided_slice %682 {offsets = [0, 0], sizes = [8, 16], strides = [1, 1]} : vector<8x22xbf16> to vector<8x16xbf16>
    %c280_616 = arith.constant 280 : index
    %c0_617 = arith.constant 0 : index
    %684 = vector.load %arg8[%c280_616, %c0_617] : memref<392x16xbf16, #tpu.memory_space<vmem>>, vector<8x16xbf16>
    tpu.vector_store %arg8[%c280_616, %c0_617], %683 {strides = array<i32>} : memref<392x16xbf16, #tpu.memory_space<vmem>>, vector<8x16xbf16>,
    %685 = vector.extract_strided_slice %682 {offsets = [0, 1], sizes = [8, 16], strides = [1, 1]} : vector<8x22xbf16> to vector<8x16xbf16>
    %c288_618 = arith.constant 288 : index
    %c0_619 = arith.constant 0 : index
    %686 = vector.load %arg8[%c288_618, %c0_619] : memref<392x16xbf16, #tpu.memory_space<vmem>>, vector<8x16xbf16>
    tpu.vector_store %arg8[%c288_618, %c0_619], %685 {strides = array<i32>} : memref<392x16xbf16, #tpu.memory_space<vmem>>, vector<8x16xbf16>,
    %687 = vector.extract_strided_slice %682 {offsets = [0, 2], sizes = [8, 16], strides = [1, 1]} : vector<8x22xbf16> to vector<8x16xbf16>
    %c296_620 = arith.constant 296 : index
    %c0_621 = arith.constant 0 : index
    %688 = vector.load %arg8[%c296_620, %c0_621] : memref<392x16xbf16, #tpu.memory_space<vmem>>, vector<8x16xbf16>
    tpu.vector_store %arg8[%c296_620, %c0_621], %687 {strides = array<i32>} : memref<392x16xbf16, #tpu.memory_space<vmem>>, vector<8x16xbf16>,
    %689 = vector.extract_strided_slice %682 {offsets = [0, 3], sizes = [8, 16], strides = [1, 1]} : vector<8x22xbf16> to vector<8x16xbf16>
    %c304_622 = arith.constant 304 : index
    %c0_623 = arith.constant 0 : index
    %690 = vector.load %arg8[%c304_622, %c0_623] : memref<392x16xbf16, #tpu.memory_space<vmem>>, vector<8x16xbf16>
    tpu.vector_store %arg8[%c304_622, %c0_623], %689 {strides = array<i32>} : memref<392x16xbf16, #tpu.memory_space<vmem>>, vector<8x16xbf16>,
    %691 = vector.extract_strided_slice %682 {offsets = [0, 4], sizes = [8, 16], strides = [1, 1]} : vector<8x22xbf16> to vector<8x16xbf16>
    %c312_624 = arith.constant 312 : index
    %c0_625 = arith.constant 0 : index
    %692 = vector.load %arg8[%c312_624, %c0_625] : memref<392x16xbf16, #tpu.memory_space<vmem>>, vector<8x16xbf16>
    tpu.vector_store %arg8[%c312_624, %c0_625], %691 {strides = array<i32>} : memref<392x16xbf16, #tpu.memory_space<vmem>>, vector<8x16xbf16>,
    %693 = vector.extract_strided_slice %682 {offsets = [0, 5], sizes = [8, 16], strides = [1, 1]} : vector<8x22xbf16> to vector<8x16xbf16>
    %c320_626 = arith.constant 320 : index
    %c0_627 = arith.constant 0 : index
    %694 = vector.load %arg8[%c320_626, %c0_627] : memref<392x16xbf16, #tpu.memory_space<vmem>>, vector<8x16xbf16>
    tpu.vector_store %arg8[%c320_626, %c0_627], %693 {strides = array<i32>} : memref<392x16xbf16, #tpu.memory_space<vmem>>, vector<8x16xbf16>,
    %695 = vector.extract_strided_slice %682 {offsets = [0, 6], sizes = [8, 16], strides = [1, 1]} : vector<8x22xbf16> to vector<8x16xbf16>
    %c328_628 = arith.constant 328 : index
    %c0_629 = arith.constant 0 : index
    %696 = vector.load %arg8[%c328_628, %c0_629] : memref<392x16xbf16, #tpu.memory_space<vmem>>, vector<8x16xbf16>
    tpu.vector_store %arg8[%c328_628, %c0_629], %695 {strides = array<i32>} : memref<392x16xbf16, #tpu.memory_space<vmem>>, vector<8x16xbf16>,
    %c4_i32_630 = arith.constant 4 : i32
    %697 = arith.addi %0, %c4_i32_630 : i32
    %c6_i32_631 = arith.constant 6 : i32
    %698 = arith.addi %697, %c6_i32_631 : i32
    %c0_632 = arith.constant 0 : index
    %699 = arith.index_cast %698 : i32 to index
    %c0_633 = arith.constant 0 : index
    %c0_634 = arith.constant 0 : index
    %700 = vector.load %arg3[%c0_632, %699, %c0_633, %c0_634] : memref<1x22x8x22xbf16, #tpu.memory_space<vmem>>, vector<1x1x8x22xbf16>
    %701 = vector.shape_cast %700 : vector<1x1x8x22xbf16> to vector<8x22xbf16>
    %702 = vector.extract_strided_slice %701 {offsets = [0, 0], sizes = [8, 16], strides = [1, 1]} : vector<8x22xbf16> to vector<8x16xbf16>
    %c336_635 = arith.constant 336 : index
    %c0_636 = arith.constant 0 : index
    %703 = vector.load %arg8[%c336_635, %c0_636] : memref<392x16xbf16, #tpu.memory_space<vmem>>, vector<8x16xbf16>
    tpu.vector_store %arg8[%c336_635, %c0_636], %702 {strides = array<i32>} : memref<392x16xbf16, #tpu.memory_space<vmem>>, vector<8x16xbf16>,
    %704 = vector.extract_strided_slice %701 {offsets = [0, 1], sizes = [8, 16], strides = [1, 1]} : vector<8x22xbf16> to vector<8x16xbf16>
    %c344_637 = arith.constant 344 : index
    %c0_638 = arith.constant 0 : index
    %705 = vector.load %arg8[%c344_637, %c0_638] : memref<392x16xbf16, #tpu.memory_space<vmem>>, vector<8x16xbf16>
    tpu.vector_store %arg8[%c344_637, %c0_638], %704 {strides = array<i32>} : memref<392x16xbf16, #tpu.memory_space<vmem>>, vector<8x16xbf16>,
    %706 = vector.extract_strided_slice %701 {offsets = [0, 2], sizes = [8, 16], strides = [1, 1]} : vector<8x22xbf16> to vector<8x16xbf16>
    %c352_639 = arith.constant 352 : index
    %c0_640 = arith.constant 0 : index
    %707 = vector.load %arg8[%c352_639, %c0_640] : memref<392x16xbf16, #tpu.memory_space<vmem>>, vector<8x16xbf16>
    tpu.vector_store %arg8[%c352_639, %c0_640], %706 {strides = array<i32>} : memref<392x16xbf16, #tpu.memory_space<vmem>>, vector<8x16xbf16>,
    %708 = vector.extract_strided_slice %701 {offsets = [0, 3], sizes = [8, 16], strides = [1, 1]} : vector<8x22xbf16> to vector<8x16xbf16>
    %c360_641 = arith.constant 360 : index
    %c0_642 = arith.constant 0 : index
    %709 = vector.load %arg8[%c360_641, %c0_642] : memref<392x16xbf16, #tpu.memory_space<vmem>>, vector<8x16xbf16>
    tpu.vector_store %arg8[%c360_641, %c0_642], %708 {strides = array<i32>} : memref<392x16xbf16, #tpu.memory_space<vmem>>, vector<8x16xbf16>,
    %710 = vector.extract_strided_slice %701 {offsets = [0, 4], sizes = [8, 16], strides = [1, 1]} : vector<8x22xbf16> to vector<8x16xbf16>
    %c368_643 = arith.constant 368 : index
    %c0_644 = arith.constant 0 : index
    %711 = vector.load %arg8[%c368_643, %c0_644] : memref<392x16xbf16, #tpu.memory_space<vmem>>, vector<8x16xbf16>
    tpu.vector_store %arg8[%c368_643, %c0_644], %710 {strides = array<i32>} : memref<392x16xbf16, #tpu.memory_space<vmem>>, vector<8x16xbf16>,
    %712 = vector.extract_strided_slice %701 {offsets = [0, 5], sizes = [8, 16], strides = [1, 1]} : vector<8x22xbf16> to vector<8x16xbf16>
    %c376_645 = arith.constant 376 : index
    %c0_646 = arith.constant 0 : index
    %713 = vector.load %arg8[%c376_645, %c0_646] : memref<392x16xbf16, #tpu.memory_space<vmem>>, vector<8x16xbf16>
    tpu.vector_store %arg8[%c376_645, %c0_646], %712 {strides = array<i32>} : memref<392x16xbf16, #tpu.memory_space<vmem>>, vector<8x16xbf16>,
    %714 = vector.extract_strided_slice %701 {offsets = [0, 6], sizes = [8, 16], strides = [1, 1]} : vector<8x22xbf16> to vector<8x16xbf16>
    %c384_647 = arith.constant 384 : index
    %c0_648 = arith.constant 0 : index
    %715 = vector.load %arg8[%c384_647, %c0_648] : memref<392x16xbf16, #tpu.memory_space<vmem>>, vector<8x16xbf16>
    tpu.vector_store %arg8[%c384_647, %c0_648], %714 {strides = array<i32>} : memref<392x16xbf16, #tpu.memory_space<vmem>>, vector<8x16xbf16>,
    %c0_649 = arith.constant 0 : index
    %c0_650 = arith.constant 0 : index
    %716 = vector.load %arg4[%c0_649, %c0_650] : memref<8x392xbf16, #tpu.memory_space<vmem>>, vector<8x392xbf16>
    %c0_651 = arith.constant 0 : index
    %c0_652 = arith.constant 0 : index
    %717 = vector.load %arg8[%c0_651, %c0_652] : memref<392x16xbf16, #tpu.memory_space<vmem>>, vector<392x16xbf16>
    %cst_653 = arith.constant dense<0.000000e+00> : vector<8x16xf32>
    %718 = tpu.matmul %716, %717, %cst_653 {dimension_numbers = #tpu.dot_dimension_numbers<[1], [0], [0], [1], [0, 0, 1, 1], [], []>} : vector<8x392xbf16>, vector<392x16xbf16>, vector<8x16xf32> -> vector<8x16xf32>
    %719 = vector.broadcast %1 : vector<8x1xf32> to vector<8x16xf32>
    %720 = arith.mulf %718, %719 : vector<8x16xf32>
    %721 = vector.broadcast %2 : vector<8x1xf32> to vector<8x16xf32>
    %722 = arith.addf %720, %721 : vector<8x16xf32>
    %cst_654 = arith.constant 0.000000e+00 : f32
    %723 = vector.broadcast %cst_654 : f32 to vector<8x16xf32>
    %724 = arith.maximumf %722, %723 : vector<8x16xf32>
    %c0_655 = arith.constant 0 : index
    %c0_656 = arith.constant 0 : index
    %c4 = arith.constant 4 : index
    %c0_657 = arith.constant 0 : index
    %725 = vector.load %arg7[%c0_655, %c0_656, %c4, %c0_657] : memref<1x8x8x16xf32, #tpu.memory_space<vmem>>, vector<1x8x1x16xf32>
    %726 = vector.shape_cast %725 : vector<1x8x1x16xf32> to vector<8x16xf32>
    %727 = vector.shape_cast %724 : vector<8x16xf32> to vector<1x8x1x16xf32>
    tpu.vector_store %arg7[%c0_655, %c0_656, %c4, %c0_657], %727 {strides = array<i32>} : memref<1x8x8x16xf32, #tpu.memory_space<vmem>>, vector<1x8x1x16xf32>,
    %c5_i32_658 = arith.constant 5 : i32
    %728 = arith.addi %0, %c5_i32_658 : i32
    %c0_i32_659 = arith.constant 0 : i32
    %729 = arith.addi %728, %c0_i32_659 : i32
    %c0_660 = arith.constant 0 : index
    %730 = arith.index_cast %729 : i32 to index
    %c0_661 = arith.constant 0 : index
    %c0_662 = arith.constant 0 : index
    %731 = vector.load %arg3[%c0_660, %730, %c0_661, %c0_662] : memref<1x22x8x22xbf16, #tpu.memory_space<vmem>>, vector<1x1x8x22xbf16>
    %732 = vector.shape_cast %731 : vector<1x1x8x22xbf16> to vector<8x22xbf16>
    %733 = vector.extract_strided_slice %732 {offsets = [0, 0], sizes = [8, 16], strides = [1, 1]} : vector<8x22xbf16> to vector<8x16xbf16>
    %c0_663 = arith.constant 0 : index
    %c0_664 = arith.constant 0 : index
    %734 = vector.load %arg8[%c0_663, %c0_664] : memref<392x16xbf16, #tpu.memory_space<vmem>>, vector<8x16xbf16>
    tpu.vector_store %arg8[%c0_663, %c0_664], %733 {strides = array<i32>} : memref<392x16xbf16, #tpu.memory_space<vmem>>, vector<8x16xbf16>,
    %735 = vector.extract_strided_slice %732 {offsets = [0, 1], sizes = [8, 16], strides = [1, 1]} : vector<8x22xbf16> to vector<8x16xbf16>
    %c8_665 = arith.constant 8 : index
    %c0_666 = arith.constant 0 : index
    %736 = vector.load %arg8[%c8_665, %c0_666] : memref<392x16xbf16, #tpu.memory_space<vmem>>, vector<8x16xbf16>
    tpu.vector_store %arg8[%c8_665, %c0_666], %735 {strides = array<i32>} : memref<392x16xbf16, #tpu.memory_space<vmem>>, vector<8x16xbf16>,
    %737 = vector.extract_strided_slice %732 {offsets = [0, 2], sizes = [8, 16], strides = [1, 1]} : vector<8x22xbf16> to vector<8x16xbf16>
    %c16_667 = arith.constant 16 : index
    %c0_668 = arith.constant 0 : index
    %738 = vector.load %arg8[%c16_667, %c0_668] : memref<392x16xbf16, #tpu.memory_space<vmem>>, vector<8x16xbf16>
    tpu.vector_store %arg8[%c16_667, %c0_668], %737 {strides = array<i32>} : memref<392x16xbf16, #tpu.memory_space<vmem>>, vector<8x16xbf16>,
    %739 = vector.extract_strided_slice %732 {offsets = [0, 3], sizes = [8, 16], strides = [1, 1]} : vector<8x22xbf16> to vector<8x16xbf16>
    %c24_669 = arith.constant 24 : index
    %c0_670 = arith.constant 0 : index
    %740 = vector.load %arg8[%c24_669, %c0_670] : memref<392x16xbf16, #tpu.memory_space<vmem>>, vector<8x16xbf16>
    tpu.vector_store %arg8[%c24_669, %c0_670], %739 {strides = array<i32>} : memref<392x16xbf16, #tpu.memory_space<vmem>>, vector<8x16xbf16>,
    %741 = vector.extract_strided_slice %732 {offsets = [0, 4], sizes = [8, 16], strides = [1, 1]} : vector<8x22xbf16> to vector<8x16xbf16>
    %c32_671 = arith.constant 32 : index
    %c0_672 = arith.constant 0 : index
    %742 = vector.load %arg8[%c32_671, %c0_672] : memref<392x16xbf16, #tpu.memory_space<vmem>>, vector<8x16xbf16>
    tpu.vector_store %arg8[%c32_671, %c0_672], %741 {strides = array<i32>} : memref<392x16xbf16, #tpu.memory_space<vmem>>, vector<8x16xbf16>,
    %743 = vector.extract_strided_slice %732 {offsets = [0, 5], sizes = [8, 16], strides = [1, 1]} : vector<8x22xbf16> to vector<8x16xbf16>
    %c40_673 = arith.constant 40 : index
    %c0_674 = arith.constant 0 : index
    %744 = vector.load %arg8[%c40_673, %c0_674] : memref<392x16xbf16, #tpu.memory_space<vmem>>, vector<8x16xbf16>
    tpu.vector_store %arg8[%c40_673, %c0_674], %743 {strides = array<i32>} : memref<392x16xbf16, #tpu.memory_space<vmem>>, vector<8x16xbf16>,
    %745 = vector.extract_strided_slice %732 {offsets = [0, 6], sizes = [8, 16], strides = [1, 1]} : vector<8x22xbf16> to vector<8x16xbf16>
    %c48_675 = arith.constant 48 : index
    %c0_676 = arith.constant 0 : index
    %746 = vector.load %arg8[%c48_675, %c0_676] : memref<392x16xbf16, #tpu.memory_space<vmem>>, vector<8x16xbf16>
    tpu.vector_store %arg8[%c48_675, %c0_676], %745 {strides = array<i32>} : memref<392x16xbf16, #tpu.memory_space<vmem>>, vector<8x16xbf16>,
    %c5_i32_677 = arith.constant 5 : i32
    %747 = arith.addi %0, %c5_i32_677 : i32
    %c1_i32_678 = arith.constant 1 : i32
    %748 = arith.addi %747, %c1_i32_678 : i32
    %c0_679 = arith.constant 0 : index
    %749 = arith.index_cast %748 : i32 to index
    %c0_680 = arith.constant 0 : index
    %c0_681 = arith.constant 0 : index
    %750 = vector.load %arg3[%c0_679, %749, %c0_680, %c0_681] : memref<1x22x8x22xbf16, #tpu.memory_space<vmem>>, vector<1x1x8x22xbf16>
    %751 = vector.shape_cast %750 : vector<1x1x8x22xbf16> to vector<8x22xbf16>
    %752 = vector.extract_strided_slice %751 {offsets = [0, 0], sizes = [8, 16], strides = [1, 1]} : vector<8x22xbf16> to vector<8x16xbf16>
    %c56_682 = arith.constant 56 : index
    %c0_683 = arith.constant 0 : index
    %753 = vector.load %arg8[%c56_682, %c0_683] : memref<392x16xbf16, #tpu.memory_space<vmem>>, vector<8x16xbf16>
    tpu.vector_store %arg8[%c56_682, %c0_683], %752 {strides = array<i32>} : memref<392x16xbf16, #tpu.memory_space<vmem>>, vector<8x16xbf16>,
    %754 = vector.extract_strided_slice %751 {offsets = [0, 1], sizes = [8, 16], strides = [1, 1]} : vector<8x22xbf16> to vector<8x16xbf16>
    %c64_684 = arith.constant 64 : index
    %c0_685 = arith.constant 0 : index
    %755 = vector.load %arg8[%c64_684, %c0_685] : memref<392x16xbf16, #tpu.memory_space<vmem>>, vector<8x16xbf16>
    tpu.vector_store %arg8[%c64_684, %c0_685], %754 {strides = array<i32>} : memref<392x16xbf16, #tpu.memory_space<vmem>>, vector<8x16xbf16>,
    %756 = vector.extract_strided_slice %751 {offsets = [0, 2], sizes = [8, 16], strides = [1, 1]} : vector<8x22xbf16> to vector<8x16xbf16>
    %c72_686 = arith.constant 72 : index
    %c0_687 = arith.constant 0 : index
    %757 = vector.load %arg8[%c72_686, %c0_687] : memref<392x16xbf16, #tpu.memory_space<vmem>>, vector<8x16xbf16>
    tpu.vector_store %arg8[%c72_686, %c0_687], %756 {strides = array<i32>} : memref<392x16xbf16, #tpu.memory_space<vmem>>, vector<8x16xbf16>,
    %758 = vector.extract_strided_slice %751 {offsets = [0, 3], sizes = [8, 16], strides = [1, 1]} : vector<8x22xbf16> to vector<8x16xbf16>
    %c80_688 = arith.constant 80 : index
    %c0_689 = arith.constant 0 : index
    %759 = vector.load %arg8[%c80_688, %c0_689] : memref<392x16xbf16, #tpu.memory_space<vmem>>, vector<8x16xbf16>
    tpu.vector_store %arg8[%c80_688, %c0_689], %758 {strides = array<i32>} : memref<392x16xbf16, #tpu.memory_space<vmem>>, vector<8x16xbf16>,
    %760 = vector.extract_strided_slice %751 {offsets = [0, 4], sizes = [8, 16], strides = [1, 1]} : vector<8x22xbf16> to vector<8x16xbf16>
    %c88_690 = arith.constant 88 : index
    %c0_691 = arith.constant 0 : index
    %761 = vector.load %arg8[%c88_690, %c0_691] : memref<392x16xbf16, #tpu.memory_space<vmem>>, vector<8x16xbf16>
    tpu.vector_store %arg8[%c88_690, %c0_691], %760 {strides = array<i32>} : memref<392x16xbf16, #tpu.memory_space<vmem>>, vector<8x16xbf16>,
    %762 = vector.extract_strided_slice %751 {offsets = [0, 5], sizes = [8, 16], strides = [1, 1]} : vector<8x22xbf16> to vector<8x16xbf16>
    %c96_692 = arith.constant 96 : index
    %c0_693 = arith.constant 0 : index
    %763 = vector.load %arg8[%c96_692, %c0_693] : memref<392x16xbf16, #tpu.memory_space<vmem>>, vector<8x16xbf16>
    tpu.vector_store %arg8[%c96_692, %c0_693], %762 {strides = array<i32>} : memref<392x16xbf16, #tpu.memory_space<vmem>>, vector<8x16xbf16>,
    %764 = vector.extract_strided_slice %751 {offsets = [0, 6], sizes = [8, 16], strides = [1, 1]} : vector<8x22xbf16> to vector<8x16xbf16>
    %c104_694 = arith.constant 104 : index
    %c0_695 = arith.constant 0 : index
    %765 = vector.load %arg8[%c104_694, %c0_695] : memref<392x16xbf16, #tpu.memory_space<vmem>>, vector<8x16xbf16>
    tpu.vector_store %arg8[%c104_694, %c0_695], %764 {strides = array<i32>} : memref<392x16xbf16, #tpu.memory_space<vmem>>, vector<8x16xbf16>,
    %c5_i32_696 = arith.constant 5 : i32
    %766 = arith.addi %0, %c5_i32_696 : i32
    %c2_i32_697 = arith.constant 2 : i32
    %767 = arith.addi %766, %c2_i32_697 : i32
    %c0_698 = arith.constant 0 : index
    %768 = arith.index_cast %767 : i32 to index
    %c0_699 = arith.constant 0 : index
    %c0_700 = arith.constant 0 : index
    %769 = vector.load %arg3[%c0_698, %768, %c0_699, %c0_700] : memref<1x22x8x22xbf16, #tpu.memory_space<vmem>>, vector<1x1x8x22xbf16>
    %770 = vector.shape_cast %769 : vector<1x1x8x22xbf16> to vector<8x22xbf16>
    %771 = vector.extract_strided_slice %770 {offsets = [0, 0], sizes = [8, 16], strides = [1, 1]} : vector<8x22xbf16> to vector<8x16xbf16>
    %c112_701 = arith.constant 112 : index
    %c0_702 = arith.constant 0 : index
    %772 = vector.load %arg8[%c112_701, %c0_702] : memref<392x16xbf16, #tpu.memory_space<vmem>>, vector<8x16xbf16>
    tpu.vector_store %arg8[%c112_701, %c0_702], %771 {strides = array<i32>} : memref<392x16xbf16, #tpu.memory_space<vmem>>, vector<8x16xbf16>,
    %773 = vector.extract_strided_slice %770 {offsets = [0, 1], sizes = [8, 16], strides = [1, 1]} : vector<8x22xbf16> to vector<8x16xbf16>
    %c120_703 = arith.constant 120 : index
    %c0_704 = arith.constant 0 : index
    %774 = vector.load %arg8[%c120_703, %c0_704] : memref<392x16xbf16, #tpu.memory_space<vmem>>, vector<8x16xbf16>
    tpu.vector_store %arg8[%c120_703, %c0_704], %773 {strides = array<i32>} : memref<392x16xbf16, #tpu.memory_space<vmem>>, vector<8x16xbf16>,
    %775 = vector.extract_strided_slice %770 {offsets = [0, 2], sizes = [8, 16], strides = [1, 1]} : vector<8x22xbf16> to vector<8x16xbf16>
    %c128_705 = arith.constant 128 : index
    %c0_706 = arith.constant 0 : index
    %776 = vector.load %arg8[%c128_705, %c0_706] : memref<392x16xbf16, #tpu.memory_space<vmem>>, vector<8x16xbf16>
    tpu.vector_store %arg8[%c128_705, %c0_706], %775 {strides = array<i32>} : memref<392x16xbf16, #tpu.memory_space<vmem>>, vector<8x16xbf16>,
    %777 = vector.extract_strided_slice %770 {offsets = [0, 3], sizes = [8, 16], strides = [1, 1]} : vector<8x22xbf16> to vector<8x16xbf16>
    %c136_707 = arith.constant 136 : index
    %c0_708 = arith.constant 0 : index
    %778 = vector.load %arg8[%c136_707, %c0_708] : memref<392x16xbf16, #tpu.memory_space<vmem>>, vector<8x16xbf16>
    tpu.vector_store %arg8[%c136_707, %c0_708], %777 {strides = array<i32>} : memref<392x16xbf16, #tpu.memory_space<vmem>>, vector<8x16xbf16>,
    %779 = vector.extract_strided_slice %770 {offsets = [0, 4], sizes = [8, 16], strides = [1, 1]} : vector<8x22xbf16> to vector<8x16xbf16>
    %c144_709 = arith.constant 144 : index
    %c0_710 = arith.constant 0 : index
    %780 = vector.load %arg8[%c144_709, %c0_710] : memref<392x16xbf16, #tpu.memory_space<vmem>>, vector<8x16xbf16>
    tpu.vector_store %arg8[%c144_709, %c0_710], %779 {strides = array<i32>} : memref<392x16xbf16, #tpu.memory_space<vmem>>, vector<8x16xbf16>,
    %781 = vector.extract_strided_slice %770 {offsets = [0, 5], sizes = [8, 16], strides = [1, 1]} : vector<8x22xbf16> to vector<8x16xbf16>
    %c152_711 = arith.constant 152 : index
    %c0_712 = arith.constant 0 : index
    %782 = vector.load %arg8[%c152_711, %c0_712] : memref<392x16xbf16, #tpu.memory_space<vmem>>, vector<8x16xbf16>
    tpu.vector_store %arg8[%c152_711, %c0_712], %781 {strides = array<i32>} : memref<392x16xbf16, #tpu.memory_space<vmem>>, vector<8x16xbf16>,
    %783 = vector.extract_strided_slice %770 {offsets = [0, 6], sizes = [8, 16], strides = [1, 1]} : vector<8x22xbf16> to vector<8x16xbf16>
    %c160_713 = arith.constant 160 : index
    %c0_714 = arith.constant 0 : index
    %784 = vector.load %arg8[%c160_713, %c0_714] : memref<392x16xbf16, #tpu.memory_space<vmem>>, vector<8x16xbf16>
    tpu.vector_store %arg8[%c160_713, %c0_714], %783 {strides = array<i32>} : memref<392x16xbf16, #tpu.memory_space<vmem>>, vector<8x16xbf16>,
    %c5_i32_715 = arith.constant 5 : i32
    %785 = arith.addi %0, %c5_i32_715 : i32
    %c3_i32_716 = arith.constant 3 : i32
    %786 = arith.addi %785, %c3_i32_716 : i32
    %c0_717 = arith.constant 0 : index
    %787 = arith.index_cast %786 : i32 to index
    %c0_718 = arith.constant 0 : index
    %c0_719 = arith.constant 0 : index
    %788 = vector.load %arg3[%c0_717, %787, %c0_718, %c0_719] : memref<1x22x8x22xbf16, #tpu.memory_space<vmem>>, vector<1x1x8x22xbf16>
    %789 = vector.shape_cast %788 : vector<1x1x8x22xbf16> to vector<8x22xbf16>
    %790 = vector.extract_strided_slice %789 {offsets = [0, 0], sizes = [8, 16], strides = [1, 1]} : vector<8x22xbf16> to vector<8x16xbf16>
    %c168_720 = arith.constant 168 : index
    %c0_721 = arith.constant 0 : index
    %791 = vector.load %arg8[%c168_720, %c0_721] : memref<392x16xbf16, #tpu.memory_space<vmem>>, vector<8x16xbf16>
    tpu.vector_store %arg8[%c168_720, %c0_721], %790 {strides = array<i32>} : memref<392x16xbf16, #tpu.memory_space<vmem>>, vector<8x16xbf16>,
    %792 = vector.extract_strided_slice %789 {offsets = [0, 1], sizes = [8, 16], strides = [1, 1]} : vector<8x22xbf16> to vector<8x16xbf16>
    %c176_722 = arith.constant 176 : index
    %c0_723 = arith.constant 0 : index
    %793 = vector.load %arg8[%c176_722, %c0_723] : memref<392x16xbf16, #tpu.memory_space<vmem>>, vector<8x16xbf16>
    tpu.vector_store %arg8[%c176_722, %c0_723], %792 {strides = array<i32>} : memref<392x16xbf16, #tpu.memory_space<vmem>>, vector<8x16xbf16>,
    %794 = vector.extract_strided_slice %789 {offsets = [0, 2], sizes = [8, 16], strides = [1, 1]} : vector<8x22xbf16> to vector<8x16xbf16>
    %c184_724 = arith.constant 184 : index
    %c0_725 = arith.constant 0 : index
    %795 = vector.load %arg8[%c184_724, %c0_725] : memref<392x16xbf16, #tpu.memory_space<vmem>>, vector<8x16xbf16>
    tpu.vector_store %arg8[%c184_724, %c0_725], %794 {strides = array<i32>} : memref<392x16xbf16, #tpu.memory_space<vmem>>, vector<8x16xbf16>,
    %796 = vector.extract_strided_slice %789 {offsets = [0, 3], sizes = [8, 16], strides = [1, 1]} : vector<8x22xbf16> to vector<8x16xbf16>
    %c192_726 = arith.constant 192 : index
    %c0_727 = arith.constant 0 : index
    %797 = vector.load %arg8[%c192_726, %c0_727] : memref<392x16xbf16, #tpu.memory_space<vmem>>, vector<8x16xbf16>
    tpu.vector_store %arg8[%c192_726, %c0_727], %796 {strides = array<i32>} : memref<392x16xbf16, #tpu.memory_space<vmem>>, vector<8x16xbf16>,
    %798 = vector.extract_strided_slice %789 {offsets = [0, 4], sizes = [8, 16], strides = [1, 1]} : vector<8x22xbf16> to vector<8x16xbf16>
    %c200_728 = arith.constant 200 : index
    %c0_729 = arith.constant 0 : index
    %799 = vector.load %arg8[%c200_728, %c0_729] : memref<392x16xbf16, #tpu.memory_space<vmem>>, vector<8x16xbf16>
    tpu.vector_store %arg8[%c200_728, %c0_729], %798 {strides = array<i32>} : memref<392x16xbf16, #tpu.memory_space<vmem>>, vector<8x16xbf16>,
    %800 = vector.extract_strided_slice %789 {offsets = [0, 5], sizes = [8, 16], strides = [1, 1]} : vector<8x22xbf16> to vector<8x16xbf16>
    %c208_730 = arith.constant 208 : index
    %c0_731 = arith.constant 0 : index
    %801 = vector.load %arg8[%c208_730, %c0_731] : memref<392x16xbf16, #tpu.memory_space<vmem>>, vector<8x16xbf16>
    tpu.vector_store %arg8[%c208_730, %c0_731], %800 {strides = array<i32>} : memref<392x16xbf16, #tpu.memory_space<vmem>>, vector<8x16xbf16>,
    %802 = vector.extract_strided_slice %789 {offsets = [0, 6], sizes = [8, 16], strides = [1, 1]} : vector<8x22xbf16> to vector<8x16xbf16>
    %c216_732 = arith.constant 216 : index
    %c0_733 = arith.constant 0 : index
    %803 = vector.load %arg8[%c216_732, %c0_733] : memref<392x16xbf16, #tpu.memory_space<vmem>>, vector<8x16xbf16>
    tpu.vector_store %arg8[%c216_732, %c0_733], %802 {strides = array<i32>} : memref<392x16xbf16, #tpu.memory_space<vmem>>, vector<8x16xbf16>,
    %c5_i32_734 = arith.constant 5 : i32
    %804 = arith.addi %0, %c5_i32_734 : i32
    %c4_i32_735 = arith.constant 4 : i32
    %805 = arith.addi %804, %c4_i32_735 : i32
    %c0_736 = arith.constant 0 : index
    %806 = arith.index_cast %805 : i32 to index
    %c0_737 = arith.constant 0 : index
    %c0_738 = arith.constant 0 : index
    %807 = vector.load %arg3[%c0_736, %806, %c0_737, %c0_738] : memref<1x22x8x22xbf16, #tpu.memory_space<vmem>>, vector<1x1x8x22xbf16>
    %808 = vector.shape_cast %807 : vector<1x1x8x22xbf16> to vector<8x22xbf16>
    %809 = vector.extract_strided_slice %808 {offsets = [0, 0], sizes = [8, 16], strides = [1, 1]} : vector<8x22xbf16> to vector<8x16xbf16>
    %c224_739 = arith.constant 224 : index
    %c0_740 = arith.constant 0 : index
    %810 = vector.load %arg8[%c224_739, %c0_740] : memref<392x16xbf16, #tpu.memory_space<vmem>>, vector<8x16xbf16>
    tpu.vector_store %arg8[%c224_739, %c0_740], %809 {strides = array<i32>} : memref<392x16xbf16, #tpu.memory_space<vmem>>, vector<8x16xbf16>,
    %811 = vector.extract_strided_slice %808 {offsets = [0, 1], sizes = [8, 16], strides = [1, 1]} : vector<8x22xbf16> to vector<8x16xbf16>
    %c232_741 = arith.constant 232 : index
    %c0_742 = arith.constant 0 : index
    %812 = vector.load %arg8[%c232_741, %c0_742] : memref<392x16xbf16, #tpu.memory_space<vmem>>, vector<8x16xbf16>
    tpu.vector_store %arg8[%c232_741, %c0_742], %811 {strides = array<i32>} : memref<392x16xbf16, #tpu.memory_space<vmem>>, vector<8x16xbf16>,
    %813 = vector.extract_strided_slice %808 {offsets = [0, 2], sizes = [8, 16], strides = [1, 1]} : vector<8x22xbf16> to vector<8x16xbf16>
    %c240_743 = arith.constant 240 : index
    %c0_744 = arith.constant 0 : index
    %814 = vector.load %arg8[%c240_743, %c0_744] : memref<392x16xbf16, #tpu.memory_space<vmem>>, vector<8x16xbf16>
    tpu.vector_store %arg8[%c240_743, %c0_744], %813 {strides = array<i32>} : memref<392x16xbf16, #tpu.memory_space<vmem>>, vector<8x16xbf16>,
    %815 = vector.extract_strided_slice %808 {offsets = [0, 3], sizes = [8, 16], strides = [1, 1]} : vector<8x22xbf16> to vector<8x16xbf16>
    %c248_745 = arith.constant 248 : index
    %c0_746 = arith.constant 0 : index
    %816 = vector.load %arg8[%c248_745, %c0_746] : memref<392x16xbf16, #tpu.memory_space<vmem>>, vector<8x16xbf16>
    tpu.vector_store %arg8[%c248_745, %c0_746], %815 {strides = array<i32>} : memref<392x16xbf16, #tpu.memory_space<vmem>>, vector<8x16xbf16>,
    %817 = vector.extract_strided_slice %808 {offsets = [0, 4], sizes = [8, 16], strides = [1, 1]} : vector<8x22xbf16> to vector<8x16xbf16>
    %c256_747 = arith.constant 256 : index
    %c0_748 = arith.constant 0 : index
    %818 = vector.load %arg8[%c256_747, %c0_748] : memref<392x16xbf16, #tpu.memory_space<vmem>>, vector<8x16xbf16>
    tpu.vector_store %arg8[%c256_747, %c0_748], %817 {strides = array<i32>} : memref<392x16xbf16, #tpu.memory_space<vmem>>, vector<8x16xbf16>,
    %819 = vector.extract_strided_slice %808 {offsets = [0, 5], sizes = [8, 16], strides = [1, 1]} : vector<8x22xbf16> to vector<8x16xbf16>
    %c264_749 = arith.constant 264 : index
    %c0_750 = arith.constant 0 : index
    %820 = vector.load %arg8[%c264_749, %c0_750] : memref<392x16xbf16, #tpu.memory_space<vmem>>, vector<8x16xbf16>
    tpu.vector_store %arg8[%c264_749, %c0_750], %819 {strides = array<i32>} : memref<392x16xbf16, #tpu.memory_space<vmem>>, vector<8x16xbf16>,
    %821 = vector.extract_strided_slice %808 {offsets = [0, 6], sizes = [8, 16], strides = [1, 1]} : vector<8x22xbf16> to vector<8x16xbf16>
    %c272_751 = arith.constant 272 : index
    %c0_752 = arith.constant 0 : index
    %822 = vector.load %arg8[%c272_751, %c0_752] : memref<392x16xbf16, #tpu.memory_space<vmem>>, vector<8x16xbf16>
    tpu.vector_store %arg8[%c272_751, %c0_752], %821 {strides = array<i32>} : memref<392x16xbf16, #tpu.memory_space<vmem>>, vector<8x16xbf16>,
    %c5_i32_753 = arith.constant 5 : i32
    %823 = arith.addi %0, %c5_i32_753 : i32
    %c5_i32_754 = arith.constant 5 : i32
    %824 = arith.addi %823, %c5_i32_754 : i32
    %c0_755 = arith.constant 0 : index
    %825 = arith.index_cast %824 : i32 to index
    %c0_756 = arith.constant 0 : index
    %c0_757 = arith.constant 0 : index
    %826 = vector.load %arg3[%c0_755, %825, %c0_756, %c0_757] : memref<1x22x8x22xbf16, #tpu.memory_space<vmem>>, vector<1x1x8x22xbf16>
    %827 = vector.shape_cast %826 : vector<1x1x8x22xbf16> to vector<8x22xbf16>
    %828 = vector.extract_strided_slice %827 {offsets = [0, 0], sizes = [8, 16], strides = [1, 1]} : vector<8x22xbf16> to vector<8x16xbf16>
    %c280_758 = arith.constant 280 : index
    %c0_759 = arith.constant 0 : index
    %829 = vector.load %arg8[%c280_758, %c0_759] : memref<392x16xbf16, #tpu.memory_space<vmem>>, vector<8x16xbf16>
    tpu.vector_store %arg8[%c280_758, %c0_759], %828 {strides = array<i32>} : memref<392x16xbf16, #tpu.memory_space<vmem>>, vector<8x16xbf16>,
    %830 = vector.extract_strided_slice %827 {offsets = [0, 1], sizes = [8, 16], strides = [1, 1]} : vector<8x22xbf16> to vector<8x16xbf16>
    %c288_760 = arith.constant 288 : index
    %c0_761 = arith.constant 0 : index
    %831 = vector.load %arg8[%c288_760, %c0_761] : memref<392x16xbf16, #tpu.memory_space<vmem>>, vector<8x16xbf16>
    tpu.vector_store %arg8[%c288_760, %c0_761], %830 {strides = array<i32>} : memref<392x16xbf16, #tpu.memory_space<vmem>>, vector<8x16xbf16>,
    %832 = vector.extract_strided_slice %827 {offsets = [0, 2], sizes = [8, 16], strides = [1, 1]} : vector<8x22xbf16> to vector<8x16xbf16>
    %c296_762 = arith.constant 296 : index
    %c0_763 = arith.constant 0 : index
    %833 = vector.load %arg8[%c296_762, %c0_763] : memref<392x16xbf16, #tpu.memory_space<vmem>>, vector<8x16xbf16>
    tpu.vector_store %arg8[%c296_762, %c0_763], %832 {strides = array<i32>} : memref<392x16xbf16, #tpu.memory_space<vmem>>, vector<8x16xbf16>,
    %834 = vector.extract_strided_slice %827 {offsets = [0, 3], sizes = [8, 16], strides = [1, 1]} : vector<8x22xbf16> to vector<8x16xbf16>
    %c304_764 = arith.constant 304 : index
    %c0_765 = arith.constant 0 : index
    %835 = vector.load %arg8[%c304_764, %c0_765] : memref<392x16xbf16, #tpu.memory_space<vmem>>, vector<8x16xbf16>
    tpu.vector_store %arg8[%c304_764, %c0_765], %834 {strides = array<i32>} : memref<392x16xbf16, #tpu.memory_space<vmem>>, vector<8x16xbf16>,
    %836 = vector.extract_strided_slice %827 {offsets = [0, 4], sizes = [8, 16], strides = [1, 1]} : vector<8x22xbf16> to vector<8x16xbf16>
    %c312_766 = arith.constant 312 : index
    %c0_767 = arith.constant 0 : index
    %837 = vector.load %arg8[%c312_766, %c0_767] : memref<392x16xbf16, #tpu.memory_space<vmem>>, vector<8x16xbf16>
    tpu.vector_store %arg8[%c312_766, %c0_767], %836 {strides = array<i32>} : memref<392x16xbf16, #tpu.memory_space<vmem>>, vector<8x16xbf16>,
    %838 = vector.extract_strided_slice %827 {offsets = [0, 5], sizes = [8, 16], strides = [1, 1]} : vector<8x22xbf16> to vector<8x16xbf16>
    %c320_768 = arith.constant 320 : index
    %c0_769 = arith.constant 0 : index
    %839 = vector.load %arg8[%c320_768, %c0_769] : memref<392x16xbf16, #tpu.memory_space<vmem>>, vector<8x16xbf16>
    tpu.vector_store %arg8[%c320_768, %c0_769], %838 {strides = array<i32>} : memref<392x16xbf16, #tpu.memory_space<vmem>>, vector<8x16xbf16>,
    %840 = vector.extract_strided_slice %827 {offsets = [0, 6], sizes = [8, 16], strides = [1, 1]} : vector<8x22xbf16> to vector<8x16xbf16>
    %c328_770 = arith.constant 328 : index
    %c0_771 = arith.constant 0 : index
    %841 = vector.load %arg8[%c328_770, %c0_771] : memref<392x16xbf16, #tpu.memory_space<vmem>>, vector<8x16xbf16>
    tpu.vector_store %arg8[%c328_770, %c0_771], %840 {strides = array<i32>} : memref<392x16xbf16, #tpu.memory_space<vmem>>, vector<8x16xbf16>,
    %c5_i32_772 = arith.constant 5 : i32
    %842 = arith.addi %0, %c5_i32_772 : i32
    %c6_i32_773 = arith.constant 6 : i32
    %843 = arith.addi %842, %c6_i32_773 : i32
    %c0_774 = arith.constant 0 : index
    %844 = arith.index_cast %843 : i32 to index
    %c0_775 = arith.constant 0 : index
    %c0_776 = arith.constant 0 : index
    %845 = vector.load %arg3[%c0_774, %844, %c0_775, %c0_776] : memref<1x22x8x22xbf16, #tpu.memory_space<vmem>>, vector<1x1x8x22xbf16>
    %846 = vector.shape_cast %845 : vector<1x1x8x22xbf16> to vector<8x22xbf16>
    %847 = vector.extract_strided_slice %846 {offsets = [0, 0], sizes = [8, 16], strides = [1, 1]} : vector<8x22xbf16> to vector<8x16xbf16>
    %c336_777 = arith.constant 336 : index
    %c0_778 = arith.constant 0 : index
    %848 = vector.load %arg8[%c336_777, %c0_778] : memref<392x16xbf16, #tpu.memory_space<vmem>>, vector<8x16xbf16>
    tpu.vector_store %arg8[%c336_777, %c0_778], %847 {strides = array<i32>} : memref<392x16xbf16, #tpu.memory_space<vmem>>, vector<8x16xbf16>,
    %849 = vector.extract_strided_slice %846 {offsets = [0, 1], sizes = [8, 16], strides = [1, 1]} : vector<8x22xbf16> to vector<8x16xbf16>
    %c344_779 = arith.constant 344 : index
    %c0_780 = arith.constant 0 : index
    %850 = vector.load %arg8[%c344_779, %c0_780] : memref<392x16xbf16, #tpu.memory_space<vmem>>, vector<8x16xbf16>
    tpu.vector_store %arg8[%c344_779, %c0_780], %849 {strides = array<i32>} : memref<392x16xbf16, #tpu.memory_space<vmem>>, vector<8x16xbf16>,
    %851 = vector.extract_strided_slice %846 {offsets = [0, 2], sizes = [8, 16], strides = [1, 1]} : vector<8x22xbf16> to vector<8x16xbf16>
    %c352_781 = arith.constant 352 : index
    %c0_782 = arith.constant 0 : index
    %852 = vector.load %arg8[%c352_781, %c0_782] : memref<392x16xbf16, #tpu.memory_space<vmem>>, vector<8x16xbf16>
    tpu.vector_store %arg8[%c352_781, %c0_782], %851 {strides = array<i32>} : memref<392x16xbf16, #tpu.memory_space<vmem>>, vector<8x16xbf16>,
    %853 = vector.extract_strided_slice %846 {offsets = [0, 3], sizes = [8, 16], strides = [1, 1]} : vector<8x22xbf16> to vector<8x16xbf16>
    %c360_783 = arith.constant 360 : index
    %c0_784 = arith.constant 0 : index
    %854 = vector.load %arg8[%c360_783, %c0_784] : memref<392x16xbf16, #tpu.memory_space<vmem>>, vector<8x16xbf16>
    tpu.vector_store %arg8[%c360_783, %c0_784], %853 {strides = array<i32>} : memref<392x16xbf16, #tpu.memory_space<vmem>>, vector<8x16xbf16>,
    %855 = vector.extract_strided_slice %846 {offsets = [0, 4], sizes = [8, 16], strides = [1, 1]} : vector<8x22xbf16> to vector<8x16xbf16>
    %c368_785 = arith.constant 368 : index
    %c0_786 = arith.constant 0 : index
    %856 = vector.load %arg8[%c368_785, %c0_786] : memref<392x16xbf16, #tpu.memory_space<vmem>>, vector<8x16xbf16>
    tpu.vector_store %arg8[%c368_785, %c0_786], %855 {strides = array<i32>} : memref<392x16xbf16, #tpu.memory_space<vmem>>, vector<8x16xbf16>,
    %857 = vector.extract_strided_slice %846 {offsets = [0, 5], sizes = [8, 16], strides = [1, 1]} : vector<8x22xbf16> to vector<8x16xbf16>
    %c376_787 = arith.constant 376 : index
    %c0_788 = arith.constant 0 : index
    %858 = vector.load %arg8[%c376_787, %c0_788] : memref<392x16xbf16, #tpu.memory_space<vmem>>, vector<8x16xbf16>
    tpu.vector_store %arg8[%c376_787, %c0_788], %857 {strides = array<i32>} : memref<392x16xbf16, #tpu.memory_space<vmem>>, vector<8x16xbf16>,
    %859 = vector.extract_strided_slice %846 {offsets = [0, 6], sizes = [8, 16], strides = [1, 1]} : vector<8x22xbf16> to vector<8x16xbf16>
    %c384_789 = arith.constant 384 : index
    %c0_790 = arith.constant 0 : index
    %860 = vector.load %arg8[%c384_789, %c0_790] : memref<392x16xbf16, #tpu.memory_space<vmem>>, vector<8x16xbf16>
    tpu.vector_store %arg8[%c384_789, %c0_790], %859 {strides = array<i32>} : memref<392x16xbf16, #tpu.memory_space<vmem>>, vector<8x16xbf16>,
    %c0_791 = arith.constant 0 : index
    %c0_792 = arith.constant 0 : index
    %861 = vector.load %arg4[%c0_791, %c0_792] : memref<8x392xbf16, #tpu.memory_space<vmem>>, vector<8x392xbf16>
    %c0_793 = arith.constant 0 : index
    %c0_794 = arith.constant 0 : index
    %862 = vector.load %arg8[%c0_793, %c0_794] : memref<392x16xbf16, #tpu.memory_space<vmem>>, vector<392x16xbf16>
    %cst_795 = arith.constant dense<0.000000e+00> : vector<8x16xf32>
    %863 = tpu.matmul %861, %862, %cst_795 {dimension_numbers = #tpu.dot_dimension_numbers<[1], [0], [0], [1], [0, 0, 1, 1], [], []>} : vector<8x392xbf16>, vector<392x16xbf16>, vector<8x16xf32> -> vector<8x16xf32>
    %864 = vector.broadcast %1 : vector<8x1xf32> to vector<8x16xf32>
    %865 = arith.mulf %863, %864 : vector<8x16xf32>
    %866 = vector.broadcast %2 : vector<8x1xf32> to vector<8x16xf32>
    %867 = arith.addf %865, %866 : vector<8x16xf32>
    %cst_796 = arith.constant 0.000000e+00 : f32
    %868 = vector.broadcast %cst_796 : f32 to vector<8x16xf32>
    %869 = arith.maximumf %867, %868 : vector<8x16xf32>
    %c0_797 = arith.constant 0 : index
    %c0_798 = arith.constant 0 : index
    %c5 = arith.constant 5 : index
    %c0_799 = arith.constant 0 : index
    %870 = vector.load %arg7[%c0_797, %c0_798, %c5, %c0_799] : memref<1x8x8x16xf32, #tpu.memory_space<vmem>>, vector<1x8x1x16xf32>
    %871 = vector.shape_cast %870 : vector<1x8x1x16xf32> to vector<8x16xf32>
    %872 = vector.shape_cast %869 : vector<8x16xf32> to vector<1x8x1x16xf32>
    tpu.vector_store %arg7[%c0_797, %c0_798, %c5, %c0_799], %872 {strides = array<i32>} : memref<1x8x8x16xf32, #tpu.memory_space<vmem>>, vector<1x8x1x16xf32>,
    %c6_i32_800 = arith.constant 6 : i32
    %873 = arith.addi %0, %c6_i32_800 : i32
    %c0_i32_801 = arith.constant 0 : i32
    %874 = arith.addi %873, %c0_i32_801 : i32
    %c0_802 = arith.constant 0 : index
    %875 = arith.index_cast %874 : i32 to index
    %c0_803 = arith.constant 0 : index
    %c0_804 = arith.constant 0 : index
    %876 = vector.load %arg3[%c0_802, %875, %c0_803, %c0_804] : memref<1x22x8x22xbf16, #tpu.memory_space<vmem>>, vector<1x1x8x22xbf16>
    %877 = vector.shape_cast %876 : vector<1x1x8x22xbf16> to vector<8x22xbf16>
    %878 = vector.extract_strided_slice %877 {offsets = [0, 0], sizes = [8, 16], strides = [1, 1]} : vector<8x22xbf16> to vector<8x16xbf16>
    %c0_805 = arith.constant 0 : index
    %c0_806 = arith.constant 0 : index
    %879 = vector.load %arg8[%c0_805, %c0_806] : memref<392x16xbf16, #tpu.memory_space<vmem>>, vector<8x16xbf16>
    tpu.vector_store %arg8[%c0_805, %c0_806], %878 {strides = array<i32>} : memref<392x16xbf16, #tpu.memory_space<vmem>>, vector<8x16xbf16>,
    %880 = vector.extract_strided_slice %877 {offsets = [0, 1], sizes = [8, 16], strides = [1, 1]} : vector<8x22xbf16> to vector<8x16xbf16>
    %c8_807 = arith.constant 8 : index
    %c0_808 = arith.constant 0 : index
    %881 = vector.load %arg8[%c8_807, %c0_808] : memref<392x16xbf16, #tpu.memory_space<vmem>>, vector<8x16xbf16>
    tpu.vector_store %arg8[%c8_807, %c0_808], %880 {strides = array<i32>} : memref<392x16xbf16, #tpu.memory_space<vmem>>, vector<8x16xbf16>,
    %882 = vector.extract_strided_slice %877 {offsets = [0, 2], sizes = [8, 16], strides = [1, 1]} : vector<8x22xbf16> to vector<8x16xbf16>
    %c16_809 = arith.constant 16 : index
    %c0_810 = arith.constant 0 : index
    %883 = vector.load %arg8[%c16_809, %c0_810] : memref<392x16xbf16, #tpu.memory_space<vmem>>, vector<8x16xbf16>
    tpu.vector_store %arg8[%c16_809, %c0_810], %882 {strides = array<i32>} : memref<392x16xbf16, #tpu.memory_space<vmem>>, vector<8x16xbf16>,
    %884 = vector.extract_strided_slice %877 {offsets = [0, 3], sizes = [8, 16], strides = [1, 1]} : vector<8x22xbf16> to vector<8x16xbf16>
    %c24_811 = arith.constant 24 : index
    %c0_812 = arith.constant 0 : index
    %885 = vector.load %arg8[%c24_811, %c0_812] : memref<392x16xbf16, #tpu.memory_space<vmem>>, vector<8x16xbf16>
    tpu.vector_store %arg8[%c24_811, %c0_812], %884 {strides = array<i32>} : memref<392x16xbf16, #tpu.memory_space<vmem>>, vector<8x16xbf16>,
    %886 = vector.extract_strided_slice %877 {offsets = [0, 4], sizes = [8, 16], strides = [1, 1]} : vector<8x22xbf16> to vector<8x16xbf16>
    %c32_813 = arith.constant 32 : index
    %c0_814 = arith.constant 0 : index
    %887 = vector.load %arg8[%c32_813, %c0_814] : memref<392x16xbf16, #tpu.memory_space<vmem>>, vector<8x16xbf16>
    tpu.vector_store %arg8[%c32_813, %c0_814], %886 {strides = array<i32>} : memref<392x16xbf16, #tpu.memory_space<vmem>>, vector<8x16xbf16>,
    %888 = vector.extract_strided_slice %877 {offsets = [0, 5], sizes = [8, 16], strides = [1, 1]} : vector<8x22xbf16> to vector<8x16xbf16>
    %c40_815 = arith.constant 40 : index
    %c0_816 = arith.constant 0 : index
    %889 = vector.load %arg8[%c40_815, %c0_816] : memref<392x16xbf16, #tpu.memory_space<vmem>>, vector<8x16xbf16>
    tpu.vector_store %arg8[%c40_815, %c0_816], %888 {strides = array<i32>} : memref<392x16xbf16, #tpu.memory_space<vmem>>, vector<8x16xbf16>,
    %890 = vector.extract_strided_slice %877 {offsets = [0, 6], sizes = [8, 16], strides = [1, 1]} : vector<8x22xbf16> to vector<8x16xbf16>
    %c48_817 = arith.constant 48 : index
    %c0_818 = arith.constant 0 : index
    %891 = vector.load %arg8[%c48_817, %c0_818] : memref<392x16xbf16, #tpu.memory_space<vmem>>, vector<8x16xbf16>
    tpu.vector_store %arg8[%c48_817, %c0_818], %890 {strides = array<i32>} : memref<392x16xbf16, #tpu.memory_space<vmem>>, vector<8x16xbf16>,
    %c6_i32_819 = arith.constant 6 : i32
    %892 = arith.addi %0, %c6_i32_819 : i32
    %c1_i32_820 = arith.constant 1 : i32
    %893 = arith.addi %892, %c1_i32_820 : i32
    %c0_821 = arith.constant 0 : index
    %894 = arith.index_cast %893 : i32 to index
    %c0_822 = arith.constant 0 : index
    %c0_823 = arith.constant 0 : index
    %895 = vector.load %arg3[%c0_821, %894, %c0_822, %c0_823] : memref<1x22x8x22xbf16, #tpu.memory_space<vmem>>, vector<1x1x8x22xbf16>
    %896 = vector.shape_cast %895 : vector<1x1x8x22xbf16> to vector<8x22xbf16>
    %897 = vector.extract_strided_slice %896 {offsets = [0, 0], sizes = [8, 16], strides = [1, 1]} : vector<8x22xbf16> to vector<8x16xbf16>
    %c56_824 = arith.constant 56 : index
    %c0_825 = arith.constant 0 : index
    %898 = vector.load %arg8[%c56_824, %c0_825] : memref<392x16xbf16, #tpu.memory_space<vmem>>, vector<8x16xbf16>
    tpu.vector_store %arg8[%c56_824, %c0_825], %897 {strides = array<i32>} : memref<392x16xbf16, #tpu.memory_space<vmem>>, vector<8x16xbf16>,
    %899 = vector.extract_strided_slice %896 {offsets = [0, 1], sizes = [8, 16], strides = [1, 1]} : vector<8x22xbf16> to vector<8x16xbf16>
    %c64_826 = arith.constant 64 : index
    %c0_827 = arith.constant 0 : index
    %900 = vector.load %arg8[%c64_826, %c0_827] : memref<392x16xbf16, #tpu.memory_space<vmem>>, vector<8x16xbf16>
    tpu.vector_store %arg8[%c64_826, %c0_827], %899 {strides = array<i32>} : memref<392x16xbf16, #tpu.memory_space<vmem>>, vector<8x16xbf16>,
    %901 = vector.extract_strided_slice %896 {offsets = [0, 2], sizes = [8, 16], strides = [1, 1]} : vector<8x22xbf16> to vector<8x16xbf16>
    %c72_828 = arith.constant 72 : index
    %c0_829 = arith.constant 0 : index
    %902 = vector.load %arg8[%c72_828, %c0_829] : memref<392x16xbf16, #tpu.memory_space<vmem>>, vector<8x16xbf16>
    tpu.vector_store %arg8[%c72_828, %c0_829], %901 {strides = array<i32>} : memref<392x16xbf16, #tpu.memory_space<vmem>>, vector<8x16xbf16>,
    %903 = vector.extract_strided_slice %896 {offsets = [0, 3], sizes = [8, 16], strides = [1, 1]} : vector<8x22xbf16> to vector<8x16xbf16>
    %c80_830 = arith.constant 80 : index
    %c0_831 = arith.constant 0 : index
    %904 = vector.load %arg8[%c80_830, %c0_831] : memref<392x16xbf16, #tpu.memory_space<vmem>>, vector<8x16xbf16>
    tpu.vector_store %arg8[%c80_830, %c0_831], %903 {strides = array<i32>} : memref<392x16xbf16, #tpu.memory_space<vmem>>, vector<8x16xbf16>,
    %905 = vector.extract_strided_slice %896 {offsets = [0, 4], sizes = [8, 16], strides = [1, 1]} : vector<8x22xbf16> to vector<8x16xbf16>
    %c88_832 = arith.constant 88 : index
    %c0_833 = arith.constant 0 : index
    %906 = vector.load %arg8[%c88_832, %c0_833] : memref<392x16xbf16, #tpu.memory_space<vmem>>, vector<8x16xbf16>
    tpu.vector_store %arg8[%c88_832, %c0_833], %905 {strides = array<i32>} : memref<392x16xbf16, #tpu.memory_space<vmem>>, vector<8x16xbf16>,
    %907 = vector.extract_strided_slice %896 {offsets = [0, 5], sizes = [8, 16], strides = [1, 1]} : vector<8x22xbf16> to vector<8x16xbf16>
    %c96_834 = arith.constant 96 : index
    %c0_835 = arith.constant 0 : index
    %908 = vector.load %arg8[%c96_834, %c0_835] : memref<392x16xbf16, #tpu.memory_space<vmem>>, vector<8x16xbf16>
    tpu.vector_store %arg8[%c96_834, %c0_835], %907 {strides = array<i32>} : memref<392x16xbf16, #tpu.memory_space<vmem>>, vector<8x16xbf16>,
    %909 = vector.extract_strided_slice %896 {offsets = [0, 6], sizes = [8, 16], strides = [1, 1]} : vector<8x22xbf16> to vector<8x16xbf16>
    %c104_836 = arith.constant 104 : index
    %c0_837 = arith.constant 0 : index
    %910 = vector.load %arg8[%c104_836, %c0_837] : memref<392x16xbf16, #tpu.memory_space<vmem>>, vector<8x16xbf16>
    tpu.vector_store %arg8[%c104_836, %c0_837], %909 {strides = array<i32>} : memref<392x16xbf16, #tpu.memory_space<vmem>>, vector<8x16xbf16>,
    %c6_i32_838 = arith.constant 6 : i32
    %911 = arith.addi %0, %c6_i32_838 : i32
    %c2_i32_839 = arith.constant 2 : i32
    %912 = arith.addi %911, %c2_i32_839 : i32
    %c0_840 = arith.constant 0 : index
    %913 = arith.index_cast %912 : i32 to index
    %c0_841 = arith.constant 0 : index
    %c0_842 = arith.constant 0 : index
    %914 = vector.load %arg3[%c0_840, %913, %c0_841, %c0_842] : memref<1x22x8x22xbf16, #tpu.memory_space<vmem>>, vector<1x1x8x22xbf16>
    %915 = vector.shape_cast %914 : vector<1x1x8x22xbf16> to vector<8x22xbf16>
    %916 = vector.extract_strided_slice %915 {offsets = [0, 0], sizes = [8, 16], strides = [1, 1]} : vector<8x22xbf16> to vector<8x16xbf16>
    %c112_843 = arith.constant 112 : index
    %c0_844 = arith.constant 0 : index
    %917 = vector.load %arg8[%c112_843, %c0_844] : memref<392x16xbf16, #tpu.memory_space<vmem>>, vector<8x16xbf16>
    tpu.vector_store %arg8[%c112_843, %c0_844], %916 {strides = array<i32>} : memref<392x16xbf16, #tpu.memory_space<vmem>>, vector<8x16xbf16>,
    %918 = vector.extract_strided_slice %915 {offsets = [0, 1], sizes = [8, 16], strides = [1, 1]} : vector<8x22xbf16> to vector<8x16xbf16>
    %c120_845 = arith.constant 120 : index
    %c0_846 = arith.constant 0 : index
    %919 = vector.load %arg8[%c120_845, %c0_846] : memref<392x16xbf16, #tpu.memory_space<vmem>>, vector<8x16xbf16>
    tpu.vector_store %arg8[%c120_845, %c0_846], %918 {strides = array<i32>} : memref<392x16xbf16, #tpu.memory_space<vmem>>, vector<8x16xbf16>,
    %920 = vector.extract_strided_slice %915 {offsets = [0, 2], sizes = [8, 16], strides = [1, 1]} : vector<8x22xbf16> to vector<8x16xbf16>
    %c128_847 = arith.constant 128 : index
    %c0_848 = arith.constant 0 : index
    %921 = vector.load %arg8[%c128_847, %c0_848] : memref<392x16xbf16, #tpu.memory_space<vmem>>, vector<8x16xbf16>
    tpu.vector_store %arg8[%c128_847, %c0_848], %920 {strides = array<i32>} : memref<392x16xbf16, #tpu.memory_space<vmem>>, vector<8x16xbf16>,
    %922 = vector.extract_strided_slice %915 {offsets = [0, 3], sizes = [8, 16], strides = [1, 1]} : vector<8x22xbf16> to vector<8x16xbf16>
    %c136_849 = arith.constant 136 : index
    %c0_850 = arith.constant 0 : index
    %923 = vector.load %arg8[%c136_849, %c0_850] : memref<392x16xbf16, #tpu.memory_space<vmem>>, vector<8x16xbf16>
    tpu.vector_store %arg8[%c136_849, %c0_850], %922 {strides = array<i32>} : memref<392x16xbf16, #tpu.memory_space<vmem>>, vector<8x16xbf16>,
    %924 = vector.extract_strided_slice %915 {offsets = [0, 4], sizes = [8, 16], strides = [1, 1]} : vector<8x22xbf16> to vector<8x16xbf16>
    %c144_851 = arith.constant 144 : index
    %c0_852 = arith.constant 0 : index
    %925 = vector.load %arg8[%c144_851, %c0_852] : memref<392x16xbf16, #tpu.memory_space<vmem>>, vector<8x16xbf16>
    tpu.vector_store %arg8[%c144_851, %c0_852], %924 {strides = array<i32>} : memref<392x16xbf16, #tpu.memory_space<vmem>>, vector<8x16xbf16>,
    %926 = vector.extract_strided_slice %915 {offsets = [0, 5], sizes = [8, 16], strides = [1, 1]} : vector<8x22xbf16> to vector<8x16xbf16>
    %c152_853 = arith.constant 152 : index
    %c0_854 = arith.constant 0 : index
    %927 = vector.load %arg8[%c152_853, %c0_854] : memref<392x16xbf16, #tpu.memory_space<vmem>>, vector<8x16xbf16>
    tpu.vector_store %arg8[%c152_853, %c0_854], %926 {strides = array<i32>} : memref<392x16xbf16, #tpu.memory_space<vmem>>, vector<8x16xbf16>,
    %928 = vector.extract_strided_slice %915 {offsets = [0, 6], sizes = [8, 16], strides = [1, 1]} : vector<8x22xbf16> to vector<8x16xbf16>
    %c160_855 = arith.constant 160 : index
    %c0_856 = arith.constant 0 : index
    %929 = vector.load %arg8[%c160_855, %c0_856] : memref<392x16xbf16, #tpu.memory_space<vmem>>, vector<8x16xbf16>
    tpu.vector_store %arg8[%c160_855, %c0_856], %928 {strides = array<i32>} : memref<392x16xbf16, #tpu.memory_space<vmem>>, vector<8x16xbf16>,
    %c6_i32_857 = arith.constant 6 : i32
    %930 = arith.addi %0, %c6_i32_857 : i32
    %c3_i32_858 = arith.constant 3 : i32
    %931 = arith.addi %930, %c3_i32_858 : i32
    %c0_859 = arith.constant 0 : index
    %932 = arith.index_cast %931 : i32 to index
    %c0_860 = arith.constant 0 : index
    %c0_861 = arith.constant 0 : index
    %933 = vector.load %arg3[%c0_859, %932, %c0_860, %c0_861] : memref<1x22x8x22xbf16, #tpu.memory_space<vmem>>, vector<1x1x8x22xbf16>
    %934 = vector.shape_cast %933 : vector<1x1x8x22xbf16> to vector<8x22xbf16>
    %935 = vector.extract_strided_slice %934 {offsets = [0, 0], sizes = [8, 16], strides = [1, 1]} : vector<8x22xbf16> to vector<8x16xbf16>
    %c168_862 = arith.constant 168 : index
    %c0_863 = arith.constant 0 : index
    %936 = vector.load %arg8[%c168_862, %c0_863] : memref<392x16xbf16, #tpu.memory_space<vmem>>, vector<8x16xbf16>
    tpu.vector_store %arg8[%c168_862, %c0_863], %935 {strides = array<i32>} : memref<392x16xbf16, #tpu.memory_space<vmem>>, vector<8x16xbf16>,
    %937 = vector.extract_strided_slice %934 {offsets = [0, 1], sizes = [8, 16], strides = [1, 1]} : vector<8x22xbf16> to vector<8x16xbf16>
    %c176_864 = arith.constant 176 : index
    %c0_865 = arith.constant 0 : index
    %938 = vector.load %arg8[%c176_864, %c0_865] : memref<392x16xbf16, #tpu.memory_space<vmem>>, vector<8x16xbf16>
    tpu.vector_store %arg8[%c176_864, %c0_865], %937 {strides = array<i32>} : memref<392x16xbf16, #tpu.memory_space<vmem>>, vector<8x16xbf16>,
    %939 = vector.extract_strided_slice %934 {offsets = [0, 2], sizes = [8, 16], strides = [1, 1]} : vector<8x22xbf16> to vector<8x16xbf16>
    %c184_866 = arith.constant 184 : index
    %c0_867 = arith.constant 0 : index
    %940 = vector.load %arg8[%c184_866, %c0_867] : memref<392x16xbf16, #tpu.memory_space<vmem>>, vector<8x16xbf16>
    tpu.vector_store %arg8[%c184_866, %c0_867], %939 {strides = array<i32>} : memref<392x16xbf16, #tpu.memory_space<vmem>>, vector<8x16xbf16>,
    %941 = vector.extract_strided_slice %934 {offsets = [0, 3], sizes = [8, 16], strides = [1, 1]} : vector<8x22xbf16> to vector<8x16xbf16>
    %c192_868 = arith.constant 192 : index
    %c0_869 = arith.constant 0 : index
    %942 = vector.load %arg8[%c192_868, %c0_869] : memref<392x16xbf16, #tpu.memory_space<vmem>>, vector<8x16xbf16>
    tpu.vector_store %arg8[%c192_868, %c0_869], %941 {strides = array<i32>} : memref<392x16xbf16, #tpu.memory_space<vmem>>, vector<8x16xbf16>,
    %943 = vector.extract_strided_slice %934 {offsets = [0, 4], sizes = [8, 16], strides = [1, 1]} : vector<8x22xbf16> to vector<8x16xbf16>
    %c200_870 = arith.constant 200 : index
    %c0_871 = arith.constant 0 : index
    %944 = vector.load %arg8[%c200_870, %c0_871] : memref<392x16xbf16, #tpu.memory_space<vmem>>, vector<8x16xbf16>
    tpu.vector_store %arg8[%c200_870, %c0_871], %943 {strides = array<i32>} : memref<392x16xbf16, #tpu.memory_space<vmem>>, vector<8x16xbf16>,
    %945 = vector.extract_strided_slice %934 {offsets = [0, 5], sizes = [8, 16], strides = [1, 1]} : vector<8x22xbf16> to vector<8x16xbf16>
    %c208_872 = arith.constant 208 : index
    %c0_873 = arith.constant 0 : index
    %946 = vector.load %arg8[%c208_872, %c0_873] : memref<392x16xbf16, #tpu.memory_space<vmem>>, vector<8x16xbf16>
    tpu.vector_store %arg8[%c208_872, %c0_873], %945 {strides = array<i32>} : memref<392x16xbf16, #tpu.memory_space<vmem>>, vector<8x16xbf16>,
    %947 = vector.extract_strided_slice %934 {offsets = [0, 6], sizes = [8, 16], strides = [1, 1]} : vector<8x22xbf16> to vector<8x16xbf16>
    %c216_874 = arith.constant 216 : index
    %c0_875 = arith.constant 0 : index
    %948 = vector.load %arg8[%c216_874, %c0_875] : memref<392x16xbf16, #tpu.memory_space<vmem>>, vector<8x16xbf16>
    tpu.vector_store %arg8[%c216_874, %c0_875], %947 {strides = array<i32>} : memref<392x16xbf16, #tpu.memory_space<vmem>>, vector<8x16xbf16>,
    %c6_i32_876 = arith.constant 6 : i32
    %949 = arith.addi %0, %c6_i32_876 : i32
    %c4_i32_877 = arith.constant 4 : i32
    %950 = arith.addi %949, %c4_i32_877 : i32
    %c0_878 = arith.constant 0 : index
    %951 = arith.index_cast %950 : i32 to index
    %c0_879 = arith.constant 0 : index
    %c0_880 = arith.constant 0 : index
    %952 = vector.load %arg3[%c0_878, %951, %c0_879, %c0_880] : memref<1x22x8x22xbf16, #tpu.memory_space<vmem>>, vector<1x1x8x22xbf16>
    %953 = vector.shape_cast %952 : vector<1x1x8x22xbf16> to vector<8x22xbf16>
    %954 = vector.extract_strided_slice %953 {offsets = [0, 0], sizes = [8, 16], strides = [1, 1]} : vector<8x22xbf16> to vector<8x16xbf16>
    %c224_881 = arith.constant 224 : index
    %c0_882 = arith.constant 0 : index
    %955 = vector.load %arg8[%c224_881, %c0_882] : memref<392x16xbf16, #tpu.memory_space<vmem>>, vector<8x16xbf16>
    tpu.vector_store %arg8[%c224_881, %c0_882], %954 {strides = array<i32>} : memref<392x16xbf16, #tpu.memory_space<vmem>>, vector<8x16xbf16>,
    %956 = vector.extract_strided_slice %953 {offsets = [0, 1], sizes = [8, 16], strides = [1, 1]} : vector<8x22xbf16> to vector<8x16xbf16>
    %c232_883 = arith.constant 232 : index
    %c0_884 = arith.constant 0 : index
    %957 = vector.load %arg8[%c232_883, %c0_884] : memref<392x16xbf16, #tpu.memory_space<vmem>>, vector<8x16xbf16>
    tpu.vector_store %arg8[%c232_883, %c0_884], %956 {strides = array<i32>} : memref<392x16xbf16, #tpu.memory_space<vmem>>, vector<8x16xbf16>,
    %958 = vector.extract_strided_slice %953 {offsets = [0, 2], sizes = [8, 16], strides = [1, 1]} : vector<8x22xbf16> to vector<8x16xbf16>
    %c240_885 = arith.constant 240 : index
    %c0_886 = arith.constant 0 : index
    %959 = vector.load %arg8[%c240_885, %c0_886] : memref<392x16xbf16, #tpu.memory_space<vmem>>, vector<8x16xbf16>
    tpu.vector_store %arg8[%c240_885, %c0_886], %958 {strides = array<i32>} : memref<392x16xbf16, #tpu.memory_space<vmem>>, vector<8x16xbf16>,
    %960 = vector.extract_strided_slice %953 {offsets = [0, 3], sizes = [8, 16], strides = [1, 1]} : vector<8x22xbf16> to vector<8x16xbf16>
    %c248_887 = arith.constant 248 : index
    %c0_888 = arith.constant 0 : index
    %961 = vector.load %arg8[%c248_887, %c0_888] : memref<392x16xbf16, #tpu.memory_space<vmem>>, vector<8x16xbf16>
    tpu.vector_store %arg8[%c248_887, %c0_888], %960 {strides = array<i32>} : memref<392x16xbf16, #tpu.memory_space<vmem>>, vector<8x16xbf16>,
    %962 = vector.extract_strided_slice %953 {offsets = [0, 4], sizes = [8, 16], strides = [1, 1]} : vector<8x22xbf16> to vector<8x16xbf16>
    %c256_889 = arith.constant 256 : index
    %c0_890 = arith.constant 0 : index
    %963 = vector.load %arg8[%c256_889, %c0_890] : memref<392x16xbf16, #tpu.memory_space<vmem>>, vector<8x16xbf16>
    tpu.vector_store %arg8[%c256_889, %c0_890], %962 {strides = array<i32>} : memref<392x16xbf16, #tpu.memory_space<vmem>>, vector<8x16xbf16>,
    %964 = vector.extract_strided_slice %953 {offsets = [0, 5], sizes = [8, 16], strides = [1, 1]} : vector<8x22xbf16> to vector<8x16xbf16>
    %c264_891 = arith.constant 264 : index
    %c0_892 = arith.constant 0 : index
    %965 = vector.load %arg8[%c264_891, %c0_892] : memref<392x16xbf16, #tpu.memory_space<vmem>>, vector<8x16xbf16>
    tpu.vector_store %arg8[%c264_891, %c0_892], %964 {strides = array<i32>} : memref<392x16xbf16, #tpu.memory_space<vmem>>, vector<8x16xbf16>,
    %966 = vector.extract_strided_slice %953 {offsets = [0, 6], sizes = [8, 16], strides = [1, 1]} : vector<8x22xbf16> to vector<8x16xbf16>
    %c272_893 = arith.constant 272 : index
    %c0_894 = arith.constant 0 : index
    %967 = vector.load %arg8[%c272_893, %c0_894] : memref<392x16xbf16, #tpu.memory_space<vmem>>, vector<8x16xbf16>
    tpu.vector_store %arg8[%c272_893, %c0_894], %966 {strides = array<i32>} : memref<392x16xbf16, #tpu.memory_space<vmem>>, vector<8x16xbf16>,
    %c6_i32_895 = arith.constant 6 : i32
    %968 = arith.addi %0, %c6_i32_895 : i32
    %c5_i32_896 = arith.constant 5 : i32
    %969 = arith.addi %968, %c5_i32_896 : i32
    %c0_897 = arith.constant 0 : index
    %970 = arith.index_cast %969 : i32 to index
    %c0_898 = arith.constant 0 : index
    %c0_899 = arith.constant 0 : index
    %971 = vector.load %arg3[%c0_897, %970, %c0_898, %c0_899] : memref<1x22x8x22xbf16, #tpu.memory_space<vmem>>, vector<1x1x8x22xbf16>
    %972 = vector.shape_cast %971 : vector<1x1x8x22xbf16> to vector<8x22xbf16>
    %973 = vector.extract_strided_slice %972 {offsets = [0, 0], sizes = [8, 16], strides = [1, 1]} : vector<8x22xbf16> to vector<8x16xbf16>
    %c280_900 = arith.constant 280 : index
    %c0_901 = arith.constant 0 : index
    %974 = vector.load %arg8[%c280_900, %c0_901] : memref<392x16xbf16, #tpu.memory_space<vmem>>, vector<8x16xbf16>
    tpu.vector_store %arg8[%c280_900, %c0_901], %973 {strides = array<i32>} : memref<392x16xbf16, #tpu.memory_space<vmem>>, vector<8x16xbf16>,
    %975 = vector.extract_strided_slice %972 {offsets = [0, 1], sizes = [8, 16], strides = [1, 1]} : vector<8x22xbf16> to vector<8x16xbf16>
    %c288_902 = arith.constant 288 : index
    %c0_903 = arith.constant 0 : index
    %976 = vector.load %arg8[%c288_902, %c0_903] : memref<392x16xbf16, #tpu.memory_space<vmem>>, vector<8x16xbf16>
    tpu.vector_store %arg8[%c288_902, %c0_903], %975 {strides = array<i32>} : memref<392x16xbf16, #tpu.memory_space<vmem>>, vector<8x16xbf16>,
    %977 = vector.extract_strided_slice %972 {offsets = [0, 2], sizes = [8, 16], strides = [1, 1]} : vector<8x22xbf16> to vector<8x16xbf16>
    %c296_904 = arith.constant 296 : index
    %c0_905 = arith.constant 0 : index
    %978 = vector.load %arg8[%c296_904, %c0_905] : memref<392x16xbf16, #tpu.memory_space<vmem>>, vector<8x16xbf16>
    tpu.vector_store %arg8[%c296_904, %c0_905], %977 {strides = array<i32>} : memref<392x16xbf16, #tpu.memory_space<vmem>>, vector<8x16xbf16>,
    %979 = vector.extract_strided_slice %972 {offsets = [0, 3], sizes = [8, 16], strides = [1, 1]} : vector<8x22xbf16> to vector<8x16xbf16>
    %c304_906 = arith.constant 304 : index
    %c0_907 = arith.constant 0 : index
    %980 = vector.load %arg8[%c304_906, %c0_907] : memref<392x16xbf16, #tpu.memory_space<vmem>>, vector<8x16xbf16>
    tpu.vector_store %arg8[%c304_906, %c0_907], %979 {strides = array<i32>} : memref<392x16xbf16, #tpu.memory_space<vmem>>, vector<8x16xbf16>,
    %981 = vector.extract_strided_slice %972 {offsets = [0, 4], sizes = [8, 16], strides = [1, 1]} : vector<8x22xbf16> to vector<8x16xbf16>
    %c312_908 = arith.constant 312 : index
    %c0_909 = arith.constant 0 : index
    %982 = vector.load %arg8[%c312_908, %c0_909] : memref<392x16xbf16, #tpu.memory_space<vmem>>, vector<8x16xbf16>
    tpu.vector_store %arg8[%c312_908, %c0_909], %981 {strides = array<i32>} : memref<392x16xbf16, #tpu.memory_space<vmem>>, vector<8x16xbf16>,
    %983 = vector.extract_strided_slice %972 {offsets = [0, 5], sizes = [8, 16], strides = [1, 1]} : vector<8x22xbf16> to vector<8x16xbf16>
    %c320_910 = arith.constant 320 : index
    %c0_911 = arith.constant 0 : index
    %984 = vector.load %arg8[%c320_910, %c0_911] : memref<392x16xbf16, #tpu.memory_space<vmem>>, vector<8x16xbf16>
    tpu.vector_store %arg8[%c320_910, %c0_911], %983 {strides = array<i32>} : memref<392x16xbf16, #tpu.memory_space<vmem>>, vector<8x16xbf16>,
    %985 = vector.extract_strided_slice %972 {offsets = [0, 6], sizes = [8, 16], strides = [1, 1]} : vector<8x22xbf16> to vector<8x16xbf16>
    %c328_912 = arith.constant 328 : index
    %c0_913 = arith.constant 0 : index
    %986 = vector.load %arg8[%c328_912, %c0_913] : memref<392x16xbf16, #tpu.memory_space<vmem>>, vector<8x16xbf16>
    tpu.vector_store %arg8[%c328_912, %c0_913], %985 {strides = array<i32>} : memref<392x16xbf16, #tpu.memory_space<vmem>>, vector<8x16xbf16>,
    %c6_i32_914 = arith.constant 6 : i32
    %987 = arith.addi %0, %c6_i32_914 : i32
    %c6_i32_915 = arith.constant 6 : i32
    %988 = arith.addi %987, %c6_i32_915 : i32
    %c0_916 = arith.constant 0 : index
    %989 = arith.index_cast %988 : i32 to index
    %c0_917 = arith.constant 0 : index
    %c0_918 = arith.constant 0 : index
    %990 = vector.load %arg3[%c0_916, %989, %c0_917, %c0_918] : memref<1x22x8x22xbf16, #tpu.memory_space<vmem>>, vector<1x1x8x22xbf16>
    %991 = vector.shape_cast %990 : vector<1x1x8x22xbf16> to vector<8x22xbf16>
    %992 = vector.extract_strided_slice %991 {offsets = [0, 0], sizes = [8, 16], strides = [1, 1]} : vector<8x22xbf16> to vector<8x16xbf16>
    %c336_919 = arith.constant 336 : index
    %c0_920 = arith.constant 0 : index
    %993 = vector.load %arg8[%c336_919, %c0_920] : memref<392x16xbf16, #tpu.memory_space<vmem>>, vector<8x16xbf16>
    tpu.vector_store %arg8[%c336_919, %c0_920], %992 {strides = array<i32>} : memref<392x16xbf16, #tpu.memory_space<vmem>>, vector<8x16xbf16>,
    %994 = vector.extract_strided_slice %991 {offsets = [0, 1], sizes = [8, 16], strides = [1, 1]} : vector<8x22xbf16> to vector<8x16xbf16>
    %c344_921 = arith.constant 344 : index
    %c0_922 = arith.constant 0 : index
    %995 = vector.load %arg8[%c344_921, %c0_922] : memref<392x16xbf16, #tpu.memory_space<vmem>>, vector<8x16xbf16>
    tpu.vector_store %arg8[%c344_921, %c0_922], %994 {strides = array<i32>} : memref<392x16xbf16, #tpu.memory_space<vmem>>, vector<8x16xbf16>,
    %996 = vector.extract_strided_slice %991 {offsets = [0, 2], sizes = [8, 16], strides = [1, 1]} : vector<8x22xbf16> to vector<8x16xbf16>
    %c352_923 = arith.constant 352 : index
    %c0_924 = arith.constant 0 : index
    %997 = vector.load %arg8[%c352_923, %c0_924] : memref<392x16xbf16, #tpu.memory_space<vmem>>, vector<8x16xbf16>
    tpu.vector_store %arg8[%c352_923, %c0_924], %996 {strides = array<i32>} : memref<392x16xbf16, #tpu.memory_space<vmem>>, vector<8x16xbf16>,
    %998 = vector.extract_strided_slice %991 {offsets = [0, 3], sizes = [8, 16], strides = [1, 1]} : vector<8x22xbf16> to vector<8x16xbf16>
    %c360_925 = arith.constant 360 : index
    %c0_926 = arith.constant 0 : index
    %999 = vector.load %arg8[%c360_925, %c0_926] : memref<392x16xbf16, #tpu.memory_space<vmem>>, vector<8x16xbf16>
    tpu.vector_store %arg8[%c360_925, %c0_926], %998 {strides = array<i32>} : memref<392x16xbf16, #tpu.memory_space<vmem>>, vector<8x16xbf16>,
    %1000 = vector.extract_strided_slice %991 {offsets = [0, 4], sizes = [8, 16], strides = [1, 1]} : vector<8x22xbf16> to vector<8x16xbf16>
    %c368_927 = arith.constant 368 : index
    %c0_928 = arith.constant 0 : index
    %1001 = vector.load %arg8[%c368_927, %c0_928] : memref<392x16xbf16, #tpu.memory_space<vmem>>, vector<8x16xbf16>
    tpu.vector_store %arg8[%c368_927, %c0_928], %1000 {strides = array<i32>} : memref<392x16xbf16, #tpu.memory_space<vmem>>, vector<8x16xbf16>,
    %1002 = vector.extract_strided_slice %991 {offsets = [0, 5], sizes = [8, 16], strides = [1, 1]} : vector<8x22xbf16> to vector<8x16xbf16>
    %c376_929 = arith.constant 376 : index
    %c0_930 = arith.constant 0 : index
    %1003 = vector.load %arg8[%c376_929, %c0_930] : memref<392x16xbf16, #tpu.memory_space<vmem>>, vector<8x16xbf16>
    tpu.vector_store %arg8[%c376_929, %c0_930], %1002 {strides = array<i32>} : memref<392x16xbf16, #tpu.memory_space<vmem>>, vector<8x16xbf16>,
    %1004 = vector.extract_strided_slice %991 {offsets = [0, 6], sizes = [8, 16], strides = [1, 1]} : vector<8x22xbf16> to vector<8x16xbf16>
    %c384_931 = arith.constant 384 : index
    %c0_932 = arith.constant 0 : index
    %1005 = vector.load %arg8[%c384_931, %c0_932] : memref<392x16xbf16, #tpu.memory_space<vmem>>, vector<8x16xbf16>
    tpu.vector_store %arg8[%c384_931, %c0_932], %1004 {strides = array<i32>} : memref<392x16xbf16, #tpu.memory_space<vmem>>, vector<8x16xbf16>,
    %c0_933 = arith.constant 0 : index
    %c0_934 = arith.constant 0 : index
    %1006 = vector.load %arg4[%c0_933, %c0_934] : memref<8x392xbf16, #tpu.memory_space<vmem>>, vector<8x392xbf16>
    %c0_935 = arith.constant 0 : index
    %c0_936 = arith.constant 0 : index
    %1007 = vector.load %arg8[%c0_935, %c0_936] : memref<392x16xbf16, #tpu.memory_space<vmem>>, vector<392x16xbf16>
    %cst_937 = arith.constant dense<0.000000e+00> : vector<8x16xf32>
    %1008 = tpu.matmul %1006, %1007, %cst_937 {dimension_numbers = #tpu.dot_dimension_numbers<[1], [0], [0], [1], [0, 0, 1, 1], [], []>} : vector<8x392xbf16>, vector<392x16xbf16>, vector<8x16xf32> -> vector<8x16xf32>
    %1009 = vector.broadcast %1 : vector<8x1xf32> to vector<8x16xf32>
    %1010 = arith.mulf %1008, %1009 : vector<8x16xf32>
    %1011 = vector.broadcast %2 : vector<8x1xf32> to vector<8x16xf32>
    %1012 = arith.addf %1010, %1011 : vector<8x16xf32>
    %cst_938 = arith.constant 0.000000e+00 : f32
    %1013 = vector.broadcast %cst_938 : f32 to vector<8x16xf32>
    %1014 = arith.maximumf %1012, %1013 : vector<8x16xf32>
    %c0_939 = arith.constant 0 : index
    %c0_940 = arith.constant 0 : index
    %c6 = arith.constant 6 : index
    %c0_941 = arith.constant 0 : index
    %1015 = vector.load %arg7[%c0_939, %c0_940, %c6, %c0_941] : memref<1x8x8x16xf32, #tpu.memory_space<vmem>>, vector<1x8x1x16xf32>
    %1016 = vector.shape_cast %1015 : vector<1x8x1x16xf32> to vector<8x16xf32>
    %1017 = vector.shape_cast %1014 : vector<8x16xf32> to vector<1x8x1x16xf32>
    tpu.vector_store %arg7[%c0_939, %c0_940, %c6, %c0_941], %1017 {strides = array<i32>} : memref<1x8x8x16xf32, #tpu.memory_space<vmem>>, vector<1x8x1x16xf32>,
    %c7_i32 = arith.constant 7 : i32
    %1018 = arith.addi %0, %c7_i32 : i32
    %c0_i32_942 = arith.constant 0 : i32
    %1019 = arith.addi %1018, %c0_i32_942 : i32
    %c0_943 = arith.constant 0 : index
    %1020 = arith.index_cast %1019 : i32 to index
    %c0_944 = arith.constant 0 : index
    %c0_945 = arith.constant 0 : index
    %1021 = vector.load %arg3[%c0_943, %1020, %c0_944, %c0_945] : memref<1x22x8x22xbf16, #tpu.memory_space<vmem>>, vector<1x1x8x22xbf16>
    %1022 = vector.shape_cast %1021 : vector<1x1x8x22xbf16> to vector<8x22xbf16>
    %1023 = vector.extract_strided_slice %1022 {offsets = [0, 0], sizes = [8, 16], strides = [1, 1]} : vector<8x22xbf16> to vector<8x16xbf16>
    %c0_946 = arith.constant 0 : index
    %c0_947 = arith.constant 0 : index
    %1024 = vector.load %arg8[%c0_946, %c0_947] : memref<392x16xbf16, #tpu.memory_space<vmem>>, vector<8x16xbf16>
    tpu.vector_store %arg8[%c0_946, %c0_947], %1023 {strides = array<i32>} : memref<392x16xbf16, #tpu.memory_space<vmem>>, vector<8x16xbf16>,
    %1025 = vector.extract_strided_slice %1022 {offsets = [0, 1], sizes = [8, 16], strides = [1, 1]} : vector<8x22xbf16> to vector<8x16xbf16>
    %c8_948 = arith.constant 8 : index
    %c0_949 = arith.constant 0 : index
    %1026 = vector.load %arg8[%c8_948, %c0_949] : memref<392x16xbf16, #tpu.memory_space<vmem>>, vector<8x16xbf16>
    tpu.vector_store %arg8[%c8_948, %c0_949], %1025 {strides = array<i32>} : memref<392x16xbf16, #tpu.memory_space<vmem>>, vector<8x16xbf16>,
    %1027 = vector.extract_strided_slice %1022 {offsets = [0, 2], sizes = [8, 16], strides = [1, 1]} : vector<8x22xbf16> to vector<8x16xbf16>
    %c16_950 = arith.constant 16 : index
    %c0_951 = arith.constant 0 : index
    %1028 = vector.load %arg8[%c16_950, %c0_951] : memref<392x16xbf16, #tpu.memory_space<vmem>>, vector<8x16xbf16>
    tpu.vector_store %arg8[%c16_950, %c0_951], %1027 {strides = array<i32>} : memref<392x16xbf16, #tpu.memory_space<vmem>>, vector<8x16xbf16>,
    %1029 = vector.extract_strided_slice %1022 {offsets = [0, 3], sizes = [8, 16], strides = [1, 1]} : vector<8x22xbf16> to vector<8x16xbf16>
    %c24_952 = arith.constant 24 : index
    %c0_953 = arith.constant 0 : index
    %1030 = vector.load %arg8[%c24_952, %c0_953] : memref<392x16xbf16, #tpu.memory_space<vmem>>, vector<8x16xbf16>
    tpu.vector_store %arg8[%c24_952, %c0_953], %1029 {strides = array<i32>} : memref<392x16xbf16, #tpu.memory_space<vmem>>, vector<8x16xbf16>,
    %1031 = vector.extract_strided_slice %1022 {offsets = [0, 4], sizes = [8, 16], strides = [1, 1]} : vector<8x22xbf16> to vector<8x16xbf16>
    %c32_954 = arith.constant 32 : index
    %c0_955 = arith.constant 0 : index
    %1032 = vector.load %arg8[%c32_954, %c0_955] : memref<392x16xbf16, #tpu.memory_space<vmem>>, vector<8x16xbf16>
    tpu.vector_store %arg8[%c32_954, %c0_955], %1031 {strides = array<i32>} : memref<392x16xbf16, #tpu.memory_space<vmem>>, vector<8x16xbf16>,
    %1033 = vector.extract_strided_slice %1022 {offsets = [0, 5], sizes = [8, 16], strides = [1, 1]} : vector<8x22xbf16> to vector<8x16xbf16>
    %c40_956 = arith.constant 40 : index
    %c0_957 = arith.constant 0 : index
    %1034 = vector.load %arg8[%c40_956, %c0_957] : memref<392x16xbf16, #tpu.memory_space<vmem>>, vector<8x16xbf16>
    tpu.vector_store %arg8[%c40_956, %c0_957], %1033 {strides = array<i32>} : memref<392x16xbf16, #tpu.memory_space<vmem>>, vector<8x16xbf16>,
    %1035 = vector.extract_strided_slice %1022 {offsets = [0, 6], sizes = [8, 16], strides = [1, 1]} : vector<8x22xbf16> to vector<8x16xbf16>
    %c48_958 = arith.constant 48 : index
    %c0_959 = arith.constant 0 : index
    %1036 = vector.load %arg8[%c48_958, %c0_959] : memref<392x16xbf16, #tpu.memory_space<vmem>>, vector<8x16xbf16>
    tpu.vector_store %arg8[%c48_958, %c0_959], %1035 {strides = array<i32>} : memref<392x16xbf16, #tpu.memory_space<vmem>>, vector<8x16xbf16>,
    %c7_i32_960 = arith.constant 7 : i32
    %1037 = arith.addi %0, %c7_i32_960 : i32
    %c1_i32_961 = arith.constant 1 : i32
    %1038 = arith.addi %1037, %c1_i32_961 : i32
    %c0_962 = arith.constant 0 : index
    %1039 = arith.index_cast %1038 : i32 to index
    %c0_963 = arith.constant 0 : index
    %c0_964 = arith.constant 0 : index
    %1040 = vector.load %arg3[%c0_962, %1039, %c0_963, %c0_964] : memref<1x22x8x22xbf16, #tpu.memory_space<vmem>>, vector<1x1x8x22xbf16>
    %1041 = vector.shape_cast %1040 : vector<1x1x8x22xbf16> to vector<8x22xbf16>
    %1042 = vector.extract_strided_slice %1041 {offsets = [0, 0], sizes = [8, 16], strides = [1, 1]} : vector<8x22xbf16> to vector<8x16xbf16>
    %c56_965 = arith.constant 56 : index
    %c0_966 = arith.constant 0 : index
    %1043 = vector.load %arg8[%c56_965, %c0_966] : memref<392x16xbf16, #tpu.memory_space<vmem>>, vector<8x16xbf16>
    tpu.vector_store %arg8[%c56_965, %c0_966], %1042 {strides = array<i32>} : memref<392x16xbf16, #tpu.memory_space<vmem>>, vector<8x16xbf16>,
    %1044 = vector.extract_strided_slice %1041 {offsets = [0, 1], sizes = [8, 16], strides = [1, 1]} : vector<8x22xbf16> to vector<8x16xbf16>
    %c64_967 = arith.constant 64 : index
    %c0_968 = arith.constant 0 : index
    %1045 = vector.load %arg8[%c64_967, %c0_968] : memref<392x16xbf16, #tpu.memory_space<vmem>>, vector<8x16xbf16>
    tpu.vector_store %arg8[%c64_967, %c0_968], %1044 {strides = array<i32>} : memref<392x16xbf16, #tpu.memory_space<vmem>>, vector<8x16xbf16>,
    %1046 = vector.extract_strided_slice %1041 {offsets = [0, 2], sizes = [8, 16], strides = [1, 1]} : vector<8x22xbf16> to vector<8x16xbf16>
    %c72_969 = arith.constant 72 : index
    %c0_970 = arith.constant 0 : index
    %1047 = vector.load %arg8[%c72_969, %c0_970] : memref<392x16xbf16, #tpu.memory_space<vmem>>, vector<8x16xbf16>
    tpu.vector_store %arg8[%c72_969, %c0_970], %1046 {strides = array<i32>} : memref<392x16xbf16, #tpu.memory_space<vmem>>, vector<8x16xbf16>,
    %1048 = vector.extract_strided_slice %1041 {offsets = [0, 3], sizes = [8, 16], strides = [1, 1]} : vector<8x22xbf16> to vector<8x16xbf16>
    %c80_971 = arith.constant 80 : index
    %c0_972 = arith.constant 0 : index
    %1049 = vector.load %arg8[%c80_971, %c0_972] : memref<392x16xbf16, #tpu.memory_space<vmem>>, vector<8x16xbf16>
    tpu.vector_store %arg8[%c80_971, %c0_972], %1048 {strides = array<i32>} : memref<392x16xbf16, #tpu.memory_space<vmem>>, vector<8x16xbf16>,
    %1050 = vector.extract_strided_slice %1041 {offsets = [0, 4], sizes = [8, 16], strides = [1, 1]} : vector<8x22xbf16> to vector<8x16xbf16>
    %c88_973 = arith.constant 88 : index
    %c0_974 = arith.constant 0 : index
    %1051 = vector.load %arg8[%c88_973, %c0_974] : memref<392x16xbf16, #tpu.memory_space<vmem>>, vector<8x16xbf16>
    tpu.vector_store %arg8[%c88_973, %c0_974], %1050 {strides = array<i32>} : memref<392x16xbf16, #tpu.memory_space<vmem>>, vector<8x16xbf16>,
    %1052 = vector.extract_strided_slice %1041 {offsets = [0, 5], sizes = [8, 16], strides = [1, 1]} : vector<8x22xbf16> to vector<8x16xbf16>
    %c96_975 = arith.constant 96 : index
    %c0_976 = arith.constant 0 : index
    %1053 = vector.load %arg8[%c96_975, %c0_976] : memref<392x16xbf16, #tpu.memory_space<vmem>>, vector<8x16xbf16>
    tpu.vector_store %arg8[%c96_975, %c0_976], %1052 {strides = array<i32>} : memref<392x16xbf16, #tpu.memory_space<vmem>>, vector<8x16xbf16>,
    %1054 = vector.extract_strided_slice %1041 {offsets = [0, 6], sizes = [8, 16], strides = [1, 1]} : vector<8x22xbf16> to vector<8x16xbf16>
    %c104_977 = arith.constant 104 : index
    %c0_978 = arith.constant 0 : index
    %1055 = vector.load %arg8[%c104_977, %c0_978] : memref<392x16xbf16, #tpu.memory_space<vmem>>, vector<8x16xbf16>
    tpu.vector_store %arg8[%c104_977, %c0_978], %1054 {strides = array<i32>} : memref<392x16xbf16, #tpu.memory_space<vmem>>, vector<8x16xbf16>,
    %c7_i32_979 = arith.constant 7 : i32
    %1056 = arith.addi %0, %c7_i32_979 : i32
    %c2_i32_980 = arith.constant 2 : i32
    %1057 = arith.addi %1056, %c2_i32_980 : i32
    %c0_981 = arith.constant 0 : index
    %1058 = arith.index_cast %1057 : i32 to index
    %c0_982 = arith.constant 0 : index
    %c0_983 = arith.constant 0 : index
    %1059 = vector.load %arg3[%c0_981, %1058, %c0_982, %c0_983] : memref<1x22x8x22xbf16, #tpu.memory_space<vmem>>, vector<1x1x8x22xbf16>
    %1060 = vector.shape_cast %1059 : vector<1x1x8x22xbf16> to vector<8x22xbf16>
    %1061 = vector.extract_strided_slice %1060 {offsets = [0, 0], sizes = [8, 16], strides = [1, 1]} : vector<8x22xbf16> to vector<8x16xbf16>
    %c112_984 = arith.constant 112 : index
    %c0_985 = arith.constant 0 : index
    %1062 = vector.load %arg8[%c112_984, %c0_985] : memref<392x16xbf16, #tpu.memory_space<vmem>>, vector<8x16xbf16>
    tpu.vector_store %arg8[%c112_984, %c0_985], %1061 {strides = array<i32>} : memref<392x16xbf16, #tpu.memory_space<vmem>>, vector<8x16xbf16>,
    %1063 = vector.extract_strided_slice %1060 {offsets = [0, 1], sizes = [8, 16], strides = [1, 1]} : vector<8x22xbf16> to vector<8x16xbf16>
    %c120_986 = arith.constant 120 : index
    %c0_987 = arith.constant 0 : index
    %1064 = vector.load %arg8[%c120_986, %c0_987] : memref<392x16xbf16, #tpu.memory_space<vmem>>, vector<8x16xbf16>
    tpu.vector_store %arg8[%c120_986, %c0_987], %1063 {strides = array<i32>} : memref<392x16xbf16, #tpu.memory_space<vmem>>, vector<8x16xbf16>,
    %1065 = vector.extract_strided_slice %1060 {offsets = [0, 2], sizes = [8, 16], strides = [1, 1]} : vector<8x22xbf16> to vector<8x16xbf16>
    %c128_988 = arith.constant 128 : index
    %c0_989 = arith.constant 0 : index
    %1066 = vector.load %arg8[%c128_988, %c0_989] : memref<392x16xbf16, #tpu.memory_space<vmem>>, vector<8x16xbf16>
    tpu.vector_store %arg8[%c128_988, %c0_989], %1065 {strides = array<i32>} : memref<392x16xbf16, #tpu.memory_space<vmem>>, vector<8x16xbf16>,
    %1067 = vector.extract_strided_slice %1060 {offsets = [0, 3], sizes = [8, 16], strides = [1, 1]} : vector<8x22xbf16> to vector<8x16xbf16>
    %c136_990 = arith.constant 136 : index
    %c0_991 = arith.constant 0 : index
    %1068 = vector.load %arg8[%c136_990, %c0_991] : memref<392x16xbf16, #tpu.memory_space<vmem>>, vector<8x16xbf16>
    tpu.vector_store %arg8[%c136_990, %c0_991], %1067 {strides = array<i32>} : memref<392x16xbf16, #tpu.memory_space<vmem>>, vector<8x16xbf16>,
    %1069 = vector.extract_strided_slice %1060 {offsets = [0, 4], sizes = [8, 16], strides = [1, 1]} : vector<8x22xbf16> to vector<8x16xbf16>
    %c144_992 = arith.constant 144 : index
    %c0_993 = arith.constant 0 : index
    %1070 = vector.load %arg8[%c144_992, %c0_993] : memref<392x16xbf16, #tpu.memory_space<vmem>>, vector<8x16xbf16>
    tpu.vector_store %arg8[%c144_992, %c0_993], %1069 {strides = array<i32>} : memref<392x16xbf16, #tpu.memory_space<vmem>>, vector<8x16xbf16>,
    %1071 = vector.extract_strided_slice %1060 {offsets = [0, 5], sizes = [8, 16], strides = [1, 1]} : vector<8x22xbf16> to vector<8x16xbf16>
    %c152_994 = arith.constant 152 : index
    %c0_995 = arith.constant 0 : index
    %1072 = vector.load %arg8[%c152_994, %c0_995] : memref<392x16xbf16, #tpu.memory_space<vmem>>, vector<8x16xbf16>
    tpu.vector_store %arg8[%c152_994, %c0_995], %1071 {strides = array<i32>} : memref<392x16xbf16, #tpu.memory_space<vmem>>, vector<8x16xbf16>,
    %1073 = vector.extract_strided_slice %1060 {offsets = [0, 6], sizes = [8, 16], strides = [1, 1]} : vector<8x22xbf16> to vector<8x16xbf16>
    %c160_996 = arith.constant 160 : index
    %c0_997 = arith.constant 0 : index
    %1074 = vector.load %arg8[%c160_996, %c0_997] : memref<392x16xbf16, #tpu.memory_space<vmem>>, vector<8x16xbf16>
    tpu.vector_store %arg8[%c160_996, %c0_997], %1073 {strides = array<i32>} : memref<392x16xbf16, #tpu.memory_space<vmem>>, vector<8x16xbf16>,
    %c7_i32_998 = arith.constant 7 : i32
    %1075 = arith.addi %0, %c7_i32_998 : i32
    %c3_i32_999 = arith.constant 3 : i32
    %1076 = arith.addi %1075, %c3_i32_999 : i32
    %c0_1000 = arith.constant 0 : index
    %1077 = arith.index_cast %1076 : i32 to index
    %c0_1001 = arith.constant 0 : index
    %c0_1002 = arith.constant 0 : index
    %1078 = vector.load %arg3[%c0_1000, %1077, %c0_1001, %c0_1002] : memref<1x22x8x22xbf16, #tpu.memory_space<vmem>>, vector<1x1x8x22xbf16>
    %1079 = vector.shape_cast %1078 : vector<1x1x8x22xbf16> to vector<8x22xbf16>
    %1080 = vector.extract_strided_slice %1079 {offsets = [0, 0], sizes = [8, 16], strides = [1, 1]} : vector<8x22xbf16> to vector<8x16xbf16>
    %c168_1003 = arith.constant 168 : index
    %c0_1004 = arith.constant 0 : index
    %1081 = vector.load %arg8[%c168_1003, %c0_1004] : memref<392x16xbf16, #tpu.memory_space<vmem>>, vector<8x16xbf16>
    tpu.vector_store %arg8[%c168_1003, %c0_1004], %1080 {strides = array<i32>} : memref<392x16xbf16, #tpu.memory_space<vmem>>, vector<8x16xbf16>,
    %1082 = vector.extract_strided_slice %1079 {offsets = [0, 1], sizes = [8, 16], strides = [1, 1]} : vector<8x22xbf16> to vector<8x16xbf16>
    %c176_1005 = arith.constant 176 : index
    %c0_1006 = arith.constant 0 : index
    %1083 = vector.load %arg8[%c176_1005, %c0_1006] : memref<392x16xbf16, #tpu.memory_space<vmem>>, vector<8x16xbf16>
    tpu.vector_store %arg8[%c176_1005, %c0_1006], %1082 {strides = array<i32>} : memref<392x16xbf16, #tpu.memory_space<vmem>>, vector<8x16xbf16>,
    %1084 = vector.extract_strided_slice %1079 {offsets = [0, 2], sizes = [8, 16], strides = [1, 1]} : vector<8x22xbf16> to vector<8x16xbf16>
    %c184_1007 = arith.constant 184 : index
    %c0_1008 = arith.constant 0 : index
    %1085 = vector.load %arg8[%c184_1007, %c0_1008] : memref<392x16xbf16, #tpu.memory_space<vmem>>, vector<8x16xbf16>
    tpu.vector_store %arg8[%c184_1007, %c0_1008], %1084 {strides = array<i32>} : memref<392x16xbf16, #tpu.memory_space<vmem>>, vector<8x16xbf16>,
    %1086 = vector.extract_strided_slice %1079 {offsets = [0, 3], sizes = [8, 16], strides = [1, 1]} : vector<8x22xbf16> to vector<8x16xbf16>
    %c192_1009 = arith.constant 192 : index
    %c0_1010 = arith.constant 0 : index
    %1087 = vector.load %arg8[%c192_1009, %c0_1010] : memref<392x16xbf16, #tpu.memory_space<vmem>>, vector<8x16xbf16>
    tpu.vector_store %arg8[%c192_1009, %c0_1010], %1086 {strides = array<i32>} : memref<392x16xbf16, #tpu.memory_space<vmem>>, vector<8x16xbf16>,
    %1088 = vector.extract_strided_slice %1079 {offsets = [0, 4], sizes = [8, 16], strides = [1, 1]} : vector<8x22xbf16> to vector<8x16xbf16>
    %c200_1011 = arith.constant 200 : index
    %c0_1012 = arith.constant 0 : index
    %1089 = vector.load %arg8[%c200_1011, %c0_1012] : memref<392x16xbf16, #tpu.memory_space<vmem>>, vector<8x16xbf16>
    tpu.vector_store %arg8[%c200_1011, %c0_1012], %1088 {strides = array<i32>} : memref<392x16xbf16, #tpu.memory_space<vmem>>, vector<8x16xbf16>,
    %1090 = vector.extract_strided_slice %1079 {offsets = [0, 5], sizes = [8, 16], strides = [1, 1]} : vector<8x22xbf16> to vector<8x16xbf16>
    %c208_1013 = arith.constant 208 : index
    %c0_1014 = arith.constant 0 : index
    %1091 = vector.load %arg8[%c208_1013, %c0_1014] : memref<392x16xbf16, #tpu.memory_space<vmem>>, vector<8x16xbf16>
    tpu.vector_store %arg8[%c208_1013, %c0_1014], %1090 {strides = array<i32>} : memref<392x16xbf16, #tpu.memory_space<vmem>>, vector<8x16xbf16>,
    %1092 = vector.extract_strided_slice %1079 {offsets = [0, 6], sizes = [8, 16], strides = [1, 1]} : vector<8x22xbf16> to vector<8x16xbf16>
    %c216_1015 = arith.constant 216 : index
    %c0_1016 = arith.constant 0 : index
    %1093 = vector.load %arg8[%c216_1015, %c0_1016] : memref<392x16xbf16, #tpu.memory_space<vmem>>, vector<8x16xbf16>
    tpu.vector_store %arg8[%c216_1015, %c0_1016], %1092 {strides = array<i32>} : memref<392x16xbf16, #tpu.memory_space<vmem>>, vector<8x16xbf16>,
    %c7_i32_1017 = arith.constant 7 : i32
    %1094 = arith.addi %0, %c7_i32_1017 : i32
    %c4_i32_1018 = arith.constant 4 : i32
    %1095 = arith.addi %1094, %c4_i32_1018 : i32
    %c0_1019 = arith.constant 0 : index
    %1096 = arith.index_cast %1095 : i32 to index
    %c0_1020 = arith.constant 0 : index
    %c0_1021 = arith.constant 0 : index
    %1097 = vector.load %arg3[%c0_1019, %1096, %c0_1020, %c0_1021] : memref<1x22x8x22xbf16, #tpu.memory_space<vmem>>, vector<1x1x8x22xbf16>
    %1098 = vector.shape_cast %1097 : vector<1x1x8x22xbf16> to vector<8x22xbf16>
    %1099 = vector.extract_strided_slice %1098 {offsets = [0, 0], sizes = [8, 16], strides = [1, 1]} : vector<8x22xbf16> to vector<8x16xbf16>
    %c224_1022 = arith.constant 224 : index
    %c0_1023 = arith.constant 0 : index
    %1100 = vector.load %arg8[%c224_1022, %c0_1023] : memref<392x16xbf16, #tpu.memory_space<vmem>>, vector<8x16xbf16>
    tpu.vector_store %arg8[%c224_1022, %c0_1023], %1099 {strides = array<i32>} : memref<392x16xbf16, #tpu.memory_space<vmem>>, vector<8x16xbf16>,
    %1101 = vector.extract_strided_slice %1098 {offsets = [0, 1], sizes = [8, 16], strides = [1, 1]} : vector<8x22xbf16> to vector<8x16xbf16>
    %c232_1024 = arith.constant 232 : index
    %c0_1025 = arith.constant 0 : index
    %1102 = vector.load %arg8[%c232_1024, %c0_1025] : memref<392x16xbf16, #tpu.memory_space<vmem>>, vector<8x16xbf16>
    tpu.vector_store %arg8[%c232_1024, %c0_1025], %1101 {strides = array<i32>} : memref<392x16xbf16, #tpu.memory_space<vmem>>, vector<8x16xbf16>,
    %1103 = vector.extract_strided_slice %1098 {offsets = [0, 2], sizes = [8, 16], strides = [1, 1]} : vector<8x22xbf16> to vector<8x16xbf16>
    %c240_1026 = arith.constant 240 : index
    %c0_1027 = arith.constant 0 : index
    %1104 = vector.load %arg8[%c240_1026, %c0_1027] : memref<392x16xbf16, #tpu.memory_space<vmem>>, vector<8x16xbf16>
    tpu.vector_store %arg8[%c240_1026, %c0_1027], %1103 {strides = array<i32>} : memref<392x16xbf16, #tpu.memory_space<vmem>>, vector<8x16xbf16>,
    %1105 = vector.extract_strided_slice %1098 {offsets = [0, 3], sizes = [8, 16], strides = [1, 1]} : vector<8x22xbf16> to vector<8x16xbf16>
    %c248_1028 = arith.constant 248 : index
    %c0_1029 = arith.constant 0 : index
    %1106 = vector.load %arg8[%c248_1028, %c0_1029] : memref<392x16xbf16, #tpu.memory_space<vmem>>, vector<8x16xbf16>
    tpu.vector_store %arg8[%c248_1028, %c0_1029], %1105 {strides = array<i32>} : memref<392x16xbf16, #tpu.memory_space<vmem>>, vector<8x16xbf16>,
    %1107 = vector.extract_strided_slice %1098 {offsets = [0, 4], sizes = [8, 16], strides = [1, 1]} : vector<8x22xbf16> to vector<8x16xbf16>
    %c256_1030 = arith.constant 256 : index
    %c0_1031 = arith.constant 0 : index
    %1108 = vector.load %arg8[%c256_1030, %c0_1031] : memref<392x16xbf16, #tpu.memory_space<vmem>>, vector<8x16xbf16>
    tpu.vector_store %arg8[%c256_1030, %c0_1031], %1107 {strides = array<i32>} : memref<392x16xbf16, #tpu.memory_space<vmem>>, vector<8x16xbf16>,
    %1109 = vector.extract_strided_slice %1098 {offsets = [0, 5], sizes = [8, 16], strides = [1, 1]} : vector<8x22xbf16> to vector<8x16xbf16>
    %c264_1032 = arith.constant 264 : index
    %c0_1033 = arith.constant 0 : index
    %1110 = vector.load %arg8[%c264_1032, %c0_1033] : memref<392x16xbf16, #tpu.memory_space<vmem>>, vector<8x16xbf16>
    tpu.vector_store %arg8[%c264_1032, %c0_1033], %1109 {strides = array<i32>} : memref<392x16xbf16, #tpu.memory_space<vmem>>, vector<8x16xbf16>,
    %1111 = vector.extract_strided_slice %1098 {offsets = [0, 6], sizes = [8, 16], strides = [1, 1]} : vector<8x22xbf16> to vector<8x16xbf16>
    %c272_1034 = arith.constant 272 : index
    %c0_1035 = arith.constant 0 : index
    %1112 = vector.load %arg8[%c272_1034, %c0_1035] : memref<392x16xbf16, #tpu.memory_space<vmem>>, vector<8x16xbf16>
    tpu.vector_store %arg8[%c272_1034, %c0_1035], %1111 {strides = array<i32>} : memref<392x16xbf16, #tpu.memory_space<vmem>>, vector<8x16xbf16>,
    %c7_i32_1036 = arith.constant 7 : i32
    %1113 = arith.addi %0, %c7_i32_1036 : i32
    %c5_i32_1037 = arith.constant 5 : i32
    %1114 = arith.addi %1113, %c5_i32_1037 : i32
    %c0_1038 = arith.constant 0 : index
    %1115 = arith.index_cast %1114 : i32 to index
    %c0_1039 = arith.constant 0 : index
    %c0_1040 = arith.constant 0 : index
    %1116 = vector.load %arg3[%c0_1038, %1115, %c0_1039, %c0_1040] : memref<1x22x8x22xbf16, #tpu.memory_space<vmem>>, vector<1x1x8x22xbf16>
    %1117 = vector.shape_cast %1116 : vector<1x1x8x22xbf16> to vector<8x22xbf16>
    %1118 = vector.extract_strided_slice %1117 {offsets = [0, 0], sizes = [8, 16], strides = [1, 1]} : vector<8x22xbf16> to vector<8x16xbf16>
    %c280_1041 = arith.constant 280 : index
    %c0_1042 = arith.constant 0 : index
    %1119 = vector.load %arg8[%c280_1041, %c0_1042] : memref<392x16xbf16, #tpu.memory_space<vmem>>, vector<8x16xbf16>
    tpu.vector_store %arg8[%c280_1041, %c0_1042], %1118 {strides = array<i32>} : memref<392x16xbf16, #tpu.memory_space<vmem>>, vector<8x16xbf16>,
    %1120 = vector.extract_strided_slice %1117 {offsets = [0, 1], sizes = [8, 16], strides = [1, 1]} : vector<8x22xbf16> to vector<8x16xbf16>
    %c288_1043 = arith.constant 288 : index
    %c0_1044 = arith.constant 0 : index
    %1121 = vector.load %arg8[%c288_1043, %c0_1044] : memref<392x16xbf16, #tpu.memory_space<vmem>>, vector<8x16xbf16>
    tpu.vector_store %arg8[%c288_1043, %c0_1044], %1120 {strides = array<i32>} : memref<392x16xbf16, #tpu.memory_space<vmem>>, vector<8x16xbf16>,
    %1122 = vector.extract_strided_slice %1117 {offsets = [0, 2], sizes = [8, 16], strides = [1, 1]} : vector<8x22xbf16> to vector<8x16xbf16>
    %c296_1045 = arith.constant 296 : index
    %c0_1046 = arith.constant 0 : index
    %1123 = vector.load %arg8[%c296_1045, %c0_1046] : memref<392x16xbf16, #tpu.memory_space<vmem>>, vector<8x16xbf16>
    tpu.vector_store %arg8[%c296_1045, %c0_1046], %1122 {strides = array<i32>} : memref<392x16xbf16, #tpu.memory_space<vmem>>, vector<8x16xbf16>,
    %1124 = vector.extract_strided_slice %1117 {offsets = [0, 3], sizes = [8, 16], strides = [1, 1]} : vector<8x22xbf16> to vector<8x16xbf16>
    %c304_1047 = arith.constant 304 : index
    %c0_1048 = arith.constant 0 : index
    %1125 = vector.load %arg8[%c304_1047, %c0_1048] : memref<392x16xbf16, #tpu.memory_space<vmem>>, vector<8x16xbf16>
    tpu.vector_store %arg8[%c304_1047, %c0_1048], %1124 {strides = array<i32>} : memref<392x16xbf16, #tpu.memory_space<vmem>>, vector<8x16xbf16>,
    %1126 = vector.extract_strided_slice %1117 {offsets = [0, 4], sizes = [8, 16], strides = [1, 1]} : vector<8x22xbf16> to vector<8x16xbf16>
    %c312_1049 = arith.constant 312 : index
    %c0_1050 = arith.constant 0 : index
    %1127 = vector.load %arg8[%c312_1049, %c0_1050] : memref<392x16xbf16, #tpu.memory_space<vmem>>, vector<8x16xbf16>
    tpu.vector_store %arg8[%c312_1049, %c0_1050], %1126 {strides = array<i32>} : memref<392x16xbf16, #tpu.memory_space<vmem>>, vector<8x16xbf16>,
    %1128 = vector.extract_strided_slice %1117 {offsets = [0, 5], sizes = [8, 16], strides = [1, 1]} : vector<8x22xbf16> to vector<8x16xbf16>
    %c320_1051 = arith.constant 320 : index
    %c0_1052 = arith.constant 0 : index
    %1129 = vector.load %arg8[%c320_1051, %c0_1052] : memref<392x16xbf16, #tpu.memory_space<vmem>>, vector<8x16xbf16>
    tpu.vector_store %arg8[%c320_1051, %c0_1052], %1128 {strides = array<i32>} : memref<392x16xbf16, #tpu.memory_space<vmem>>, vector<8x16xbf16>,
    %1130 = vector.extract_strided_slice %1117 {offsets = [0, 6], sizes = [8, 16], strides = [1, 1]} : vector<8x22xbf16> to vector<8x16xbf16>
    %c328_1053 = arith.constant 328 : index
    %c0_1054 = arith.constant 0 : index
    %1131 = vector.load %arg8[%c328_1053, %c0_1054] : memref<392x16xbf16, #tpu.memory_space<vmem>>, vector<8x16xbf16>
    tpu.vector_store %arg8[%c328_1053, %c0_1054], %1130 {strides = array<i32>} : memref<392x16xbf16, #tpu.memory_space<vmem>>, vector<8x16xbf16>,
    %c7_i32_1055 = arith.constant 7 : i32
    %1132 = arith.addi %0, %c7_i32_1055 : i32
    %c6_i32_1056 = arith.constant 6 : i32
    %1133 = arith.addi %1132, %c6_i32_1056 : i32
    %c0_1057 = arith.constant 0 : index
    %1134 = arith.index_cast %1133 : i32 to index
    %c0_1058 = arith.constant 0 : index
    %c0_1059 = arith.constant 0 : index
    %1135 = vector.load %arg3[%c0_1057, %1134, %c0_1058, %c0_1059] : memref<1x22x8x22xbf16, #tpu.memory_space<vmem>>, vector<1x1x8x22xbf16>
    %1136 = vector.shape_cast %1135 : vector<1x1x8x22xbf16> to vector<8x22xbf16>
    %1137 = vector.extract_strided_slice %1136 {offsets = [0, 0], sizes = [8, 16], strides = [1, 1]} : vector<8x22xbf16> to vector<8x16xbf16>
    %c336_1060 = arith.constant 336 : index
    %c0_1061 = arith.constant 0 : index
    %1138 = vector.load %arg8[%c336_1060, %c0_1061] : memref<392x16xbf16, #tpu.memory_space<vmem>>, vector<8x16xbf16>
    tpu.vector_store %arg8[%c336_1060, %c0_1061], %1137 {strides = array<i32>} : memref<392x16xbf16, #tpu.memory_space<vmem>>, vector<8x16xbf16>,
    %1139 = vector.extract_strided_slice %1136 {offsets = [0, 1], sizes = [8, 16], strides = [1, 1]} : vector<8x22xbf16> to vector<8x16xbf16>
    %c344_1062 = arith.constant 344 : index
    %c0_1063 = arith.constant 0 : index
    %1140 = vector.load %arg8[%c344_1062, %c0_1063] : memref<392x16xbf16, #tpu.memory_space<vmem>>, vector<8x16xbf16>
    tpu.vector_store %arg8[%c344_1062, %c0_1063], %1139 {strides = array<i32>} : memref<392x16xbf16, #tpu.memory_space<vmem>>, vector<8x16xbf16>,
    %1141 = vector.extract_strided_slice %1136 {offsets = [0, 2], sizes = [8, 16], strides = [1, 1]} : vector<8x22xbf16> to vector<8x16xbf16>
    %c352_1064 = arith.constant 352 : index
    %c0_1065 = arith.constant 0 : index
    %1142 = vector.load %arg8[%c352_1064, %c0_1065] : memref<392x16xbf16, #tpu.memory_space<vmem>>, vector<8x16xbf16>
    tpu.vector_store %arg8[%c352_1064, %c0_1065], %1141 {strides = array<i32>} : memref<392x16xbf16, #tpu.memory_space<vmem>>, vector<8x16xbf16>,
    %1143 = vector.extract_strided_slice %1136 {offsets = [0, 3], sizes = [8, 16], strides = [1, 1]} : vector<8x22xbf16> to vector<8x16xbf16>
    %c360_1066 = arith.constant 360 : index
    %c0_1067 = arith.constant 0 : index
    %1144 = vector.load %arg8[%c360_1066, %c0_1067] : memref<392x16xbf16, #tpu.memory_space<vmem>>, vector<8x16xbf16>
    tpu.vector_store %arg8[%c360_1066, %c0_1067], %1143 {strides = array<i32>} : memref<392x16xbf16, #tpu.memory_space<vmem>>, vector<8x16xbf16>,
    %1145 = vector.extract_strided_slice %1136 {offsets = [0, 4], sizes = [8, 16], strides = [1, 1]} : vector<8x22xbf16> to vector<8x16xbf16>
    %c368_1068 = arith.constant 368 : index
    %c0_1069 = arith.constant 0 : index
    %1146 = vector.load %arg8[%c368_1068, %c0_1069] : memref<392x16xbf16, #tpu.memory_space<vmem>>, vector<8x16xbf16>
    tpu.vector_store %arg8[%c368_1068, %c0_1069], %1145 {strides = array<i32>} : memref<392x16xbf16, #tpu.memory_space<vmem>>, vector<8x16xbf16>,
    %1147 = vector.extract_strided_slice %1136 {offsets = [0, 5], sizes = [8, 16], strides = [1, 1]} : vector<8x22xbf16> to vector<8x16xbf16>
    %c376_1070 = arith.constant 376 : index
    %c0_1071 = arith.constant 0 : index
    %1148 = vector.load %arg8[%c376_1070, %c0_1071] : memref<392x16xbf16, #tpu.memory_space<vmem>>, vector<8x16xbf16>
    tpu.vector_store %arg8[%c376_1070, %c0_1071], %1147 {strides = array<i32>} : memref<392x16xbf16, #tpu.memory_space<vmem>>, vector<8x16xbf16>,
    %1149 = vector.extract_strided_slice %1136 {offsets = [0, 6], sizes = [8, 16], strides = [1, 1]} : vector<8x22xbf16> to vector<8x16xbf16>
    %c384_1072 = arith.constant 384 : index
    %c0_1073 = arith.constant 0 : index
    %1150 = vector.load %arg8[%c384_1072, %c0_1073] : memref<392x16xbf16, #tpu.memory_space<vmem>>, vector<8x16xbf16>
    tpu.vector_store %arg8[%c384_1072, %c0_1073], %1149 {strides = array<i32>} : memref<392x16xbf16, #tpu.memory_space<vmem>>, vector<8x16xbf16>,
    %c0_1074 = arith.constant 0 : index
    %c0_1075 = arith.constant 0 : index
    %1151 = vector.load %arg4[%c0_1074, %c0_1075] : memref<8x392xbf16, #tpu.memory_space<vmem>>, vector<8x392xbf16>
    %c0_1076 = arith.constant 0 : index
    %c0_1077 = arith.constant 0 : index
    %1152 = vector.load %arg8[%c0_1076, %c0_1077] : memref<392x16xbf16, #tpu.memory_space<vmem>>, vector<392x16xbf16>
    %cst_1078 = arith.constant dense<0.000000e+00> : vector<8x16xf32>
    %1153 = tpu.matmul %1151, %1152, %cst_1078 {dimension_numbers = #tpu.dot_dimension_numbers<[1], [0], [0], [1], [0, 0, 1, 1], [], []>} : vector<8x392xbf16>, vector<392x16xbf16>, vector<8x16xf32> -> vector<8x16xf32>
    %1154 = vector.broadcast %1 : vector<8x1xf32> to vector<8x16xf32>
    %1155 = arith.mulf %1153, %1154 : vector<8x16xf32>
    %1156 = vector.broadcast %2 : vector<8x1xf32> to vector<8x16xf32>
    %1157 = arith.addf %1155, %1156 : vector<8x16xf32>
    %cst_1079 = arith.constant 0.000000e+00 : f32
    %1158 = vector.broadcast %cst_1079 : f32 to vector<8x16xf32>
    %1159 = arith.maximumf %1157, %1158 : vector<8x16xf32>
    %c0_1080 = arith.constant 0 : index
    %c0_1081 = arith.constant 0 : index
    %c7 = arith.constant 7 : index
    %c0_1082 = arith.constant 0 : index
    %1160 = vector.load %arg7[%c0_1080, %c0_1081, %c7, %c0_1082] : memref<1x8x8x16xf32, #tpu.memory_space<vmem>>, vector<1x8x1x16xf32>
    %1161 = vector.shape_cast %1160 : vector<1x8x1x16xf32> to vector<8x16xf32>
    %1162 = vector.shape_cast %1159 : vector<8x16xf32> to vector<1x8x1x16xf32>
    tpu.vector_store %arg7[%c0_1080, %c0_1081, %c7, %c0_1082], %1162 {strides = array<i32>} : memref<1x8x8x16xf32, #tpu.memory_space<vmem>>, vector<1x8x1x16xf32>,
    return
  }
  func.func @transform_0(%arg0: i32, %arg1: i32, %arg2: i32) -> (i32, i32, i32, i32) {
    %c0_i32 = arith.constant 0 : i32
    %c0_i32_0 = arith.constant 0 : i32
    %c0_i32_1 = arith.constant 0 : i32
    %c0_i32_2 = arith.constant 0 : i32
    return %arg0, %c0_i32, %c0_i32_0, %c0_i32_1 : i32, i32, i32, i32
  }
  func.func @transform_1(%arg0: i32, %arg1: i32, %arg2: i32) -> (i32, i32) {
    %c0_i32 = arith.constant 0 : i32
    %c0_i32_0 = arith.constant 0 : i32
    return %arg1, %c0_i32 : i32, i32
  }
  func.func @transform_2(%arg0: i32, %arg1: i32, %arg2: i32) -> (i32, i32) {
    %c0_i32 = arith.constant 0 : i32
    %c0_i32_0 = arith.constant 0 : i32
    return %arg1, %c0_i32 : i32, i32
  }
  func.func @transform_3(%arg0: i32, %arg1: i32, %arg2: i32) -> (i32, i32) {
    %c0_i32 = arith.constant 0 : i32
    %c0_i32_0 = arith.constant 0 : i32
    return %arg1, %c0_i32 : i32, i32
  }
  func.func @transform_4(%arg0: i32, %arg1: i32, %arg2: i32) -> (i32, i32, i32, i32) {
    %c0_i32 = arith.constant 0 : i32
    %c0_i32_0 = arith.constant 0 : i32
    return %arg0, %arg1, %arg2, %c0_i32 : i32, i32, i32, i32
  }
}

</mosaic_0001>

<bundles_post_ra>
// kernel: tpu_custom_call.1
= control target key start
LH: loop header
LB: loop body
LE: loop exit
PB: predicated region body
PF: predicated region fallthrough
CT: control target
= control target key end

     0   :  { %9 = vsyncpa [#allocation4], 0  ;;  %s7428_s0 = inlined_call_operand.hbm [shape: bf16[2,22,8,22], index: 0, kind: input, shape index: {}]   ;;  %s7429_s1 = inlined_call_operand.vmem [shape: bf16[8,392], index: 1, kind: input, shape index: {}]   ;;  %s7430_s2 = inlined_call_operand.vmem [shape: f32[8,1], index: 2, kind: input, shape index: {}]   ;;  %s7431_s3 = inlined_call_operand.vmem [shape: f32[8,1], index: 3, kind: input, shape index: {}]   ;;  %s7432_s4 = inlined_call_operand.hbm [shape: f32[2,8,16,16], index: 4, kind: output, shape index: {}]  }
   0x1   :  { %11 = vsyncpa [#allocation4 + $0x1], 0 }
   0x2   :  { %12 = vsyncpa [#allocation5], 0 }
   0x3   :  { %14 = vsyncpa [#allocation5 + $0x1], 0  ;;  %s5827_s15 = smov 0   ;;  %s5829_s16 = smov 0  }
   0x4   :  { %s5831_s17 = smov 0   ;;  %s5833_s18 = smov 0  }
   0x5   :  { %s5835_s19 = smov 0   ;;  %s5837_s20 = smov 0  }
   0x6   :  { %s5839_s21 = smov 0   ;;  %s5841_s22 = smov 0  }
   0x7   :  { %s5843_s23 = smov 0   ;;  %s5845_s24 = smov 0  }
   0x8   :  { %s5847_s25 = smov 0  }
   0x9 LB: > { %7438 = sst [smem:[#allocation9_spill]] %s5768_s20  ;;  %s4437_s26 = sadd.s32 4294967295, %s5788_s25   ;;  %s5788_s25 = sphi %s5847_s25, %s20_s25   ;;  %s5784_s24 = sphi %s5845_s24, %s7453_s24   ;;  %s5780_s23 = sphi %s5843_s23, %s7452_s23   ;;  %s5776_s22 = sphi %s5841_s22, %s7451_s22   ;;  %s5772_s21 = sphi %s5839_s21, %s7450_s21   ;;  %s5768_s20 = sphi %s5837_s20, %s7449_s20   ;;  %s5764_s19 = sphi %s5835_s19, %s7458_s19   ;;  %s5760_s18 = sphi %s5833_s18, %s7457_s18   ;;  %s5756_s17 = sphi %s5831_s17, %s7456_s17   ;;  %s5752_s16 = sphi %s5829_s16, %s7455_s16   ;;  %s5748_s15 = sphi %s5827_s15, %s7454_s15  }
   0xa   : > { %7439 = sst [smem:[#allocation10_spill]] %s5780_s23  ;;  %s4438_s27 = sadd.s32 4294967294, %s5788_s25  }
   0xb   : > { %7440 = sst [smem:[#allocation11_spill]] %s5784_s24  ;;  %s32_s28 = sadd.s32 1, %s5780_s23 }
   0xc   : > { %s39_s29 = sadd.s32 1, %s5784_s24  ;;  %p33_p0 = scmp.ge.s32.totalorder %s32_s28, 2 }
   0xd   : > { %s46_s30 = sadd.s32 1, %s5768_s20  ;;  %p53_p1 = scmp.ne.s32.totalorder %s5768_s20, %s5764_s19 }
   0xe   : > { %p54_p2 = scmp.eq.s32.totalorder %s5788_s25, 0  ;;  %s7460_s28 = smov (%p33_p0, %s32_s28), 0 }
   0xf   : > { %7441 = sst [smem:[#allocation12_spill]] %s7460_s28  ;;  %s7462_s29 = smov (!%p33_p0, %s39_s29), %s5784_s24 }
  0x10   : > { %p5891_p3 = por %p54_p2, %p53_p1  ;;  %p59_p4 = scmp.ne.s32.totalorder %s5764_s19, %s5760_s18 }
  0x11   : > { %p41_p5 = scmp.ge.s32.totalorder %s7462_s29, 2  ;;  %p60_p6 = scmp.eq.s32.totalorder %s4437_s26, 0 }
  0x12   : > { %s150_s6 = ssub.s32 %s5780_s23, %s7460_s28  ;;  %s154_s7 = sadd.s32 1, %s5756_s17 }
  0x13   : > { %s7464_s29 = smov (%p41_p5, %s7462_s29), 0  ;;  %p5901_p7 = por %p60_p6, %p59_p4 }
  0x14   : > { %7443 = sst [smem:[#allocation13_spill]] %s7464_s29  ;;  %p164_p8 = scmp.ne.s32.totalorder %s5756_s17, %s5752_s16 }
  0x15   : > { %s43_s9 = ssub.s32 %s5784_s24, %s7464_s29  ;;  %p165_p9 = scmp.eq.s32.totalorder %s4437_s26, 3 }
  0x16   : > { %p44_p10 = scmp.eq.s32.totalorder %s43_s9, 0  ;;  %s151_s10 = sor.u32 %s150_s6, %s43_s9 }
  0x17   : > { %p152_p11 = scmp.eq.s32.totalorder %s151_s10, 0  ;;  %p5909_p12 = por %p165_p9, %p164_p8 }
  0x18   : > { %s5914_s12 = scalar_select %p44_p10, %s5768_s20, %s46_s30  }
  0x19   : > { %s5917_s13 = scalar_select %p152_p11, %s5756_s17, %s154_s7  }
  0x1a   : > { %7446 = sst [smem:[#allocation14_spill]] %s5914_s12  ;;  %p170_p13 = scmp.ne.s32.totalorder %s5752_s16, %s5748_s15 }
  0x1b   : > { %p171_p0 = scmp.eq.s32.totalorder %s4438_s27, 3  ;;  %p5532_p1 = scmp.lt.s32.totalorder %s5788_s25, 4 }
  0x1c   : > { %s213_s18 = sand.u32 1, %s5768_s20   ;;  %s5518_s6 = smul.u32 88, %s5784_s24 }
  0x1d   : > { %p5922_p2 = por %p171_p0, %p170_p13  ;;  %s5517_s26 = smul.u32 88, %s213_s18 }
  0x1e   : > { %p5525_p4 = pnand %p5532_p1, %p5891_p3  ;;  %s222_s30 = scalar_lea.hbm %s7428_s0, %s5518_s6 }
  0x1f   : > { %s217_s29 = scalar_lea.vmem [#allocation3], %s5517_s26  ;;  %s223_s28 = sshll.u32 %s222_s30, 4  ;;  %s224_s28 = int_to_ptr.hbm [resolvable:$true] %s223_s28 }
  0x20   : > { %s225_s7 = sshll.u32 %s217_s29, 4  ;;  %p4445_p5 = scmp.ge.s32.totalorder %s5788_s25, 1  ;;  %s226_s7 = int_to_ptr.vmem [resolvable:$true] %s225_s7 }
  0x21   : > { %s214_s27 = scalar_lea.sflag [#allocation4], %s213_s18  ;;  %s5790_s23 = smov 64  }
  0x22   : > { %s5791_s12 = smov 4   ;;  %p233_p6 = scmp.lt.s32.totalorder %s5788_s25, 5 }
  0x23   : > { %5527 = dma.hbm_to_vmem [thread:$0]  (!%p5525_p4), %s224_s28, 1408, %s226_s7, %s214_s27, %s5790_s23, %s5790_s23, %s5791_s12  }
  0x24   : > { %p234_p8 = pnand %p4445_p5, %p233_p6 }
  0x25   : > { %s239_s5 = sand.u32 (!%p234_p8), 1, %s5764_s19  }
  0x26   : > { %237 = sbr.rel (%p234_p8) target bundleno = 1221 (0x4c5), region = 36  ;;  %s240_s20 = scalar_lea.sflag (!%p234_p8), [#allocation4], %s239_s5 }
  0x27   : > { %s5519_s24 = smul.u32 (!%p234_p8), 88, %s239_s5 }
  0x29   : > { %s243_s9 = scalar_lea.vmem (!%p234_p8), [#allocation3], %s5519_s24 }
  0x2b   : > { %5739 = dma.done.wait (%p5901_p7), %s240_s20, 1408  }
  0x2c   : > { %5741 = vsyncadd (%p5901_p7), %s240_s20, 4294965888  ;;  %s5311_s29 = sshll.u32 %s5772_s21, 5  ;;  %vm303_vm0 = vcmask 125952   ;;  %s5792_s23 = smov 123   ;;  %v5798_v8 = vmov 0   ;;  %v299_v14 = vld [vmem:[%s7431_s3] sm:$0xff] }
  0x2d   : > { %s5941_s18 = scalar_lea.vmem %s243_s9, %s5311_s29 [#allocation3]  ;;  %s5793_s24 = smov 125   ;;  %5635 = vset.pattern.permute.xlu1 %v5798_v8  ;;  %5634 = vset.pattern.permute.xlu0 %v5798_v8  ;;  %v298_v15 = vld [vmem:[%s7430_s2] sm:$0xff]  ;;  %vm725_vm1 = vcmask 1043456   ;;  %vm721_vm2 = vcmask 64512   ;;  %vm809_vm3 = vcmask 122880  }
  0x2e   : > { %v302_v0 = vld [vmem:[%s5941_s18] sm:$0xf]  ;;  %v4451_v1 = vld [vmem:[%s5941_s18 + $0x4] sm:$0xf]  ;;  %s5794_s20 = smov 127   ;;  %s5795_s28 = smov 122  }
  0x2f   : > { %322 = vrot.lane.b32.xlu2 %v302_v0, %s5792_s23  ;;  %304 = vst.msk [vmem:[#allocation2] sm:$0xf] %vm303_vm0, %v302_v0  ;;  %314 = vrot.lane.b32.xlu1 %v302_v0, %s5793_s24  ;;  %v4454_v2 = vld [vmem:[%s5941_s18 + $0x8] sm:$0xf]  ;;  %s5796_s8 = smov 124   ;;  %s5797_s12 = smov 126  }
  0x30   : > { %306 = vrot.lane.b32.xlu0 %v302_v0, %s5794_s20  ;;  %334 = vst.msk [vmem:[#allocation2 + $0x1c] sm:$0xf] %vm303_vm0, %v4451_v1  ;;  %v4457_v3 = vld [vmem:[%s5941_s18 + $0xc] sm:$0xf]  ;;  %v4460_v4 = vld [vmem:[%s5941_s18 + $0x10] sm:$0xf] }
  0x31   : > { %364 = vst.msk [vmem:[#allocation2 + $0x38] sm:$0xf] %vm303_vm0, %v4454_v2  ;;  %v4463_v5 = vld [vmem:[%s5941_s18 + $0x14] sm:$0xf]  ;;  %v4466_v6 = vld [vmem:[%s5941_s18 + $0x18] sm:$0xf] }
  0x32   : > { %394 = vst.msk [vmem:[#allocation2 + $0x54] sm:$0xf] %vm303_vm0, %v4457_v3  ;;  %v4564_v7 = vld [vmem:[%s5941_s18 + $0x4] sm:$0xf]  ;;  %v4565_v12 = vld [vmem:[%s5941_s18 + $0x8] sm:$0xf] }
  0x33   : > { %424 = vst.msk [vmem:[#allocation2 + $0x70] sm:$0xf] %vm303_vm0, %v4460_v4  ;;  %v4566_v16 = vld [vmem:[%s5941_s18 + $0xc] sm:$0xf]  ;;  %v4567_v29 = vld [vmem:[%s5941_s18 + $0x10] sm:$0xf] }
  0x34   : > { %454 = vst.msk [vmem:[#allocation2 + $0x8c] sm:$0xf] %vm303_vm0, %v4463_v5  ;;  %v6045_v31 = vld [vmem:[%s5941_s18 + $0x14] sm:$0xf]  ;;  %v6072_v48 = vld [vmem:[%s5941_s18 + $0x18] sm:$0xf] }
  0x35   : > { %484 = vst.msk [vmem:[#allocation2 + $0xa8] sm:$0xf] %vm303_vm0, %v4466_v6  ;;  %v6082_v51 = vld [vmem:[%s5941_s18 + $0x1c] sm:$0xf]  ;;  %v6105_v62 = vld [vmem:[%s5941_s18 + $0x8] sm:$0xf] }
  0x36   : > { %819 = vst.msk [vmem:[#allocation2] sm:$0xf] %vm303_vm0, %v4564_v7  ;;  %s279_s29 = sand.u32 1, %s5752_s16  }
  0x37   : > { %326 = vrot.lane.b32.xlu2 %v302_v0, %s5795_s28  ;;  %318 = vrot.lane.b32.xlu1 %v302_v0, %s5796_s8  ;;  %873 = vst.msk [vmem:[#allocation2 + $0x38] sm:$0xf] %vm303_vm0, %v4566_v16  ;;  %s4446_s26 = sshll.u32 %s279_s29, 6  ;;  %s4228_s5 = scalar_lea.sflag [#allocation5], %s279_s29 }
  0x38   : > { %310 = vrot.lane.b32.xlu0 %v302_v0, %s5797_s12  ;;  %927 = vst.msk [vmem:[#allocation2 + $0x70] sm:$0xf] %vm303_vm0, %v6045_v31  ;;  %s6413_s6 = scalar_lea.vmem [#allocation6], %s4446_s26 }
  0x39   : > { %984 = vst.msk [vmem:[#allocation2 + $0xa8] sm:$0xf] %vm303_vm0, %v6082_v51 }
  0x3f   : > { %344 = vrot.lane.b32.xlu2 %v4451_v1, %s5793_s24  ;;  %340 = vrot.lane.b32.xlu1 %v4451_v1, %s5797_s12 }
  0x40   : > { %336 = vrot.lane.b32.xlu0 %v4451_v1, %s5794_s20 }
  0x47   : > { %356 = vrot.lane.b32.xlu2 %v4451_v1, %s5795_s28  ;;  %352 = vrot.lane.b32.xlu1 %v4451_v1, %s5792_s23 }
  0x48   : > { %348 = vrot.lane.b32.xlu0 %v4451_v1, %s5796_s8 }
  0x4f   : > { %374 = vrot.lane.b32.xlu2 %v4454_v2, %s5793_s24  ;;  %370 = vrot.lane.b32.xlu1 %v4454_v2, %s5797_s12 }
  0x50   : > { %366 = vrot.lane.b32.xlu0 %v4454_v2, %s5794_s20 }
  0x57   : > { %386 = vrot.lane.b32.xlu2 %v4454_v2, %s5795_s28  ;;  %382 = vrot.lane.b32.xlu1 %v4454_v2, %s5792_s23 }
  0x58   : > { %378 = vrot.lane.b32.xlu0 %v4454_v2, %s5796_s8 }
  0x5f   : > { %404 = vrot.lane.b32.xlu2 %v4457_v3, %s5793_s24  ;;  %400 = vrot.lane.b32.xlu1 %v4457_v3, %s5797_s12 }
  0x60   : > { %396 = vrot.lane.b32.xlu0 %v4457_v3, %s5794_s20 }
  0x67   : > { %416 = vrot.lane.b32.xlu2 %v4457_v3, %s5795_s28  ;;  %412 = vrot.lane.b32.xlu1 %v4457_v3, %s5792_s23 }
  0x68   : > { %408 = vrot.lane.b32.xlu0 %v4457_v3, %s5796_s8 }
  0x6f   : > { %434 = vrot.lane.b32.xlu2 %v4460_v4, %s5793_s24  ;;  %430 = vrot.lane.b32.xlu1 %v4460_v4, %s5797_s12 }
  0x70   : > { %426 = vrot.lane.b32.xlu0 %v4460_v4, %s5794_s20 }
  0x77   : > { %446 = vrot.lane.b32.xlu2 %v4460_v4, %s5795_s28  ;;  %442 = vrot.lane.b32.xlu1 %v4460_v4, %s5792_s23 }
  0x78   : > { %438 = vrot.lane.b32.xlu0 %v4460_v4, %s5796_s8 }
  0x7f   : > { %464 = vrot.lane.b32.xlu2 %v4463_v5, %s5793_s24  ;;  %460 = vrot.lane.b32.xlu1 %v4463_v5, %s5797_s12 }
  0x80   : > { %456 = vrot.lane.b32.xlu0 %v4463_v5, %s5794_s20 }
  0x87   : > { %476 = vrot.lane.b32.xlu2 %v4463_v5, %s5795_s28  ;;  %472 = vrot.lane.b32.xlu1 %v4463_v5, %s5792_s23 }
  0x88   : > { %468 = vrot.lane.b32.xlu0 %v4463_v5, %s5796_s8 }
  0x89   : > { %v323_v9 = vpop.permute.xlu2 %322 }
  0x8a   : > { %325 = vst.msk [vmem:[#allocation2 + $0x14] sm:$0xf] %vm303_vm0, %v323_v9 }
  0x8f   : > { %494 = vrot.lane.b32.xlu2 %v4466_v6, %s5793_s24  ;;  %490 = vrot.lane.b32.xlu1 %v4466_v6, %s5797_s12 }
  0x90   : > { %486 = vrot.lane.b32.xlu0 %v4466_v6, %s5794_s20 }
  0x91   : > { %v327_v10 = vpop.permute.xlu2 %326 }
  0x92   : > { %329 = vst.msk [vmem:[#allocation2 + $0x18] sm:$0xf] %vm303_vm0, %v327_v10 }
  0x97   : > { %506 = vrot.lane.b32.xlu2 %v4466_v6, %s5795_s28  ;;  %502 = vrot.lane.b32.xlu1 %v4466_v6, %s5792_s23 }
  0x98   : > { %498 = vrot.lane.b32.xlu0 %v4466_v6, %s5796_s8 }
  0x99   : > { %v345_v11 = vpop.permute.xlu2 %344  ;;  %v6005_v13 = vld [vmem:[#allocation2 + $0x18] sm:$0xff] }
  0x9a   : > { %347 = vst.msk [vmem:[#allocation2 + $0x28] sm:$0xf] %vm303_vm0, %v345_v11 }
  0x9b   : > { %846 = vst.msk [vmem:[#allocation2 + $0x1c] sm:$0xf] %vm303_vm0, %v4565_v12 }
  0x9f   : > { %821 = vrot.lane.b32.xlu2 %v4564_v7, %s5794_s20  ;;  %789 = vperm.xlu1 %5635, %v299_v14  }
  0xa0   : > { %783 = vperm.xlu0 %5634, %v298_v15  }
  0xa1   : > { %v357_v17 = vpop.permute.xlu2 %356  ;;  %v315_v18 = vpop.permute.xlu1 %314 }
  0xa2   : > { %359 = vst.msk [vmem:[#allocation2 + $0x34] sm:$0xf] %vm303_vm0, %v357_v17  ;;  %v307_v19 = vpop.permute.xlu0 %306 }
  0xa3   : > { %317 = vst.msk [vmem:[#allocation2 + $0xc] sm:$0xf] %vm303_vm0, %v315_v18 }
  0xa4   : > { %309 = vst.msk [vmem:[#allocation2 + $0x4] sm:$0xf] %vm303_vm0, %v307_v19 }
  0xa7   : > { %829 = vrot.lane.b32.xlu2 %v4564_v7, %s5793_s24  ;;  %825 = vrot.lane.b32.xlu1 %v4564_v7, %s5797_s12 }
  0xa8   : > { %833 = vrot.lane.b32.xlu0 %v4564_v7, %s5796_s8 }
  0xa9   : > { %v375_v20 = vpop.permute.xlu2 %374  ;;  %v319_v21 = vpop.permute.xlu1 %318 }
  0xaa   : > { %377 = vst.msk [vmem:[#allocation2 + $0x44] sm:$0xf] %vm303_vm0, %v375_v20  ;;  %v311_v22 = vpop.permute.xlu0 %310  ;;  %v6148_v20 = vld [vmem:[%s5941_s18 + $0x10] sm:$0xf] }
  0xab   : > { %321 = vst.msk [vmem:[#allocation2 + $0x10] sm:$0xf] %vm303_vm0, %v319_v21  ;;  %v5318_v56 = vld [vmem:[#allocation2] sm:$0xff] }
  0xac   : > { %313 = vst.msk [vmem:[#allocation2 + $0x8] sm:$0xf] %vm303_vm0, %v311_v22 }
  0xad   : > { %1306 = vst.msk [vmem:[#allocation2] sm:$0xf] %vm303_vm0, %v6105_v62 }
  0xaf   : > { %841 = vrot.lane.b32.xlu2 %v4564_v7, %s5795_s28  ;;  %837 = vrot.lane.b32.xlu1 %v4564_v7, %s5792_s23 }
  0xb0   : > { %848 = vrot.lane.b32.xlu0 %v4565_v12, %s5794_s20 }
  0xb1   : > { %v387_v23 = vpop.permute.xlu2 %386  ;;  %v341_v24 = vpop.permute.xlu1 %340 }
  0xb2   : > { %389 = vst.msk [vmem:[#allocation2 + $0x50] sm:$0xf] %vm303_vm0, %v387_v23  ;;  %v337_v25 = vpop.permute.xlu0 %336  ;;  %v5320_v50 = vld [vmem:[#allocation2 + $0x10] sm:$0xff]  ;;  %v6159_v23 = vld [vmem:[%s7429_s1 + $0x8] sm:$0xff] }
  0xb3   : > { %343 = vst.msk [vmem:[#allocation2 + $0x24] sm:$0xf] %vm303_vm0, %v341_v24  ;;  %v5319_v55 = vld [vmem:[#allocation2 + $0x8] sm:$0xff] }
  0xb4   : > { %339 = vst.msk [vmem:[#allocation2 + $0x20] sm:$0xf] %vm303_vm0, %v337_v25  ;;  %v4671_v25 = vld [vmem:[%s5941_s18 + $0xc] sm:$0xf] }
  0xb7   : > { %856 = vrot.lane.b32.xlu2 %v4565_v12, %s5793_s24  ;;  %852 = vrot.lane.b32.xlu1 %v4565_v12, %s5797_s12 }
  0xb8   : > { %860 = vrot.lane.b32.xlu0 %v4565_v12, %s5796_s8 }
  0xb9   : > { %v405_v26 = vpop.permute.xlu2 %404  ;;  %v353_v27 = vpop.permute.xlu1 %352  ;;  %v6039_v30 = vld [vmem:[#allocation2 + $0x50] sm:$0xff] }
  0xba   : > { %407 = vst.msk [vmem:[#allocation2 + $0x60] sm:$0xf] %vm303_vm0, %v405_v26  ;;  %v349_v28 = vpop.permute.xlu0 %348  ;;  %v566_v26 = vunpack.c.h.b16 %v6159_v23 }
  0xbb   : > { %355 = vst.msk [vmem:[#allocation2 + $0x30] sm:$0xf] %vm303_vm0, %v353_v27  ;;  %v5322_v44 = vld [vmem:[#allocation2 + $0x20] sm:$0xff] }
  0xbc   : > { %351 = vst.msk [vmem:[#allocation2 + $0x2c] sm:$0xf] %vm303_vm0, %v349_v28 }
  0xbd   : > { %900 = vst.msk [vmem:[#allocation2 + $0x54] sm:$0xf] %vm303_vm0, %v4567_v29 }
  0xbf   : > { %868 = vrot.lane.b32.xlu2 %v4565_v12, %s5795_s28  ;;  %864 = vrot.lane.b32.xlu1 %v4565_v12, %s5792_s23 }
  0xc0   : > { %875 = vrot.lane.b32.xlu0 %v4566_v16, %s5794_s20 }
  0xc1   : > { %v417_v32 = vpop.permute.xlu2 %416  ;;  %v371_v33 = vpop.permute.xlu1 %370 }
  0xc2   : > { %419 = vst.msk [vmem:[#allocation2 + $0x6c] sm:$0xf] %vm303_vm0, %v417_v32  ;;  %v367_v34 = vpop.permute.xlu0 %366  ;;  %v5324_v39 = vld [vmem:[#allocation2 + $0x30] sm:$0xff] }
  0xc3   : > { %373 = vst.msk [vmem:[#allocation2 + $0x40] sm:$0xf] %vm303_vm0, %v371_v33  ;;  %v5323_v43 = vld [vmem:[#allocation2 + $0x28] sm:$0xff] }
  0xc4   : > { %369 = vst.msk [vmem:[#allocation2 + $0x3c] sm:$0xf] %vm303_vm0, %v367_v34 }
  0xc7   : > { %883 = vrot.lane.b32.xlu2 %v4566_v16, %s5793_s24  ;;  %879 = vrot.lane.b32.xlu1 %v4566_v16, %s5797_s12 }
  0xc8   : > { %887 = vrot.lane.b32.xlu0 %v4566_v16, %s5796_s8 }
  0xc9   : > { %v435_v35 = vpop.permute.xlu2 %434  ;;  %v383_v36 = vpop.permute.xlu1 %382 }
  0xca   : > { %437 = vst.msk [vmem:[#allocation2 + $0x7c] sm:$0xf] %vm303_vm0, %v435_v35  ;;  %v379_v37 = vpop.permute.xlu0 %378 }
  0xcb   : > { %385 = vst.msk [vmem:[#allocation2 + $0x4c] sm:$0xf] %vm303_vm0, %v383_v36  ;;  %v5325_v38 = vld [vmem:[#allocation2 + $0x38] sm:$0xff] }
  0xcc   : > { %381 = vst.msk [vmem:[#allocation2 + $0x48] sm:$0xf] %vm303_vm0, %v379_v37  ;;  %729 = vmatpush.bf16.msra.mxu0 %v5325_v38 }
  0xcd   : > { %1360 = vst.msk [vmem:[#allocation2 + $0x38] sm:$0xf] %vm303_vm0, %v6148_v20 }
  0xcf   : > { %895 = vrot.lane.b32.xlu2 %v4566_v16, %s5795_s28  ;;  %891 = vrot.lane.b32.xlu1 %v4566_v16, %s5792_s23  ;;  %v5326_v16 = vld [vmem:[#allocation2 + $0x40] sm:$0xff] }
  0xd0   : > { %902 = vrot.lane.b32.xlu0 %v4567_v29, %s5794_s20  ;;  %730 = vmatpush.bf16.msra.mxu0 %v5324_v39 }
  0xd1   : > { %v447_v40 = vpop.permute.xlu2 %446  ;;  %v401_v41 = vpop.permute.xlu1 %400 }
  0xd2   : > { %449 = vst.msk [vmem:[#allocation2 + $0x88] sm:$0xf] %vm303_vm0, %v447_v40  ;;  %v397_v42 = vpop.permute.xlu0 %396 }
  0xd3   : > { %403 = vst.msk [vmem:[#allocation2 + $0x5c] sm:$0xf] %vm303_vm0, %v401_v41  ;;  %v5327_v15 = vld [vmem:[#allocation2 + $0x48] sm:$0xff] }
  0xd4   : > { %399 = vst.msk [vmem:[#allocation2 + $0x58] sm:$0xf] %vm303_vm0, %v397_v42  ;;  %731 = vmatpush.bf16.msra.mxu0 %v5323_v43 }
  0xd7   : > { %910 = vrot.lane.b32.xlu2 %v4567_v29, %s5793_s24  ;;  %906 = vrot.lane.b32.xlu1 %v4567_v29, %s5797_s12 }
  0xd8   : > { %914 = vrot.lane.b32.xlu0 %v4567_v29, %s5796_s8  ;;  %732 = vmatpush.bf16.msra.mxu0 %v5322_v44 }
  0xd9   : > { %v465_v45 = vpop.permute.xlu2 %464  ;;  %v413_v46 = vpop.permute.xlu1 %412  ;;  %v6074_v49 = vld [vmem:[#allocation2 + $0x88] sm:$0xff] }
  0xda   : > { %467 = vst.msk [vmem:[#allocation2 + $0x98] sm:$0xf] %vm303_vm0, %v465_v45  ;;  %v409_v47 = vpop.permute.xlu0 %408 }
  0xdb   : > { %415 = vst.msk [vmem:[#allocation2 + $0x68] sm:$0xf] %vm303_vm0, %v413_v46  ;;  %v5329_v8 = vld [vmem:[#allocation2 + $0x58] sm:$0xff] }
  0xdc   : > { %411 = vst.msk [vmem:[#allocation2 + $0x64] sm:$0xf] %vm303_vm0, %v409_v47  ;;  %733 = vmatpush.bf16.msra.mxu0 %v6005_v13 }
  0xdd   : > { %954 = vst.msk [vmem:[#allocation2 + $0x8c] sm:$0xf] %vm303_vm0, %v6072_v48 }
  0xdf   : > { %922 = vrot.lane.b32.xlu2 %v4567_v29, %s5795_s28  ;;  %918 = vrot.lane.b32.xlu1 %v4567_v29, %s5792_s23  ;;  %v510_v29 = vld [vmem:[%s7429_s1] sm:$0xff] }
  0xe0   : > { %929 = vrot.lane.b32.xlu0 %v6045_v31, %s5794_s20  ;;  %734 = vmatpush.bf16.msra.mxu0 %v5320_v50  ;;  %v564_v32 = vunpack.c.h.b16 %v510_v29  ;;  %v565_v50 = vunpack.c.l.b16 %v6159_v23 }
  0xe1   : > { %v477_v52 = vpop.permute.xlu2 %476  ;;  %v431_v53 = vpop.permute.xlu1 %430 }
  0xe2   : > { %479 = vst.msk [vmem:[#allocation2 + $0xa4] sm:$0xf] %vm303_vm0, %v477_v52  ;;  %v427_v54 = vpop.permute.xlu0 %426  ;;  %v5331_v2 = vld [vmem:[#allocation2 + $0x68] sm:$0xff]  ;;  %v6178_v34 = vpack.c.b16 %v564_v32, %v564_v32  ;;  %v6210_v52 = vld [vmem:[%s5941_s18 + $0x18] sm:$0xf] }
  0xe3   : > { %433 = vst.msk [vmem:[#allocation2 + $0x78] sm:$0xf] %vm303_vm0, %v431_v53  ;;  %v5330_v3 = vld [vmem:[#allocation2 + $0x60] sm:$0xff]  ;;  %v6214_v53 = vpack.c.b16 %v565_v50, %v565_v50 }
  0xe4   : > { %429 = vst.msk [vmem:[#allocation2 + $0x74] sm:$0xf] %vm303_vm0, %v427_v54  ;;  %735 = vmatpush.bf16.msra.mxu0 %v5319_v55 }
  0xe7   : > { %937 = vrot.lane.b32.xlu2 %v6045_v31, %s5793_s24  ;;  %933 = vrot.lane.b32.xlu1 %v6045_v31, %s5797_s12 }
  0xe8   : > { %941 = vrot.lane.b32.xlu0 %v6045_v31, %s5796_s8  ;;  %736 = vmatpush.bf16.msra.mxu0 %v5318_v56  ;;  %v4673_v56 = vld [vmem:[%s5941_s18 + $0x14] sm:$0xf] }
  0xe9   : > { %v495_v57 = vpop.permute.xlu2 %494  ;;  %v443_v58 = vpop.permute.xlu1 %442 }
  0xea   : > { %497 = vst.msk [vmem:[#allocation2 + $0xb4] sm:$0xf] %vm303_vm0, %v495_v57  ;;  %v439_v59 = vpop.permute.xlu0 %438  ;;  %v5333_v60 = vld [vmem:[#allocation2 + $0x78] sm:$0xff] }
  0xeb   : > { %445 = vst.msk [vmem:[#allocation2 + $0x84] sm:$0xf] %vm303_vm0, %v443_v58  ;;  %742 = vmatpush.bf16.msra.mxu1 %v5333_v60  ;;  %v5332_v61 = vld [vmem:[#allocation2 + $0x70] sm:$0xff] }
  0xec   : > { %441 = vst.msk [vmem:[#allocation2 + $0x80] sm:$0xf] %vm303_vm0, %v439_v59 }
  0xed   : > { %1414 = vst.msk [vmem:[#allocation2 + $0x70] sm:$0xf] %vm303_vm0, %v6210_v52 }
  0xef   : > { %949 = vrot.lane.b32.xlu2 %v6045_v31, %s5795_s28  ;;  %945 = vrot.lane.b32.xlu1 %v6045_v31, %s5792_s23  ;;  %v563_v31 = vunpack.c.l.b16 %v510_v29 }
  0xf0   : > { %956 = vrot.lane.b32.xlu0 %v6072_v48, %s5794_s20  ;;  %743 = vmatpush.bf16.msra.mxu1 %v5332_v61 }
  0xf1   : > { %v507_v63 = vpop.permute.xlu2 %506  ;;  %v461_v0 = vpop.permute.xlu1 %460  ;;  %v6176_v33 = vpack.c.b16 %v563_v31, %v563_v31 }
  0xf2   : > { %509 = vst.msk [vmem:[#allocation2 + $0xc0] sm:$0xf] %vm303_vm0, %v507_v63  ;;  %v457_v1 = vpop.permute.xlu0 %456 }
  0xf3   : > { %463 = vst.msk [vmem:[#allocation2 + $0x94] sm:$0xf] %vm303_vm0, %v461_v0  ;;  %737 = vmatmul.bf16.vlgmr.msra.gmra.mxu0 %v6176_v33 }
  0xf4   : > { %459 = vst.msk [vmem:[#allocation2 + $0x90] sm:$0xf] %vm303_vm0, %v457_v1  ;;  %744 = vmatpush.bf16.msra.mxu1 %v5331_v2 }
  0xf7   : > { %964 = vrot.lane.b32.xlu2 %v6072_v48, %s5793_s24  ;;  %960 = vrot.lane.b32.xlu1 %v6072_v48, %s5797_s12 }
  0xf8   : > { %968 = vrot.lane.b32.xlu0 %v6072_v48, %s5796_s8  ;;  %745 = vmatpush.bf16.msra.mxu1 %v5330_v3 }
  0xf9   : > { %v822_v4 = vpop.permute.xlu2 %821  ;;  %v473_v5 = vpop.permute.xlu1 %472  ;;  %v560_v6 = vld [vmem:[#allocation2 + $0xc0] sm:$0xf] }
  0xfa   : > { %824 = vst.msk [vmem:[#allocation2 + $0x4] sm:$0xf] %vm303_vm0, %v822_v4  ;;  %v469_v7 = vpop.permute.xlu0 %468  ;;  %v671_v9 = vunpack.c.l.b16 %v560_v6 }
  0xfb   : > { %475 = vst.msk [vmem:[#allocation2 + $0xa0] sm:$0xf] %vm303_vm0, %v473_v5  ;;  %v5336_v45 = vld [vmem:[#allocation2 + $0x90] sm:$0xff] }
  0xfc   : > { %471 = vst.msk [vmem:[#allocation2 + $0x9c] sm:$0xf] %vm303_vm0, %v469_v7  ;;  %746 = vmatpush.bf16.msra.mxu1 %v5329_v8  ;;  %v696_v10 = vpack.c.b16 %v671_v9, %v671_v9  ;;  %v6253_v8 = vld [vmem:[%s5941_s18 + $0x20] sm:$0xf] }
  0xfe   : > { %v727_v11 = vsel %vm725_vm1, %v696_v10, 0 }
  0xff   : > { %976 = vrot.lane.b32.xlu2 %v6072_v48, %s5795_s28  ;;  %972 = vrot.lane.b32.xlu1 %v6072_v48, %s5792_s23 }
 0x100   : > { %986 = vrot.lane.b32.xlu0 %v6082_v51, %s5794_s20  ;;  %747 = vmatpush.bf16.msra.mxu1 %v6039_v30  ;;  %v6172_v30 = vpack.c.b16 %v566_v26, %v566_v26 }
 0x101   : > { %v830_v12 = vpop.permute.xlu2 %829  ;;  %v491_v13 = vpop.permute.xlu1 %490  ;;  %775 = vmatpush.bf16.msra.mxu3 %v727_v11 }
 0x102   : > { %832 = vst.msk [vmem:[#allocation2 + $0xc] sm:$0xf] %vm303_vm0, %v830_v12  ;;  %v487_v14 = vpop.permute.xlu0 %486  ;;  %v5338_v40 = vld [vmem:[#allocation2 + $0xa0] sm:$0xff] }
 0x103   : > { %493 = vst.msk [vmem:[#allocation2 + $0xb0] sm:$0xf] %vm303_vm0, %v491_v13  ;;  %v5337_v44 = vld [vmem:[#allocation2 + $0x98] sm:$0xff] }
 0x104   : > { %489 = vst.msk [vmem:[#allocation2 + $0xac] sm:$0xf] %vm303_vm0, %v487_v14  ;;  %748 = vmatpush.bf16.msra.mxu1 %v5327_v15  ;;  %4563 = vmatmul.msk.bf16.vlgmr.msra.gmra.mxu3 %vm721_vm2, %v6172_v30  ;;  %v4675_v13 = vld [vmem:[%s5941_s18 + $0x1c] sm:$0xf]  ;;  %v5343_v15 = vld [vmem:[#allocation2] sm:$0xff] }
 0x107   : > { %994 = vrot.lane.b32.xlu2 %v6082_v51, %s5793_s24  ;;  %990 = vrot.lane.b32.xlu1 %v6082_v51, %s5797_s12 }
 0x108   : > { %998 = vrot.lane.b32.xlu0 %v6082_v51, %s5796_s8  ;;  %749 = vmatpush.bf16.msra.mxu1 %v5326_v16 }
 0x109   : > { %v842_v17 = vpop.permute.xlu2 %841  ;;  %v503_v18 = vpop.permute.xlu1 %502 }
 0x10a   : > { %844 = vst.msk [vmem:[#allocation2 + $0x18] sm:$0xf] %vm303_vm0, %v842_v17  ;;  %v499_v19 = vpop.permute.xlu0 %498  ;;  %v5340_v35 = vld [vmem:[#allocation2 + $0xb0] sm:$0xff] }
 0x10b   : > { %505 = vst.msk [vmem:[#allocation2 + $0xbc] sm:$0xf] %vm303_vm0, %v503_v18  ;;  %750 = vmatmul.bf16.vlgmr.msra.gmra.mxu1 %v6178_v34  ;;  %v5339_v39 = vld [vmem:[#allocation2 + $0xa8] sm:$0xff] }
 0x10c   : > { %501 = vst.msk [vmem:[#allocation2 + $0xb8] sm:$0xf] %vm303_vm0, %v499_v19  ;;  %v6281_v19 = vld [vmem:[%s5941_s18 + $0xc] sm:$0xf] }
 0x10d   : > { %1471 = vst.msk [vmem:[#allocation2 + $0xa8] sm:$0xf] %vm303_vm0, %v6253_v8 }
 0x10e   : > { %1793 = vst.msk [vmem:[#allocation2] sm:$0xf] %vm303_vm0, %v6281_v19 }
 0x10f   : > { %1006 = vrot.lane.b32.xlu2 %v6082_v51, %s5795_s28  ;;  %1002 = vrot.lane.b32.xlu1 %v6082_v51, %s5792_s23  ;;  %v5334_v51 = vld [vmem:[#allocation2 + $0x80] sm:$0xff] }
 0x110   : > { %1308 = vrot.lane.b32.xlu0 %v6105_v62, %s5794_s20 }
 0x111   : > { %v857_v21 = vpop.permute.xlu2 %856  ;;  %v6154_v22 = vpop.permute.xlu1 %789  ;;  %v6166_v27 = vld [vmem:[#allocation2 + $0x18] sm:$0xff] }
 0x112   : > { %859 = vst.msk [vmem:[#allocation2 + $0x28] sm:$0xf] %vm303_vm0, %v857_v21  ;;  %v6162_v24 = vpop.permute.xlu0 %783 }
 0x113   : > { %v5341_v28 = vld [vmem:[#allocation2 + $0xb8] sm:$0xff]  ;;  %1333 = vst.msk [vmem:[#allocation2 + $0x1c] sm:$0xf] %vm303_vm0, %v4671_v25 }
 0x114   : > { %755 = vmatpush.bf16.msra.mxu2 %v5341_v28 }
 0x117   : > { %1316 = vrot.lane.b32.xlu2 %v6105_v62, %s5793_s24  ;;  %1312 = vrot.lane.b32.xlu1 %v6105_v62, %s5797_s12 }
 0x118   : > { %1320 = vrot.lane.b32.xlu0 %v6105_v62, %s5796_s8  ;;  %756 = vmatpush.bf16.msra.mxu2 %v5340_v35 }
 0x119   : > { %v869_v36 = vpop.permute.xlu2 %868  ;;  %v826_v37 = vpop.permute.xlu1 %825 }
 0x11a   : > { %871 = vst.msk [vmem:[#allocation2 + $0x34] sm:$0xf] %vm303_vm0, %v869_v36  ;;  %v834_v38 = vpop.permute.xlu0 %833 }
 0x11b   : > { %828 = vst.msk [vmem:[#allocation2 + $0x8] sm:$0xf] %vm303_vm0, %v826_v37 }
 0x11c   : > { %836 = vst.msk [vmem:[#allocation2 + $0x10] sm:$0xf] %vm303_vm0, %v834_v38  ;;  %757 = vmatpush.bf16.msra.mxu2 %v5339_v39 }
 0x11f   : > { %1328 = vrot.lane.b32.xlu2 %v6105_v62, %s5795_s28  ;;  %1324 = vrot.lane.b32.xlu1 %v6105_v62, %s5792_s23 }
 0x120   : > { %1335 = vrot.lane.b32.xlu0 %v4671_v25, %s5794_s20  ;;  %758 = vmatpush.bf16.msra.mxu2 %v5338_v40 }
 0x121   : > { %v884_v41 = vpop.permute.xlu2 %883  ;;  %v838_v42 = vpop.permute.xlu1 %837 }
 0x122   : > { %886 = vst.msk [vmem:[#allocation2 + $0x44] sm:$0xf] %vm303_vm0, %v884_v41  ;;  %v849_v43 = vpop.permute.xlu0 %848  ;;  %v5344_v12 = vld [vmem:[#allocation2 + $0x8] sm:$0xff] }
 0x123   : > { %840 = vst.msk [vmem:[#allocation2 + $0x14] sm:$0xf] %vm303_vm0, %v838_v42 }
 0x124   : > { %851 = vst.msk [vmem:[#allocation2 + $0x20] sm:$0xf] %vm303_vm0, %v849_v43  ;;  %759 = vmatpush.bf16.msra.mxu2 %v5337_v44 }
 0x127   : > { %1343 = vrot.lane.b32.xlu2 %v4671_v25, %s5793_s24  ;;  %1339 = vrot.lane.b32.xlu1 %v4671_v25, %s5797_s12 }
 0x128   : > { %1347 = vrot.lane.b32.xlu0 %v4671_v25, %s5796_s8  ;;  %760 = vmatpush.bf16.msra.mxu2 %v5336_v45 }
 0x129   : > { %v896_v46 = vpop.permute.xlu2 %895  ;;  %v853_v47 = vpop.permute.xlu1 %852 }
 0x12a   : > { %898 = vst.msk [vmem:[#allocation2 + $0x50] sm:$0xf] %vm303_vm0, %v896_v46  ;;  %v861_v48 = vpop.permute.xlu0 %860  ;;  %v5345_v7 = vld [vmem:[#allocation2 + $0x10] sm:$0xff] }
 0x12b   : > { %855 = vst.msk [vmem:[#allocation2 + $0x24] sm:$0xf] %vm303_vm0, %v853_v47  ;;  %v6320_v47 = vld [vmem:[%s5941_s18 + $0x14] sm:$0xf] }
 0x12c   : > { %863 = vst.msk [vmem:[#allocation2 + $0x2c] sm:$0xf] %vm303_vm0, %v861_v48  ;;  %761 = vmatpush.bf16.msra.mxu2 %v6074_v49 }
 0x12f   : > { %1355 = vrot.lane.b32.xlu2 %v4671_v25, %s5795_s28  ;;  %1351 = vrot.lane.b32.xlu1 %v4671_v25, %s5792_s23 }
 0x130   : > { %1362 = vrot.lane.b32.xlu0 %v6148_v20, %s5794_s20  ;;  %762 = vmatpush.bf16.msra.mxu2 %v5334_v51  ;;  %v4777_v51 = vld [vmem:[%s5941_s18 + $0x10] sm:$0xf] }
 0x131   : > { %v911_v54 = vpop.permute.xlu2 %910  ;;  %v865_v55 = vpop.permute.xlu1 %864  ;;  %v6223_v57 = vld [vmem:[#allocation2 + $0x50] sm:$0xff] }
 0x132   : > { %913 = vst.msk [vmem:[#allocation2 + $0x60] sm:$0xf] %vm303_vm0, %v911_v54  ;;  %v876_v49 = vpop.permute.xlu0 %875  ;;  %v5347_v3 = vld [vmem:[#allocation2 + $0x20] sm:$0xff] }
 0x133   : > { %867 = vst.msk [vmem:[#allocation2 + $0x30] sm:$0xf] %vm303_vm0, %v865_v55  ;;  %763 = vmatmul.bf16.vlgmr.msra.gmra.mxu2 %v6214_v53  ;;  %v5348_v2 = vld [vmem:[#allocation2 + $0x28] sm:$0xff] }
 0x134   : > { %878 = vst.msk [vmem:[#allocation2 + $0x3c] sm:$0xf] %vm303_vm0, %v876_v49 }
 0x135   : > { %1387 = vst.msk [vmem:[#allocation2 + $0x54] sm:$0xf] %vm303_vm0, %v4673_v56 }
 0x137   : > { %1370 = vrot.lane.b32.xlu2 %v6148_v20, %s5793_s24  ;;  %1366 = vrot.lane.b32.xlu1 %v6148_v20, %s5797_s12 }
 0x138   : > { %1374 = vrot.lane.b32.xlu0 %v6148_v20, %s5796_s8 }
 0x139   : > { %v923_v58 = vpop.permute.xlu2 %922  ;;  %v880_v59 = vpop.permute.xlu1 %879 }
 0x13a   : > { %925 = vst.msk [vmem:[#allocation2 + $0x6c] sm:$0xf] %vm303_vm0, %v923_v58  ;;  %v888_v60 = vpop.permute.xlu0 %887  ;;  %v5349_v62 = vld [vmem:[#allocation2 + $0x30] sm:$0xff] }
 0x13b   : > { %882 = vst.msk [vmem:[#allocation2 + $0x40] sm:$0xf] %vm303_vm0, %v880_v59  ;;  %v5350_v61 = vld [vmem:[#allocation2 + $0x38] sm:$0xff] }
 0x13c   : > { %890 = vst.msk [vmem:[#allocation2 + $0x48] sm:$0xf] %vm303_vm0, %v888_v60  ;;  %1227 = vmatpush.bf16.msrb.mxu3 %v5350_v61 }
 0x13d   : > { %1847 = vst.msk [vmem:[#allocation2 + $0x38] sm:$0xf] %vm303_vm0, %v6320_v47 }
 0x13f   : > { %1382 = vrot.lane.b32.xlu2 %v6148_v20, %s5795_s28  ;;  %1378 = vrot.lane.b32.xlu1 %v6148_v20, %s5792_s23 }
 0x140   : > { %1389 = vrot.lane.b32.xlu0 %v4673_v56, %s5794_s20  ;;  %1228 = vmatpush.bf16.msrb.mxu3 %v5349_v62 }
 0x141   : > { %v938_v63 = vpop.permute.xlu2 %937  ;;  %v892_v0 = vpop.permute.xlu1 %891 }
 0x142   : > { %940 = vst.msk [vmem:[#allocation2 + $0x7c] sm:$0xf] %vm303_vm0, %v938_v63  ;;  %v903_v1 = vpop.permute.xlu0 %902  ;;  %v5351_v46 = vld [vmem:[#allocation2 + $0x40] sm:$0xff] }
 0x143   : > { %894 = vst.msk [vmem:[#allocation2 + $0x4c] sm:$0xf] %vm303_vm0, %v892_v0 }
 0x144   : > { %905 = vst.msk [vmem:[#allocation2 + $0x58] sm:$0xf] %vm303_vm0, %v903_v1  ;;  %1229 = vmatpush.bf16.msrb.mxu3 %v5348_v2 }
 0x147   : > { %1397 = vrot.lane.b32.xlu2 %v4673_v56, %s5793_s24  ;;  %1393 = vrot.lane.b32.xlu1 %v4673_v56, %s5797_s12 }
 0x148   : > { %1401 = vrot.lane.b32.xlu0 %v4673_v56, %s5796_s8  ;;  %1230 = vmatpush.bf16.msrb.mxu3 %v5347_v3 }
 0x149   : > { %v950_v4 = vpop.permute.xlu2 %949  ;;  %v907_v5 = vpop.permute.xlu1 %906 }
 0x14a   : > { %952 = vst.msk [vmem:[#allocation2 + $0x88] sm:$0xf] %vm303_vm0, %v950_v4  ;;  %v915_v6 = vpop.permute.xlu0 %914  ;;  %v5352_v45 = vld [vmem:[#allocation2 + $0x48] sm:$0xff] }
 0x14b   : > { %909 = vst.msk [vmem:[#allocation2 + $0x5c] sm:$0xf] %vm303_vm0, %v907_v5 }
 0x14c   : > { %917 = vst.msk [vmem:[#allocation2 + $0x64] sm:$0xf] %vm303_vm0, %v915_v6  ;;  %1231 = vmatpush.bf16.msrb.mxu3 %v6166_v27 }
 0x14f   : > { %1409 = vrot.lane.b32.xlu2 %v4673_v56, %s5795_s28  ;;  %1405 = vrot.lane.b32.xlu1 %v4673_v56, %s5792_s23 }
 0x150   : > { %1416 = vrot.lane.b32.xlu0 %v6210_v52, %s5794_s20  ;;  %1232 = vmatpush.bf16.msrb.mxu3 %v5345_v7 }
 0x151   : > { %v965_v9 = vpop.permute.xlu2 %964  ;;  %v919_v10 = vpop.permute.xlu1 %918  ;;  %v6263_v14 = vld [vmem:[#allocation2 + $0x88] sm:$0xff] }
 0x152   : > { %967 = vst.msk [vmem:[#allocation2 + $0x98] sm:$0xf] %vm303_vm0, %v965_v9  ;;  %v930_v11 = vpop.permute.xlu0 %929  ;;  %v5354_v38 = vld [vmem:[#allocation2 + $0x58] sm:$0xff] }
 0x153   : > { %921 = vst.msk [vmem:[#allocation2 + $0x68] sm:$0xf] %vm303_vm0, %v919_v10  ;;  %v5355_v32 = vld [vmem:[#allocation2 + $0x60] sm:$0xff] }
 0x154   : > { %932 = vst.msk [vmem:[#allocation2 + $0x74] sm:$0xf] %vm303_vm0, %v930_v11  ;;  %1233 = vmatpush.bf16.msrb.mxu3 %v5344_v12  ;;  %v4779_v12 = vld [vmem:[%s5941_s18 + $0x18] sm:$0xf] }
 0x155   : > { %1441 = vst.msk [vmem:[#allocation2 + $0x8c] sm:$0xf] %vm303_vm0, %v4675_v13 }
 0x157   : > { %1424 = vrot.lane.b32.xlu2 %v6210_v52, %s5793_s24  ;;  %1420 = vrot.lane.b32.xlu1 %v6210_v52, %s5797_s12 }
 0x158   : > { %1428 = vrot.lane.b32.xlu0 %v6210_v52, %s5796_s8  ;;  %1234 = vmatpush.bf16.msrb.mxu3 %v5343_v15 }
 0x159   : > { %v977_v16 = vpop.permute.xlu2 %976  ;;  %v934_v17 = vpop.permute.xlu1 %933 }
 0x15a   : > { %979 = vst.msk [vmem:[#allocation2 + $0xa4] sm:$0xf] %vm303_vm0, %v977_v16  ;;  %v942_v18 = vpop.permute.xlu0 %941  ;;  %v5356_v31 = vld [vmem:[#allocation2 + $0x68] sm:$0xff]  ;;  %v6370_v16 = vld [vmem:[%s5941_s18 + $0x1c] sm:$0xf] }
 0x15b   : > { %936 = vst.msk [vmem:[#allocation2 + $0x78] sm:$0xf] %vm303_vm0, %v934_v17  ;;  %1235 = vmatmul.bf16.vlgmr.msrb.gmra.mxu3 %v6176_v33  ;;  %v5357_v26 = vld [vmem:[#allocation2 + $0x70] sm:$0xff] }
 0x15c   : > { %944 = vst.msk [vmem:[#allocation2 + $0x80] sm:$0xf] %vm303_vm0, %v942_v18 }
 0x15d   : > { %1901 = vst.msk [vmem:[#allocation2 + $0x70] sm:$0xf] %vm303_vm0, %v6370_v16 }
 0x15f   : > { %1436 = vrot.lane.b32.xlu2 %v6210_v52, %s5795_s28  ;;  %1432 = vrot.lane.b32.xlu1 %v6210_v52, %s5792_s23 }
 0x160   : > { %1443 = vrot.lane.b32.xlu0 %v4675_v13, %s5794_s20 }
 0x161   : > { %v995_v20 = vpop.permute.xlu2 %994  ;;  %v946_v21 = vpop.permute.xlu1 %945 }
 0x162   : > { %997 = vst.msk [vmem:[#allocation2 + $0xb4] sm:$0xf] %vm303_vm0, %v995_v20  ;;  %v957_v23 = vpop.permute.xlu0 %956  ;;  %v5358_v25 = vld [vmem:[#allocation2 + $0x78] sm:$0xff] }
 0x163   : > { %948 = vst.msk [vmem:[#allocation2 + $0x84] sm:$0xf] %vm303_vm0, %v946_v21  ;;  %1240 = vmatpush.bf16.msrb.mxu0 %v5358_v25 }
 0x164   : > { %959 = vst.msk [vmem:[#allocation2 + $0x90] sm:$0xf] %vm303_vm0, %v957_v23 }
 0x167   : > { %1451 = vrot.lane.b32.xlu2 %v4675_v13, %s5793_s24  ;;  %1447 = vrot.lane.b32.xlu1 %v4675_v13, %s5797_s12 }
 0x168   : > { %1455 = vrot.lane.b32.xlu0 %v4675_v13, %s5796_s8  ;;  %1241 = vmatpush.bf16.msrb.mxu0 %v5357_v26 }
 0x169   : > { %v1007_v27 = vpop.permute.xlu2 %1006  ;;  %v961_v28 = vpop.permute.xlu1 %960 }
 0x16a   : > { %1009 = vst.msk [vmem:[#allocation2 + $0xc0] sm:$0xf] %vm303_vm0, %v1007_v27  ;;  %v969_v29 = vpop.permute.xlu0 %968  ;;  %v5359_v15 = vld [vmem:[#allocation2 + $0x80] sm:$0xff] }
 0x16b   : > { %963 = vst.msk [vmem:[#allocation2 + $0x94] sm:$0xf] %vm303_vm0, %v961_v28 }
 0x16c   : > { %971 = vst.msk [vmem:[#allocation2 + $0x9c] sm:$0xf] %vm303_vm0, %v969_v29  ;;  %1242 = vmatpush.bf16.msrb.mxu0 %v5356_v31 }
 0x16f   : > { %1463 = vrot.lane.b32.xlu2 %v4675_v13, %s5795_s28  ;;  %1459 = vrot.lane.b32.xlu1 %v4675_v13, %s5792_s23 }
 0x170   : > { %1473 = vrot.lane.b32.xlu0 %v6253_v8, %s5794_s20  ;;  %1243 = vmatpush.bf16.msrb.mxu0 %v5355_v32  ;;  %v738_v61 = vpop.f32.mrf.mxu0 }
 0x171   : > { %v1317_v33 = vpop.permute.xlu2 %1316  ;;  %v973_v35 = vpop.permute.xlu1 %972  ;;  %v1060_v36 = vld [vmem:[#allocation2 + $0xc0] sm:$0xf] }
 0x172   : > { %1319 = vst.msk [vmem:[#allocation2 + $0xc] sm:$0xf] %vm303_vm0, %v1317_v33  ;;  %v987_v37 = vpop.permute.xlu0 %986  ;;  %v1171_v39 = vunpack.c.l.b16 %v1060_v36  ;;  %v5361_v6 = vld [vmem:[#allocation2 + $0x90] sm:$0xff] }
 0x173   : > { %975 = vst.msk [vmem:[#allocation2 + $0xa0] sm:$0xf] %vm303_vm0, %v973_v35  ;;  %v5362_v3 = vld [vmem:[#allocation2 + $0x98] sm:$0xff] }
 0x174   : > { %989 = vst.msk [vmem:[#allocation2 + $0xac] sm:$0xf] %vm303_vm0, %v987_v37  ;;  %1244 = vmatpush.bf16.msrb.mxu0 %v5354_v38  ;;  %v1196_v40 = vpack.c.b16 %v1171_v39, %v1171_v39 }
 0x176   : > { %v1225_v41 = vsel %vm725_vm1, %v1196_v40, 0 }
 0x177   : > { %1481 = vrot.lane.b32.xlu2 %v6253_v8, %s5793_s24  ;;  %1477 = vrot.lane.b32.xlu1 %v6253_v8, %s5797_s12 }
 0x178   : > { %1485 = vrot.lane.b32.xlu0 %v6253_v8, %s5796_s8  ;;  %1245 = vmatpush.bf16.msrb.mxu0 %v6223_v57  ;;  %v740_v5 = vpop.f32.mrf.mxu0 }
 0x179   : > { %v1329_v42 = vpop.permute.xlu2 %1328  ;;  %v991_v43 = vpop.permute.xlu1 %990  ;;  %1273 = vmatpush.bf16.msrb.mxu2 %v1225_v41  ;;  %v6409_v41 = vld [vmem:[%s5941_s18 + $0x24] sm:$0xf] }
 0x17a   : > { %1331 = vst.msk [vmem:[#allocation2 + $0x18] sm:$0xf] %vm303_vm0, %v1329_v42  ;;  %v999_v44 = vpop.permute.xlu0 %998  ;;  %v5363_v62 = vld [vmem:[#allocation2 + $0xa0] sm:$0xff] }
 0x17b   : > { %993 = vst.msk [vmem:[#allocation2 + $0xb0] sm:$0xf] %vm303_vm0, %v991_v43  ;;  %v5364_v60 = vld [vmem:[#allocation2 + $0xa8] sm:$0xff] }
 0x17c   : > { %1001 = vst.msk [vmem:[#allocation2 + $0xb8] sm:$0xf] %vm303_vm0, %v999_v44  ;;  %1246 = vmatpush.bf16.msrb.mxu0 %v5352_v45  ;;  %4669 = vmatmul.msk.bf16.vlgmr.msrb.gmra.mxu2 %vm721_vm2, %v6172_v30 }
 0x17d   : > { %1958 = vst.msk [vmem:[#allocation2 + $0xa8] sm:$0xf] %vm303_vm0, %v6409_v41 }
 0x17f   : > { %1493 = vrot.lane.b32.xlu2 %v6253_v8, %s5795_s28  ;;  %1489 = vrot.lane.b32.xlu1 %v6253_v8, %s5792_s23 }
 0x180   : > { %1795 = vrot.lane.b32.xlu0 %v6281_v19, %s5794_s20  ;;  %1247 = vmatpush.bf16.msrb.mxu0 %v5351_v46 }
 0x181   : > { %v1344_v48 = vpop.permute.xlu2 %1343  ;;  %v1003_v50 = vpop.permute.xlu1 %1002  ;;  %v6331_v52 = vld [vmem:[#allocation2 + $0x18] sm:$0xff] }
 0x182   : > { %1346 = vst.msk [vmem:[#allocation2 + $0x28] sm:$0xf] %vm303_vm0, %v1344_v48  ;;  %v1309_v30 = vpop.permute.xlu0 %1308  ;;  %v5365_v56 = vld [vmem:[#allocation2 + $0xb0] sm:$0xff] }
 0x183   : > { %1005 = vst.msk [vmem:[#allocation2 + $0xbc] sm:$0xf] %vm303_vm0, %v1003_v50  ;;  %1248 = vmatmul.bf16.vlgmr.msrb.gmra.mxu0 %v6178_v34 }
 0x184   : > { %1311 = vst.msk [vmem:[#allocation2 + $0x4] sm:$0xf] %vm303_vm0, %v1309_v30 }
 0x185   : > { %1820 = vst.msk [vmem:[#allocation2 + $0x1c] sm:$0xf] %vm303_vm0, %v4777_v51 }
 0x187   : > { %1803 = vrot.lane.b32.xlu2 %v6281_v19, %s5793_s24  ;;  %1799 = vrot.lane.b32.xlu1 %v6281_v19, %s5797_s12  ;;  %v777_v4 = vpop.f32.mrf.mxu3 }
 0x188   : > { %1807 = vrot.lane.b32.xlu0 %v6281_v19, %s5796_s8  ;;  %v751_v63 = vpop.f32.mrf.mxu1 }
 0x189   : > { %v1356_v54 = vpop.permute.xlu2 %1355  ;;  %v1313_v55 = vpop.permute.xlu1 %1312  ;;  %v752_v26 = vadd.f32 %v751_v63, %v738_v61 }
 0x18a   : > { %1358 = vst.msk [vmem:[#allocation2 + $0x34] sm:$0xf] %vm303_vm0, %v1356_v54  ;;  %v1321_v34 = vpop.permute.xlu0 %1320  ;;  %v5366_v49 = vld [vmem:[#allocation2 + $0xb8] sm:$0xff] }
 0x18b   : > { %1315 = vst.msk [vmem:[#allocation2 + $0x8] sm:$0xf] %vm303_vm0, %v1313_v55  ;;  %1253 = vmatpush.bf16.msrb.mxu1 %v5366_v49  ;;  %v5368_v54 = vld [vmem:[#allocation2] sm:$0xff] }
 0x18c   : > { %1323 = vst.msk [vmem:[#allocation2 + $0x10] sm:$0xf] %vm303_vm0, %v1321_v34 }
 0x18f   : > { %1815 = vrot.lane.b32.xlu2 %v6281_v19, %s5795_s28  ;;  %1811 = vrot.lane.b32.xlu1 %v6281_v19, %s5792_s23  ;;  %v779_v11 = vpop.f32.mrf.mxu3 }
 0x190   : > { %1822 = vrot.lane.b32.xlu0 %v4777_v51, %s5794_s20  ;;  %1254 = vmatpush.bf16.msrb.mxu1 %v5365_v56  ;;  %v753_v7 = vpop.f32.mrf.mxu1  ;;  %v4781_v56 = vld [vmem:[%s5941_s18 + $0x20] sm:$0xf] }
 0x191   : > { %v1371_v57 = vpop.permute.xlu2 %1370  ;;  %v1325_v58 = vpop.permute.xlu1 %1324 }
 0x192   : > { %1373 = vst.msk [vmem:[#allocation2 + $0x44] sm:$0xf] %vm303_vm0, %v1371_v57  ;;  %v1336_v59 = vpop.permute.xlu0 %1335  ;;  %v5369_v50 = vld [vmem:[#allocation2 + $0x8] sm:$0xff] }
 0x193   : > { %1327 = vst.msk [vmem:[#allocation2 + $0x14] sm:$0xf] %vm303_vm0, %v1325_v58  ;;  %v6452_v58 = vld [vmem:[%s5941_s18 + $0x10] sm:$0xf] }
 0x194   : > { %1338 = vst.msk [vmem:[#allocation2 + $0x20] sm:$0xf] %vm303_vm0, %v1336_v59  ;;  %1255 = vmatpush.bf16.msrb.mxu1 %v5364_v60 }
 0x195   : > { %2280 = vst.msk [vmem:[#allocation2] sm:$0xf] %vm303_vm0, %v6452_v58 }
 0x197   : > { %1830 = vrot.lane.b32.xlu2 %v4777_v51, %s5793_s24  ;;  %1826 = vrot.lane.b32.xlu1 %v4777_v51, %s5797_s12 }
 0x198   : > { %1834 = vrot.lane.b32.xlu0 %v4777_v51, %s5796_s8  ;;  %1256 = vmatpush.bf16.msrb.mxu1 %v5363_v62 }
 0x199   : > { %v1383_v0 = vpop.permute.xlu2 %1382  ;;  %v1340_v1 = vpop.permute.xlu1 %1339 }
 0x19a   : > { %1385 = vst.msk [vmem:[#allocation2 + $0x50] sm:$0xf] %vm303_vm0, %v1383_v0  ;;  %v1348_v2 = vpop.permute.xlu0 %1347  ;;  %v5370_v38 = vld [vmem:[#allocation2 + $0x10] sm:$0xff] }
 0x19b   : > { %1342 = vst.msk [vmem:[#allocation2 + $0x24] sm:$0xf] %vm303_vm0, %v1340_v1 }
 0x19c   : > { %1350 = vst.msk [vmem:[#allocation2 + $0x2c] sm:$0xf] %vm303_vm0, %v1348_v2  ;;  %1257 = vmatpush.bf16.msrb.mxu1 %v5362_v3 }
 0x19f   : > { %1842 = vrot.lane.b32.xlu2 %v4777_v51, %s5795_s28  ;;  %1838 = vrot.lane.b32.xlu1 %v4777_v51, %s5792_s23 }
 0x1a0   : > { %1849 = vrot.lane.b32.xlu0 %v6320_v47, %s5794_s20  ;;  %1258 = vmatpush.bf16.msrb.mxu1 %v5361_v6 }
 0x1a1   : > { %v1398_v8 = vpop.permute.xlu2 %1397  ;;  %v1352_v9 = vpop.permute.xlu1 %1351  ;;  %v6366_v13 = vld [vmem:[#allocation2 + $0x50] sm:$0xff] }
 0x1a2   : > { %1400 = vst.msk [vmem:[#allocation2 + $0x60] sm:$0xf] %vm303_vm0, %v1398_v8  ;;  %v1363_v10 = vpop.permute.xlu0 %1362  ;;  %v5372_v28 = vld [vmem:[#allocation2 + $0x20] sm:$0xff] }
 0x1a3   : > { %1354 = vst.msk [vmem:[#allocation2 + $0x30] sm:$0xf] %vm303_vm0, %v1352_v9  ;;  %v5373_v25 = vld [vmem:[#allocation2 + $0x28] sm:$0xff] }
 0x1a4   : > { %1365 = vst.msk [vmem:[#allocation2 + $0x3c] sm:$0xf] %vm303_vm0, %v1363_v10  ;;  %1259 = vmatpush.bf16.msrb.mxu1 %v6263_v14 }
 0x1a5   : > { %1874 = vst.msk [vmem:[#allocation2 + $0x54] sm:$0xf] %vm303_vm0, %v4779_v12 }
 0x1a7   : > { %1857 = vrot.lane.b32.xlu2 %v6320_v47, %s5793_s24  ;;  %1853 = vrot.lane.b32.xlu1 %v6320_v47, %s5797_s12 }
 0x1a8   : > { %1861 = vrot.lane.b32.xlu0 %v6320_v47, %s5796_s8  ;;  %1260 = vmatpush.bf16.msrb.mxu1 %v5359_v15 }
 0x1a9   : > { %v1410_v14 = vpop.permute.xlu2 %1409  ;;  %v1367_v17 = vpop.permute.xlu1 %1366 }
 0x1aa   : > { %1412 = vst.msk [vmem:[#allocation2 + $0x6c] sm:$0xf] %vm303_vm0, %v1410_v14  ;;  %v1375_v18 = vpop.permute.xlu0 %1374  ;;  %v5374_v20 = vld [vmem:[#allocation2 + $0x30] sm:$0xff] }
 0x1ab   : > { %1369 = vst.msk [vmem:[#allocation2 + $0x40] sm:$0xf] %vm303_vm0, %v1367_v17  ;;  %1261 = vmatmul.bf16.vlgmr.msrb.gmra.mxu1 %v6214_v53  ;;  %v5375_v19 = vld [vmem:[#allocation2 + $0x38] sm:$0xff] }
 0x1ac   : > { %1377 = vst.msk [vmem:[#allocation2 + $0x48] sm:$0xf] %vm303_vm0, %v1375_v18  ;;  %1714 = vmatpush.bf16.msra.mxu3 %v5375_v19  ;;  %v6491_v18 = vld [vmem:[%s5941_s18 + $0x18] sm:$0xf] }
 0x1ad   : > { %2334 = vst.msk [vmem:[#allocation2 + $0x38] sm:$0xf] %vm303_vm0, %v6491_v18 }
 0x1af   : > { %1869 = vrot.lane.b32.xlu2 %v6320_v47, %s5795_s28  ;;  %1865 = vrot.lane.b32.xlu1 %v6320_v47, %s5792_s23 }
 0x1b0   : > { %1876 = vrot.lane.b32.xlu0 %v4779_v12, %s5794_s20  ;;  %1715 = vmatpush.bf16.msra.mxu3 %v5374_v20 }
 0x1b1   : > { %v1425_v21 = vpop.permute.xlu2 %1424  ;;  %v1379_v23 = vpop.permute.xlu1 %1378 }
 0x1b2   : > { %1427 = vst.msk [vmem:[#allocation2 + $0x7c] sm:$0xf] %vm303_vm0, %v1425_v21  ;;  %v1390_v53 = vpop.permute.xlu0 %1389  ;;  %v5376_v19 = vld [vmem:[#allocation2 + $0x40] sm:$0xff] }
 0x1b3   : > { %1381 = vst.msk [vmem:[#allocation2 + $0x4c] sm:$0xf] %vm303_vm0, %v1379_v23  ;;  %v4883_v23 = vld [vmem:[%s5941_s18 + $0x14] sm:$0xf] }
 0x1b4   : > { %1392 = vst.msk [vmem:[#allocation2 + $0x58] sm:$0xf] %vm303_vm0, %v1390_v53  ;;  %1716 = vmatpush.bf16.msra.mxu3 %v5373_v25  ;;  %v1497_v53 = vld [vmem:[%s7429_s1] sm:$0xff] }
 0x1b6   : > { %v764_v27 = vpop.f32.mrf.mxu2 }
 0x1b7   : > { %1884 = vrot.lane.b32.xlu2 %v4779_v12, %s5793_s24  ;;  %1880 = vrot.lane.b32.xlu1 %v4779_v12, %s5797_s12  ;;  %v765_v29 = vadd.f32 %v764_v27, %v752_v26  ;;  %v1550_v26 = vunpack.c.l.b16 %v1497_v53  ;;  %v1551_v27 = vunpack.c.h.b16 %v1497_v53 }
 0x1b8   : > { %1888 = vrot.lane.b32.xlu0 %v4779_v12, %s5796_s8  ;;  %1717 = vmatpush.bf16.msra.mxu3 %v5372_v28 }
 0x1b9   : > { %v1437_v31 = vpop.permute.xlu2 %1436  ;;  %v1394_v32 = vpop.permute.xlu1 %1393  ;;  %v778_v33 = vadd.f32 %v777_v4, %v765_v29  ;;  %v6507_v28 = vpack.c.b16 %v1550_v26, %v1550_v26  ;;  %v6509_v29 = vpack.c.b16 %v1551_v27, %v1551_v27 }
 0x1ba   : > { %1439 = vst.msk [vmem:[#allocation2 + $0x88] sm:$0xf] %vm303_vm0, %v1437_v31  ;;  %v1402_v35 = vpop.permute.xlu0 %1401  ;;  %v5377_v17 = vld [vmem:[#allocation2 + $0x48] sm:$0xff] }
 0x1bb   : > { %1396 = vst.msk [vmem:[#allocation2 + $0x5c] sm:$0xf] %vm303_vm0, %v1394_v32  ;;  %v786_v36 = vmul.f32 %v6162_v24, %v778_v33 }
 0x1bc   : > { %1404 = vst.msk [vmem:[#allocation2 + $0x64] sm:$0xf] %vm303_vm0, %v1402_v35  ;;  %1718 = vmatpush.bf16.msra.mxu3 %v6331_v52 }
 0x1bd   : > { %v792_v37 = vadd.f32 %v6154_v22, %v786_v36  ;;  %v1498_v36 = vld [vmem:[%s7429_s1 + $0x8] sm:$0xff] }
 0x1be   : > { %v766_v39 = vpop.f32.mrf.mxu2 }
 0x1bf   : > { %1896 = vrot.lane.b32.xlu2 %v4779_v12, %s5795_s28  ;;  %1892 = vrot.lane.b32.xlu1 %v4779_v12, %s5792_s23  ;;  %v793_v40 = vmax.f32 %v792_v37, 0.0  ;;  %v1553_v37 = vunpack.c.h.b16 %v1498_v36 }
 0x1c0   : > { %1903 = vrot.lane.b32.xlu0 %v6370_v16, %s5794_s20  ;;  %1719 = vmatpush.bf16.msra.mxu3 %v5370_v38 }
 0x1c1   : > { %v1452_v42 = vpop.permute.xlu2 %1451  ;;  %v1406_v43 = vpop.permute.xlu1 %1405  ;;  %v795_v44 = vrot.slane %v793_v40, 1  ;;  %v796_v45 = vrot.slane %v793_v40, 2  ;;  %v797_v46 = vrot.slane %v793_v40, 3  ;;  %810 = vst.msk [vmem:[%s6413_s6] sm:$0x1] %vm809_vm3, %v793_v40  ;;  %v798_v48 = vrot.slane %v793_v40, 4 }
 0x1c2   : > { %v1417_v47 = vpop.permute.xlu0 %1416  ;;  %1454 = vst.msk [vmem:[#allocation2 + $0x98] sm:$0xf] %vm303_vm0, %v1452_v42  ;;  %v799_v30 = vrot.slane %v793_v40, 5  ;;  %v800_v51 = vrot.slane %v793_v40, 6  ;;  %v801_v52 = vrot.slane %v793_v40, 7  ;;  %v6448_v57 = vld [vmem:[#allocation2 + $0x88] sm:$0xff]  ;;  %v6525_v39 = vpack.c.b16 %v1553_v37, %v1553_v37 }
 0x1c3   : > { %811 = vst.msk [vmem:[%s6413_s6 + $0x8] sm:$0x1] %vm809_vm3, %v795_v44  ;;  %v5380_v4 = vld [vmem:[#allocation2 + $0x60] sm:$0xff]  ;;  %v5379_v11 = vld [vmem:[#allocation2 + $0x58] sm:$0xff] }
 0x1c4   : > { %812 = vst.msk [vmem:[%s6413_s6 + $0x10] sm:$0x1] %vm809_vm3, %v796_v45  ;;  %1720 = vmatpush.bf16.msra.mxu3 %v5369_v50 }
 0x1c5   : > { %813 = vst.msk [vmem:[%s6413_s6 + $0x18] sm:$0x1] %vm809_vm3, %v797_v46 }
 0x1c6   : > { %814 = vst.msk [vmem:[%s6413_s6 + $0x20] sm:$0x1] %vm809_vm3, %v798_v48 }
 0x1c7   : > { %1911 = vrot.lane.b32.xlu2 %v6370_v16, %s5793_s24  ;;  %1907 = vrot.lane.b32.xlu1 %v6370_v16, %s5797_s12  ;;  %815 = vst.msk [vmem:[%s6413_s6 + $0x28] sm:$0x1] %vm809_vm3, %v799_v30 }
 0x1c8   : > { %1915 = vrot.lane.b32.xlu0 %v6370_v16, %s5796_s8  ;;  %816 = vst.msk [vmem:[%s6413_s6 + $0x30] sm:$0x1] %vm809_vm3, %v800_v51  ;;  %1721 = vmatpush.bf16.msra.mxu3 %v5368_v54 }
 0x1c9   : > { %v1464_v55 = vpop.permute.xlu2 %1463  ;;  %v1421_v34 = vpop.permute.xlu1 %1420  ;;  %817 = vst.msk [vmem:[%s6413_s6 + $0x38] sm:$0x1] %vm809_vm3, %v801_v52 }
 0x1ca   : > { %v1429_v49 = vpop.permute.xlu0 %1428  ;;  %1408 = vst.msk [vmem:[#allocation2 + $0x68] sm:$0xf] %vm303_vm0, %v1406_v43 }
 0x1cb   : > { %1419 = vst.msk [vmem:[#allocation2 + $0x74] sm:$0xf] %vm303_vm0, %v1417_v47  ;;  %1722 = vmatmul.bf16.vlgmr.msra.gmra.mxu3 %v6507_v28 }
 0x1cc   : > { %1466 = vst.msk [vmem:[#allocation2 + $0xa4] sm:$0xf] %vm303_vm0, %v1464_v55 }
 0x1cd   : > { %1423 = vst.msk [vmem:[#allocation2 + $0x78] sm:$0xf] %vm303_vm0, %v1421_v34 }
 0x1ce   : > { %1431 = vst.msk [vmem:[#allocation2 + $0x80] sm:$0xf] %vm303_vm0, %v1429_v49 }
 0x1cf   : > { %1923 = vrot.lane.b32.xlu2 %v6370_v16, %s5795_s28  ;;  %1919 = vrot.lane.b32.xlu1 %v6370_v16, %s5792_s23  ;;  %1928 = vst.msk [vmem:[#allocation2 + $0x8c] sm:$0xf] %vm303_vm0, %v4781_v56 }
 0x1d0   : > { %1930 = vrot.lane.b32.xlu0 %v4781_v56, %s5794_s20 }
 0x1d1   : > { %v1482_v59 = vpop.permute.xlu2 %1481  ;;  %v1433_v60 = vpop.permute.xlu1 %1432  ;;  %v5381_v3 = vld [vmem:[#allocation2 + $0x68] sm:$0xff] }
 0x1d2   : > { %1484 = vst.msk [vmem:[#allocation2 + $0xb4] sm:$0xf] %vm303_vm0, %v1482_v59  ;;  %v1444_v61 = vpop.permute.xlu0 %1443  ;;  %v5382_v63 = vld [vmem:[#allocation2 + $0x70] sm:$0xff]  ;;  %v4885_v59 = vld [vmem:[%s5941_s18 + $0x1c] sm:$0xf] }
 0x1d3   : > { %1435 = vst.msk [vmem:[#allocation2 + $0x84] sm:$0xf] %vm303_vm0, %v1433_v60 }
 0x1d4   : > { %1446 = vst.msk [vmem:[#allocation2 + $0x90] sm:$0xf] %vm303_vm0, %v1444_v61  ;;  %v5383_v62 = vld [vmem:[#allocation2 + $0x78] sm:$0xff] }
 0x1d5   : > { %1727 = vmatpush.bf16.msra.mxu2 %v5383_v62 }
 0x1d7   : > { %1938 = vrot.lane.b32.xlu2 %v4781_v56, %s5793_s24  ;;  %1934 = vrot.lane.b32.xlu1 %v4781_v56, %s5797_s12 }
 0x1d8   : > { %1942 = vrot.lane.b32.xlu0 %v4781_v56, %s5796_s8 }
 0x1d9   : > { %v1494_v0 = vpop.permute.xlu2 %1493  ;;  %v1448_v1 = vpop.permute.xlu1 %1447  ;;  %1728 = vmatpush.bf16.msra.mxu2 %v5382_v63  ;;  %v6562_v63 = vld [vmem:[%s5941_s18 + $0x20] sm:$0xf] }
 0x1da   : > { %1496 = vst.msk [vmem:[#allocation2 + $0xc0] sm:$0xf] %vm303_vm0, %v1494_v0  ;;  %v1456_v2 = vpop.permute.xlu0 %1455  ;;  %v5384_v62 = vld [vmem:[#allocation2 + $0x80] sm:$0xff] }
 0x1db   : > { %1450 = vst.msk [vmem:[#allocation2 + $0x94] sm:$0xf] %vm303_vm0, %v1448_v1 }
 0x1dc   : > { %1458 = vst.msk [vmem:[#allocation2 + $0x9c] sm:$0xf] %vm303_vm0, %v1456_v2 }
 0x1dd   : > { %1729 = vmatpush.bf16.msra.mxu2 %v5381_v3  ;;  %2388 = vst.msk [vmem:[#allocation2 + $0x70] sm:$0xf] %vm303_vm0, %v6562_v63 }
 0x1de   : > { %v6535_v44 = vpop.f32.mrf.mxu3 }
 0x1df   : > { %1950 = vrot.lane.b32.xlu2 %v4781_v56, %s5795_s28  ;;  %1946 = vrot.lane.b32.xlu1 %v4781_v56, %s5792_s23 }
 0x1e0   : > { %1960 = vrot.lane.b32.xlu0 %v6409_v41, %s5794_s20 }
 0x1e1   : > { %v1804_v5 = vpop.permute.xlu2 %1803  ;;  %v1460_v6 = vpop.permute.xlu1 %1459  ;;  %v1547_v7 = vld [vmem:[#allocation2 + $0xc0] sm:$0xf]  ;;  %1730 = vmatpush.bf16.msra.mxu2 %v5380_v4 }
 0x1e2   : > { %1806 = vst.msk [vmem:[#allocation2 + $0xc] sm:$0xf] %vm303_vm0, %v1804_v5  ;;  %v1474_v8 = vpop.permute.xlu0 %1473  ;;  %v1658_v9 = vunpack.c.l.b16 %v1547_v7  ;;  %v5386_v55 = vld [vmem:[#allocation2 + $0x90] sm:$0xff] }
 0x1e3   : > { %1462 = vst.msk [vmem:[#allocation2 + $0xa0] sm:$0xf] %vm303_vm0, %v1460_v6  ;;  %v5387_v30 = vld [vmem:[#allocation2 + $0x98] sm:$0xff] }
 0x1e4   : > { %1476 = vst.msk [vmem:[#allocation2 + $0xac] sm:$0xf] %vm303_vm0, %v1474_v8  ;;  %v1683_v10 = vpack.c.b16 %v1658_v9, %v1658_v9 }
 0x1e5   : > { %1731 = vmatpush.bf16.msra.mxu2 %v5379_v11 }
 0x1e6   : > { %v1712_v12 = vsel %vm725_vm1, %v1683_v10, 0  ;;  %v1238_v52 = vpop.f32.mrf.mxu3 }
 0x1e7   : > { %1968 = vrot.lane.b32.xlu2 %v6409_v41, %s5793_s24  ;;  %1964 = vrot.lane.b32.xlu1 %v6409_v41, %s5797_s12 }
 0x1e8   : > { %1972 = vrot.lane.b32.xlu0 %v6409_v41, %s5796_s8  ;;  %1760 = vmatpush.bf16.msra.mxu1 %v1712_v12 }
 0x1e9   : > { %v1816_v15 = vpop.permute.xlu2 %1815  ;;  %v1478_v16 = vpop.permute.xlu1 %1477  ;;  %1732 = vmatpush.bf16.msra.mxu2 %v6366_v13 }
 0x1ea   : > { %1818 = vst.msk [vmem:[#allocation2 + $0x18] sm:$0xf] %vm303_vm0, %v1816_v15  ;;  %v1486_v14 = vpop.permute.xlu0 %1485  ;;  %v5388_v46 = vld [vmem:[#allocation2 + $0xa0] sm:$0xff] }
 0x1eb   : > { %1480 = vst.msk [vmem:[#allocation2 + $0xb0] sm:$0xf] %vm303_vm0, %v1478_v16  ;;  %4775 = vmatmul.msk.bf16.vlgmr.msra.gmra.mxu1 %vm721_vm2, %v6525_v39  ;;  %v5389_v43 = vld [vmem:[#allocation2 + $0xa8] sm:$0xff] }
 0x1ec   : > { %1488 = vst.msk [vmem:[#allocation2 + $0xb8] sm:$0xf] %vm303_vm0, %v1486_v14 }
 0x1ed   : > { %1733 = vmatpush.bf16.msra.mxu2 %v5377_v17 }
 0x1ef   : > { %1980 = vrot.lane.b32.xlu2 %v6409_v41, %s5795_s28  ;;  %1976 = vrot.lane.b32.xlu1 %v6409_v41, %s5792_s23 }
 0x1f0   : > { %2282 = vrot.lane.b32.xlu0 %v6452_v58, %s5794_s20 }
 0x1f1   : > { %v1831_v13 = vpop.permute.xlu2 %1830  ;;  %v1490_v20 = vpop.permute.xlu1 %1489  ;;  %1734 = vmatpush.bf16.msra.mxu2 %v5376_v19  ;;  %v6502_v25 = vld [vmem:[#allocation2 + $0x18] sm:$0xff] }
 0x1f2   : > { %1833 = vst.msk [vmem:[#allocation2 + $0x28] sm:$0xf] %vm303_vm0, %v1831_v13  ;;  %v1796_v21 = vpop.permute.xlu0 %1795  ;;  %v5390_v38 = vld [vmem:[#allocation2 + $0xb0] sm:$0xff] }
 0x1f3   : > { %1492 = vst.msk [vmem:[#allocation2 + $0xbc] sm:$0xf] %vm303_vm0, %v1490_v20  ;;  %v6601_v20 = vld [vmem:[%s5941_s18 + $0x28] sm:$0xf] }
 0x1f4   : > { %1798 = vst.msk [vmem:[#allocation2 + $0x4] sm:$0xf] %vm303_vm0, %v1796_v21  ;;  %1735 = vmatmul.bf16.vlgmr.msra.gmra.mxu2 %v6509_v29 }
 0x1f5   : > { %2307 = vst.msk [vmem:[#allocation2 + $0x1c] sm:$0xf] %vm303_vm0, %v4883_v23 }
 0x1f6   : > { %2445 = vst.msk [vmem:[#allocation2 + $0xa8] sm:$0xf] %vm303_vm0, %v6601_v20 }
 0x1f7   : > { %2290 = vrot.lane.b32.xlu2 %v6452_v58, %s5793_s24  ;;  %2286 = vrot.lane.b32.xlu1 %v6452_v58, %s5797_s12 }
 0x1f8   : > { %2294 = vrot.lane.b32.xlu0 %v6452_v58, %s5796_s8 }
 0x1f9   : > { %v1843_v31 = vpop.permute.xlu2 %1842  ;;  %v1800_v32 = vpop.permute.xlu1 %1799 }
 0x1fa   : > { %1845 = vst.msk [vmem:[#allocation2 + $0x34] sm:$0xf] %vm303_vm0, %v1843_v31  ;;  %v1808_v33 = vpop.permute.xlu0 %1807  ;;  %v5391_v35 = vld [vmem:[#allocation2 + $0xb8] sm:$0xff] }
 0x1fb   : > { %1802 = vst.msk [vmem:[#allocation2 + $0x8] sm:$0xf] %vm303_vm0, %v1800_v32  ;;  %1740 = vmatpush.bf16.msra.mxu0 %v5391_v35 }
 0x1fc   : > { %1810 = vst.msk [vmem:[#allocation2 + $0x10] sm:$0xf] %vm303_vm0, %v1808_v33 }
 0x1ff   : > { %2302 = vrot.lane.b32.xlu2 %v6452_v58, %s5795_s28  ;;  %2298 = vrot.lane.b32.xlu1 %v6452_v58, %s5792_s23  ;;  %v6545_v51 = vpop.f32.mrf.mxu2  ;;  %v1552_v58 = vunpack.c.l.b16 %v1498_v36 }
 0x200   : > { %2309 = vrot.lane.b32.xlu0 %v4883_v23, %s5794_s20  ;;  %1741 = vmatpush.bf16.msra.mxu0 %v5390_v38  ;;  %v6537_v45 = vpop.f32.mrf.mxu0 }
 0x201   : > { %v1858_v40 = vpop.permute.xlu2 %1857  ;;  %v1812_v41 = vpop.permute.xlu1 %1811  ;;  %v6568_v0 = vpack.c.b16 %v1552_v58, %v1552_v58  ;;  %v1250_v9 = vadd.f32 %v6537_v45, %v6535_v44  ;;  %v4887_v44 = vld [vmem:[%s5941_s18 + $0x24] sm:$0xf] }
 0x202   : > { %1860 = vst.msk [vmem:[#allocation2 + $0x44] sm:$0xf] %vm303_vm0, %v1858_v40  ;;  %v1823_v42 = vpop.permute.xlu0 %1822  ;;  %v5394_v33 = vld [vmem:[#allocation2 + $0x8] sm:$0xff]  ;;  %v5393_v40 = vld [vmem:[#allocation2] sm:$0xff] }
 0x203   : > { %1814 = vst.msk [vmem:[#allocation2 + $0x14] sm:$0xf] %vm303_vm0, %v1812_v41 }
 0x204   : > { %1825 = vst.msk [vmem:[#allocation2 + $0x20] sm:$0xf] %vm303_vm0, %v1823_v42  ;;  %1742 = vmatpush.bf16.msra.mxu0 %v5389_v43 }
 0x207   : > { %2317 = vrot.lane.b32.xlu2 %v4883_v23, %s5793_s24  ;;  %2313 = vrot.lane.b32.xlu1 %v4883_v23, %s5797_s12  ;;  %v1277_v61 = vpop.f32.mrf.mxu2 }
 0x208   : > { %2321 = vrot.lane.b32.xlu0 %v4883_v23, %s5796_s8  ;;  %1743 = vmatpush.bf16.msra.mxu0 %v5388_v46  ;;  %v1251_v54 = vpop.f32.mrf.mxu0  ;;  %v6643_v46 = vld [vmem:[%s5941_s18 + $0x14] sm:$0xf] }
 0x209   : > { %v1870_v47 = vpop.permute.xlu2 %1869  ;;  %v1827_v48 = vpop.permute.xlu1 %1826  ;;  %2767 = vst.msk [vmem:[#allocation2] sm:$0xf] %vm303_vm0, %v6643_v46 }
 0x20a   : > { %1872 = vst.msk [vmem:[#allocation2 + $0x50] sm:$0xf] %vm303_vm0, %v1870_v47  ;;  %v1835_v50 = vpop.permute.xlu0 %1834  ;;  %v5395_v13 = vld [vmem:[#allocation2 + $0x10] sm:$0xff] }
 0x20b   : > { %1829 = vst.msk [vmem:[#allocation2 + $0x24] sm:$0xf] %vm303_vm0, %v1827_v48 }
 0x20c   : > { %1837 = vst.msk [vmem:[#allocation2 + $0x2c] sm:$0xf] %vm303_vm0, %v1835_v50  ;;  %1744 = vmatpush.bf16.msra.mxu0 %v5387_v30 }
 0x20f   : > { %2329 = vrot.lane.b32.xlu2 %v4883_v23, %s5795_s28  ;;  %2325 = vrot.lane.b32.xlu1 %v4883_v23, %s5792_s23 }
 0x210   : > { %2336 = vrot.lane.b32.xlu0 %v6491_v18, %s5794_s20  ;;  %1745 = vmatpush.bf16.msra.mxu0 %v5386_v55 }
 0x211   : > { %v1885_v34 = vpop.permute.xlu2 %1884  ;;  %v1839_v49 = vpop.permute.xlu1 %1838  ;;  %v6555_v60 = vld [vmem:[#allocation2 + $0x50] sm:$0xff] }
 0x212   : > { %1887 = vst.msk [vmem:[#allocation2 + $0x60] sm:$0xf] %vm303_vm0, %v1885_v34  ;;  %v1850_v56 = vpop.permute.xlu0 %1849  ;;  %v5397_v10 = vld [vmem:[#allocation2 + $0x20] sm:$0xff] }
 0x213   : > { %1841 = vst.msk [vmem:[#allocation2 + $0x30] sm:$0xf] %vm303_vm0, %v1839_v49  ;;  %v5398_v8 = vld [vmem:[#allocation2 + $0x28] sm:$0xff] }
 0x214   : > { %1852 = vst.msk [vmem:[#allocation2 + $0x3c] sm:$0xf] %vm303_vm0, %v1850_v56  ;;  %1746 = vmatpush.bf16.msra.mxu0 %v6448_v57 }
 0x215   : > { %2361 = vst.msk [vmem:[#allocation2 + $0x54] sm:$0xf] %vm303_vm0, %v4885_v59 }
 0x217   : > { %2344 = vrot.lane.b32.xlu2 %v6491_v18, %s5793_s24  ;;  %2340 = vrot.lane.b32.xlu1 %v6491_v18, %s5797_s12 }
 0x218   : > { %2348 = vrot.lane.b32.xlu0 %v6491_v18, %s5796_s8  ;;  %1747 = vmatpush.bf16.msra.mxu0 %v5384_v62 }
 0x219   : > { %v1897_v57 = vpop.permute.xlu2 %1896  ;;  %v1854_v1 = vpop.permute.xlu1 %1853 }
 0x21a   : > { %1899 = vst.msk [vmem:[#allocation2 + $0x6c] sm:$0xf] %vm303_vm0, %v1897_v57  ;;  %v1862_v2 = vpop.permute.xlu0 %1861  ;;  %v5399_v4 = vld [vmem:[#allocation2 + $0x30] sm:$0xff] }
 0x21b   : > { %1856 = vst.msk [vmem:[#allocation2 + $0x40] sm:$0xf] %vm303_vm0, %v1854_v1  ;;  %v5400_v3 = vld [vmem:[#allocation2 + $0x38] sm:$0xff]  ;;  %1748 = vmatmul.bf16.vlgmr.msra.gmra.mxu0 %v6568_v0 }
 0x21c   : > { %1864 = vst.msk [vmem:[#allocation2 + $0x48] sm:$0xf] %vm303_vm0, %v1862_v2  ;;  %2201 = vmatpush.bf16.msrb.mxu3 %v5400_v3 }
 0x21f   : > { %2356 = vrot.lane.b32.xlu2 %v6491_v18, %s5795_s28  ;;  %2352 = vrot.lane.b32.xlu1 %v6491_v18, %s5792_s23 }
 0x220   : > { %2363 = vrot.lane.b32.xlu0 %v4885_v59, %s5794_s20  ;;  %2202 = vmatpush.bf16.msrb.mxu3 %v5399_v4 }
 0x221   : > { %v1912_v5 = vpop.permute.xlu2 %1911  ;;  %v1866_v6 = vpop.permute.xlu1 %1865 }
 0x222   : > { %1914 = vst.msk [vmem:[#allocation2 + $0x7c] sm:$0xf] %vm303_vm0, %v1912_v5  ;;  %v1877_v7 = vpop.permute.xlu0 %1876  ;;  %v5401_v5 = vld [vmem:[#allocation2 + $0x40] sm:$0xff] }
 0x223   : > { %1868 = vst.msk [vmem:[#allocation2 + $0x4c] sm:$0xf] %vm303_vm0, %v1866_v6 }
 0x224   : > { %1879 = vst.msk [vmem:[#allocation2 + $0x58] sm:$0xf] %vm303_vm0, %v1877_v7  ;;  %2203 = vmatpush.bf16.msrb.mxu3 %v5398_v8  ;;  %v4989_v8 = vld [vmem:[%s5941_s18 + $0x18] sm:$0xf] }
 0x227   : > { %2371 = vrot.lane.b32.xlu2 %v4885_v59, %s5793_s24  ;;  %2367 = vrot.lane.b32.xlu1 %v4885_v59, %s5797_s12 }
 0x228   : > { %2375 = vrot.lane.b32.xlu0 %v4885_v59, %s5796_s8  ;;  %v1262_v11 = vpop.f32.mrf.mxu1  ;;  %2204 = vmatpush.bf16.msrb.mxu3 %v5397_v10 }
 0x229   : > { %v1263_v12 = vadd.f32 %v1262_v11, %v1250_v9  ;;  %v1924_v15 = vpop.permute.xlu2 %1923  ;;  %v1881_v16 = vpop.permute.xlu1 %1880 }
 0x22a   : > { %1926 = vst.msk [vmem:[#allocation2 + $0x88] sm:$0xf] %vm303_vm0, %v1924_v15  ;;  %v1889_v14 = vpop.permute.xlu0 %1888  ;;  %v5402_v4 = vld [vmem:[#allocation2 + $0x48] sm:$0xff] }
 0x22b   : > { %1883 = vst.msk [vmem:[#allocation2 + $0x5c] sm:$0xf] %vm303_vm0, %v1881_v16  ;;  %v1276_v17 = vadd.f32 %v6545_v51, %v1263_v12 }
 0x22c   : > { %1891 = vst.msk [vmem:[#allocation2 + $0x64] sm:$0xf] %vm303_vm0, %v1889_v14  ;;  %2205 = vmatpush.bf16.msrb.mxu3 %v6502_v25 }
 0x22d   : > { %v1279_v18 = vmul.f32 %v1276_v17, %v6162_v24 }
 0x22f   : > { %v1280_v19 = vadd.f32 %v1279_v18, %v6154_v22  ;;  %2383 = vrot.lane.b32.xlu2 %v4885_v59, %s5795_s28  ;;  %2379 = vrot.lane.b32.xlu1 %v4885_v59, %s5792_s23 }
 0x230   : > { %2390 = vrot.lane.b32.xlu0 %v6562_v63, %s5794_s20  ;;  %v1264_v21 = vpop.f32.mrf.mxu1  ;;  %2206 = vmatpush.bf16.msrb.mxu3 %v5395_v13 }
 0x231   : > { %v1281_v23 = vmax.f32 %v1280_v19, 0.0  ;;  %v1939_v53 = vpop.permute.xlu2 %1938  ;;  %v1893_v25 = vpop.permute.xlu1 %1892  ;;  %v6637_v45 = vld [vmem:[#allocation2 + $0x88] sm:$0xff] }
 0x232   : > { %1941 = vst.msk [vmem:[#allocation2 + $0x98] sm:$0xf] %vm303_vm0, %v1939_v53  ;;  %v1904_v26 = vpop.permute.xlu0 %1903 }
 0x233   : > { %v1283_v27 = vrot.slane %v1281_v23, 1  ;;  %v1284_v31 = vrot.slane %v1281_v23, 2  ;;  %v1285_v32 = vrot.slane %v1281_v23, 3  ;;  %1297 = vst.msk [vmem:[%s6413_s6 + $0x1] sm:$0x1] %vm809_vm3, %v1281_v23  ;;  %v1286_v35 = vrot.slane %v1281_v23, 4 }
 0x234   : > { %1895 = vst.msk [vmem:[#allocation2 + $0x68] sm:$0xf] %vm303_vm0, %v1893_v25  ;;  %v1287_v36 = vrot.slane %v1281_v23, 5  ;;  %2207 = vmatpush.bf16.msrb.mxu3 %v5394_v33  ;;  %v1288_v37 = vrot.slane %v1281_v23, 6  ;;  %v1289_v38 = vrot.slane %v1281_v23, 7  ;;  %v5405_v34 = vld [vmem:[#allocation2 + $0x60] sm:$0xff] }
 0x235   : > { %1298 = vst.msk [vmem:[%s6413_s6 + $0x9] sm:$0x1] %vm809_vm3, %v1283_v27 }
 0x236   : > { %1299 = vst.msk [vmem:[%s6413_s6 + $0x11] sm:$0x1] %vm809_vm3, %v1284_v31 }
 0x237   : > { %1300 = vst.msk [vmem:[%s6413_s6 + $0x19] sm:$0x1] %vm809_vm3, %v1285_v32  ;;  %2398 = vrot.lane.b32.xlu2 %v6562_v63, %s5793_s24  ;;  %2394 = vrot.lane.b32.xlu1 %v6562_v63, %s5797_s12 }
 0x238   : > { %1301 = vst.msk [vmem:[%s6413_s6 + $0x21] sm:$0x1] %vm809_vm3, %v1286_v35  ;;  %2402 = vrot.lane.b32.xlu0 %v6562_v63, %s5796_s8  ;;  %2208 = vmatpush.bf16.msrb.mxu3 %v5393_v40  ;;  %v4991_v35 = vld [vmem:[%s5941_s18 + $0x20] sm:$0xf] }
 0x239   : > { %1302 = vst.msk [vmem:[%s6413_s6 + $0x29] sm:$0x1] %vm809_vm3, %v1287_v36  ;;  %v1951_v41 = vpop.permute.xlu2 %1950  ;;  %v1908_v42 = vpop.permute.xlu1 %1907 }
 0x23a   : > { %1303 = vst.msk [vmem:[%s6413_s6 + $0x31] sm:$0x1] %vm809_vm3, %v1288_v37  ;;  %v1916_v43 = vpop.permute.xlu0 %1915 }
 0x23b   : > { %1304 = vst.msk [vmem:[%s6413_s6 + $0x39] sm:$0x1] %vm809_vm3, %v1289_v38  ;;  %2209 = vmatmul.bf16.vlgmr.msrb.gmra.mxu3 %v6507_v28  ;;  %v5406_v55 = vld [vmem:[#allocation2 + $0x68] sm:$0xff] }
 0x23c   : > { %1906 = vst.msk [vmem:[#allocation2 + $0x74] sm:$0xf] %vm303_vm0, %v1904_v26 }
 0x23d   : > { %1953 = vst.msk [vmem:[#allocation2 + $0xa4] sm:$0xf] %vm303_vm0, %v1951_v41 }
 0x23e   : > { %1910 = vst.msk [vmem:[#allocation2 + $0x78] sm:$0xf] %vm303_vm0, %v1908_v42  ;;  %v6734_v42 = vld [vmem:[%s5941_s18 + $0x24] sm:$0xf] }
 0x23f   : > { %1918 = vst.msk [vmem:[#allocation2 + $0x80] sm:$0xf] %vm303_vm0, %v1916_v43  ;;  %2410 = vrot.lane.b32.xlu2 %v6562_v63, %s5795_s28  ;;  %2406 = vrot.lane.b32.xlu1 %v6562_v63, %s5792_s23  ;;  %v5404_v63 = vld [vmem:[#allocation2 + $0x58] sm:$0xff] }
 0x240   : > { %2417 = vrot.lane.b32.xlu0 %v4887_v44, %s5794_s20  ;;  %2415 = vst.msk [vmem:[#allocation2 + $0x8c] sm:$0xf] %vm303_vm0, %v4887_v44 }
 0x241   : > { %v1969_v28 = vpop.permute.xlu2 %1968  ;;  %v1920_v47 = vpop.permute.xlu1 %1919 }
 0x242   : > { %1971 = vst.msk [vmem:[#allocation2 + $0xb4] sm:$0xf] %vm303_vm0, %v1969_v28  ;;  %v1931_v48 = vpop.permute.xlu0 %1930 }
 0x243   : > { %1922 = vst.msk [vmem:[#allocation2 + $0x84] sm:$0xf] %vm303_vm0, %v1920_v47  ;;  %v5407_v30 = vld [vmem:[#allocation2 + $0x70] sm:$0xff] }
 0x244   : > { %1933 = vst.msk [vmem:[#allocation2 + $0x90] sm:$0xf] %vm303_vm0, %v1931_v48 }
 0x245   : > { %v5408_v50 = vld [vmem:[#allocation2 + $0x78] sm:$0xff]  ;;  %2875 = vst.msk [vmem:[#allocation2 + $0x70] sm:$0xf] %vm303_vm0, %v6734_v42 }
 0x246   : > { %2214 = vmatpush.bf16.msrb.mxu1 %v5408_v50 }
 0x247   : > { %2425 = vrot.lane.b32.xlu2 %v4887_v44, %s5793_s24  ;;  %2421 = vrot.lane.b32.xlu1 %v4887_v44, %s5797_s12 }
 0x248   : > { %2429 = vrot.lane.b32.xlu0 %v4887_v44, %s5796_s8 }
 0x249   : > { %v1981_v51 = vpop.permute.xlu2 %1980  ;;  %v1935_v52 = vpop.permute.xlu1 %1934 }
 0x24a   : > { %1983 = vst.msk [vmem:[#allocation2 + $0xc0] sm:$0xf] %vm303_vm0, %v1981_v51  ;;  %v1943_v54 = vpop.permute.xlu0 %1942  ;;  %2215 = vmatpush.bf16.msrb.mxu1 %v5407_v30  ;;  %v5409_v41 = vld [vmem:[#allocation2 + $0x80] sm:$0xff] }
 0x24b   : > { %1937 = vst.msk [vmem:[#allocation2 + $0x94] sm:$0xf] %vm303_vm0, %v1935_v52 }
 0x24c   : > { %1945 = vst.msk [vmem:[#allocation2 + $0x9c] sm:$0xf] %vm303_vm0, %v1943_v54 }
 0x24e   : > { %2216 = vmatpush.bf16.msrb.mxu1 %v5406_v55  ;;  %v1723_v53 = vpop.f32.mrf.mxu3 }
 0x24f   : > { %2437 = vrot.lane.b32.xlu2 %v4887_v44, %s5795_s28  ;;  %2433 = vrot.lane.b32.xlu1 %v4887_v44, %s5792_s23 }
 0x250   : > { %2447 = vrot.lane.b32.xlu0 %v6601_v20, %s5794_s20 }
 0x251   : > { %v2291_v49 = vpop.permute.xlu2 %2290  ;;  %v2034_v56 = vld [vmem:[#allocation2 + $0xc0] sm:$0xf]  ;;  %v1947_v58 = vpop.permute.xlu1 %1946 }
 0x252   : > { %2293 = vst.msk [vmem:[#allocation2 + $0xc] sm:$0xf] %vm303_vm0, %v2291_v49  ;;  %v1961_v59 = vpop.permute.xlu0 %1960  ;;  %v2145_v61 = vunpack.c.l.b16 %v2034_v56  ;;  %2217 = vmatpush.bf16.msrb.mxu1 %v5405_v34  ;;  %v5411_v27 = vld [vmem:[#allocation2 + $0x90] sm:$0xff] }
 0x253   : > { %1949 = vst.msk [vmem:[#allocation2 + $0xa0] sm:$0xf] %vm303_vm0, %v1947_v58  ;;  %v5412_v23 = vld [vmem:[#allocation2 + $0x98] sm:$0xff] }
 0x254   : > { %1963 = vst.msk [vmem:[#allocation2 + $0xac] sm:$0xf] %vm303_vm0, %v1961_v59  ;;  %v2170_v62 = vpack.c.b16 %v2145_v61, %v2145_v61 }
 0x256   : > { %v2199_v57 = vsel %vm725_vm1, %v2170_v62, 0  ;;  %2218 = vmatpush.bf16.msrb.mxu1 %v5404_v63  ;;  %v1725_v37 = vpop.f32.mrf.mxu3  ;;  %v6768_v62 = vld [vmem:[%s5941_s18 + $0x2c] sm:$0xf] }
 0x257   : > { %2455 = vrot.lane.b32.xlu2 %v6601_v20, %s5793_s24  ;;  %2451 = vrot.lane.b32.xlu1 %v6601_v20, %s5797_s12 }
 0x258   : > { %2459 = vrot.lane.b32.xlu0 %v6601_v20, %s5796_s8  ;;  %2247 = vmatpush.bf16.msrb.mxu0 %v2199_v57 }
 0x259   : > { %v2303_v1 = vpop.permute.xlu2 %2302  ;;  %v1965_v2 = vpop.permute.xlu1 %1964 }
 0x25a   : > { %2305 = vst.msk [vmem:[#allocation2 + $0x18] sm:$0xf] %vm303_vm0, %v2303_v1  ;;  %v1973_v3 = vpop.permute.xlu0 %1972  ;;  %2219 = vmatpush.bf16.msrb.mxu1 %v6555_v60  ;;  %v6684_v60 = vld [vmem:[%s5941_s18 + $0x1c] sm:$0xf]  ;;  %v5413_v19 = vld [vmem:[#allocation2 + $0xa0] sm:$0xff] }
 0x25b   : > { %1967 = vst.msk [vmem:[#allocation2 + $0xb0] sm:$0xf] %vm303_vm0, %v1965_v2  ;;  %4881 = vmatmul.msk.bf16.vlgmr.msrb.gmra.mxu0 %vm721_vm2, %v6525_v39  ;;  %v5414_v18 = vld [vmem:[#allocation2 + $0xa8] sm:$0xff] }
 0x25c   : > { %1975 = vst.msk [vmem:[#allocation2 + $0xb8] sm:$0xf] %vm303_vm0, %v1973_v3 }
 0x25d   : > { %2821 = vst.msk [vmem:[#allocation2 + $0x38] sm:$0xf] %vm303_vm0, %v6684_v60 }
 0x25e   : > { %2220 = vmatpush.bf16.msrb.mxu1 %v5402_v4  ;;  %2932 = vst.msk [vmem:[#allocation2 + $0xa8] sm:$0xf] %vm303_vm0, %v6768_v62 }
 0x25f   : > { %2467 = vrot.lane.b32.xlu2 %v6601_v20, %s5795_s28  ;;  %2463 = vrot.lane.b32.xlu1 %v6601_v20, %s5792_s23 }
 0x260   : > { %2769 = vrot.lane.b32.xlu0 %v6643_v46, %s5794_s20 }
 0x261   : > { %v2318_v6 = vpop.permute.xlu2 %2317  ;;  %v1977_v39 = vpop.permute.xlu1 %1976  ;;  %v6692_v9 = vld [vmem:[#allocation2 + $0x18] sm:$0xff] }
 0x262   : > { %2320 = vst.msk [vmem:[#allocation2 + $0x28] sm:$0xf] %vm303_vm0, %v2318_v6  ;;  %v2283_v7 = vpop.permute.xlu0 %2282  ;;  %2221 = vmatpush.bf16.msrb.mxu1 %v5401_v5 }
 0x263   : > { %1979 = vst.msk [vmem:[#allocation2 + $0xbc] sm:$0xf] %vm303_vm0, %v1977_v39 }
 0x264   : > { %2285 = vst.msk [vmem:[#allocation2 + $0x4] sm:$0xf] %vm303_vm0, %v2283_v7 }
 0x265   : > { %2794 = vst.msk [vmem:[#allocation2 + $0x1c] sm:$0xf] %vm303_vm0, %v4989_v8  ;;  %2222 = vmatmul.bf16.vlgmr.msrb.gmra.mxu1 %v6509_v29  ;;  %v5415_v29 = vld [vmem:[#allocation2 + $0xb0] sm:$0xff] }
 0x267   : > { %2777 = vrot.lane.b32.xlu2 %v6643_v46, %s5793_s24  ;;  %2773 = vrot.lane.b32.xlu1 %v6643_v46, %s5797_s12 }
 0x268   : > { %2781 = vrot.lane.b32.xlu0 %v6643_v46, %s5796_s8  ;;  %v1762_v26 = vpop.f32.mrf.mxu1 }
 0x269   : > { %v2330_v10 = vpop.permute.xlu2 %2329  ;;  %v2287_v11 = vpop.permute.xlu1 %2286 }
 0x26a   : > { %2332 = vst.msk [vmem:[#allocation2 + $0x34] sm:$0xf] %vm303_vm0, %v2330_v10  ;;  %v2295_v12 = vpop.permute.xlu0 %2294  ;;  %v5416_v15 = vld [vmem:[#allocation2 + $0xb8] sm:$0xff] }
 0x26b   : > { %2289 = vst.msk [vmem:[#allocation2 + $0x8] sm:$0xf] %vm303_vm0, %v2287_v11  ;;  %2227 = vmatpush.bf16.msrb.mxu2 %v5416_v15 }
 0x26c   : > { %2297 = vst.msk [vmem:[#allocation2 + $0x10] sm:$0xf] %vm303_vm0, %v2295_v12 }
 0x26f   : > { %2789 = vrot.lane.b32.xlu2 %v6643_v46, %s5795_s28  ;;  %2785 = vrot.lane.b32.xlu1 %v6643_v46, %s5792_s23 }
 0x270   : > { %2796 = vrot.lane.b32.xlu0 %v4989_v8, %s5794_s20  ;;  %2228 = vmatpush.bf16.msrb.mxu2 %v5415_v29  ;;  %v1764_v40 = vpop.f32.mrf.mxu1  ;;  %v4993_v29 = vld [vmem:[%s5941_s18 + $0x28] sm:$0xf] }
 0x271   : > { %v2345_v16 = vpop.permute.xlu2 %2344  ;;  %v2299_v14 = vpop.permute.xlu1 %2298 }
 0x272   : > { %2347 = vst.msk [vmem:[#allocation2 + $0x44] sm:$0xf] %vm303_vm0, %v2345_v16  ;;  %v2310_v17 = vpop.permute.xlu0 %2309  ;;  %v5419_v4 = vld [vmem:[#allocation2 + $0x8] sm:$0xff] }
 0x273   : > { %2301 = vst.msk [vmem:[#allocation2 + $0x14] sm:$0xf] %vm303_vm0, %v2299_v14  ;;  %v6809_v14 = vld [vmem:[%s5941_s18 + $0x18] sm:$0xf] }
 0x274   : > { %2312 = vst.msk [vmem:[#allocation2 + $0x20] sm:$0xf] %vm303_vm0, %v2310_v17  ;;  %2229 = vmatpush.bf16.msrb.mxu2 %v5414_v18 }
 0x277   : > { %2804 = vrot.lane.b32.xlu2 %v4989_v8, %s5793_s24  ;;  %2800 = vrot.lane.b32.xlu1 %v4989_v8, %s5797_s12  ;;  %v1736_v25 = vpop.f32.mrf.mxu2 }
 0x278   : > { %2808 = vrot.lane.b32.xlu0 %v4989_v8, %s5796_s8  ;;  %2230 = vmatpush.bf16.msrb.mxu2 %v5413_v19 }
 0x279   : > { %v2357_v13 = vpop.permute.xlu2 %2356  ;;  %v2314_v20 = vpop.permute.xlu1 %2313 }
 0x27a   : > { %2359 = vst.msk [vmem:[#allocation2 + $0x50] sm:$0xf] %vm303_vm0, %v2357_v13  ;;  %v2322_v21 = vpop.permute.xlu0 %2321  ;;  %v5420_v59 = vld [vmem:[#allocation2 + $0x10] sm:$0xff] }
 0x27b   : > { %2316 = vst.msk [vmem:[#allocation2 + $0x24] sm:$0xf] %vm303_vm0, %v2314_v20 }
 0x27c   : > { %2324 = vst.msk [vmem:[#allocation2 + $0x2c] sm:$0xf] %vm303_vm0, %v2322_v21  ;;  %2231 = vmatpush.bf16.msrb.mxu2 %v5412_v23 }
 0x27f   : > { %2816 = vrot.lane.b32.xlu2 %v4989_v8, %s5795_s28  ;;  %2812 = vrot.lane.b32.xlu1 %v4989_v8, %s5792_s23  ;;  %v1738_v38 = vpop.f32.mrf.mxu2 }
 0x280   : > { %2823 = vrot.lane.b32.xlu0 %v6684_v60, %s5794_s20  ;;  %2232 = vmatpush.bf16.msrb.mxu2 %v5411_v27  ;;  %v6833_v27 = vld [vmem:[%s5941_s18 + $0x30] sm:$0xf] }
 0x281   : > { %v2372_v31 = vpop.permute.xlu2 %2371  ;;  %v2326_v32 = vpop.permute.xlu1 %2325  ;;  %v6727_v36 = vld [vmem:[#allocation2 + $0x50] sm:$0xff]  ;;  %3419 = vst.msk [vmem:[#allocation2 + $0xa8] sm:$0xf] %vm303_vm0, %v6833_v27 }
 0x282   : > { %2374 = vst.msk [vmem:[#allocation2 + $0x60] sm:$0xf] %vm303_vm0, %v2372_v31  ;;  %v2337_v33 = vpop.permute.xlu0 %2336  ;;  %v5422_v51 = vld [vmem:[#allocation2 + $0x20] sm:$0xff] }
 0x283   : > { %2328 = vst.msk [vmem:[#allocation2 + $0x30] sm:$0xf] %vm303_vm0, %v2326_v32  ;;  %v5423_v30 = vld [vmem:[#allocation2 + $0x28] sm:$0xff] }
 0x284   : > { %2339 = vst.msk [vmem:[#allocation2 + $0x3c] sm:$0xf] %vm303_vm0, %v2337_v33  ;;  %2233 = vmatpush.bf16.msrb.mxu2 %v6637_v45 }
 0x285   : > { %2848 = vst.msk [vmem:[#allocation2 + $0x54] sm:$0xf] %vm303_vm0, %v4991_v35 }
 0x287   : > { %2831 = vrot.lane.b32.xlu2 %v6684_v60, %s5793_s24  ;;  %2827 = vrot.lane.b32.xlu1 %v6684_v60, %s5797_s12 }
 0x288   : > { %2835 = vrot.lane.b32.xlu0 %v6684_v60, %s5796_s8  ;;  %2234 = vmatpush.bf16.msrb.mxu2 %v5409_v41 }
 0x289   : > { %v2384_v43 = vpop.permute.xlu2 %2383  ;;  %v2341_v44 = vpop.permute.xlu1 %2340 }
 0x28a   : > { %2386 = vst.msk [vmem:[#allocation2 + $0x6c] sm:$0xf] %vm303_vm0, %v2384_v43  ;;  %v2349_v45 = vpop.permute.xlu0 %2348  ;;  %v5424_v28 = vld [vmem:[#allocation2 + $0x30] sm:$0xff] }
 0x28b   : > { %2343 = vst.msk [vmem:[#allocation2 + $0x40] sm:$0xf] %vm303_vm0, %v2341_v44  ;;  %v5425_v46 = vld [vmem:[#allocation2 + $0x38] sm:$0xff]  ;;  %2235 = vmatmul.bf16.vlgmr.msrb.gmra.mxu2 %v6568_v0  ;;  %v1737_v0 = vadd.f32 %v1736_v25, %v1723_v53  ;;  %v6824_v25 = vld [vmem:[%s5941_s18 + $0x28] sm:$0xf] }
 0x28c   : > { %2351 = vst.msk [vmem:[#allocation2 + $0x48] sm:$0xf] %vm303_vm0, %v2349_v45  ;;  %2688 = vmatpush.bf16.msra.mxu3 %v5425_v46 }
 0x28f   : > { %2843 = vrot.lane.b32.xlu2 %v6684_v60, %s5795_s28  ;;  %2839 = vrot.lane.b32.xlu1 %v6684_v60, %s5792_s23 }
 0x290   : > { %2850 = vrot.lane.b32.xlu0 %v4991_v35, %s5794_s20  ;;  %2689 = vmatpush.bf16.msra.mxu3 %v5424_v28 }
 0x291   : > { %v2399_v47 = vpop.permute.xlu2 %2398  ;;  %v2353_v48 = vpop.permute.xlu1 %2352 }
 0x292   : > { %2401 = vst.msk [vmem:[#allocation2 + $0x7c] sm:$0xf] %vm303_vm0, %v2399_v47  ;;  %v2364_v50 = vpop.permute.xlu0 %2363  ;;  %v5426_v47 = vld [vmem:[#allocation2 + $0x40] sm:$0xff] }
 0x293   : > { %2355 = vst.msk [vmem:[#allocation2 + $0x4c] sm:$0xf] %vm303_vm0, %v2353_v48 }
 0x294   : > { %2366 = vst.msk [vmem:[#allocation2 + $0x58] sm:$0xf] %vm303_vm0, %v2364_v50  ;;  %2690 = vmatpush.bf16.msra.mxu3 %v5423_v30  ;;  %v6866_v30 = vld [vmem:[%s5941_s18 + $0x1c] sm:$0xf] }
 0x297   : > { %2858 = vrot.lane.b32.xlu2 %v4991_v35, %s5793_s24  ;;  %2854 = vrot.lane.b32.xlu1 %v4991_v35, %s5797_s12 }
 0x298   : > { %2862 = vrot.lane.b32.xlu0 %v4991_v35, %s5796_s8  ;;  %v1749_v52 = vpop.f32.mrf.mxu0  ;;  %2691 = vmatpush.bf16.msra.mxu3 %v5422_v51 }
 0x299   : > { %v2411_v54 = vpop.permute.xlu2 %2410  ;;  %v1750_v55 = vadd.f32 %v1749_v52, %v1737_v0  ;;  %v2368_v34 = vpop.permute.xlu1 %2367  ;;  %v2471_v0 = vld [vmem:[%s7429_s1] sm:$0xff] }
 0x29a   : > { %2413 = vst.msk [vmem:[#allocation2 + $0x88] sm:$0xf] %vm303_vm0, %v2411_v54  ;;  %v2376_v49 = vpop.permute.xlu0 %2375  ;;  %v5427_v28 = vld [vmem:[#allocation2 + $0x48] sm:$0xff]  ;;  %v2524_v52 = vunpack.c.l.b16 %v2471_v0 }
 0x29b   : > { %2370 = vst.msk [vmem:[#allocation2 + $0x5c] sm:$0xf] %vm303_vm0, %v2368_v34  ;;  %v1763_v56 = vadd.f32 %v1762_v26, %v1750_v55  ;;  %v6886_v55 = vld [vmem:[%s7429_s1 + $0x8] sm:$0xff] }
 0x29c   : > { %2378 = vst.msk [vmem:[#allocation2 + $0x64] sm:$0xf] %vm303_vm0, %v2376_v49  ;;  %2692 = vmatpush.bf16.msra.mxu3 %v6692_v9  ;;  %v5418_v9 = vld [vmem:[#allocation2] sm:$0xff]  ;;  %v6877_v54 = vpack.c.b16 %v2524_v52, %v2524_v52  ;;  %v2527_v49 = vunpack.c.h.b16 %v6886_v55 }
 0x29d   : > { %v1766_v58 = vmul.f32 %v1763_v56, %v6162_v24  ;;  %3254 = vst.msk [vmem:[#allocation2] sm:$0xf] %vm303_vm0, %v6809_v14 }
 0x29f   : > { %2870 = vrot.lane.b32.xlu2 %v4991_v35, %s5795_s28  ;;  %v1767_v61 = vadd.f32 %v1766_v58, %v6154_v22  ;;  %2866 = vrot.lane.b32.xlu1 %v4991_v35, %s5792_s23 }
 0x2a0   : > { %2877 = vrot.lane.b32.xlu0 %v6734_v42, %s5794_s20  ;;  %2693 = vmatpush.bf16.msra.mxu3 %v5420_v59  ;;  %v1751_v57 = vpop.f32.mrf.mxu0 }
 0x2a1   : > { %v2426_v63 = vpop.permute.xlu2 %2425  ;;  %v1768_v1 = vmax.f32 %v1767_v61, 0.0  ;;  %v2380_v2 = vpop.permute.xlu1 %2379  ;;  %v6803_v16 = vld [vmem:[#allocation2 + $0x88] sm:$0xff]  ;;  %v6892_v61 = vpack.c.b16 %v2527_v49, %v2527_v49 }
 0x2a2   : > { %2428 = vst.msk [vmem:[#allocation2 + $0x98] sm:$0xf] %vm303_vm0, %v2426_v63  ;;  %v2391_v3 = vpop.permute.xlu0 %2390  ;;  %v5429_v41 = vld [vmem:[#allocation2 + $0x58] sm:$0xff] }
 0x2a3   : > { %2382 = vst.msk [vmem:[#allocation2 + $0x68] sm:$0xf] %vm303_vm0, %v2380_v2  ;;  %v1770_v60 = vrot.slane %v1768_v1, 1  ;;  %v1771_v5 = vrot.slane %v1768_v1, 2  ;;  %v1772_v6 = vrot.slane %v1768_v1, 3  ;;  %v1773_v39 = vrot.slane %v1768_v1, 4 }
 0x2a4   : > { %1784 = vst.msk [vmem:[%s6413_s6 + $0x2] sm:$0x1] %vm809_vm3, %v1768_v1  ;;  %2694 = vmatpush.bf16.msra.mxu3 %v5419_v4  ;;  %v1774_v7 = vrot.slane %v1768_v1, 5  ;;  %v1775_v8 = vrot.slane %v1768_v1, 6  ;;  %v1776_v10 = vrot.slane %v1768_v1, 7  ;;  %v5430_v31 = vld [vmem:[#allocation2 + $0x60] sm:$0xff] }
 0x2a5   : > { %2393 = vst.msk [vmem:[#allocation2 + $0x74] sm:$0xf] %vm303_vm0, %v2391_v3 }
 0x2a6   : > { %1785 = vst.msk [vmem:[%s6413_s6 + $0xa] sm:$0x1] %vm809_vm3, %v1770_v60 }
 0x2a7   : > { %1786 = vst.msk [vmem:[%s6413_s6 + $0x12] sm:$0x1] %vm809_vm3, %v1771_v5  ;;  %2885 = vrot.lane.b32.xlu2 %v6734_v42, %s5793_s24  ;;  %2881 = vrot.lane.b32.xlu1 %v6734_v42, %s5797_s12 }
 0x2a8   : > { %1787 = vst.msk [vmem:[%s6413_s6 + $0x1a] sm:$0x1] %vm809_vm3, %v1772_v6  ;;  %2889 = vrot.lane.b32.xlu0 %v6734_v42, %s5796_s8  ;;  %2695 = vmatpush.bf16.msra.mxu3 %v5418_v9 }
 0x2a9   : > { %1788 = vst.msk [vmem:[%s6413_s6 + $0x22] sm:$0x1] %vm809_vm3, %v1773_v39  ;;  %v2438_v11 = vpop.permute.xlu2 %2437  ;;  %v2395_v12 = vpop.permute.xlu1 %2394 }
 0x2aa   : > { %1789 = vst.msk [vmem:[%s6413_s6 + $0x2a] sm:$0x1] %vm809_vm3, %v1774_v7  ;;  %v2403_v15 = vpop.permute.xlu0 %2402  ;;  %v5431_v26 = vld [vmem:[#allocation2 + $0x68] sm:$0xff] }
 0x2ab   : > { %1790 = vst.msk [vmem:[%s6413_s6 + $0x32] sm:$0x1] %vm809_vm3, %v1775_v8  ;;  %2696 = vmatmul.bf16.vlgmr.msra.gmra.mxu3 %v6877_v54 }
 0x2ac   : > { %1791 = vst.msk [vmem:[%s6413_s6 + $0x3a] sm:$0x1] %vm809_vm3, %v1776_v10  ;;  %v5432_v20 = vld [vmem:[#allocation2 + $0x70] sm:$0xff] }
 0x2ad   : > { %2440 = vst.msk [vmem:[#allocation2 + $0xa4] sm:$0xf] %vm303_vm0, %v2438_v11 }
 0x2ae   : > { %2397 = vst.msk [vmem:[#allocation2 + $0x78] sm:$0xf] %vm303_vm0, %v2395_v12 }
 0x2af   : > { %2405 = vst.msk [vmem:[#allocation2 + $0x80] sm:$0xf] %vm303_vm0, %v2403_v15  ;;  %2897 = vrot.lane.b32.xlu2 %v6734_v42, %s5795_s28  ;;  %2893 = vrot.lane.b32.xlu1 %v6734_v42, %s5792_s23  ;;  %v6841_v42 = vld [vmem:[%s5941_s18 + $0x20] sm:$0xf] }
 0x2b0   : > { %2904 = vrot.lane.b32.xlu0 %v4993_v29, %s5794_s20  ;;  %2902 = vst.msk [vmem:[#allocation2 + $0x8c] sm:$0xf] %vm303_vm0, %v4993_v29 }
 0x2b1   : > { %v2456_v17 = vpop.permute.xlu2 %2455  ;;  %v2407_v18 = vpop.permute.xlu1 %2406  ;;  %3362 = vst.msk [vmem:[#allocation2 + $0x70] sm:$0xf] %vm303_vm0, %v6824_v25 }
 0x2b2   : > { %2458 = vst.msk [vmem:[#allocation2 + $0xb4] sm:$0xf] %vm303_vm0, %v2456_v17  ;;  %v2418_v19 = vpop.permute.xlu0 %2417  ;;  %v6934_v17 = vld [vmem:[%s5941_s18 + $0x24] sm:$0xf] }
 0x2b3   : > { %2409 = vst.msk [vmem:[#allocation2 + $0x84] sm:$0xf] %vm303_vm0, %v2407_v18  ;;  %v2526_v18 = vunpack.c.l.b16 %v6886_v55 }
 0x2b4   : > { %2420 = vst.msk [vmem:[#allocation2 + $0x90] sm:$0xf] %vm303_vm0, %v2418_v19 }
 0x2b5   : > { %v5433_v13 = vld [vmem:[#allocation2 + $0x78] sm:$0xff]  ;;  %3308 = vst.msk [vmem:[#allocation2 + $0x38] sm:$0xf] %vm303_vm0, %v6841_v42 }
 0x2b6   : > { %2701 = vmatpush.bf16.msra.mxu0 %v5433_v13 }
 0x2b7   : > { %2912 = vrot.lane.b32.xlu2 %v4993_v29, %s5793_s24  ;;  %2908 = vrot.lane.b32.xlu1 %v4993_v29, %s5797_s12 }
 0x2b8   : > { %2916 = vrot.lane.b32.xlu0 %v4993_v29, %s5796_s8 }
 0x2b9   : > { %v2468_v21 = vpop.permute.xlu2 %2467  ;;  %v2422_v23 = vpop.permute.xlu1 %2421 }
 0x2ba   : > { %2470 = vst.msk [vmem:[#allocation2 + $0xc0] sm:$0xf] %vm303_vm0, %v2468_v21  ;;  %v2430_v53 = vpop.permute.xlu0 %2429  ;;  %2702 = vmatpush.bf16.msra.mxu0 %v5432_v20  ;;  %v5434_v21 = vld [vmem:[#allocation2 + $0x80] sm:$0xff] }
 0x2bb   : > { %2424 = vst.msk [vmem:[#allocation2 + $0x94] sm:$0xf] %vm303_vm0, %v2422_v23  ;;  %v6948_v23 = vpack.c.b16 %v2526_v18, %v2526_v18 }
 0x2bc   : > { %2432 = vst.msk [vmem:[#allocation2 + $0x9c] sm:$0xf] %vm303_vm0, %v2430_v53 }
 0x2be   : > { %2703 = vmatpush.bf16.msra.mxu0 %v5431_v26  ;;  %v6918_v8 = vpop.f32.mrf.mxu3 }
 0x2bf   : > { %2924 = vrot.lane.b32.xlu2 %v4993_v29, %s5795_s28  ;;  %2920 = vrot.lane.b32.xlu1 %v4993_v29, %s5792_s23 }
 0x2c0   : > { %2934 = vrot.lane.b32.xlu0 %v6768_v62, %s5794_s20 }
 0x2c1   : > { %v2778_v32 = vpop.permute.xlu2 %2777  ;;  %v2521_v33 = vld [vmem:[#allocation2 + $0xc0] sm:$0xf]  ;;  %v2434_v35 = vpop.permute.xlu1 %2433 }
 0x2c2   : > { %2780 = vst.msk [vmem:[#allocation2 + $0xc] sm:$0xf] %vm303_vm0, %v2778_v32  ;;  %v2448_v37 = vpop.permute.xlu0 %2447  ;;  %v2632_v38 = vunpack.c.l.b16 %v2521_v33  ;;  %2704 = vmatpush.bf16.msra.mxu0 %v5430_v31  ;;  %v5436_v10 = vld [vmem:[#allocation2 + $0x90] sm:$0xff] }
 0x2c3   : > { %2436 = vst.msk [vmem:[#allocation2 + $0xa0] sm:$0xf] %vm303_vm0, %v2434_v35  ;;  %v5437_v7 = vld [vmem:[#allocation2 + $0x98] sm:$0xff]  ;;  %v6957_v35 = vld [vmem:[%s5941_s18 + $0x34] sm:$0xf] }
 0x2c4   : > { %2450 = vst.msk [vmem:[#allocation2 + $0xac] sm:$0xf] %vm303_vm0, %v2448_v37  ;;  %v2657_v40 = vpack.c.b16 %v2632_v38, %v2632_v38 }
 0x2c6   : > { %v2686_v43 = vsel %vm725_vm1, %v2657_v40, 0  ;;  %2705 = vmatpush.bf16.msra.mxu0 %v5429_v41  ;;  %v2212_v13 = vpop.f32.mrf.mxu3 }
 0x2c7   : > { %2942 = vrot.lane.b32.xlu2 %v6768_v62, %s5793_s24  ;;  %2938 = vrot.lane.b32.xlu1 %v6768_v62, %s5797_s12 }
 0x2c8   : > { %2946 = vrot.lane.b32.xlu0 %v6768_v62, %s5796_s8  ;;  %2734 = vmatpush.bf16.msra.mxu2 %v2686_v43  ;;  %v6969_v43 = vld [vmem:[%s5941_s18 + $0x2c] sm:$0xf] }
 0x2c9   : > { %v2790_v44 = vpop.permute.xlu2 %2789  ;;  %v2452_v45 = vpop.permute.xlu1 %2451 }
 0x2ca   : > { %2792 = vst.msk [vmem:[#allocation2 + $0x18] sm:$0xf] %vm303_vm0, %v2790_v44  ;;  %v2460_v46 = vpop.permute.xlu0 %2459  ;;  %2706 = vmatpush.bf16.msra.mxu0 %v6727_v36  ;;  %v5438_v60 = vld [vmem:[#allocation2 + $0xa0] sm:$0xff] }
 0x2cb   : > { %2454 = vst.msk [vmem:[#allocation2 + $0xb0] sm:$0xf] %vm303_vm0, %v2452_v45  ;;  %4987 = vmatmul.msk.bf16.vlgmr.msra.gmra.mxu2 %vm721_vm2, %v6892_v61  ;;  %v5439_v4 = vld [vmem:[#allocation2 + $0xa8] sm:$0xff] }
 0x2cc   : > { %2462 = vst.msk [vmem:[#allocation2 + $0xb8] sm:$0xf] %vm303_vm0, %v2460_v46 }
 0x2cd   : > { %3906 = vst.msk [vmem:[#allocation2 + $0xa8] sm:$0xf] %vm303_vm0, %v6957_v35 }
 0x2ce   : > { %2707 = vmatpush.bf16.msra.mxu0 %v5427_v28 }
 0x2cf   : > { %2954 = vrot.lane.b32.xlu2 %v6768_v62, %s5795_s28  ;;  %2950 = vrot.lane.b32.xlu1 %v6768_v62, %s5792_s23  ;;  %v2525_v62 = vunpack.c.h.b16 %v2471_v0 }
 0x2d0   : > { %3256 = vrot.lane.b32.xlu0 %v6809_v14, %s5794_s20 }
 0x2d1   : > { %v2805_v48 = vpop.permute.xlu2 %2804  ;;  %v2464_v36 = vpop.permute.xlu1 %2463  ;;  %v6871_v51 = vld [vmem:[#allocation2 + $0x18] sm:$0xff]  ;;  %v6897_v63 = vpack.c.b16 %v2525_v62, %v2525_v62 }
 0x2d2   : > { %2807 = vst.msk [vmem:[#allocation2 + $0x28] sm:$0xf] %vm303_vm0, %v2805_v48  ;;  %v2770_v50 = vpop.permute.xlu0 %2769  ;;  %2708 = vmatpush.bf16.msra.mxu0 %v5426_v47  ;;  %v5440_v57 = vld [vmem:[#allocation2 + $0xb0] sm:$0xff]  ;;  %v6983_v48 = vld [vmem:[%s5941_s18 + $0x24] sm:$0xf] }
 0x2d3   : > { %2466 = vst.msk [vmem:[#allocation2 + $0xbc] sm:$0xf] %vm303_vm0, %v2464_v36 }
 0x2d4   : > { %2772 = vst.msk [vmem:[#allocation2 + $0x4] sm:$0xf] %vm303_vm0, %v2770_v50 }
 0x2d5   : > { %3281 = vst.msk [vmem:[#allocation2 + $0x1c] sm:$0xf] %vm303_vm0, %v6866_v30  ;;  %2709 = vmatmul.bf16.vlgmr.msra.gmra.mxu0 %v6897_v63 }
 0x2d7   : > { %3264 = vrot.lane.b32.xlu2 %v6809_v14, %s5793_s24  ;;  %3260 = vrot.lane.b32.xlu1 %v6809_v14, %s5797_s12 }
 0x2d8   : > { %3268 = vrot.lane.b32.xlu0 %v6809_v14, %s5796_s8  ;;  %v6928_v11 = vpop.f32.mrf.mxu0 }
 0x2d9   : > { %v2817_v34 = vpop.permute.xlu2 %2816  ;;  %v2774_v56 = vpop.permute.xlu1 %2773 }
 0x2da   : > { %2819 = vst.msk [vmem:[#allocation2 + $0x34] sm:$0xf] %vm303_vm0, %v2817_v34  ;;  %v2782_v58 = vpop.permute.xlu0 %2781  ;;  %v5441_v59 = vld [vmem:[#allocation2 + $0xb8] sm:$0xff] }
 0x2db   : > { %2776 = vst.msk [vmem:[#allocation2 + $0x8] sm:$0xf] %vm303_vm0, %v2774_v56  ;;  %2714 = vmatpush.bf16.msra.mxu1 %v5441_v59  ;;  %v5443_v62 = vld [vmem:[#allocation2] sm:$0xff] }
 0x2dc   : > { %2784 = vst.msk [vmem:[#allocation2 + $0x10] sm:$0xf] %vm303_vm0, %v2782_v58 }
 0x2df   : > { %3372 = vrot.lane.b32.xlu2 %v6824_v25, %s5793_s24  ;;  %3368 = vrot.lane.b32.xlu1 %v6824_v25, %s5797_s12 }
 0x2e0   : > { %3433 = vrot.lane.b32.xlu0 %v6833_v27, %s5796_s8  ;;  %2715 = vmatpush.bf16.msra.mxu1 %v5440_v57  ;;  %v2251_v53 = vpop.f32.mrf.mxu0 }
 0x2e1   : > { %v2832_v1 = vpop.permute.xlu2 %2831  ;;  %v2786_v2 = vpop.permute.xlu1 %2785 }
 0x2e2   : > { %2834 = vst.msk [vmem:[#allocation2 + $0x44] sm:$0xf] %vm303_vm0, %v2832_v1  ;;  %v2797_v3 = vpop.permute.xlu0 %2796  ;;  %v6920_v9 = vpop.f32.mrf.mxu1  ;;  %v5444_v49 = vld [vmem:[#allocation2 + $0x8] sm:$0xff] }
 0x2e3   : > { %2788 = vst.msk [vmem:[#allocation2 + $0x14] sm:$0xf] %vm303_vm0, %v2786_v2  ;;  %v2224_v47 = vadd.f32 %v6920_v9, %v6918_v8 }
 0x2e4   : > { %2799 = vst.msk [vmem:[#allocation2 + $0x20] sm:$0xf] %vm303_vm0, %v2797_v3  ;;  %2716 = vmatpush.bf16.msra.mxu1 %v5439_v4 }
 0x2e7   : > { %3310 = vrot.lane.b32.xlu2 %v6841_v42, %s5794_s20  ;;  %3437 = vrot.lane.b32.xlu1 %v6833_v27, %s5792_s23 }
 0x2e8   : > { %3364 = vrot.lane.b32.xlu0 %v6824_v25, %s5794_s20  ;;  %2717 = vmatpush.bf16.msra.mxu1 %v5438_v60 }
 0x2e9   : > { %v2844_v5 = vpop.permute.xlu2 %2843  ;;  %v2801_v6 = vpop.permute.xlu1 %2800 }
 0x2ea   : > { %2846 = vst.msk [vmem:[#allocation2 + $0x50] sm:$0xf] %vm303_vm0, %v2844_v5  ;;  %v2809_v39 = vpop.permute.xlu0 %2808  ;;  %v2225_v20 = vpop.f32.mrf.mxu1  ;;  %v5445_v50 = vld [vmem:[#allocation2 + $0x10] sm:$0xff] }
 0x2eb   : > { %2803 = vst.msk [vmem:[#allocation2 + $0x24] sm:$0xf] %vm303_vm0, %v2801_v6 }
 0x2ec   : > { %2811 = vst.msk [vmem:[#allocation2 + $0x2c] sm:$0xf] %vm303_vm0, %v2809_v39  ;;  %2718 = vmatpush.bf16.msra.mxu1 %v5437_v7 }
 0x2ef   : > { %3429 = vrot.lane.b32.xlu2 %v6833_v27, %s5793_s24  ;;  %3425 = vrot.lane.b32.xlu1 %v6833_v27, %s5797_s12 }
 0x2f0   : > { %3299 = vrot.lane.b32.xlu0 %v6866_v30, %s5792_s23  ;;  %2719 = vmatpush.bf16.msra.mxu1 %v5436_v10 }
 0x2f1   : > { %v2859_v12 = vpop.permute.xlu2 %2858  ;;  %v2813_v15 = vpop.permute.xlu1 %2812  ;;  %v6937_v19 = vld [vmem:[#allocation2 + $0x50] sm:$0xff] }
 0x2f2   : > { %2861 = vst.msk [vmem:[#allocation2 + $0x60] sm:$0xf] %vm303_vm0, %v2859_v12  ;;  %v2824_v29 = vpop.permute.xlu0 %2823  ;;  %v5447_v44 = vld [vmem:[#allocation2 + $0x20] sm:$0xff] }
 0x2f3   : > { %2815 = vst.msk [vmem:[#allocation2 + $0x30] sm:$0xf] %vm303_vm0, %v2813_v15  ;;  %v5448_v41 = vld [vmem:[#allocation2 + $0x28] sm:$0xff] }
 0x2f4   : > { %2826 = vst.msk [vmem:[#allocation2 + $0x3c] sm:$0xf] %vm303_vm0, %v2824_v29  ;;  %2720 = vmatpush.bf16.msra.mxu1 %v6803_v16 }
 0x2f5   : > { %3335 = vst.msk [vmem:[#allocation2 + $0x54] sm:$0xf] %vm303_vm0, %v6934_v17 }
 0x2f7   : > { %3353 = vrot.lane.b32.xlu2 %v6934_v17, %s5792_s23  ;;  %3303 = vrot.lane.b32.xlu1 %v6866_v30, %s5795_s28 }
 0x2f8   : > { %3357 = vrot.lane.b32.xlu0 %v6934_v17, %s5795_s28  ;;  %2721 = vmatpush.bf16.msra.mxu1 %v5434_v21 }
 0x2f9   : > { %v2871_v26 = vpop.permute.xlu2 %2870  ;;  %v2828_v16 = vpop.permute.xlu1 %2827 }
 0x2fa   : > { %2873 = vst.msk [vmem:[#allocation2 + $0x6c] sm:$0xf] %vm303_vm0, %v2871_v26  ;;  %v2836_v31 = vpop.permute.xlu0 %2835  ;;  %v5449_v33 = vld [vmem:[#allocation2 + $0x30] sm:$0xff] }
 0x2fb   : > { %2830 = vst.msk [vmem:[#allocation2 + $0x40] sm:$0xf] %vm303_vm0, %v2828_v16  ;;  %v5450_v32 = vld [vmem:[#allocation2 + $0x38] sm:$0xff]  ;;  %2722 = vmatmul.bf16.vlgmr.msra.gmra.mxu1 %v6948_v23 }
 0x2fc   : > { %2838 = vst.msk [vmem:[#allocation2 + $0x48] sm:$0xf] %vm303_vm0, %v2836_v31  ;;  %3175 = vmatpush.bf16.msrb.mxu2 %v5450_v32 }
 0x2fd   : > { %3795 = vst.msk [vmem:[#allocation2 + $0x38] sm:$0xf] %vm303_vm0, %v6983_v48 }
 0x2ff   : > { %3291 = vrot.lane.b32.xlu2 %v6866_v30, %s5793_s24  ;;  %3421 = vrot.lane.b32.xlu1 %v6833_v27, %s5794_s20 }
 0x300   : > { %3295 = vrot.lane.b32.xlu0 %v6866_v30, %s5796_s8  ;;  %3176 = vmatpush.bf16.msrb.mxu2 %v5449_v33 }
 0x301   : > { %v2886_v37 = vpop.permute.xlu2 %2885  ;;  %v2840_v38 = vpop.permute.xlu1 %2839 }
 0x302   : > { %2888 = vst.msk [vmem:[#allocation2 + $0x7c] sm:$0xf] %vm303_vm0, %v2886_v37  ;;  %v2851_v40 = vpop.permute.xlu0 %2850 }
 0x303   : > { %2842 = vst.msk [vmem:[#allocation2 + $0x4c] sm:$0xf] %vm303_vm0, %v2840_v38 }
 0x304   : > { %2853 = vst.msk [vmem:[#allocation2 + $0x58] sm:$0xf] %vm303_vm0, %v2851_v40  ;;  %3177 = vmatpush.bf16.msrb.mxu2 %v5448_v41 }
 0x307   : > { %3349 = vrot.lane.b32.xlu2 %v6934_v17, %s5796_s8  ;;  %3345 = vrot.lane.b32.xlu1 %v6934_v17, %s5793_s24 }
 0x308   : > { %3407 = vrot.lane.b32.xlu0 %v6969_v43, %s5792_s23  ;;  %3178 = vmatpush.bf16.msrb.mxu2 %v5447_v44 }
 0x309   : > { %v2898_v45 = vpop.permute.xlu2 %2897  ;;  %v2855_v46 = vpop.permute.xlu1 %2854 }
 0x30a   : > { %2900 = vst.msk [vmem:[#allocation2 + $0x88] sm:$0xf] %vm303_vm0, %v2898_v45  ;;  %v2863_v28 = vpop.permute.xlu0 %2862  ;;  %v5452_v44 = vld [vmem:[#allocation2 + $0x48] sm:$0xff] }
 0x30b   : > { %2857 = vst.msk [vmem:[#allocation2 + $0x5c] sm:$0xf] %vm303_vm0, %v2855_v46  ;;  %v7085_v46 = vld [vmem:[%s5941_s18 + $0x20] sm:$0xf] }
 0x30c   : > { %2865 = vst.msk [vmem:[#allocation2 + $0x64] sm:$0xf] %vm303_vm0, %v2863_v28  ;;  %3179 = vmatpush.bf16.msrb.mxu2 %v6871_v51 }
 0x30e   : > { %v2236_v36 = vpop.f32.mrf.mxu2 }
 0x30f   : > { %3283 = vrot.lane.b32.xlu2 %v6866_v30, %s5794_s20  ;;  %v2237_v0 = vadd.f32 %v2236_v36, %v2224_v47  ;;  %3411 = vrot.lane.b32.xlu1 %v6969_v43, %s5795_s28 }
 0x310   : > { %3287 = vrot.lane.b32.xlu0 %v6866_v30, %s5797_s12  ;;  %3180 = vmatpush.bf16.msrb.mxu2 %v5445_v50  ;;  %v7002_v30 = vld [vmem:[%s5941_s18 + $0x2c] sm:$0xf] }
 0x311   : > { %v2913_v52 = vpop.permute.xlu2 %2912  ;;  %v2250_v51 = vadd.f32 %v6928_v11, %v2237_v0  ;;  %v2867_v55 = vpop.permute.xlu1 %2866  ;;  %v6999_v58 = vld [vmem:[#allocation2 + $0x88] sm:$0xff]  ;;  %3849 = vst.msk [vmem:[#allocation2 + $0x70] sm:$0xf] %vm303_vm0, %v7002_v30 }
 0x312   : > { %2915 = vst.msk [vmem:[#allocation2 + $0x98] sm:$0xf] %vm303_vm0, %v2913_v52  ;;  %v2878_v34 = vpop.permute.xlu0 %2877  ;;  %v5454_v38 = vld [vmem:[#allocation2 + $0x58] sm:$0xff] }
 0x313   : > { %2869 = vst.msk [vmem:[#allocation2 + $0x68] sm:$0xf] %vm303_vm0, %v2867_v55  ;;  %v2253_v56 = vmul.f32 %v2250_v51, %v6162_v24  ;;  %v5455_v32 = vld [vmem:[#allocation2 + $0x60] sm:$0xff] }
 0x314   : > { %2880 = vst.msk [vmem:[#allocation2 + $0x74] sm:$0xf] %vm303_vm0, %v2878_v34  ;;  %3181 = vmatpush.bf16.msrb.mxu2 %v5444_v49 }
 0x315   : > { %3389 = vst.msk [vmem:[#allocation2 + $0x8c] sm:$0xf] %vm303_vm0, %v6969_v43  ;;  %v2254_v59 = vadd.f32 %v2253_v56, %v6154_v22 }
 0x316   : > { %v2238_v57 = vpop.f32.mrf.mxu2 }
 0x317   : > { %3341 = vrot.lane.b32.xlu2 %v6934_v17, %s5797_s12  ;;  %v2255_v1 = vmax.f32 %v2254_v59, 0.0  ;;  %3337 = vrot.lane.b32.xlu1 %v6934_v17, %s5794_s20 }
 0x318   : > { %3920 = vrot.lane.b32.xlu0 %v6957_v35, %s5796_s8  ;;  %3182 = vmatpush.bf16.msrb.mxu2 %v5443_v62 }
 0x319   : > { %v2925_v2 = vpop.permute.xlu2 %2924  ;;  %v2257_v3 = vrot.slane %v2255_v1, 1  ;;  %v2258_v4 = vrot.slane %v2255_v1, 2  ;;  %v2259_v60 = vrot.slane %v2255_v1, 3  ;;  %2271 = vst.msk [vmem:[%s6413_s6 + $0x3] sm:$0x1] %vm809_vm3, %v2255_v1  ;;  %v2882_v5 = vpop.permute.xlu1 %2881  ;;  %v2260_v39 = vrot.slane %v2255_v1, 4 }
 0x31a   : > { %v2890_v6 = vpop.permute.xlu0 %2889  ;;  %2927 = vst.msk [vmem:[#allocation2 + $0xa4] sm:$0xf] %vm303_vm0, %v2925_v2  ;;  %v2261_v7 = vrot.slane %v2255_v1, 5  ;;  %v2262_v8 = vrot.slane %v2255_v1, 6  ;;  %v2263_v9 = vrot.slane %v2255_v1, 7  ;;  %v5456_v21 = vld [vmem:[#allocation2 + $0x68] sm:$0xff] }
 0x31b   : > { %2272 = vst.msk [vmem:[%s6413_s6 + $0xb] sm:$0x1] %vm809_vm3, %v2257_v3  ;;  %3183 = vmatmul.bf16.vlgmr.msrb.gmra.mxu2 %v6877_v54  ;;  %v5457_v18 = vld [vmem:[#allocation2 + $0x70] sm:$0xff]  ;;  %v7116_v1 = vld [vmem:[%s5941_s18 + $0x28] sm:$0xf] }
 0x31c   : > { %2273 = vst.msk [vmem:[%s6413_s6 + $0x13] sm:$0x1] %vm809_vm3, %v2258_v4  ;;  %v7119_v3 = vld [vmem:[%s5941_s18 + $0x30] sm:$0xf] }
 0x31d   : > { %2274 = vst.msk [vmem:[%s6413_s6 + $0x1b] sm:$0x1] %vm809_vm3, %v2259_v60 }
 0x31e   : > { %2275 = vst.msk [vmem:[%s6413_s6 + $0x23] sm:$0x1] %vm809_vm3, %v2260_v39 }
 0x31f   : > { %3399 = vrot.lane.b32.xlu2 %v6969_v43, %s5793_s24  ;;  %2276 = vst.msk [vmem:[%s6413_s6 + $0x2b] sm:$0x1] %vm809_vm3, %v2261_v7  ;;  %3924 = vrot.lane.b32.xlu1 %v6957_v35, %s5792_s23 }
 0x320   : > { %3403 = vrot.lane.b32.xlu0 %v6969_v43, %s5796_s8  ;;  %2277 = vst.msk [vmem:[%s6413_s6 + $0x33] sm:$0x1] %vm809_vm3, %v2262_v8 }
 0x321   : > { %v2943_v54 = vpop.permute.xlu2 %2942  ;;  %2278 = vst.msk [vmem:[%s6413_s6 + $0x3b] sm:$0x1] %vm809_vm3, %v2263_v9  ;;  %v2894_v10 = vpop.permute.xlu1 %2893 }
 0x322   : > { %v2905_v11 = vpop.permute.xlu0 %2904  ;;  %2884 = vst.msk [vmem:[#allocation2 + $0x78] sm:$0xf] %vm303_vm0, %v2882_v5 }
 0x323   : > { %2892 = vst.msk [vmem:[#allocation2 + $0x80] sm:$0xf] %vm303_vm0, %v2890_v6 }
 0x324   : > { %2945 = vst.msk [vmem:[#allocation2 + $0xb4] sm:$0xf] %vm303_vm0, %v2943_v54 }
 0x325   : > { %2896 = vst.msk [vmem:[#allocation2 + $0x84] sm:$0xf] %vm303_vm0, %v2894_v10 }
 0x326   : > { %2907 = vst.msk [vmem:[#allocation2 + $0x90] sm:$0xf] %vm303_vm0, %v2905_v11 }
 0x327   : > { %3330 = vrot.lane.b32.xlu2 %v6841_v42, %s5795_s28  ;;  %3276 = vrot.lane.b32.xlu1 %v6809_v14, %s5795_s28 }
 0x328   : > { %3797 = vrot.lane.b32.xlu0 %v6983_v48, %s5794_s20 }
 0x329   : > { %v2955_v12 = vpop.permute.xlu2 %2954  ;;  %v5458_v15 = vld [vmem:[#allocation2 + $0x78] sm:$0xff]  ;;  %v2909_v29 = vpop.permute.xlu1 %2908 }
 0x32a   : > { %2957 = vst.msk [vmem:[#allocation2 + $0xc0] sm:$0xf] %vm303_vm0, %v2955_v12  ;;  %v2917_v17 = vpop.permute.xlu0 %2916  ;;  %3188 = vmatpush.bf16.msrb.mxu3 %v5458_v15 }
 0x32b   : > { %2911 = vst.msk [vmem:[#allocation2 + $0x94] sm:$0xf] %vm303_vm0, %v2909_v29 }
 0x32c   : > { %2919 = vst.msk [vmem:[#allocation2 + $0x9c] sm:$0xf] %vm303_vm0, %v2917_v17  ;;  %v5459_v10 = vld [vmem:[#allocation2 + $0x80] sm:$0xff] }
 0x32e   : > { %3189 = vmatpush.bf16.msrb.mxu3 %v5457_v18 }
 0x32f   : > { %3859 = vrot.lane.b32.xlu2 %v7002_v30, %s5793_s24  ;;  %3855 = vrot.lane.b32.xlu1 %v7002_v30, %s5797_s12 }
 0x330   : > { %3912 = vrot.lane.b32.xlu0 %v6957_v35, %s5797_s12 }
 0x331   : > { %v3265_v13 = vpop.permute.xlu2 %3264  ;;  %v3008_v20 = vld [vmem:[#allocation2 + $0xc0] sm:$0xf]  ;;  %v2921_v53 = vpop.permute.xlu1 %2920 }
 0x332   : > { %3267 = vst.msk [vmem:[#allocation2 + $0xc] sm:$0xf] %vm303_vm0, %v3265_v13  ;;  %v2935_v26 = vpop.permute.xlu0 %2934  ;;  %v3119_v16 = vunpack.c.l.b16 %v3008_v20  ;;  %3190 = vmatpush.bf16.msrb.mxu3 %v5456_v21  ;;  %v5461_v4 = vld [vmem:[#allocation2 + $0x90] sm:$0xff] }
 0x333   : > { %2923 = vst.msk [vmem:[#allocation2 + $0xa0] sm:$0xf] %vm303_vm0, %v2921_v53  ;;  %v5462_v62 = vld [vmem:[#allocation2 + $0x98] sm:$0xff] }
 0x334   : > { %2937 = vst.msk [vmem:[#allocation2 + $0xac] sm:$0xf] %vm303_vm0, %v2935_v26  ;;  %v3144_v31 = vpack.c.b16 %v3119_v16, %v3119_v16 }
 0x336   : > { %v3173_v33 = vsel %vm725_vm1, %v3144_v31, 0  ;;  %3191 = vmatpush.bf16.msrb.mxu3 %v5455_v32 }
 0x337   : > { %3391 = vrot.lane.b32.xlu2 %v6969_v43, %s5794_s20  ;;  %3221 = vmatpush.bf16.msrb.mxu1 %v3173_v33 }
 0x338   : > { %3916 = vrot.lane.b32.xlu1 %v6957_v35, %s5793_s24  ;;  %3395 = vrot.lane.b32.xlu0 %v6969_v43, %s5797_s12 }
 0x339   : > { %v3373_v37 = vpop.permute.xlu2 %3372  ;;  %v2939_v40 = vpop.permute.xlu1 %2938 }
 0x33a   : > { %3375 = vst.msk [vmem:[#allocation2 + $0x7c] sm:$0xf] %vm303_vm0, %v3373_v37  ;;  %v2947_v41 = vpop.permute.xlu0 %2946  ;;  %5093 = vmatmul.msk.bf16.vlgmr.msrb.gmra.mxu1 %vm721_vm2, %v6892_v61  ;;  %3192 = vmatpush.bf16.msrb.mxu3 %v5454_v38  ;;  %v5463_v34 = vld [vmem:[#allocation2 + $0xa0] sm:$0xff] }
 0x33b   : > { %2941 = vst.msk [vmem:[#allocation2 + $0xb0] sm:$0xf] %vm303_vm0, %v2939_v40 }
 0x33c   : > { %2949 = vst.msk [vmem:[#allocation2 + $0xb8] sm:$0xf] %vm303_vm0, %v2947_v41 }
 0x33e   : > { %3193 = vmatpush.bf16.msrb.mxu3 %v6937_v19  ;;  %v5451_v19 = vld [vmem:[#allocation2 + $0x40] sm:$0xff] }
 0x33f   : > { %3322 = vrot.lane.b32.xlu2 %v6841_v42, %s5796_s8 }
 0x340   : > { %3272 = vrot.lane.b32.xlu1 %v6809_v14, %s5792_s23  ;;  %3326 = vrot.lane.b32.xlu0 %v6841_v42, %s5792_s23 }
 0x341   : > { %v3311_v43 = vpop.permute.xlu2 %3310  ;;  %v2951_v61 = vpop.permute.xlu1 %2950 }
 0x342   : > { %3313 = vst.msk [vmem:[#allocation2 + $0x3c] sm:$0xf] %vm303_vm0, %v3311_v43  ;;  %v3257_v45 = vpop.permute.xlu0 %3256  ;;  %3194 = vmatpush.bf16.msrb.mxu3 %v5452_v44  ;;  %v5465_v28 = vld [vmem:[#allocation2 + $0xb0] sm:$0xff] }
 0x343   : > { %2953 = vst.msk [vmem:[#allocation2 + $0xbc] sm:$0xf] %vm303_vm0, %v2951_v61 }
 0x344   : > { %3259 = vst.msk [vmem:[#allocation2 + $0x4] sm:$0xf] %vm303_vm0, %v3257_v45 }
 0x346   : > { %3195 = vmatpush.bf16.msrb.mxu3 %v5451_v19 }
 0x347   : > { %3790 = vrot.lane.b32.xlu2 %v7085_v46, %s5795_s28 }
 0x348   : > { %3786 = vrot.lane.b32.xlu1 %v7085_v46, %s5792_s23  ;;  %3851 = vrot.lane.b32.xlu0 %v7002_v30, %s5794_s20 }
 0x349   : > { %v3430_v14 = vpop.permute.xlu2 %3429  ;;  %v5475_v47 = vld [vmem:[#allocation2 + $0x38] sm:$0xff]  ;;  %v3261_v36 = vpop.permute.xlu1 %3260  ;;  %3196 = vmatmul.bf16.vlgmr.msrb.gmra.mxu3 %v6897_v63  ;;  %v5464_v63 = vld [vmem:[#allocation2 + $0xa8] sm:$0xff] }
 0x34a   : > { %v3269_v50 = vpop.permute.xlu0 %3268  ;;  %v5466_v0 = vld [vmem:[#allocation2 + $0xb8] sm:$0xff]  ;;  %3432 = vst.msk [vmem:[#allocation2 + $0xb4] sm:$0xf] %vm303_vm0, %v3430_v14  ;;  %3662 = vmatpush.bf16.msra.mxu1 %v5475_v47 }
 0x34b   : > { %3263 = vst.msk [vmem:[#allocation2 + $0x8] sm:$0xf] %vm303_vm0, %v3261_v36  ;;  %3201 = vmatpush.bf16.msrb.mxu0 %v5466_v0 }
 0x34c   : > { %3271 = vst.msk [vmem:[#allocation2 + $0x10] sm:$0xf] %vm303_vm0, %v3269_v50 }
 0x34e   : > { %v2736_v60 = vpop.f32.mrf.mxu2 }
 0x34f   : > { %3384 = vrot.lane.b32.xlu2 %v6824_v25, %s5795_s28  ;;  %3202 = vmatpush.bf16.msrb.mxu0 %v5465_v28 }
 0x350   : > { %3908 = vrot.lane.b32.xlu1 %v6957_v35, %s5794_s20  ;;  %3314 = vrot.lane.b32.xlu0 %v6841_v42, %s5797_s12 }
 0x351   : > { %v3354_v52 = vpop.permute.xlu2 %3353  ;;  %v3369_v51 = vpop.permute.xlu1 %3368 }
 0x352   : > { %3356 = vst.msk [vmem:[#allocation2 + $0x68] sm:$0xf] %vm303_vm0, %v3354_v52  ;;  %v3434_v55 = vpop.permute.xlu0 %3433  ;;  %v2710_v2 = vpop.f32.mrf.mxu0 }
 0x353   : > { %3371 = vst.msk [vmem:[#allocation2 + $0x78] sm:$0xf] %vm303_vm0, %v3369_v51  ;;  %3203 = vmatpush.bf16.msrb.mxu0 %v5464_v63 }
 0x354   : > { %3436 = vst.msk [vmem:[#allocation2 + $0xb8] sm:$0xf] %vm303_vm0, %v3434_v55 }
 0x356   : > { %v2738_v11 = vpop.f32.mrf.mxu2 }
 0x357   : > { %3778 = vrot.lane.b32.xlu2 %v7085_v46, %s5793_s24  ;;  %3204 = vmatpush.bf16.msrb.mxu0 %v5463_v34 }
 0x358   : > { %3318 = vrot.lane.b32.xlu1 %v6841_v42, %s5793_s24  ;;  %3782 = vrot.lane.b32.xlu0 %v7085_v46, %s5796_s8  ;;  %v2697_v42 = vpop.f32.mrf.mxu3 }
 0x359   : > { %v3292_v49 = vpop.permute.xlu2 %3291  ;;  %v3438_v56 = vpop.permute.xlu1 %3437 }
 0x35a   : > { %3294 = vst.msk [vmem:[#allocation2 + $0x28] sm:$0xf] %vm303_vm0, %v3292_v49  ;;  %v3365_v59 = vpop.permute.xlu0 %3364  ;;  %v5483_v57 = vld [vmem:[#allocation2 + $0x78] sm:$0xff]  ;;  %v2712_v54 = vpop.f32.mrf.mxu0 }
 0x35b   : > { %3440 = vst.msk [vmem:[#allocation2 + $0xbc] sm:$0xf] %vm303_vm0, %v3438_v56  ;;  %3205 = vmatpush.bf16.msrb.mxu0 %v5462_v62  ;;  %3675 = vmatpush.bf16.msra.mxu2 %v5483_v57 }
 0x35c   : > { %3367 = vst.msk [vmem:[#allocation2 + $0x74] sm:$0xf] %vm303_vm0, %v3365_v59 }
 0x35f   : > { %3844 = vrot.lane.b32.xlu2 %v7116_v1, %s5795_s28  ;;  %3206 = vmatpush.bf16.msrb.mxu0 %v5461_v4 }
 0x360   : > { %3840 = vrot.lane.b32.xlu1 %v7116_v1, %s5792_s23  ;;  %3894 = vrot.lane.b32.xlu0 %v7119_v3, %s5792_s23  ;;  %v2699_v9 = vpop.f32.mrf.mxu3 }
 0x361   : > { %v3350_v5 = vpop.permute.xlu2 %3349  ;;  %v3426_v6 = vpop.permute.xlu1 %3425 }
 0x362   : > { %3352 = vst.msk [vmem:[#allocation2 + $0x64] sm:$0xf] %vm303_vm0, %v3350_v5  ;;  %v3300_v39 = vpop.permute.xlu0 %3299  ;;  %v5491_v7 = vld [vmem:[#allocation2 + $0xb8] sm:$0xff] }
 0x363   : > { %3428 = vst.msk [vmem:[#allocation2 + $0xb0] sm:$0xf] %vm303_vm0, %v3426_v6  ;;  %v5482_v8 = vld [vmem:[#allocation2 + $0x70] sm:$0xff]  ;;  %3207 = vmatpush.bf16.msrb.mxu0 %v6999_v58  ;;  %3688 = vmatpush.bf16.msra.mxu3 %v5491_v7 }
 0x364   : > { %3302 = vst.msk [vmem:[#allocation2 + $0x30] sm:$0xf] %vm303_vm0, %v3300_v39  ;;  %3676 = vmatpush.bf16.msra.mxu2 %v5482_v8 }
 0x367   : > { %3441 = vrot.lane.b32.xlu2 %v6833_v27, %s5795_s28  ;;  %3208 = vmatpush.bf16.msrb.mxu0 %v5459_v10  ;;  %v7144_v27 = vld [vmem:[%s5941_s18 + $0x1c] sm:$0xf] }
 0x368   : > { %3898 = vrot.lane.b32.xlu1 %v7119_v3, %s5795_s28  ;;  %3376 = vrot.lane.b32.xlu0 %v6824_v25, %s5796_s8  ;;  %3741 = vst.msk [vmem:[#allocation2] sm:$0xf] %vm303_vm0, %v7144_v27 }
 0x369   : > { %v3284_v12 = vpop.permute.xlu2 %3283  ;;  %v3304_v58 = vpop.permute.xlu1 %3303 }
 0x36a   : > { %3286 = vst.msk [vmem:[#allocation2 + $0x20] sm:$0xf] %vm303_vm0, %v3284_v12  ;;  %v3358_v15 = vpop.permute.xlu0 %3357  ;;  %v5490_v29 = vld [vmem:[#allocation2 + $0xb0] sm:$0xff]  ;;  %3209 = vmatmul.bf16.vlgmr.msrb.gmra.mxu0 %v6948_v23 }
 0x36b   : > { %3306 = vst.msk [vmem:[#allocation2 + $0x34] sm:$0xf] %vm303_vm0, %v3304_v58  ;;  %3689 = vmatpush.bf16.msra.mxu3 %v5490_v29 }
 0x36c   : > { %3360 = vst.msk [vmem:[#allocation2 + $0x6c] sm:$0xf] %vm303_vm0, %v3358_v15 }
 0x36f   : > { %3770 = vrot.lane.b32.xlu2 %v7085_v46, %s5794_s20 }
 0x370   : > { %3380 = vrot.lane.b32.xlu1 %v6824_v25, %s5792_s23  ;;  %3774 = vrot.lane.b32.xlu0 %v7085_v46, %s5797_s12  ;;  %v2711_v25 = vadd.f32 %v2710_v2, %v2697_v42 }
 0x371   : > { %v3342_v17 = vpop.permute.xlu2 %3341  ;;  %v3422_v23 = vpop.permute.xlu1 %3421 }
 0x372   : > { %3344 = vst.msk [vmem:[#allocation2 + $0x5c] sm:$0xf] %vm303_vm0, %v3342_v17  ;;  %v3296_v18 = vpop.permute.xlu0 %3295  ;;  %v5474_v13 = vld [vmem:[#allocation2 + $0x30] sm:$0xff] }
 0x373   : > { %3424 = vst.msk [vmem:[#allocation2 + $0xac] sm:$0xf] %vm303_vm0, %v3422_v23  ;;  %v5481_v20 = vld [vmem:[#allocation2 + $0x68] sm:$0xff]  ;;  %3663 = vmatpush.bf16.msra.mxu1 %v5474_v13  ;;  %v5468_v23 = vld [vmem:[#allocation2] sm:$0xff] }
 0x374   : > { %3298 = vst.msk [vmem:[#allocation2 + $0x2c] sm:$0xf] %vm303_vm0, %v3296_v18  ;;  %3677 = vmatpush.bf16.msra.mxu2 %v5481_v20 }
 0x377   : > { %3836 = vrot.lane.b32.xlu2 %v7116_v1, %s5796_s8 }
 0x378   : > { %3832 = vrot.lane.b32.xlu1 %v7116_v1, %s5793_s24  ;;  %3886 = vrot.lane.b32.xlu0 %v7119_v3, %s5793_s24  ;;  %v2723_v21 = vpop.f32.mrf.mxu1 }
 0x379   : > { %v3400_v53 = vpop.permute.xlu2 %3399  ;;  %v2724_v26 = vadd.f32 %v2723_v21, %v2711_v25  ;;  %v3346_v16 = vpop.permute.xlu1 %3345 }
 0x37a   : > { %3402 = vst.msk [vmem:[#allocation2 + $0x98] sm:$0xf] %vm303_vm0, %v3400_v53  ;;  %v3408_v31 = vpop.permute.xlu0 %3407  ;;  %v5489_v32 = vld [vmem:[#allocation2 + $0xa8] sm:$0xff] }
 0x37b   : > { %3348 = vst.msk [vmem:[#allocation2 + $0x60] sm:$0xf] %vm303_vm0, %v3346_v16  ;;  %v5473_v33 = vld [vmem:[#allocation2 + $0x28] sm:$0xff]  ;;  %v2737_v37 = vadd.f32 %v2736_v60, %v2724_v26  ;;  %3690 = vmatpush.bf16.msra.mxu3 %v5489_v32 }
 0x37c   : > { %3410 = vst.msk [vmem:[#allocation2 + $0xa0] sm:$0xf] %vm303_vm0, %v3408_v31  ;;  %3664 = vmatpush.bf16.msra.mxu1 %v5473_v33 }
 0x37d   : > { %v2740_v38 = vmul.f32 %v2737_v37, %v6162_v24 }
 0x37f   : > { %3763 = vrot.lane.b32.xlu2 %v7144_v27, %s5795_s28  ;;  %v2741_v40 = vadd.f32 %v2740_v38, %v6154_v22 }
 0x380   : > { %3890 = vrot.lane.b32.xlu1 %v7119_v3, %s5796_s8  ;;  %3824 = vrot.lane.b32.xlu0 %v7116_v1, %s5794_s20  ;;  %v2725_v43 = vpop.f32.mrf.mxu1 }
 0x381   : > { %v3331_v41 = vpop.permute.xlu2 %3330  ;;  %v2742_v44 = vmax.f32 %v2741_v40, 0.0  ;;  %v3412_v61 = vpop.permute.xlu1 %3411  ;;  %v3445_v43 = vld [vmem:[%s7429_s1] sm:$0xff] }
 0x382   : > { %3333 = vst.msk [vmem:[#allocation2 + $0x50] sm:$0xf] %vm303_vm0, %v3331_v41  ;;  %v3288_v45 = vpop.permute.xlu0 %3287  ;;  %v5480_v19 = vld [vmem:[#allocation2 + $0x60] sm:$0xff] }
 0x383   : > { %3414 = vst.msk [vmem:[#allocation2 + $0xa4] sm:$0xf] %vm303_vm0, %v3412_v61  ;;  %v2744_v14 = vrot.slane %v2742_v44, 1  ;;  %v2745_v28 = vrot.slane %v2742_v44, 2  ;;  %v2746_v47 = vrot.slane %v2742_v44, 3  ;;  %3678 = vmatpush.bf16.msra.mxu2 %v5480_v19  ;;  %v2747_v36 = vrot.slane %v2742_v44, 4 }
 0x384   : > { %2758 = vst.msk [vmem:[%s6413_s6 + $0x4] sm:$0x1] %vm809_vm3, %v2742_v44  ;;  %v2748_v50 = vrot.slane %v2742_v44, 5  ;;  %v2749_v0 = vrot.slane %v2742_v44, 6  ;;  %v2750_v52 = vrot.slane %v2742_v44, 7  ;;  %v3499_v61 = vunpack.c.h.b16 %v3445_v43 }
 0x385   : > { %3290 = vst.msk [vmem:[#allocation2 + $0x24] sm:$0xf] %vm303_vm0, %v3288_v45 }
 0x386   : > { %2759 = vst.msk [vmem:[%s6413_s6 + $0xc] sm:$0x1] %vm809_vm3, %v2744_v14 }
 0x387   : > { %2760 = vst.msk [vmem:[%s6413_s6 + $0x14] sm:$0x1] %vm809_vm3, %v2745_v28  ;;  %3878 = vrot.lane.b32.xlu2 %v7119_v3, %s5794_s20 }
 0x388   : > { %2761 = vst.msk [vmem:[%s6413_s6 + $0x1c] sm:$0x1] %vm809_vm3, %v2746_v47  ;;  %3828 = vrot.lane.b32.xlu1 %v7116_v1, %s5797_s12  ;;  %3882 = vrot.lane.b32.xlu0 %v7119_v3, %s5797_s12 }
 0x389   : > { %2762 = vst.msk [vmem:[%s6413_s6 + $0x24] sm:$0x1] %vm809_vm3, %v2747_v36  ;;  %v3860_v51 = vpop.permute.xlu2 %3859  ;;  %v3338_v55 = vpop.permute.xlu1 %3337  ;;  %v5478_v56 = vld [vmem:[#allocation2 + $0x50] sm:$0xff]  ;;  %v7268_v36 = vpack.c.b16 %v3499_v61, %v3499_v61 }
 0x38a   : > { %2763 = vst.msk [vmem:[%s6413_s6 + $0x2c] sm:$0x1] %vm809_vm3, %v2748_v50  ;;  %v3921_v63 = vpop.permute.xlu0 %3920  ;;  %v5488_v34 = vld [vmem:[#allocation2 + $0xa0] sm:$0xff] }
 0x38b   : > { %2764 = vst.msk [vmem:[%s6413_s6 + $0x34] sm:$0x1] %vm809_vm3, %v2749_v0  ;;  %3691 = vmatpush.bf16.msra.mxu3 %v5488_v34 }
 0x38c   : > { %2765 = vst.msk [vmem:[%s6413_s6 + $0x3c] sm:$0x1] %vm809_vm3, %v2750_v52  ;;  %v5472_v49 = vld [vmem:[#allocation2 + $0x20] sm:$0xff] }
 0x38d   : > { %3862 = vst.msk [vmem:[#allocation2 + $0x7c] sm:$0xf] %vm303_vm0, %v3860_v51  ;;  %3665 = vmatpush.bf16.msra.mxu1 %v5472_v49 }
 0x38e   : > { %3340 = vst.msk [vmem:[#allocation2 + $0x58] sm:$0xf] %vm303_vm0, %v3338_v55  ;;  %v3498_v55 = vunpack.c.l.b16 %v3445_v43 }
 0x38f   : > { %3923 = vst.msk [vmem:[#allocation2 + $0xb8] sm:$0xf] %vm303_vm0, %v3921_v63  ;;  %3759 = vrot.lane.b32.xlu2 %v7144_v27, %s5792_s23 }
 0x390   : > { %3755 = vrot.lane.b32.xlu1 %v7144_v27, %s5796_s8  ;;  %3822 = vst.msk [vmem:[#allocation2 + $0x54] sm:$0xf] %vm303_vm0, %v7116_v1  ;;  %3817 = vrot.lane.b32.xlu0 %v6983_v48, %s5795_s28  ;;  %v7272_v63 = vpack.c.b16 %v3498_v55, %v3498_v55 }
 0x391   : > { %v3392_v59 = vpop.permute.xlu2 %3391  ;;  %v3925_v62 = vpop.permute.xlu1 %3924 }
 0x392   : > { %3394 = vst.msk [vmem:[#allocation2 + $0x90] sm:$0xf] %vm303_vm0, %v3392_v59  ;;  %v3404_v57 = vpop.permute.xlu0 %3403 }
 0x393   : > { %3927 = vst.msk [vmem:[#allocation2 + $0xbc] sm:$0xf] %vm303_vm0, %v3925_v62 }
 0x394   : > { %3406 = vst.msk [vmem:[#allocation2 + $0x9c] sm:$0xf] %vm303_vm0, %v3404_v57 }
 0x395   : > { %v5479_v42 = vld [vmem:[#allocation2 + $0x58] sm:$0xff] }
 0x396   : > { %3679 = vmatpush.bf16.msra.mxu2 %v5479_v42 }
 0x397   : > { %3928 = vrot.lane.b32.xlu2 %v6957_v35, %s5795_s28 }
 0x398   : > { %3871 = vrot.lane.b32.xlu1 %v7002_v30, %s5795_s28  ;;  %3747 = vrot.lane.b32.xlu0 %v7144_v27, %s5797_s12  ;;  %s5307_s28 = sshll.u32 %s5776_s22, 4 }
 0x399   : > { %v3323_v1 = vpop.permute.xlu2 %3322  ;;  %v3277_v2 = vpop.permute.xlu1 %3276 }
 0x39a   : > { %3325 = vst.msk [vmem:[#allocation2 + $0x48] sm:$0xf] %vm303_vm0, %v3323_v1  ;;  %v3798_v4 = vpop.permute.xlu0 %3797  ;;  %3680 = vmatpush.bf16.msra.mxu2 %v5478_v56  ;;  %v5516_v47 = vld [vmem:[#allocation2 + $0xb8] sm:$0xff]  ;;  %v3446_v56 = vld [vmem:[%s7429_s1 + $0x8] sm:$0xff] }
 0x39b   : > { %3279 = vst.msk [vmem:[#allocation2 + $0x18] sm:$0xf] %vm303_vm0, %v3277_v2  ;;  %v5487_v60 = vld [vmem:[#allocation2 + $0x98] sm:$0xff]  ;;  %v3501_v42 = vunpack.c.h.b16 %v3446_v56 }
 0x39c   : > { %3800 = vst.msk [vmem:[#allocation2 + $0x3c] sm:$0xf] %vm303_vm0, %v3798_v4  ;;  %3692 = vmatpush.bf16.msra.mxu3 %v5487_v60 }
 0x39d   : > { %v7280_v1 = vpack.c.b16 %v3501_v42, %v3501_v42 }
 0x39e   : > { %v7255_v20 = vpop.f32.mrf.mxu2 }
 0x39f   : > { %3809 = vrot.lane.b32.xlu2 %v6983_v48, %s5796_s8 }
 0x3a0   : > { %3751 = vrot.lane.b32.xlu1 %v7144_v27, %s5793_s24  ;;  %3813 = vrot.lane.b32.xlu0 %v6983_v48, %s5792_s23 }
 0x3a1   : > { %v3791_v35 = vpop.permute.xlu2 %3790  ;;  %v3856_v5 = vpop.permute.xlu1 %3855 }
 0x3a2   : > { %3793 = vst.msk [vmem:[#allocation2 + $0x34] sm:$0xf] %vm303_vm0, %v3791_v35  ;;  %v5471_v6 = vld [vmem:[#allocation2 + $0x18] sm:$0xff]  ;;  %v3913_v39 = vpop.permute.xlu0 %3912 }
 0x3a3   : > { %3858 = vst.msk [vmem:[#allocation2 + $0x78] sm:$0xf] %vm303_vm0, %v3856_v5  ;;  %3666 = vmatpush.bf16.msra.mxu1 %v5471_v6  ;;  %v5500_v40 = vld [vmem:[#allocation2 + $0x38] sm:$0xff]  ;;  %v3500_v6 = vunpack.c.l.b16 %v3446_v56 }
 0x3a4   : > { %3915 = vst.msk [vmem:[#allocation2 + $0xb0] sm:$0xf] %vm303_vm0, %v3913_v39 }
 0x3a5   : > { %3768 = vst.msk [vmem:[#allocation2 + $0x1c] sm:$0xf] %vm303_vm0, %v7085_v46 }
 0x3a6   : > { %v3186_v37 = vpop.f32.mrf.mxu2 }
 0x3a7   : > { %3867 = vrot.lane.b32.xlu2 %v7002_v30, %s5792_s23  ;;  %s5686_s23 = scalar_lea.hbm %s7432_s4, 256 }
 0x3a8   : > { %3863 = vrot.lane.b32.xlu1 %v7002_v30, %s5796_s8  ;;  %3743 = vrot.lane.b32.xlu0 %v7144_v27, %s5794_s20  ;;  %v5469_v27 = vld [vmem:[#allocation2 + $0x8] sm:$0xff]  ;;  %s4241_s8 = sadd.s32 %s5772_s21, %s5307_s28  ;;  %s4244_s21 = sshll.u32 %s6413_s6, 4  ;;  %s4245_s21 = int_to_ptr.vmem [resolvable:$true] %s4244_s21 }
 0x3a9   : > { %v3385_v7 = vpop.permute.xlu2 %3384 }
 0x3aa   : > { %3387 = vst.msk [vmem:[#allocation2 + $0x88] sm:$0xf] %vm303_vm0, %v3385_v7  ;;  %v3917_v8 = vpop.permute.xlu1 %3916  ;;  %v3396_v9 = vpop.permute.xlu0 %3395  ;;  %v5508_v13 = vld [vmem:[#allocation2 + $0x78] sm:$0xff] }
 0x3ab   : > { %3919 = vst.msk [vmem:[#allocation2 + $0xb4] sm:$0xf] %vm303_vm0, %v3917_v8 }
 0x3ac   : > { %3398 = vst.msk [vmem:[#allocation2 + $0x94] sm:$0xf] %vm303_vm0, %v3396_v9 }
 0x3af   : > { %3805 = vrot.lane.b32.xlu2 %v6983_v48, %s5793_s24 }
 0x3b0   : > { %3801 = vrot.lane.b32.xlu1 %v6983_v48, %s5797_s12  ;;  %s5308_s12 = sshll.u32 %s4241_s8, 3 }
 0x3b1   : > { %v3779_v46 = vpop.permute.xlu2 %3778  ;;  %v5485_v11 = vld [vmem:[#allocation2 + $0x88] sm:$0xff]  ;;  %s4243_s27 = scalar_lea.hbm %s7432_s4, %s5308_s12 }
 0x3b2   : > { %3781 = vst.msk [vmem:[#allocation2 + $0x28] sm:$0xf] %vm303_vm0, %v3779_v46  ;;  %v3273_v30 = vpop.permute.xlu1 %3272  ;;  %v3327_v54 = vpop.permute.xlu0 %3326  ;;  %v5515_v51 = vld [vmem:[#allocation2 + $0xb0] sm:$0xff]  ;;  %s4246_s22 = sshll.u32 %s4243_s27, 4  ;;  %s4247_s22 = int_to_ptr.hbm [resolvable:$true] %s4246_s22 }
 0x3b3   : > { %3275 = vst.msk [vmem:[#allocation2 + $0x14] sm:$0xf] %vm303_vm0, %v3273_v30  ;;  %v5486_v10 = vld [vmem:[#allocation2 + $0x90] sm:$0xff]  ;;  %s5680_s9 = sshra.s32 %s4247_s22, 4  ;;  %s5681_s9 = int_to_ptr.hbm [resolvable:$true] %s5680_s9 }
 0x3b4   : > { %3329 = vst.msk [vmem:[#allocation2 + $0x4c] sm:$0xf] %vm303_vm0, %v3327_v54  ;;  %3693 = vmatpush.bf16.msra.mxu3 %v5486_v10  ;;  %s5682_s26 = scalar_lea.hbm %s5681_s9, 64  ;;  %p5687_p10 = scmp.lt.s32.totalorder %s5681_s9, %s7432_s4 }
 0x3b5   : > { %3876 = vst.msk [vmem:[#allocation2 + $0x8c] sm:$0xf] %vm303_vm0, %v7119_v3  ;;  %p5683_p3 = scmp.ne.s32.totalorder %s5681_s9, %s5682_s26  ;;  %p5688_p11 = scmp.lt.s32.totalorder %s5686_s23, %s5682_s26 }
 0x3b7   : > { %v7260_v33 = vpop.f32.mrf.mxu1  ;;  %p5684_p7 = pnand %p5683_p3, %p5909_p12  ;;  %p5689_p13 = por %p5688_p11, %p5687_p10 }
 0x3b8   : > { %3694 = vmatpush.bf16.msra.mxu3 %v5485_v11  ;;  %v7291_v11 = vpack.c.b16 %v3500_v6, %v3500_v6 }
 0x3b9   : > { %v3845_v12 = vpop.permute.xlu2 %3844  ;;  %p5685_p9 = pneg %p5684_p7 }
 0x3ba   : > { %3847 = vst.msk [vmem:[#allocation2 + $0x6c] sm:$0xf] %vm303_vm0, %v3845_v12  ;;  %v3787_v48 = vpop.permute.xlu1 %3786  ;;  %v5470_v58 = vld [vmem:[#allocation2 + $0x10] sm:$0xff]  ;;  %v3852_v15 = vpop.permute.xlu0 %3851 }
 0x3bb   : > { %3789 = vst.msk [vmem:[#allocation2 + $0x30] sm:$0xf] %vm303_vm0, %v3787_v48  ;;  %v5477_v29 = vld [vmem:[#allocation2 + $0x48] sm:$0xff]  ;;  %3667 = vmatpush.bf16.msra.mxu1 %v5470_v58  ;;  %p5690_p0 = pnand %p5689_p13, %p5685_p9 }
 0x3bc   : > { %3854 = vst.msk [vmem:[#allocation2 + $0x74] sm:$0xf] %vm303_vm0, %v3852_v15  ;;  %3681 = vmatpush.bf16.msra.mxu2 %v5477_v29 }
 0x3bf   : > { %3668 = vmatpush.bf16.msra.mxu1 %v5469_v27  ;;  %v3225_v50 = vpop.f32.mrf.mxu1 }
 0x3c1   : > { %v3442_v17 = vpop.permute.xlu2 %3441 }
 0x3c2   : > { %3444 = vst.msk [vmem:[#allocation2 + $0xc0] sm:$0xf] %vm303_vm0, %v3442_v17  ;;  %v3909_v3 = vpop.permute.xlu1 %3908  ;;  %v3315_v18 = vpop.permute.xlu0 %3314  ;;  %v5499_v14 = vld [vmem:[#allocation2 + $0x30] sm:$0xff] }
 0x3c3   : > { %3911 = vst.msk [vmem:[#allocation2 + $0xac] sm:$0xf] %vm303_vm0, %v3909_v3  ;;  %3669 = vmatpush.bf16.msra.mxu1 %v5468_v23  ;;  %v5507_v25 = vld [vmem:[#allocation2 + $0x70] sm:$0xff] }
 0x3c4   : > { %3317 = vst.msk [vmem:[#allocation2 + $0x40] sm:$0xf] %vm303_vm0, %v3315_v18 }
 0x3c6   : > { %3670 = vmatmul.bf16.vlgmr.msra.gmra.mxu1 %v7272_v63 }
 0x3c7   : > { %4162 = vmatpush.bf16.msrb.mxu1 %v5508_v13 }
 0x3c9   : > { %v3495_v21 = vld [vmem:[#allocation2 + $0xc0] sm:$0xf]  ;;  %v3771_v53 = vpop.permute.xlu2 %3770 }
 0x3ca   : > { %v3319_v26 = vpop.permute.xlu1 %3318  ;;  %v3606_v16 = vunpack.c.l.b16 %v3495_v21  ;;  %3773 = vst.msk [vmem:[#allocation2 + $0x20] sm:$0xf] %vm303_vm0, %v3771_v53  ;;  %v3783_v31 = vpop.permute.xlu0 %3782  ;;  %v5514_v57 = vld [vmem:[#allocation2 + $0xa8] sm:$0xff] }
 0x3cb   : > { %4163 = vmatpush.bf16.msrb.mxu1 %v5507_v25  ;;  %3321 = vst.msk [vmem:[#allocation2 + $0x44] sm:$0xf] %vm303_vm0, %v3319_v26 }
 0x3cc   : > { %3785 = vst.msk [vmem:[#allocation2 + $0x2c] sm:$0xf] %vm303_vm0, %v3783_v31  ;;  %v3631_v32 = vpack.c.b16 %v3606_v16, %v3606_v16  ;;  %v3197_v41 = vpop.f32.mrf.mxu3 }
 0x3cd   : > { %v3198_v5 = vadd.f32 %v3197_v41, %v7255_v20 }
 0x3ce   : > { %v3660_v38 = vsel %vm725_vm1, %v3631_v32, 0 }
 0x3cf   : > { %3708 = vmatpush.bf16.msra.mxu0 %v3660_v38 }
 0x3d1   : > { %v3837_v44 = vpop.permute.xlu2 %3836 }
 0x3d2   : > { %v3841_v45 = vpop.permute.xlu1 %3840  ;;  %v5476_v19 = vld [vmem:[#allocation2 + $0x40] sm:$0xff]  ;;  %3839 = vst.msk [vmem:[#allocation2 + $0x64] sm:$0xf] %vm303_vm0, %v3837_v44  ;;  %v3895_v28 = vpop.permute.xlu0 %3894  ;;  %5199 = vmatmul.msk.bf16.vlgmr.msra.gmra.mxu0 %vm721_vm2, %v7280_v1 }
 0x3d3   : > { %4149 = vmatpush.bf16.msrb.mxu0 %v5500_v40  ;;  %3843 = vst.msk [vmem:[#allocation2 + $0x68] sm:$0xf] %vm303_vm0, %v3841_v45  ;;  %3682 = vmatpush.bf16.msra.mxu2 %v5476_v19  ;;  %v5498_v0 = vld [vmem:[#allocation2 + $0x28] sm:$0xff] }
 0x3d4   : > { %3897 = vst.msk [vmem:[#allocation2 + $0xa0] sm:$0xf] %vm303_vm0, %v3895_v28  ;;  %v3199_v52 = vpop.f32.mrf.mxu3 }
 0x3d6   : > { %3683 = vmatmul.bf16.vlgmr.msra.gmra.mxu2 %v7268_v36 }
 0x3d7   : > { %4150 = vmatpush.bf16.msrb.mxu0 %v5499_v14  ;;  %4175 = vmatpush.bf16.msrb.mxu2 %v5516_v47 }
 0x3d9   : > { %v3764_v59 = vpop.permute.xlu2 %3763 }
 0x3da   : > { %v3899_v34 = vpop.permute.xlu1 %3898  ;;  %v5506_v49 = vld [vmem:[#allocation2 + $0x68] sm:$0xff]  ;;  %v3377_v62 = vpop.permute.xlu0 %3376  ;;  %3766 = vst.msk [vmem:[#allocation2 + $0x18] sm:$0xf] %vm303_vm0, %v3764_v59 }
 0x3db   : > { %4151 = vmatpush.bf16.msrb.mxu0 %v5498_v0  ;;  %4176 = vmatpush.bf16.msrb.mxu2 %v5515_v51  ;;  %3901 = vst.msk [vmem:[#allocation2 + $0xa4] sm:$0xf] %vm303_vm0, %v3899_v34 }
 0x3dc   : > { %3379 = vst.msk [vmem:[#allocation2 + $0x80] sm:$0xf] %vm303_vm0, %v3377_v62  ;;  %4164 = vmatpush.bf16.msrb.mxu1 %v5506_v49 }
 0x3df   : > { %4177 = vmatpush.bf16.msrb.mxu2 %v5514_v57 }
 0x3e1   : > { %v3879_v60 = vpop.permute.xlu2 %3878  ;;  %v5496_v48 = vld [vmem:[#allocation2 + $0x18] sm:$0xff] }
 0x3e2   : > { %v3381_v2 = vpop.permute.xlu1 %3380  ;;  %v5513_v4 = vld [vmem:[#allocation2 + $0xa0] sm:$0xff]  ;;  %v3775_v35 = vpop.permute.xlu0 %3774  ;;  %3881 = vst.msk [vmem:[#allocation2 + $0x90] sm:$0xf] %vm303_vm0, %v3879_v60 }
 0x3e3   : > { %3383 = vst.msk [vmem:[#allocation2 + $0x84] sm:$0xf] %vm303_vm0, %v3381_v2  ;;  %4178 = vmatpush.bf16.msrb.mxu2 %v5513_v4 }
 0x3e4   : > { %3777 = vst.msk [vmem:[#allocation2 + $0x24] sm:$0xf] %vm303_vm0, %v3775_v35 }
 0x3e7   : > { %v3210_v39 = vpop.f32.mrf.mxu0 }
 0x3e8   : > { %v3211_v7 = vadd.f32 %v3210_v39, %v3198_v5 }
 0x3e9   : > { %v3760_v46 = vpop.permute.xlu2 %3759 }
 0x3ea   : > { %v3833_v8 = vpop.permute.xlu1 %3832  ;;  %v5484_v9 = vld [vmem:[#allocation2 + $0x80] sm:$0xff]  ;;  %v3887_v30 = vpop.permute.xlu0 %3886  ;;  %v3224_v54 = vadd.f32 %v7260_v33, %v3211_v7  ;;  %3762 = vst.msk [vmem:[#allocation2 + $0x14] sm:$0xf] %vm303_vm0, %v3760_v46 }
 0x3eb   : > { %3835 = vst.msk [vmem:[#allocation2 + $0x60] sm:$0xf] %vm303_vm0, %v3833_v8  ;;  %v5497_v10 = vld [vmem:[#allocation2 + $0x20] sm:$0xff]  ;;  %3695 = vmatpush.bf16.msra.mxu3 %v5484_v9 }
 0x3ec   : > { %3889 = vst.msk [vmem:[#allocation2 + $0x98] sm:$0xf] %vm303_vm0, %v3887_v30  ;;  %v3227_v12 = vmul.f32 %v3224_v54, %v6162_v24  ;;  %4152 = vmatpush.bf16.msrb.mxu0 %v5497_v10 }
 0x3ee   : > { %v3228_v58 = vadd.f32 %v3227_v12, %v6154_v22  ;;  %3696 = vmatmul.bf16.vlgmr.msra.gmra.mxu3 %v7291_v11 }
 0x3ef   : > { %v3212_v15 = vpop.f32.mrf.mxu0 }
 0x3f0   : > { %v3229_v29 = vmax.f32 %v3228_v58, 0.0  ;;  %4153 = vmatpush.bf16.msrb.mxu0 %v5496_v48 }
 0x3f1   : > { %v3929_v3 = vpop.permute.xlu2 %3928 }
 0x3f2   : > { %v3891_v27 = vpop.permute.xlu1 %3890  ;;  %v5505_v17 = vld [vmem:[#allocation2 + $0x60] sm:$0xff]  ;;  %v3231_v23 = vrot.slane %v3229_v29, 1  ;;  %v3232_v18 = vrot.slane %v3229_v29, 2  ;;  %v3233_v13 = vrot.slane %v3229_v29, 3  ;;  %3245 = vst.msk [vmem:[%s6413_s6 + $0x5] sm:$0x1] %vm809_vm3, %v3229_v29  ;;  %v3825_v20 = vpop.permute.xlu0 %3824 }
 0x3f3   : > { %v3234_v25 = vrot.slane %v3229_v29, 4  ;;  %3893 = vst.msk [vmem:[#allocation2 + $0x9c] sm:$0xf] %vm303_vm0, %v3891_v27  ;;  %4165 = vmatpush.bf16.msrb.mxu1 %v5505_v17  ;;  %v3235_v21 = vrot.slane %v3229_v29, 5  ;;  %v3236_v53 = vrot.slane %v3229_v29, 6  ;;  %v3237_v26 = vrot.slane %v3229_v29, 7 }
 0x3f4   : > { %3246 = vst.msk [vmem:[%s6413_s6 + $0xd] sm:$0x1] %vm809_vm3, %v3231_v23 }
 0x3f5   : > { %3247 = vst.msk [vmem:[%s6413_s6 + $0x15] sm:$0x1] %vm809_vm3, %v3232_v18 }
 0x3f6   : > { %3248 = vst.msk [vmem:[%s6413_s6 + $0x1d] sm:$0x1] %vm809_vm3, %v3233_v13 }
 0x3f7   : > { %3249 = vst.msk [vmem:[%s6413_s6 + $0x25] sm:$0x1] %vm809_vm3, %v3234_v25 }
 0x3f8   : > { %3250 = vst.msk [vmem:[%s6413_s6 + $0x2d] sm:$0x1] %vm809_vm3, %v3235_v21 }
 0x3f9   : > { %3251 = vst.msk [vmem:[%s6413_s6 + $0x35] sm:$0x1] %vm809_vm3, %v3236_v53  ;;  %v3810_v31 = vpop.permute.xlu2 %3809 }
 0x3fa   : > { %v3829_v16 = vpop.permute.xlu1 %3828  ;;  %3252 = vst.msk [vmem:[%s6413_s6 + $0x3d] sm:$0x1] %vm809_vm3, %v3237_v26  ;;  %v3883_v32 = vpop.permute.xlu0 %3882  ;;  %v5512_v33 = vld [vmem:[#allocation2 + $0x98] sm:$0xff] }
 0x3fb   : > { %3827 = vst.msk [vmem:[#allocation2 + $0x58] sm:$0xf] %vm303_vm0, %v3825_v20  ;;  %4179 = vmatpush.bf16.msrb.mxu2 %v5512_v33 }
 0x3fc   : > { %3831 = vst.msk [vmem:[#allocation2 + $0x5c] sm:$0xf] %vm303_vm0, %v3829_v16 }
 0x3fd   : > { %3885 = vst.msk [vmem:[#allocation2 + $0x94] sm:$0xf] %vm303_vm0, %v3883_v32 }
 0x3fe   : > { %3931 = vst.msk [vmem:[#allocation2 + $0xc0] sm:$0xf] %vm303_vm0, %v3929_v3 }
 0x3ff   : > { %3812 = vst.msk [vmem:[#allocation2 + $0x48] sm:$0xf] %vm303_vm0, %v3810_v31 }
 0x401   : > { %v3868_v38 = vpop.permute.xlu2 %3867 }
 0x402   : > { %v3756_v37 = vpop.permute.xlu1 %3755  ;;  %v3818_v40 = vpop.permute.xlu0 %3817  ;;  %3870 = vst.msk [vmem:[#allocation2 + $0x84] sm:$0xf] %vm303_vm0, %v3868_v38 }
 0x403   : > { %3758 = vst.msk [vmem:[#allocation2 + $0x10] sm:$0xf] %vm303_vm0, %v3756_v37  ;;  %v5504_v41 = vld [vmem:[#allocation2 + $0x58] sm:$0xff] }
 0x404   : > { %3820 = vst.msk [vmem:[#allocation2 + $0x50] sm:$0xf] %vm303_vm0, %v3818_v40  ;;  %v5511_v43 = vld [vmem:[#allocation2 + $0x90] sm:$0xff]  ;;  %4166 = vmatpush.bf16.msrb.mxu1 %v5504_v41 }
 0x405   : > { %v3982_v44 = vld [vmem:[#allocation2 + $0xc0] sm:$0xf]  ;;  %4180 = vmatpush.bf16.msrb.mxu2 %v5511_v43 }
 0x406   : > { %v4093_v61 = vunpack.c.l.b16 %v3982_v44 }
 0x408   : > { %v4118_v45 = vpack.c.b16 %v4093_v61, %v4093_v61 }
 0x409   : > { %v3806_v28 = vpop.permute.xlu2 %3805 }
 0x40a   : > { %v3872_v19 = vpop.permute.xlu1 %3871  ;;  %v5495_v14 = vld [vmem:[#allocation2 + $0x10] sm:$0xff]  ;;  %v3748_v47 = vpop.permute.xlu0 %3747  ;;  %v4147_v0 = vsel %vm725_vm1, %v4118_v45, 0  ;;  %3808 = vst.msk [vmem:[#allocation2 + $0x44] sm:$0xf] %vm303_vm0, %v3806_v28 }
 0x40b   : > { %3874 = vst.msk [vmem:[#allocation2 + $0x88] sm:$0xf] %vm303_vm0, %v3872_v19  ;;  %v5503_v50 = vld [vmem:[#allocation2 + $0x50] sm:$0xff]  ;;  %4154 = vmatpush.bf16.msrb.mxu0 %v5495_v14  ;;  %4195 = vmatpush.bf16.msrb.mxu3 %v4147_v0 }
 0x40c   : > { %3750 = vst.msk [vmem:[#allocation2 + $0x8] sm:$0xf] %vm303_vm0, %v3748_v47  ;;  %4167 = vmatpush.bf16.msrb.mxu1 %v5503_v50 }
 0x40e   : > { %5305 = vmatmul.msk.bf16.vlgmr.msrb.gmra.mxu3 %vm721_vm2, %v7280_v1 }
 0x412   : > { %v3752_v52 = vpop.permute.xlu1 %3751  ;;  %v5510_v51 = vld [vmem:[#allocation2 + $0x88] sm:$0xff]  ;;  %v3814_v55 = vpop.permute.xlu0 %3813 }
 0x413   : > { %3754 = vst.msk [vmem:[#allocation2 + $0xc] sm:$0xf] %vm303_vm0, %v3752_v52  ;;  %4181 = vmatpush.bf16.msrb.mxu2 %v5510_v51 }
 0x414   : > { %3816 = vst.msk [vmem:[#allocation2 + $0x4c] sm:$0xf] %vm303_vm0, %v3814_v55 }
 0x41a   : > { %v3864_v34 = vpop.permute.xlu1 %3863  ;;  %v5494_v49 = vld [vmem:[#allocation2 + $0x8] sm:$0xff]  ;;  %v3744_v56 = vpop.permute.xlu0 %3743 }
 0x41b   : > { %3866 = vst.msk [vmem:[#allocation2 + $0x80] sm:$0xf] %vm303_vm0, %v3864_v34  ;;  %v5502_v59 = vld [vmem:[#allocation2 + $0x48] sm:$0xff]  ;;  %4155 = vmatpush.bf16.msrb.mxu0 %v5494_v49 }
 0x41c   : > { %3746 = vst.msk [vmem:[#allocation2 + $0x4] sm:$0xf] %vm303_vm0, %v3744_v56  ;;  %4168 = vmatpush.bf16.msrb.mxu1 %v5502_v59 }
 0x422   : > { %v3802_v62 = vpop.permute.xlu1 %3801  ;;  %v5509_v57 = vld [vmem:[#allocation2 + $0x80] sm:$0xff] }
 0x423   : > { %3804 = vst.msk [vmem:[#allocation2 + $0x40] sm:$0xf] %vm303_vm0, %v3802_v62  ;;  %v5493_v42 = vld [vmem:[#allocation2] sm:$0xff]  ;;  %4182 = vmatpush.bf16.msrb.mxu2 %v5509_v57 }
 0x424   : > { %4156 = vmatpush.bf16.msrb.mxu0 %v5493_v42 }
 0x426   : > { %4183 = vmatmul.bf16.vlgmr.msrb.gmra.mxu2 %v7291_v11 }
 0x427   : > { %4157 = vmatmul.bf16.vlgmr.msrb.gmra.mxu0 %v7272_v63 }
 0x42a   : > { %v5501_v1 = vld [vmem:[#allocation2 + $0x40] sm:$0xff] }
 0x42b   : > { %4169 = vmatpush.bf16.msrb.mxu1 %v5501_v1 }
 0x42e   : > { %4170 = vmatmul.bf16.vlgmr.msrb.gmra.mxu1 %v7268_v36 }
 0x443   : > { %v3671_v2 = vpop.f32.mrf.mxu1 }
 0x44b   : > { %v3673_v35 = vpop.f32.mrf.mxu1 }
 0x44f   : > { %v3710_v60 = vpop.f32.mrf.mxu0 }
 0x457   : > { %v3712_v6 = vpop.f32.mrf.mxu0 }
 0x459   : > { %v3684_v4 = vpop.f32.mrf.mxu2 }
 0x45a   : > { %v3685_v39 = vadd.f32 %v3684_v4, %v3671_v2 }
 0x461   : > { %v3686_v5 = vpop.f32.mrf.mxu2 }
 0x471   : > { %v3697_v7 = vpop.f32.mrf.mxu3 }
 0x472   : > { %v3698_v8 = vadd.f32 %v3697_v7, %v3685_v39 }
 0x474   : > { %v3711_v9 = vadd.f32 %v3710_v60, %v3698_v8 }
 0x476   : > { %v3714_v63 = vmul.f32 %v3711_v9, %v6162_v24 }
 0x478   : > { %v3715_v36 = vadd.f32 %v3714_v63, %v6154_v22 }
 0x479   : > { %v3699_v46 = vpop.f32.mrf.mxu3 }
 0x47a   : > { %v3716_v30 = vmax.f32 %v3715_v36, 0.0 }
 0x47c   : > { %v3718_v54 = vrot.slane %v3716_v30, 1  ;;  %v3719_v10 = vrot.slane %v3716_v30, 2  ;;  %v3720_v11 = vrot.slane %v3716_v30, 3  ;;  %3732 = vst.msk [vmem:[%s6413_s6 + $0x6] sm:$0x1] %vm809_vm3, %v3716_v30  ;;  %v3721_v12 = vrot.slane %v3716_v30, 4 }
 0x47d   : > { %v3722_v48 = vrot.slane %v3716_v30, 5  ;;  %v3723_v58 = vrot.slane %v3716_v30, 6  ;;  %v3724_v15 = vrot.slane %v3716_v30, 7 }
 0x47e   : > { %3733 = vst.msk [vmem:[%s6413_s6 + $0xe] sm:$0x1] %vm809_vm3, %v3718_v54 }
 0x47f   : > { %3734 = vst.msk [vmem:[%s6413_s6 + $0x16] sm:$0x1] %vm809_vm3, %v3719_v10 }
 0x480   : > { %3735 = vst.msk [vmem:[%s6413_s6 + $0x1e] sm:$0x1] %vm809_vm3, %v3720_v11 }
 0x481   : > { %3736 = vst.msk [vmem:[%s6413_s6 + $0x26] sm:$0x1] %vm809_vm3, %v3721_v12 }
 0x482   : > { %3737 = vst.msk [vmem:[%s6413_s6 + $0x2e] sm:$0x1] %vm809_vm3, %v3722_v48 }
 0x483   : > { %3738 = vst.msk [vmem:[%s6413_s6 + $0x36] sm:$0x1] %vm809_vm3, %v3723_v58 }
 0x484   : > { %3739 = vst.msk [vmem:[%s6413_s6 + $0x3e] sm:$0x1] %vm809_vm3, %v3724_v15 }
 0x491   : > { %v4197_v29 = vpop.f32.mrf.mxu3 }
 0x499   : > { %v4199_v27 = vpop.f32.mrf.mxu3 }
 0x4a4   : > { %v4158_v17 = vpop.f32.mrf.mxu0 }
 0x4a9   : > { %v4184_v3 = vpop.f32.mrf.mxu2 }
 0x4ab   : > { %v4171_v23 = vpop.f32.mrf.mxu1 }
 0x4ac   : > { %v4160_v18 = vpop.f32.mrf.mxu0  ;;  %v4172_v13 = vadd.f32 %v4171_v23, %v4158_v17 }
 0x4ae   : > { %v4185_v20 = vadd.f32 %v4184_v3, %v4172_v13 }
 0x4b0   : > { %v4198_v25 = vadd.f32 %v4197_v29, %v4185_v20 }
 0x4b1   : > { %v4186_v21 = vpop.f32.mrf.mxu2 }
 0x4b2   : > { %v4201_v53 = vmul.f32 %v4198_v25, %v6162_v24 }
 0x4b3   : > { %v4173_v26 = vpop.f32.mrf.mxu1 }
 0x4b4   : > { %v4202_v16 = vadd.f32 %v4201_v53, %v6154_v22 }
 0x4b6   : > { %v4203_v31 = vmax.f32 %v4202_v16, 0.0 }
 0x4b8   : > { %v4205_v32 = vrot.slane %v4203_v31, 1  ;;  %v4206_v33 = vrot.slane %v4203_v31, 2  ;;  %v4207_v37 = vrot.slane %v4203_v31, 3  ;;  %4219 = vst.msk [vmem:[%s6413_s6 + $0x7] sm:$0x1] %vm809_vm3, %v4203_v31  ;;  %v4208_v24 = vrot.slane %v4203_v31, 4 }
 0x4b9   : > { %v4209_v22 = vrot.slane %v4203_v31, 5  ;;  %v4210_v38 = vrot.slane %v4203_v31, 6  ;;  %v4211_v40 = vrot.slane %v4203_v31, 7 }
 0x4ba   : > { %4220 = vst.msk [vmem:[%s6413_s6 + $0xf] sm:$0x1] %vm809_vm3, %v4205_v32 }
 0x4bb   : > { %4221 = vst.msk [vmem:[%s6413_s6 + $0x17] sm:$0x1] %vm809_vm3, %v4206_v33 }
 0x4bc   : > { %4222 = vst.msk [vmem:[%s6413_s6 + $0x1f] sm:$0x1] %vm809_vm3, %v4207_v37 }
 0x4bd   : > { %4223 = vst.msk [vmem:[%s6413_s6 + $0x27] sm:$0x1] %vm809_vm3, %v4208_v24 }
 0x4be   : > { %4224 = vst.msk [vmem:[%s6413_s6 + $0x2f] sm:$0x1] %vm809_vm3, %v4209_v22 }
 0x4bf   : > { %4225 = vst.msk [vmem:[%s6413_s6 + $0x37] sm:$0x1] %vm809_vm3, %v4210_v38 }
 0x4c0   : > { %4226 = vst.msk [vmem:[%s6413_s6 + $0x3f] sm:$0x1] %vm809_vm3, %v4211_v40 }
 0x4c1   : > { %5693 = shalt.err (!%p5690_p0)
}
 0x4c2   : > { %s5799_s29 = smov 128   ;;  %s5800_s6 = smov 256  }
 0x4c3   : > { %s5801_s28 = smov 8  }
 0x4c4   : > { %5522 = dma.vmem_to_hbm [thread:$0]  (%p5909_p12), %s4245_s21, 1024, %s4247_s22, %s4228_s5, %s5799_s29, %s5800_s6, %s5801_s28  }
 0x4c5 PF: > { %p5533_p1 = scmp.ge.s32.totalorder %s5788_s25, 2  ;;  %s4261_s8 = sand.u32 1, %s5748_s15  }
 0x4c6   : > { %s4262_s12 = scalar_lea.sflag [#allocation5], %s4261_s8 }
 0x4c7   : > { %p5529_p4 = pnand %p5533_p1, %p5922_p2 }
 0x4c9   : > { %p5530_p5 = pneg %p5529_p4 }
 0x4cb   : > { %5743 = dma.done.wait (%p5530_p5), %s4262_s12, 1024  }
 0x4cc   : > { %5745 = vsyncadd (%p5530_p5), %s4262_s12, 4294966272  ;;  %s20_s25 = sadd.s32 1, %s5788_s25   ;;  %s7448_s11 = sld [smem:[#allocation9_spill]] }
 0x4cd   : > { %p17_p6 = scmp.ge.s32.totalorder %s20_s25, 6   ;;  %s7449_s20 = sld [smem:[#allocation14_spill]] }
 0x4ce   : > { %s7450_s21 = sld [smem:[#allocation10_spill]]  ;;  %s7454_s15 = smov %s5752_s16 }
 0x4cf   : > { %s7451_s22 = sld [smem:[#allocation11_spill]]  ;;  %s7455_s16 = smov %s5756_s17 }
 0x4d0   : > { %s7452_s23 = sld [smem:[#allocation12_spill]]  ;;  %s7456_s17 = smov %s5917_s13 }
 0x4d1   : > { %s7453_s24 = sld [smem:[#allocation13_spill]]  ;;  %s7457_s18 = smov %s5764_s19 }
 0x4d2   : > { %s7458_s19 = smov %s7448_s11  ;;  %19 = sbr.rel (!%p17_p6) target bundleno = 9 (0x9), region = 104 }
 0x4d7   :  { %4268 = vsyncpa [#allocation4], 1 }
 0x4d8   :  { %4270 = vsyncpa [#allocation4 + $0x1], 1 }
 0x4d9   :  { %4271 = vsyncpa [#allocation5], 1 }
 0x4da   :  { %4273 = vsyncpa [#allocation5 + $0x1], 1 }

</bundles_post_ra>
